<compile_context>
chip_gen: v5e
topology: v5e:2x2
jax: 0.10.0
libtpu: 0.0.40
codegen_flags: <defaults>
</compile_context>

<pallas_src>
import functools

import jax
import jax.numpy as jnp
import numpy as np
from jax import lax
from jax.experimental import pallas as pl
from jax.experimental.pallas import tpu as pltpu

EPS = 1e-5


# ---------------------------------------------------------------------------
# Fused kernel
# ---------------------------------------------------------------------------
def _downconv_kernel(x_ref, w1_ref, w2_ref, cmask_ref, p_ref,
                     out_ref, before_ref,
                     s1, s2, pool_s, *, H, W, d, pad):
    """One batch element per grid step.

    x_ref      : (1, H*W, Cin)      bf16, flattened NHWC image
    w1_ref     : (9, Cin, Cout)     bf16 conv taps
    w2_ref     : (9, Cout, Cout)    bf16 conv taps
    cmask_ref  : (3, H*W, 1)        bf16 0/1 column-validity masks (per kx)
    p_ref      : (8, Cout)          f32 rows: scale1, shift1, a1, scale2,
                                              shift2, a2, a3, <pad>
    out_ref    : (1, Cout, Ho*Wo)   f32 (channel-major -> NCHW)
    before_ref : (1, Cout, H*W)     f32 (channel-major -> NCHW)
    s1, s2     : (2*pad + H*W, C)   bf16 slack-padded flat activations
    pool_s     : (Ho, W, Cout)      f32 row-pair-max scratch
    """
    HW = H * W
    Ho, Wo = H // 2, W // 2
    Cout = w2_ref.shape[-1]

    # Column masks hoisted once (don't re-broadcast inside the tap loops).
    m_lo = cmask_ref[0]          # valid when x - d >= 0
    m_hi = cmask_ref[2]          # valid when x + d <  W

    def conv3x3(src, w_ref):
        """3x3 dilated conv, zero padding = d, on the flat (H*W, C) layout.

        The source scratch has `pad` zeroed slack rows on each side, so a tap
        shift of (oy, ox) is just a flat read at offset pad + oy*W + ox; the
        column mask kills the contributions that wrap across image rows.
        """
        # TODO(synk): for larger channel counts, build a (H*W, 9*C) im2col slab
        # and do a single K=9*C matmul instead of 9 small-K matmuls.
        co = w_ref.shape[-1]
        acc = jnp.zeros((HW, co), jnp.float32)
        for ky in range(3):
            for kx in range(3):
                delta = (ky - 1) * d * W + (kx - 1) * d
                win = src[pl.ds(pad + delta, HW), :]          # (HW, Cin) bf16
                if kx == 0:
                    win = win * m_lo
                elif kx == 2:
                    win = win * m_hi
                acc = acc + jnp.dot(win, w_ref[ky * 3 + kx],
                                    preferred_element_type=jnp.float32)
        return acc

    # ---- stage 0: zero-padded flat copy of the input (halo built in VMEM) ----
    s1[...] = jnp.zeros_like(s1)
    s1[pl.ds(pad, HW), :] = x_ref[0]

    # ---- stage 1: conv1 + BN1 (folded) + PReLU1 ----
    y = conv3x3(s1, w1_ref)
    y = y * p_ref[0:1, :] + p_ref[1:2, :]
    y = jnp.where(y > 0.0, y, p_ref[2:3, :] * y)

    # ---- handoff stays resident in VMEM (no HBM round trip) ----
    s2[...] = jnp.zeros_like(s2)
    s2[pl.ds(pad, HW), :] = y.astype(s2.dtype)

    # ---- stage 2: conv2 + BN2 (folded) + PReLU2 ----
    y = conv3x3(s2, w2_ref)
    y = y * p_ref[3:4, :] + p_ref[4:5, :]
    y = jnp.where(y > 0.0, y, p_ref[5:6, :] * y)

    # Lane-dense channel-major store -> NCHW "before_down" with no host transpose.
    before_ref[0] = y.T

    # ---- 2x2 / stride-2 max-pool + PReLU3 ----
    t = y.reshape(Ho, 2, W, Cout)                 # pure relabel (W % 8 == 0)
    pool_s[...] = jnp.maximum(t[:, 0], t[:, 1])   # pair-max over rows
    pooled = jnp.maximum(pool_s[:, pl.ds(0, Wo, stride=2), :],
                         pool_s[:, pl.ds(1, Wo, stride=2), :])   # pair-max over cols
    pooled = pooled.reshape(Ho * Wo, Cout)
    pooled = jnp.where(pooled > 0.0, pooled, p_ref[6:7, :] * pooled)
    out_ref[0] = pooled.T                          # lane-dense (Cout, Ho*Wo)


# ---------------------------------------------------------------------------
# Wrapper
# ---------------------------------------------------------------------------
def _fold_bn(b, gamma, beta, mean, var):
    scale = gamma / jnp.sqrt(var + EPS)
    shift = beta + (b - mean) * scale
    return scale, shift


def _col_masks(H, W, d):
    """0/1 masks (3, H*W, 1): validity of column x + (kx-1)*d for kx=0,1,2."""
    xs = np.tile(np.arange(W), H)
    m = np.zeros((3, H * W, 1), np.float32)
    for kx in range(3):
        ox = (kx - 1) * d
        m[kx, :, 0] = ((xs + ox >= 0) & (xs + ox < W)).astype(np.float32)
    return m


def downconv_forward(x_nchw, params, dilation=1):
    """DownConv forward. Input NCHW; returns (out_NCHW, before_down_NCHW)."""
    N, Cin, H, W = x_nchw.shape
    Cout = params["w1"].shape[-1]
    d = int(dilation)
    # Pooling needs even H/W; the in-kernel relabel reshapes need W, W//2 to be
    # sublane multiples.
    assert H % 2 == 0 and W % 16 == 0, "kernel assumes even H and W % 16 == 0"
    HW = H * W
    Ho, Wo = H // 2, W // 2
    pad = ((d * (W + 1) + 7) // 8) * 8     # flat halo slack, sublane aligned

    p = params
    scale1, shift1 = _fold_bn(p["b1"], p["g1"], p["be1"], p["m1"], p["v1"])
    scale2, shift2 = _fold_bn(p["b2"], p["g2"], p["be2"], p["m2"], p["v2"])
    pvec = jnp.stack([scale1, shift1, p["a1"], scale2, shift2, p["a2"],
                      p["a3"], jnp.zeros_like(p["a3"])]).astype(jnp.float32)

    # bf16 MXU inputs (f32 accumulation happens in-kernel).
    x_in = jnp.transpose(x_nchw, (0, 2, 3, 1)).reshape(N, HW, Cin)
    x_in = x_in.astype(jnp.bfloat16)
    w1 = p["w1"].reshape(9, Cin, Cout).astype(jnp.bfloat16)
    w2 = p["w2"].reshape(9, Cout, Cout).astype(jnp.bfloat16)
    cmask = jnp.asarray(_col_masks(H, W, d), jnp.bfloat16)

    # TODO(synk): for large H/W (and v7x's 64 MiB VMEM / 2 TensorCores) add a
    # row-tiled spatial grid axis with a d-row halo; one whole image per grid
    # step is plenty at these sizes and keeps the index maps trivial.
    kernel = functools.partial(_downconv_kernel, H=H, W=W, d=d, pad=pad)
    out_flat, before_flat = pl.pallas_call(
        kernel,
        out_shape=(jax.ShapeDtypeStruct((N, Cout, Ho * Wo), jnp.float32),
                   jax.ShapeDtypeStruct((N, Cout, HW), jnp.float32)),
        grid=(N,),
        in_specs=[
            pl.BlockSpec((1, HW, Cin), lambda n: (n, 0, 0)),
            pl.BlockSpec((9, Cin, Cout), lambda n: (0, 0, 0)),
            pl.BlockSpec((9, Cout, Cout), lambda n: (0, 0, 0)),
            pl.BlockSpec((3, HW, 1), lambda n: (0, 0, 0)),
            pl.BlockSpec((8, Cout), lambda n: (0, 0)),
        ],
        out_specs=(
            pl.BlockSpec((1, Cout, Ho * Wo), lambda n: (n, 0, 0)),
            pl.BlockSpec((1, Cout, HW), lambda n: (n, 0, 0)),
        ),
        scratch_shapes=[
            pltpu.VMEM((2 * pad + HW, Cin), jnp.bfloat16),    # padded input
            pltpu.VMEM((2 * pad + HW, Cout), jnp.bfloat16),   # padded stage-1 act
            pltpu.VMEM((Ho, W, Cout), jnp.float32),           # pool scratch
        ],
        compiler_params=pltpu.CompilerParams(
            dimension_semantics=("parallel",)),
    )(x_in, w1, w2, cmask, pvec)

    # Outputs are already channel-major: just split the flat spatial dim (NCHW).
    out = out_flat.reshape(N, Cout, Ho, Wo)
    before = before_flat.reshape(N, Cout, H, W)
    return out, before


# ---------------------------------------------------------------------------
# Pure-JAX reference (for validation; full f32 / highest precision)
# ---------------------------------------------------------------------------
def _ref_downconv(x_nchw, p, d):
    x = jnp.transpose(x_nchw, (0, 2, 3, 1)).astype(jnp.float32)

    def block(x, w, b, g, be, m, v, a):
        y = lax.conv_general_dilated(
            x, w, (1, 1), [(d, d), (d, d)], rhs_dilation=(d, d),
            dimension_numbers=("NHWC", "HWIO", "NHWC"), precision="highest")
        y = y + b
        y = (y - m) * (g / jnp.sqrt(v + EPS)) + be
        return jnp.where(y > 0, y, a * y)

    h = block(x, p["w1"], p["b1"], p["g1"], p["be1"], p["m1"], p["v1"], p["a1"])
    before = block(h, p["w2"], p["b2"], p["g2"], p["be2"], p["m2"], p["v2"],
                   p["a2"])
    pooled = lax.reduce_window(before, -jnp.inf, lax.max,
                               (1, 2, 2, 1), (1, 2, 2, 1), "VALID")
    out = jnp.where(pooled > 0, pooled, p["a3"] * pooled)
    return (jnp.transpose(out, (0, 3, 1, 2)),
            jnp.transpose(before, (0, 3, 1, 2)))


# ---------------------------------------------------------------------------
def _init_params(key, cin, cout):
    ks = jax.random.split(key, 15)

    def conv_bn(k, ci, co):
        k1, k2, k3, k4, k5, k6, k7 = jax.random.split(k, 7)
        return dict(
            w=0.2 * jax.random.normal(k1, (3, 3, ci, co), jnp.float32),
            b=0.1 * jax.random.normal(k2, (co,), jnp.float32),
            g=1.0 + 0.1 * jax.random.normal(k3, (co,), jnp.float32),
            be=0.1 * jax.random.normal(k4, (co,), jnp.float32),
            m=0.1 * jax.random.normal(k5, (co,), jnp.float32),
            v=jax.random.uniform(k6, (co,), jnp.float32, 0.5, 1.5),
            a=0.25 + 0.01 * jax.random.normal(k7, (co,), jnp.float32),
        )

    p1 = conv_bn(ks[0], cin, cout)
    p2 = conv_bn(ks[1], cout, cout)
    a3 = 0.25 + 0.01 * jax.random.normal(ks[2], (cout,), jnp.float32)
    return {
        "w1": p1["w"], "b1": p1["b"], "g1": p1["g"], "be1": p1["be"],
        "m1": p1["m"], "v1": p1["v"], "a1": p1["a"],
        "w2": p2["w"], "b2": p2["b"], "g2": p2["g"], "be2": p2["be"],
        "m2": p2["m"], "v2": p2["v"], "a2": p2["a"],
        "a3": a3,
    }


if __name__ == "__main__":
    N, Cin, Cout, H, W = 2, 4, 8, 16, 16
    dilation = 1

    key = jax.random.PRNGKey(0)
    kx, kp = jax.random.split(key)
    x_nchw = jax.random.normal(kx, (N, Cin, H, W), jnp.float32)
    params = _init_params(kp, Cin, Cout)

    out, before = downconv_forward(x_nchw, params, dilation)
    jax.block_until_ready((out, before))

    # Tolerances account for the deliberate bf16 MXU inputs in the Pallas path
    # (the reference runs the two stacked convs in full f32 / highest precision).
    ref_out, ref_before = _ref_downconv(x_nchw, params, dilation)
    np.testing.assert_allclose(np.asarray(before), np.asarray(ref_before),
                               rtol=2e-2, atol=5e-2)
    np.testing.assert_allclose(np.asarray(out), np.asarray(ref_out),
                               rtol=2e-2, atol=5e-2)

    assert out.shape == (N, Cout, H // 2, W // 2)
    assert before.shape == (N, Cout, H, W)
    print("KERNEL_OK")
</pallas_src>

<mosaic_0001>
module attributes {stable_mosaic.version = 11 : i64} {
  func.func @_downconv_kernel(%arg0: i32, %arg1: memref<1x256x4xbf16, #tpu.memory_space<vmem>>, %arg2: memref<9x4x8xbf16, #tpu.memory_space<vmem>>, %arg3: memref<9x8x8xbf16, #tpu.memory_space<vmem>>, %arg4: memref<3x256x1xbf16, #tpu.memory_space<vmem>>, %arg5: memref<8x8xf32, #tpu.memory_space<vmem>>, %arg6: memref<1x8x64xf32, #tpu.memory_space<vmem>>, %arg7: memref<1x8x256xf32, #tpu.memory_space<vmem>>, %arg8: memref<304x4xbf16, #tpu.memory_space<vmem>>, %arg9: memref<304x8xbf16, #tpu.memory_space<vmem>>, %arg10: memref<8x16x8xf32, #tpu.memory_space<vmem>>) attributes {dimension_semantics = [#tpu.dimension_semantics<parallel>], iteration_bounds = array<i64: 2>, scalar_prefetch = 0 : i64, scratch_operands = 3 : i64, tpu.core_type = #tpu.core_type<tc>, window_params = [{transform_indices = @transform_0, window_bounds = array<i64: 1, 256, 4>}, {pipeline_mode = #tpu.pipeline_mode<synchronous>, transform_indices = @transform_1, window_bounds = array<i64: 9, 4, 8>}, {pipeline_mode = #tpu.pipeline_mode<synchronous>, transform_indices = @transform_2, window_bounds = array<i64: 9, 8, 8>}, {pipeline_mode = #tpu.pipeline_mode<synchronous>, transform_indices = @transform_3, window_bounds = array<i64: 3, 256, 1>}, {pipeline_mode = #tpu.pipeline_mode<synchronous>, transform_indices = @transform_4, window_bounds = array<i64: 8, 8>}, {transform_indices = @transform_5, window_bounds = array<i64: 1, 8, 64>}, {transform_indices = @transform_6, window_bounds = array<i64: 1, 8, 256>}]} {
    %c0 = arith.constant 0 : index
    %c0_0 = arith.constant 0 : index
    %c0_1 = arith.constant 0 : index
    %0 = vector.load %arg4[%c0, %c0_0, %c0_1] : memref<3x256x1xbf16, #tpu.memory_space<vmem>>, vector<1x256x1xbf16>
    %1 = vector.shape_cast %0 : vector<1x256x1xbf16> to vector<256x1xbf16>
    %c2 = arith.constant 2 : index
    %c0_2 = arith.constant 0 : index
    %c0_3 = arith.constant 0 : index
    %2 = vector.load %arg4[%c2, %c0_2, %c0_3] : memref<3x256x1xbf16, #tpu.memory_space<vmem>>, vector<1x256x1xbf16>
    %3 = vector.shape_cast %2 : vector<1x256x1xbf16> to vector<256x1xbf16>
    %cst = arith.constant 0.000000e+00 : bf16
    %4 = vector.broadcast %cst : bf16 to vector<304x4xbf16>
    %c0_4 = arith.constant 0 : index
    %c0_5 = arith.constant 0 : index
    %5 = vector.load %arg8[%c0_4, %c0_5] : memref<304x4xbf16, #tpu.memory_space<vmem>>, vector<304x4xbf16>
    tpu.vector_store %arg8[%c0_4, %c0_5], %4 {strides = array<i32>} : memref<304x4xbf16, #tpu.memory_space<vmem>>, vector<304x4xbf16>,
    %c0_6 = arith.constant 0 : index
    %c0_7 = arith.constant 0 : index
    %c0_8 = arith.constant 0 : index
    %6 = vector.load %arg1[%c0_6, %c0_7, %c0_8] : memref<1x256x4xbf16, #tpu.memory_space<vmem>>, vector<1x256x4xbf16>
    %7 = vector.shape_cast %6 : vector<1x256x4xbf16> to vector<256x4xbf16>
    %c24 = arith.constant 24 : index
    %c0_9 = arith.constant 0 : index
    %8 = vector.load %arg8[%c24, %c0_9] : memref<304x4xbf16, #tpu.memory_space<vmem>>, vector<256x4xbf16>
    tpu.vector_store %arg8[%c24, %c0_9], %7 {strides = array<i32>} : memref<304x4xbf16, #tpu.memory_space<vmem>>, vector<256x4xbf16>,
    %cst_10 = arith.constant 0.000000e+00 : f32
    %9 = vector.broadcast %cst_10 : f32 to vector<256x8xf32>
    %c7 = arith.constant 7 : index
    %c0_11 = arith.constant 0 : index
    %10 = vector.load %arg8[%c7, %c0_11] : memref<304x4xbf16, #tpu.memory_space<vmem>>, vector<256x4xbf16>
    %11 = vector.broadcast %1 : vector<256x1xbf16> to vector<256x4xbf16>
    %12 = arith.mulf %10, %11 : vector<256x4xbf16>
    %c0_12 = arith.constant 0 : index
    %c0_13 = arith.constant 0 : index
    %c0_14 = arith.constant 0 : index
    %13 = vector.load %arg2[%c0_12, %c0_13, %c0_14] : memref<9x4x8xbf16, #tpu.memory_space<vmem>>, vector<1x4x8xbf16>
    %14 = vector.shape_cast %13 : vector<1x4x8xbf16> to vector<4x8xbf16>
    %cst_15 = arith.constant dense<0.000000e+00> : vector<256x8xf32>
    %15 = tpu.matmul %12, %14, %cst_15 {dimension_numbers = #tpu.dot_dimension_numbers<[1], [0], [0], [1], [0, 0, 1, 1], [], []>} : vector<256x4xbf16>, vector<4x8xbf16>, vector<256x8xf32> -> vector<256x8xf32>
    %16 = arith.addf %9, %15 : vector<256x8xf32>
    %c8 = arith.constant 8 : index
    %c0_16 = arith.constant 0 : index
    %17 = vector.load %arg8[%c8, %c0_16] : memref<304x4xbf16, #tpu.memory_space<vmem>>, vector<256x4xbf16>
    %c1 = arith.constant 1 : index
    %c0_17 = arith.constant 0 : index
    %c0_18 = arith.constant 0 : index
    %18 = vector.load %arg2[%c1, %c0_17, %c0_18] : memref<9x4x8xbf16, #tpu.memory_space<vmem>>, vector<1x4x8xbf16>
    %19 = vector.shape_cast %18 : vector<1x4x8xbf16> to vector<4x8xbf16>
    %cst_19 = arith.constant dense<0.000000e+00> : vector<256x8xf32>
    %20 = tpu.matmul %17, %19, %cst_19 {dimension_numbers = #tpu.dot_dimension_numbers<[1], [0], [0], [1], [0, 0, 1, 1], [], []>} : vector<256x4xbf16>, vector<4x8xbf16>, vector<256x8xf32> -> vector<256x8xf32>
    %21 = arith.addf %16, %20 : vector<256x8xf32>
    %c9 = arith.constant 9 : index
    %c0_20 = arith.constant 0 : index
    %22 = vector.load %arg8[%c9, %c0_20] : memref<304x4xbf16, #tpu.memory_space<vmem>>, vector<256x4xbf16>
    %23 = vector.broadcast %3 : vector<256x1xbf16> to vector<256x4xbf16>
    %24 = arith.mulf %22, %23 : vector<256x4xbf16>
    %c2_21 = arith.constant 2 : index
    %c0_22 = arith.constant 0 : index
    %c0_23 = arith.constant 0 : index
    %25 = vector.load %arg2[%c2_21, %c0_22, %c0_23] : memref<9x4x8xbf16, #tpu.memory_space<vmem>>, vector<1x4x8xbf16>
    %26 = vector.shape_cast %25 : vector<1x4x8xbf16> to vector<4x8xbf16>
    %cst_24 = arith.constant dense<0.000000e+00> : vector<256x8xf32>
    %27 = tpu.matmul %24, %26, %cst_24 {dimension_numbers = #tpu.dot_dimension_numbers<[1], [0], [0], [1], [0, 0, 1, 1], [], []>} : vector<256x4xbf16>, vector<4x8xbf16>, vector<256x8xf32> -> vector<256x8xf32>
    %28 = arith.addf %21, %27 : vector<256x8xf32>
    %c23 = arith.constant 23 : index
    %c0_25 = arith.constant 0 : index
    %29 = vector.load %arg8[%c23, %c0_25] : memref<304x4xbf16, #tpu.memory_space<vmem>>, vector<256x4xbf16>
    %30 = vector.broadcast %1 : vector<256x1xbf16> to vector<256x4xbf16>
    %31 = arith.mulf %29, %30 : vector<256x4xbf16>
    %c3 = arith.constant 3 : index
    %c0_26 = arith.constant 0 : index
    %c0_27 = arith.constant 0 : index
    %32 = vector.load %arg2[%c3, %c0_26, %c0_27] : memref<9x4x8xbf16, #tpu.memory_space<vmem>>, vector<1x4x8xbf16>
    %33 = vector.shape_cast %32 : vector<1x4x8xbf16> to vector<4x8xbf16>
    %cst_28 = arith.constant dense<0.000000e+00> : vector<256x8xf32>
    %34 = tpu.matmul %31, %33, %cst_28 {dimension_numbers = #tpu.dot_dimension_numbers<[1], [0], [0], [1], [0, 0, 1, 1], [], []>} : vector<256x4xbf16>, vector<4x8xbf16>, vector<256x8xf32> -> vector<256x8xf32>
    %35 = arith.addf %28, %34 : vector<256x8xf32>
    %c24_29 = arith.constant 24 : index
    %c0_30 = arith.constant 0 : index
    %36 = vector.load %arg8[%c24_29, %c0_30] : memref<304x4xbf16, #tpu.memory_space<vmem>>, vector<256x4xbf16>
    %c4 = arith.constant 4 : index
    %c0_31 = arith.constant 0 : index
    %c0_32 = arith.constant 0 : index
    %37 = vector.load %arg2[%c4, %c0_31, %c0_32] : memref<9x4x8xbf16, #tpu.memory_space<vmem>>, vector<1x4x8xbf16>
    %38 = vector.shape_cast %37 : vector<1x4x8xbf16> to vector<4x8xbf16>
    %cst_33 = arith.constant dense<0.000000e+00> : vector<256x8xf32>
    %39 = tpu.matmul %36, %38, %cst_33 {dimension_numbers = #tpu.dot_dimension_numbers<[1], [0], [0], [1], [0, 0, 1, 1], [], []>} : vector<256x4xbf16>, vector<4x8xbf16>, vector<256x8xf32> -> vector<256x8xf32>
    %40 = arith.addf %35, %39 : vector<256x8xf32>
    %c25 = arith.constant 25 : index
    %c0_34 = arith.constant 0 : index
    %41 = vector.load %arg8[%c25, %c0_34] : memref<304x4xbf16, #tpu.memory_space<vmem>>, vector<256x4xbf16>
    %42 = vector.broadcast %3 : vector<256x1xbf16> to vector<256x4xbf16>
    %43 = arith.mulf %41, %42 : vector<256x4xbf16>
    %c5 = arith.constant 5 : index
    %c0_35 = arith.constant 0 : index
    %c0_36 = arith.constant 0 : index
    %44 = vector.load %arg2[%c5, %c0_35, %c0_36] : memref<9x4x8xbf16, #tpu.memory_space<vmem>>, vector<1x4x8xbf16>
    %45 = vector.shape_cast %44 : vector<1x4x8xbf16> to vector<4x8xbf16>
    %cst_37 = arith.constant dense<0.000000e+00> : vector<256x8xf32>
    %46 = tpu.matmul %43, %45, %cst_37 {dimension_numbers = #tpu.dot_dimension_numbers<[1], [0], [0], [1], [0, 0, 1, 1], [], []>} : vector<256x4xbf16>, vector<4x8xbf16>, vector<256x8xf32> -> vector<256x8xf32>
    %47 = arith.addf %40, %46 : vector<256x8xf32>
    %c39 = arith.constant 39 : index
    %c0_38 = arith.constant 0 : index
    %48 = vector.load %arg8[%c39, %c0_38] : memref<304x4xbf16, #tpu.memory_space<vmem>>, vector<256x4xbf16>
    %49 = vector.broadcast %1 : vector<256x1xbf16> to vector<256x4xbf16>
    %50 = arith.mulf %48, %49 : vector<256x4xbf16>
    %c6 = arith.constant 6 : index
    %c0_39 = arith.constant 0 : index
    %c0_40 = arith.constant 0 : index
    %51 = vector.load %arg2[%c6, %c0_39, %c0_40] : memref<9x4x8xbf16, #tpu.memory_space<vmem>>, vector<1x4x8xbf16>
    %52 = vector.shape_cast %51 : vector<1x4x8xbf16> to vector<4x8xbf16>
    %cst_41 = arith.constant dense<0.000000e+00> : vector<256x8xf32>
    %53 = tpu.matmul %50, %52, %cst_41 {dimension_numbers = #tpu.dot_dimension_numbers<[1], [0], [0], [1], [0, 0, 1, 1], [], []>} : vector<256x4xbf16>, vector<4x8xbf16>, vector<256x8xf32> -> vector<256x8xf32>
    %54 = arith.addf %47, %53 : vector<256x8xf32>
    %c40 = arith.constant 40 : index
    %c0_42 = arith.constant 0 : index
    %55 = vector.load %arg8[%c40, %c0_42] : memref<304x4xbf16, #tpu.memory_space<vmem>>, vector<256x4xbf16>
    %c7_43 = arith.constant 7 : index
    %c0_44 = arith.constant 0 : index
    %c0_45 = arith.constant 0 : index
    %56 = vector.load %arg2[%c7_43, %c0_44, %c0_45] : memref<9x4x8xbf16, #tpu.memory_space<vmem>>, vector<1x4x8xbf16>
    %57 = vector.shape_cast %56 : vector<1x4x8xbf16> to vector<4x8xbf16>
    %cst_46 = arith.constant dense<0.000000e+00> : vector<256x8xf32>
    %58 = tpu.matmul %55, %57, %cst_46 {dimension_numbers = #tpu.dot_dimension_numbers<[1], [0], [0], [1], [0, 0, 1, 1], [], []>} : vector<256x4xbf16>, vector<4x8xbf16>, vector<256x8xf32> -> vector<256x8xf32>
    %59 = arith.addf %54, %58 : vector<256x8xf32>
    %c41 = arith.constant 41 : index
    %c0_47 = arith.constant 0 : index
    %60 = vector.load %arg8[%c41, %c0_47] : memref<304x4xbf16, #tpu.memory_space<vmem>>, vector<256x4xbf16>
    %61 = vector.broadcast %3 : vector<256x1xbf16> to vector<256x4xbf16>
    %62 = arith.mulf %60, %61 : vector<256x4xbf16>
    %c8_48 = arith.constant 8 : index
    %c0_49 = arith.constant 0 : index
    %c0_50 = arith.constant 0 : index
    %63 = vector.load %arg2[%c8_48, %c0_49, %c0_50] : memref<9x4x8xbf16, #tpu.memory_space<vmem>>, vector<1x4x8xbf16>
    %64 = vector.shape_cast %63 : vector<1x4x8xbf16> to vector<4x8xbf16>
    %cst_51 = arith.constant dense<0.000000e+00> : vector<256x8xf32>
    %65 = tpu.matmul %62, %64, %cst_51 {dimension_numbers = #tpu.dot_dimension_numbers<[1], [0], [0], [1], [0, 0, 1, 1], [], []>} : vector<256x4xbf16>, vector<4x8xbf16>, vector<256x8xf32> -> vector<256x8xf32>
    %66 = arith.addf %59, %65 : vector<256x8xf32>
    %c0_52 = arith.constant 0 : index
    %c0_53 = arith.constant 0 : index
    %67 = vector.load %arg5[%c0_52, %c0_53] : memref<8x8xf32, #tpu.memory_space<vmem>>, vector<1x8xf32>
    %68 = vector.broadcast %67 : vector<1x8xf32> to vector<256x8xf32>
    %69 = arith.mulf %66, %68 : vector<256x8xf32>
    %c1_54 = arith.constant 1 : index
    %c0_55 = arith.constant 0 : index
    %70 = vector.load %arg5[%c1_54, %c0_55] : memref<8x8xf32, #tpu.memory_space<vmem>>, vector<1x8xf32>
    %71 = vector.broadcast %70 : vector<1x8xf32> to vector<256x8xf32>
    %72 = arith.addf %69, %71 : vector<256x8xf32>
    %cst_56 = arith.constant 0.000000e+00 : f32
    %73 = vector.broadcast %cst_56 : f32 to vector<256x8xf32>
    %74 = arith.cmpf ogt, %72, %73 : vector<256x8xf32>
    %c2_57 = arith.constant 2 : index
    %c0_58 = arith.constant 0 : index
    %75 = vector.load %arg5[%c2_57, %c0_58] : memref<8x8xf32, #tpu.memory_space<vmem>>, vector<1x8xf32>
    %76 = vector.broadcast %75 : vector<1x8xf32> to vector<256x8xf32>
    %77 = arith.mulf %76, %72 : vector<256x8xf32>
    %78 = arith.select %74, %72, %77 : vector<256x8xi1>, vector<256x8xf32>
    %cst_59 = arith.constant 0.000000e+00 : bf16
    %79 = vector.broadcast %cst_59 : bf16 to vector<304x8xbf16>
    %c0_60 = arith.constant 0 : index
    %c0_61 = arith.constant 0 : index
    %80 = vector.load %arg9[%c0_60, %c0_61] : memref<304x8xbf16, #tpu.memory_space<vmem>>, vector<304x8xbf16>
    tpu.vector_store %arg9[%c0_60, %c0_61], %79 {strides = array<i32>} : memref<304x8xbf16, #tpu.memory_space<vmem>>, vector<304x8xbf16>,
    %81 = arith.truncf %78 : vector<256x8xf32> to vector<256x8xbf16>
    %c24_62 = arith.constant 24 : index
    %c0_63 = arith.constant 0 : index
    %82 = vector.load %arg9[%c24_62, %c0_63] : memref<304x8xbf16, #tpu.memory_space<vmem>>, vector<256x8xbf16>
    tpu.vector_store %arg9[%c24_62, %c0_63], %81 {strides = array<i32>} : memref<304x8xbf16, #tpu.memory_space<vmem>>, vector<256x8xbf16>,
    %cst_64 = arith.constant 0.000000e+00 : f32
    %83 = vector.broadcast %cst_64 : f32 to vector<256x8xf32>
    %c7_65 = arith.constant 7 : index
    %c0_66 = arith.constant 0 : index
    %84 = vector.load %arg9[%c7_65, %c0_66] : memref<304x8xbf16, #tpu.memory_space<vmem>>, vector<256x8xbf16>
    %85 = vector.broadcast %1 : vector<256x1xbf16> to vector<256x8xbf16>
    %86 = arith.mulf %84, %85 : vector<256x8xbf16>
    %c0_67 = arith.constant 0 : index
    %c0_68 = arith.constant 0 : index
    %c0_69 = arith.constant 0 : index
    %87 = vector.load %arg3[%c0_67, %c0_68, %c0_69] : memref<9x8x8xbf16, #tpu.memory_space<vmem>>, vector<1x8x8xbf16>
    %88 = vector.shape_cast %87 : vector<1x8x8xbf16> to vector<8x8xbf16>
    %cst_70 = arith.constant dense<0.000000e+00> : vector<256x8xf32>
    %89 = tpu.matmul %86, %88, %cst_70 {dimension_numbers = #tpu.dot_dimension_numbers<[1], [0], [0], [1], [0, 0, 1, 1], [], []>} : vector<256x8xbf16>, vector<8x8xbf16>, vector<256x8xf32> -> vector<256x8xf32>
    %90 = arith.addf %83, %89 : vector<256x8xf32>
    %c8_71 = arith.constant 8 : index
    %c0_72 = arith.constant 0 : index
    %91 = vector.load %arg9[%c8_71, %c0_72] : memref<304x8xbf16, #tpu.memory_space<vmem>>, vector<256x8xbf16>
    %c1_73 = arith.constant 1 : index
    %c0_74 = arith.constant 0 : index
    %c0_75 = arith.constant 0 : index
    %92 = vector.load %arg3[%c1_73, %c0_74, %c0_75] : memref<9x8x8xbf16, #tpu.memory_space<vmem>>, vector<1x8x8xbf16>
    %93 = vector.shape_cast %92 : vector<1x8x8xbf16> to vector<8x8xbf16>
    %cst_76 = arith.constant dense<0.000000e+00> : vector<256x8xf32>
    %94 = tpu.matmul %91, %93, %cst_76 {dimension_numbers = #tpu.dot_dimension_numbers<[1], [0], [0], [1], [0, 0, 1, 1], [], []>} : vector<256x8xbf16>, vector<8x8xbf16>, vector<256x8xf32> -> vector<256x8xf32>
    %95 = arith.addf %90, %94 : vector<256x8xf32>
    %c9_77 = arith.constant 9 : index
    %c0_78 = arith.constant 0 : index
    %96 = vector.load %arg9[%c9_77, %c0_78] : memref<304x8xbf16, #tpu.memory_space<vmem>>, vector<256x8xbf16>
    %97 = vector.broadcast %3 : vector<256x1xbf16> to vector<256x8xbf16>
    %98 = arith.mulf %96, %97 : vector<256x8xbf16>
    %c2_79 = arith.constant 2 : index
    %c0_80 = arith.constant 0 : index
    %c0_81 = arith.constant 0 : index
    %99 = vector.load %arg3[%c2_79, %c0_80, %c0_81] : memref<9x8x8xbf16, #tpu.memory_space<vmem>>, vector<1x8x8xbf16>
    %100 = vector.shape_cast %99 : vector<1x8x8xbf16> to vector<8x8xbf16>
    %cst_82 = arith.constant dense<0.000000e+00> : vector<256x8xf32>
    %101 = tpu.matmul %98, %100, %cst_82 {dimension_numbers = #tpu.dot_dimension_numbers<[1], [0], [0], [1], [0, 0, 1, 1], [], []>} : vector<256x8xbf16>, vector<8x8xbf16>, vector<256x8xf32> -> vector<256x8xf32>
    %102 = arith.addf %95, %101 : vector<256x8xf32>
    %c23_83 = arith.constant 23 : index
    %c0_84 = arith.constant 0 : index
    %103 = vector.load %arg9[%c23_83, %c0_84] : memref<304x8xbf16, #tpu.memory_space<vmem>>, vector<256x8xbf16>
    %104 = vector.broadcast %1 : vector<256x1xbf16> to vector<256x8xbf16>
    %105 = arith.mulf %103, %104 : vector<256x8xbf16>
    %c3_85 = arith.constant 3 : index
    %c0_86 = arith.constant 0 : index
    %c0_87 = arith.constant 0 : index
    %106 = vector.load %arg3[%c3_85, %c0_86, %c0_87] : memref<9x8x8xbf16, #tpu.memory_space<vmem>>, vector<1x8x8xbf16>
    %107 = vector.shape_cast %106 : vector<1x8x8xbf16> to vector<8x8xbf16>
    %cst_88 = arith.constant dense<0.000000e+00> : vector<256x8xf32>
    %108 = tpu.matmul %105, %107, %cst_88 {dimension_numbers = #tpu.dot_dimension_numbers<[1], [0], [0], [1], [0, 0, 1, 1], [], []>} : vector<256x8xbf16>, vector<8x8xbf16>, vector<256x8xf32> -> vector<256x8xf32>
    %109 = arith.addf %102, %108 : vector<256x8xf32>
    %c24_89 = arith.constant 24 : index
    %c0_90 = arith.constant 0 : index
    %110 = vector.load %arg9[%c24_89, %c0_90] : memref<304x8xbf16, #tpu.memory_space<vmem>>, vector<256x8xbf16>
    %c4_91 = arith.constant 4 : index
    %c0_92 = arith.constant 0 : index
    %c0_93 = arith.constant 0 : index
    %111 = vector.load %arg3[%c4_91, %c0_92, %c0_93] : memref<9x8x8xbf16, #tpu.memory_space<vmem>>, vector<1x8x8xbf16>
    %112 = vector.shape_cast %111 : vector<1x8x8xbf16> to vector<8x8xbf16>
    %cst_94 = arith.constant dense<0.000000e+00> : vector<256x8xf32>
    %113 = tpu.matmul %110, %112, %cst_94 {dimension_numbers = #tpu.dot_dimension_numbers<[1], [0], [0], [1], [0, 0, 1, 1], [], []>} : vector<256x8xbf16>, vector<8x8xbf16>, vector<256x8xf32> -> vector<256x8xf32>
    %114 = arith.addf %109, %113 : vector<256x8xf32>
    %c25_95 = arith.constant 25 : index
    %c0_96 = arith.constant 0 : index
    %115 = vector.load %arg9[%c25_95, %c0_96] : memref<304x8xbf16, #tpu.memory_space<vmem>>, vector<256x8xbf16>
    %116 = vector.broadcast %3 : vector<256x1xbf16> to vector<256x8xbf16>
    %117 = arith.mulf %115, %116 : vector<256x8xbf16>
    %c5_97 = arith.constant 5 : index
    %c0_98 = arith.constant 0 : index
    %c0_99 = arith.constant 0 : index
    %118 = vector.load %arg3[%c5_97, %c0_98, %c0_99] : memref<9x8x8xbf16, #tpu.memory_space<vmem>>, vector<1x8x8xbf16>
    %119 = vector.shape_cast %118 : vector<1x8x8xbf16> to vector<8x8xbf16>
    %cst_100 = arith.constant dense<0.000000e+00> : vector<256x8xf32>
    %120 = tpu.matmul %117, %119, %cst_100 {dimension_numbers = #tpu.dot_dimension_numbers<[1], [0], [0], [1], [0, 0, 1, 1], [], []>} : vector<256x8xbf16>, vector<8x8xbf16>, vector<256x8xf32> -> vector<256x8xf32>
    %121 = arith.addf %114, %120 : vector<256x8xf32>
    %c39_101 = arith.constant 39 : index
    %c0_102 = arith.constant 0 : index
    %122 = vector.load %arg9[%c39_101, %c0_102] : memref<304x8xbf16, #tpu.memory_space<vmem>>, vector<256x8xbf16>
    %123 = vector.broadcast %1 : vector<256x1xbf16> to vector<256x8xbf16>
    %124 = arith.mulf %122, %123 : vector<256x8xbf16>
    %c6_103 = arith.constant 6 : index
    %c0_104 = arith.constant 0 : index
    %c0_105 = arith.constant 0 : index
    %125 = vector.load %arg3[%c6_103, %c0_104, %c0_105] : memref<9x8x8xbf16, #tpu.memory_space<vmem>>, vector<1x8x8xbf16>
    %126 = vector.shape_cast %125 : vector<1x8x8xbf16> to vector<8x8xbf16>
    %cst_106 = arith.constant dense<0.000000e+00> : vector<256x8xf32>
    %127 = tpu.matmul %124, %126, %cst_106 {dimension_numbers = #tpu.dot_dimension_numbers<[1], [0], [0], [1], [0, 0, 1, 1], [], []>} : vector<256x8xbf16>, vector<8x8xbf16>, vector<256x8xf32> -> vector<256x8xf32>
    %128 = arith.addf %121, %127 : vector<256x8xf32>
    %c40_107 = arith.constant 40 : index
    %c0_108 = arith.constant 0 : index
    %129 = vector.load %arg9[%c40_107, %c0_108] : memref<304x8xbf16, #tpu.memory_space<vmem>>, vector<256x8xbf16>
    %c7_109 = arith.constant 7 : index
    %c0_110 = arith.constant 0 : index
    %c0_111 = arith.constant 0 : index
    %130 = vector.load %arg3[%c7_109, %c0_110, %c0_111] : memref<9x8x8xbf16, #tpu.memory_space<vmem>>, vector<1x8x8xbf16>
    %131 = vector.shape_cast %130 : vector<1x8x8xbf16> to vector<8x8xbf16>
    %cst_112 = arith.constant dense<0.000000e+00> : vector<256x8xf32>
    %132 = tpu.matmul %129, %131, %cst_112 {dimension_numbers = #tpu.dot_dimension_numbers<[1], [0], [0], [1], [0, 0, 1, 1], [], []>} : vector<256x8xbf16>, vector<8x8xbf16>, vector<256x8xf32> -> vector<256x8xf32>
    %133 = arith.addf %128, %132 : vector<256x8xf32>
    %c41_113 = arith.constant 41 : index
    %c0_114 = arith.constant 0 : index
    %134 = vector.load %arg9[%c41_113, %c0_114] : memref<304x8xbf16, #tpu.memory_space<vmem>>, vector<256x8xbf16>
    %135 = vector.broadcast %3 : vector<256x1xbf16> to vector<256x8xbf16>
    %136 = arith.mulf %134, %135 : vector<256x8xbf16>
    %c8_115 = arith.constant 8 : index
    %c0_116 = arith.constant 0 : index
    %c0_117 = arith.constant 0 : index
    %137 = vector.load %arg3[%c8_115, %c0_116, %c0_117] : memref<9x8x8xbf16, #tpu.memory_space<vmem>>, vector<1x8x8xbf16>
    %138 = vector.shape_cast %137 : vector<1x8x8xbf16> to vector<8x8xbf16>
    %cst_118 = arith.constant dense<0.000000e+00> : vector<256x8xf32>
    %139 = tpu.matmul %136, %138, %cst_118 {dimension_numbers = #tpu.dot_dimension_numbers<[1], [0], [0], [1], [0, 0, 1, 1], [], []>} : vector<256x8xbf16>, vector<8x8xbf16>, vector<256x8xf32> -> vector<256x8xf32>
    %140 = arith.addf %133, %139 : vector<256x8xf32>
    %c3_119 = arith.constant 3 : index
    %c0_120 = arith.constant 0 : index
    %141 = vector.load %arg5[%c3_119, %c0_120] : memref<8x8xf32, #tpu.memory_space<vmem>>, vector<1x8xf32>
    %142 = vector.broadcast %141 : vector<1x8xf32> to vector<256x8xf32>
    %143 = arith.mulf %140, %142 : vector<256x8xf32>
    %c4_121 = arith.constant 4 : index
    %c0_122 = arith.constant 0 : index
    %144 = vector.load %arg5[%c4_121, %c0_122] : memref<8x8xf32, #tpu.memory_space<vmem>>, vector<1x8xf32>
    %145 = vector.broadcast %144 : vector<1x8xf32> to vector<256x8xf32>
    %146 = arith.addf %143, %145 : vector<256x8xf32>
    %cst_123 = arith.constant 0.000000e+00 : f32
    %147 = vector.broadcast %cst_123 : f32 to vector<256x8xf32>
    %148 = arith.cmpf ogt, %146, %147 : vector<256x8xf32>
    %c5_124 = arith.constant 5 : index
    %c0_125 = arith.constant 0 : index
    %149 = vector.load %arg5[%c5_124, %c0_125] : memref<8x8xf32, #tpu.memory_space<vmem>>, vector<1x8xf32>
    %150 = vector.broadcast %149 : vector<1x8xf32> to vector<256x8xf32>
    %151 = arith.mulf %150, %146 : vector<256x8xf32>
    %152 = arith.select %148, %146, %151 : vector<256x8xi1>, vector<256x8xf32>
    %153 = tpu.transpose %152, [1, 0] : vector<256x8xf32> -> vector<8x256xf32>
    %c0_126 = arith.constant 0 : index
    %c0_127 = arith.constant 0 : index
    %c0_128 = arith.constant 0 : index
    %154 = vector.load %arg7[%c0_126, %c0_127, %c0_128] : memref<1x8x256xf32, #tpu.memory_space<vmem>>, vector<1x8x256xf32>
    %155 = vector.shape_cast %154 : vector<1x8x256xf32> to vector<8x256xf32>
    %156 = vector.shape_cast %153 : vector<8x256xf32> to vector<1x8x256xf32>
    tpu.vector_store %arg7[%c0_126, %c0_127, %c0_128], %156 {strides = array<i32>} : memref<1x8x256xf32, #tpu.memory_space<vmem>>, vector<1x8x256xf32>,
    %157 = vector.shape_cast %152 : vector<256x8xf32> to vector<8x2x16x8xf32>
    %158 = vector.extract_strided_slice %157 {offsets = [0, 0, 0, 0], sizes = [8, 1, 16, 8], strides = [1, 1, 1, 1]} : vector<8x2x16x8xf32> to vector<8x1x16x8xf32>
    %159 = vector.shape_cast %158 : vector<8x1x16x8xf32> to vector<8x16x8xf32>
    %160 = vector.extract_strided_slice %157 {offsets = [0, 1, 0, 0], sizes = [8, 1, 16, 8], strides = [1, 1, 1, 1]} : vector<8x2x16x8xf32> to vector<8x1x16x8xf32>
    %161 = vector.shape_cast %160 : vector<8x1x16x8xf32> to vector<8x16x8xf32>
    %162 = arith.maximumf %159, %161 : vector<8x16x8xf32>
    %c0_129 = arith.constant 0 : index
    %c0_130 = arith.constant 0 : index
    %c0_131 = arith.constant 0 : index
    %163 = vector.load %arg10[%c0_129, %c0_130, %c0_131] : memref<8x16x8xf32, #tpu.memory_space<vmem>>, vector<8x16x8xf32>
    tpu.vector_store %arg10[%c0_129, %c0_130, %c0_131], %162 {strides = array<i32>} : memref<8x16x8xf32, #tpu.memory_space<vmem>>, vector<8x16x8xf32>,
    %c0_132 = arith.constant 0 : index
    %c0_133 = arith.constant 0 : index
    %c0_134 = arith.constant 0 : index
    %164 = tpu.strided_load %arg10[%c0_132, %c0_133, %c0_134] {strides = array<i32: 1, 2, 1>} : memref<8x16x8xf32, #tpu.memory_space<vmem>>, vector<8x8x8xf32>
    %c0_135 = arith.constant 0 : index
    %c1_136 = arith.constant 1 : index
    %c0_137 = arith.constant 0 : index
    %165 = tpu.strided_load %arg10[%c0_135, %c1_136, %c0_137] {strides = array<i32: 1, 2, 1>} : memref<8x16x8xf32, #tpu.memory_space<vmem>>, vector<8x8x8xf32>
    %166 = arith.maximumf %164, %165 : vector<8x8x8xf32>
    %167 = vector.shape_cast %166 : vector<8x8x8xf32> to vector<64x8xf32>
    %cst_138 = arith.constant 0.000000e+00 : f32
    %168 = vector.broadcast %cst_138 : f32 to vector<64x8xf32>
    %169 = arith.cmpf ogt, %167, %168 : vector<64x8xf32>
    %c6_139 = arith.constant 6 : index
    %c0_140 = arith.constant 0 : index
    %170 = vector.load %arg5[%c6_139, %c0_140] : memref<8x8xf32, #tpu.memory_space<vmem>>, vector<1x8xf32>
    %171 = vector.broadcast %170 : vector<1x8xf32> to vector<64x8xf32>
    %172 = arith.mulf %171, %167 : vector<64x8xf32>
    %173 = arith.select %169, %167, %172 : vector<64x8xi1>, vector<64x8xf32>
    %174 = tpu.transpose %173, [1, 0] : vector<64x8xf32> -> vector<8x64xf32>
    %c0_141 = arith.constant 0 : index
    %c0_142 = arith.constant 0 : index
    %c0_143 = arith.constant 0 : index
    %175 = vector.load %arg6[%c0_141, %c0_142, %c0_143] : memref<1x8x64xf32, #tpu.memory_space<vmem>>, vector<1x8x64xf32>
    %176 = vector.shape_cast %175 : vector<1x8x64xf32> to vector<8x64xf32>
    %177 = vector.shape_cast %174 : vector<8x64xf32> to vector<1x8x64xf32>
    tpu.vector_store %arg6[%c0_141, %c0_142, %c0_143], %177 {strides = array<i32>} : memref<1x8x64xf32, #tpu.memory_space<vmem>>, vector<1x8x64xf32>,
    return
  }
  func.func @transform_0(%arg0: i32) -> (i32, i32, i32) {
    %c0_i32 = arith.constant 0 : i32
    %c0_i32_0 = arith.constant 0 : i32
    %c0_i32_1 = arith.constant 0 : i32
    return %arg0, %c0_i32, %c0_i32_0 : i32, i32, i32
  }
  func.func @transform_1(%arg0: i32) -> (i32, i32, i32) {
    %c0_i32 = arith.constant 0 : i32
    %c0_i32_0 = arith.constant 0 : i32
    %c0_i32_1 = arith.constant 0 : i32
    %c0_i32_2 = arith.constant 0 : i32
    return %c0_i32, %c0_i32_0, %c0_i32_1 : i32, i32, i32
  }
  func.func @transform_2(%arg0: i32) -> (i32, i32, i32) {
    %c0_i32 = arith.constant 0 : i32
    %c0_i32_0 = arith.constant 0 : i32
    %c0_i32_1 = arith.constant 0 : i32
    %c0_i32_2 = arith.constant 0 : i32
    return %c0_i32, %c0_i32_0, %c0_i32_1 : i32, i32, i32
  }
  func.func @transform_3(%arg0: i32) -> (i32, i32, i32) {
    %c0_i32 = arith.constant 0 : i32
    %c0_i32_0 = arith.constant 0 : i32
    %c0_i32_1 = arith.constant 0 : i32
    %c0_i32_2 = arith.constant 0 : i32
    return %c0_i32, %c0_i32_0, %c0_i32_1 : i32, i32, i32
  }
  func.func @transform_4(%arg0: i32) -> (i32, i32) {
    %c0_i32 = arith.constant 0 : i32
    %c0_i32_0 = arith.constant 0 : i32
    %c0_i32_1 = arith.constant 0 : i32
    return %c0_i32, %c0_i32_0 : i32, i32
  }
  func.func @transform_5(%arg0: i32) -> (i32, i32, i32) {
    %c0_i32 = arith.constant 0 : i32
    %c0_i32_0 = arith.constant 0 : i32
    %c0_i32_1 = arith.constant 0 : i32
    return %arg0, %c0_i32, %c0_i32_0 : i32, i32, i32
  }
  func.func @transform_6(%arg0: i32) -> (i32, i32, i32) {
    %c0_i32 = arith.constant 0 : i32
    %c0_i32_0 = arith.constant 0 : i32
    %c0_i32_1 = arith.constant 0 : i32
    return %arg0, %c0_i32, %c0_i32_0 : i32, i32, i32
  }
}

</mosaic_0001>

<bundles_post_ra>
// kernel: tpu_custom_call.1
= control target key start
LH: loop header
LB: loop body
LE: loop exit
PB: predicated region body
PF: predicated region fallthrough
CT: control target
= control target key end

     0   :  { %12 = vsyncpa [#allocation6], 0  ;;  %s15506_s0 = inlined_call_operand.vmem [shape: bf16[2,256,4], index: 0, kind: input, shape index: {}]   ;;  %s15507_s1 = inlined_call_operand.vmem [shape: bf16[9,4,8], index: 1, kind: input, shape index: {}]   ;;  %s15508_s2 = inlined_call_operand.vmem [shape: bf16[9,8,8], index: 2, kind: input, shape index: {}]   ;;  %s15509_s3 = inlined_call_operand.vmem [shape: bf16[3,256,1], index: 3, kind: input, shape index: {}]   ;;  %s15510_s4 = inlined_call_operand.vmem [shape: f32[8,8], index: 4, kind: input, shape index: {}]   ;;  %s15511_s5 = inlined_call_operand.hbm [shape: f32[2,8,64], index: 5, kind: output, shape index: {0}]   ;;  %s15512_s6 = inlined_call_operand.hbm [shape: f32[2,8,256], index: 6, kind: output, shape index: {1}]  }
   0x1   :  { %14 = vsyncpa [#allocation6 + $0x1], 0 }
   0x2   :  { %15 = vsyncpa [#allocation8], 0 }
   0x3   :  { %17 = vsyncpa [#allocation8 + $0x1], 0  ;;  %s10604_s21 = smov 0   ;;  %s10606_s22 = smov 0  }
   0x4   :  { %s10608_s23 = smov 0   ;;  %s10610_s24 = smov 0  }
   0x5 LB: > { %s10625_s25 = sadd.s32 4294967295, %s10565_s24   ;;  %s8672_s26 = sadd.s32 4294967294, %s10565_s24   ;;  %s10565_s24 = sphi %s10610_s24, %s16424_s24   ;;  %s10561_s23 = sphi %s10608_s23, %s16423_s23   ;;  %s10557_s22 = sphi %s10606_s22, %s16422_s22   ;;  %s10553_s21 = sphi %s10604_s21, %s16421_s21  }
   0x6   : > { %s10629_s27 = sadd.s32 1, %s10565_s24   ;;  %s140_s28 = sadd.s32 1, %s10561_s23 }
   0x7   : > { %s137_s29 = ssub.s32 %s10565_s24, %s10629_s27  ;;  %p150_p0 = scmp.ne.s32.totalorder %s10561_s23, %s10557_s22 }
   0x8   : > { %p138_p1 = scmp.eq.s32.totalorder %s137_s29, 0  ;;  %p151_p2 = scmp.eq.s32.totalorder %s10625_s25, 1 }
   0x9   : > { %p156_p3 = scmp.ne.s32.totalorder %s10557_s22, %s10553_s21  ;;  %p157_p4 = scmp.eq.s32.totalorder %s8672_s26, 1 }
   0xa   : > { %s10640_s30 = scalar_select %p138_p1, %s10561_s23, %s140_s28  }
   0xb   : > { %p10642_p5 = por %p151_p2, %p150_p0  ;;  %p10646_p6 = por %p157_p4, %p156_p3 }
   0xc   : > { %p8675_p7 = scmp.ge.s32.totalorder %s10565_s24, 1  ;;  %p221_p8 = scmp.lt.s32.totalorder %s10565_s24, 3 }
   0xe   : > { %p222_p9 = pnand %p8675_p7, %p221_p8 }
  0x10   : > { %225 = sbr.rel (%p222_p9) target bundleno = 1716 (0x6b4), region = 40 }
  0x15   : > { %v281_v0 = vld [vmem:[%s15509_s3 + $0x4c] sm:$0xf]  ;;  %v279_v1 = vld [vmem:[%s15509_s3 + $0x44] sm:$0xf]  ;;  %vm1127_vm0 = vcmask 1041408   ;;  %v15513_v2 = vmov 0  }
  0x16   : > { %10456 = vset.pattern.permute.xlu2 %v15513_v2  ;;  %10455 = vset.pattern.permute.xlu1 %v15513_v2  ;;  %v277_v3 = vld [vmem:[%s15509_s3 + $0x3c] sm:$0xf]  ;;  %v8712_v4 = vld [vmem:[%s15507_s1 + $0x2] sm:$0x3]  ;;  %vm327_vm1 = vcmask 27648   ;;  %vm1078_vm2 = vcmask 31744  }
  0x17   : > { %10454 = vset.pattern.permute.xlu0 %v15513_v2  ;;  %636 = vperm.xlu2 %10456, %v281_v0   ;;  %v1129_v5 = vsel %vm1127_vm0, %v8712_v4, 0  ;;  %329 = vst.msk [vmem:[#allocation2 + $0x4] sm:$0xf] %vm327_vm1, %v15513_v2  ;;  %v282_v6 = vld [vmem:[%s15509_s3 + $0x50] sm:$0xf]  ;;  %p256_p10 = scmp.lt.s32.totalorder %s10625_s25, 1 }
  0x18   : > { %618 = vperm.xlu1 %10455, %v279_v1   ;;  %600 = vperm.xlu0 %10454, %v277_v3   ;;  %330 = vst.msk [vmem:[#allocation2 + $0x8] sm:$0xf] %vm327_vm1, %v15513_v2  ;;  %v280_v7 = vld [vmem:[%s15509_s3 + $0x48] sm:$0xf]  ;;  %v278_v8 = vld [vmem:[%s15509_s3 + $0x40] sm:$0xf] }
  0x19   : > { %1138 = vmatpush.bf16.msra.mxu0 %v1129_v5  ;;  %10405 = vmatpush.bf16.msra.mxu2 %v1129_v5  ;;  %328 = vst.msk [vmem:[#allocation2] sm:$0xf] %vm327_vm1, %v15513_v2  ;;  %v285_v10 = vld [vmem:[%s15509_s3 + $0x5c] sm:$0xf]  ;;  %v284_v11 = vld [vmem:[%s15509_s3 + $0x58] sm:$0xf] }
  0x1a   : > { %331 = vst.msk [vmem:[#allocation2 + $0xc] sm:$0xf] %vm327_vm1, %v15513_v2  ;;  %v283_v12 = vld [vmem:[%s15509_s3 + $0x54] sm:$0xf]  ;;  %v288_v13 = vld [vmem:[%s15509_s3 + $0x68] sm:$0xf] }
  0x1b   : > { %332 = vst.msk [vmem:[#allocation2 + $0x10] sm:$0xf] %vm327_vm1, %v15513_v2  ;;  %v287_v14 = vld [vmem:[%s15509_s3 + $0x64] sm:$0xf]  ;;  %v286_v15 = vld [vmem:[%s15509_s3 + $0x60] sm:$0xf] }
  0x1c   : > { %333 = vst.msk [vmem:[#allocation2 + $0x14] sm:$0xf] %vm327_vm1, %v15513_v2  ;;  %s257_s20 = scalar_select %p256_p10, %s10625_s25, 1  ;;  %v291_v16 = vld [vmem:[%s15509_s3 + $0x74] sm:$0xf]  ;;  %vm848_vm3 = vcmask 1046528  }
  0x1d   : > { %334 = vst.msk [vmem:[#allocation2 + $0x18] sm:$0xf] %vm327_vm1, %v15513_v2  ;;  %v290_v17 = vld [vmem:[%s15509_s3 + $0x70] sm:$0xf]  ;;  %v289_v18 = vld [vmem:[%s15509_s3 + $0x6c] sm:$0xf] }
  0x1e   : > { %335 = vst.msk [vmem:[#allocation2 + $0x1c] sm:$0xf] %vm327_vm1, %v15513_v2  ;;  %s9407_s26 = sshll.u32 %s257_s20, 7  ;;  %v8680_v21 = vld [vmem:[%s15509_s3 + $0x100] sm:$0xf]  ;;  %vm1931_vm5 = vcmask 1040384  }
  0x1f   : > { %645 = vperm.xlu2 %10456, %v282_v6   ;;  %v9408_v9 = vld [vmem:[#allocation2 + $0x4] sm:$0xff]  ;;  %336 = vst.msk [vmem:[#allocation2 + $0x20] sm:$0xf] %vm327_vm1, %v15513_v2  ;;  %s10776_s15 = scalar_lea.vmem %s15506_s0, %s9407_s26  ;;  %v293_v22 = vld [vmem:[%s15509_s3 + $0x7c] sm:$0xf]  ;;  %vm4787_vm7 = vcmask 60416  }
  0x20   : > { %627 = vperm.xlu1 %10455, %v280_v7   ;;  %609 = vperm.xlu0 %10454, %v278_v8   ;;  %337 = vst.msk [vmem:[#allocation2 + $0x24] sm:$0xf] %vm327_vm1, %v15513_v2  ;;  %v366_v19 = vld [vmem:[%s10776_s15] sm:$0xf]  ;;  %v367_v20 = vld [vmem:[%s10776_s15 + $0x4] sm:$0xf] }
  0x21   : > { %8777 = vmatmul.msk.bf16.vlgmr.msra.gmra.mxu0 %vm1078_vm2, %v9408_v9  ;;  %338 = vst.msk [vmem:[#allocation2 + $0x28] sm:$0xf] %vm327_vm1, %v15513_v2  ;;  %v292_v23 = vld [vmem:[%s15509_s3 + $0x78] sm:$0xf]  ;;  %v368_v24 = vld [vmem:[%s10776_s15 + $0x8] sm:$0xf] }
  0x22   : > { %339 = vst.msk [vmem:[#allocation2 + $0x2c] sm:$0xf] %vm327_vm1, %v15513_v2  ;;  %v369_v25 = vld [vmem:[%s10776_s15 + $0xc] sm:$0xf]  ;;  %v370_v26 = vld [vmem:[%s10776_s15 + $0x10] sm:$0xf] }
  0x23   : > { %340 = vst.msk [vmem:[#allocation2 + $0x30] sm:$0xf] %vm327_vm1, %v15513_v2  ;;  %v371_v27 = vld [vmem:[%s10776_s15 + $0x14] sm:$0xf]  ;;  %v263_v28 = vld [vmem:[%s15509_s3 + $0x4] sm:$0xf] }
  0x24   : > { %341 = vst.msk [vmem:[#allocation2 + $0x34] sm:$0xf] %vm327_vm1, %v15513_v2  ;;  %v8681_v29 = vld [vmem:[%s15509_s3 + $0x104] sm:$0xf]  ;;  %v262_v31 = vld [vmem:[%s15509_s3] sm:$0xf] }
  0x25   : > { %342 = vst.msk [vmem:[#allocation2 + $0x38] sm:$0xf] %vm327_vm1, %v15513_v2  ;;  %v380_v32 = vld [vmem:[%s10776_s15 + $0x38] sm:$0xf]  ;;  %v381_v33 = vld [vmem:[%s10776_s15 + $0x3c] sm:$0xf] }
  0x26   : > { %343 = vst.msk [vmem:[#allocation2 + $0x3c] sm:$0xf] %vm327_vm1, %v15513_v2  ;;  %v8682_v34 = vld [vmem:[%s15509_s3 + $0x108] sm:$0xf]  ;;  %v372_v35 = vld [vmem:[%s10776_s15 + $0x18] sm:$0xf] }
  0x27   : > { %672 = vperm.xlu2 %10456, %v285_v10   ;;  %344 = vst.msk [vmem:[#allocation2 + $0x40] sm:$0xf] %vm327_vm1, %v15513_v2  ;;  %v373_v36 = vld [vmem:[%s10776_s15 + $0x1c] sm:$0xf]  ;;  %v264_v37 = vld [vmem:[%s15509_s3 + $0x8] sm:$0xf] }
  0x28   : > { %663 = vperm.xlu1 %10455, %v284_v11   ;;  %654 = vperm.xlu0 %10454, %v283_v12   ;;  %345 = vst.msk [vmem:[#allocation2 + $0x44] sm:$0xf] %vm327_vm1, %v15513_v2  ;;  %v265_v38 = vld [vmem:[%s15509_s3 + $0xc] sm:$0xf]  ;;  %v267_v41 = vld [vmem:[%s15509_s3 + $0x14] sm:$0xf] }
  0x29   : > { %346 = vst.msk [vmem:[#allocation2 + $0x48] sm:$0xf] %vm327_vm1, %v15513_v2  ;;  %v8683_v42 = vld [vmem:[%s15509_s3 + $0x10c] sm:$0xf]  ;;  %v266_v43 = vld [vmem:[%s15509_s3 + $0x10] sm:$0xf] }
  0x2a   : > { %347 = vst.msk [vmem:[#allocation2 + $0x4c] sm:$0xf] %vm327_vm1, %v15513_v2  ;;  %v382_v44 = vld [vmem:[%s10776_s15 + $0x40] sm:$0xf]  ;;  %v383_v45 = vld [vmem:[%s10776_s15 + $0x44] sm:$0xf] }
  0x2b   : > { %348 = vst.msk [vmem:[#allocation2 + $0x50] sm:$0xf] %vm327_vm1, %v15513_v2  ;;  %v374_v46 = vld [vmem:[%s10776_s15 + $0x20] sm:$0xf]  ;;  %v375_v47 = vld [vmem:[%s10776_s15 + $0x24] sm:$0xf] }
  0x2c   : > { %349 = vst.msk [vmem:[#allocation2 + $0x54] sm:$0xf] %vm327_vm1, %v15513_v2  ;;  %v268_v48 = vld [vmem:[%s15509_s3 + $0x18] sm:$0xf]  ;;  %v8684_v49 = vld [vmem:[%s15509_s3 + $0x110] sm:$0xf] }
  0x2d   : > { %350 = vst.msk [vmem:[#allocation2 + $0x58] sm:$0xf] %vm327_vm1, %v15513_v2  ;;  %v8685_v50 = vld [vmem:[%s15509_s3 + $0x114] sm:$0xf]  ;;  %v8687_v53 = vld [vmem:[%s15509_s3 + $0x11c] sm:$0xf] }
  0x2e   : > { %351 = vst.msk [vmem:[#allocation2 + $0x5c] sm:$0xf] %vm327_vm1, %v15513_v2  ;;  %v269_v54 = vld [vmem:[%s15509_s3 + $0x1c] sm:$0xf]  ;;  %v8686_v55 = vld [vmem:[%s15509_s3 + $0x118] sm:$0xf] }
  0x2f   : > { %699 = vperm.xlu2 %10456, %v288_v13   ;;  %352 = vst.msk [vmem:[#allocation2 + $0x60] sm:$0xf] %vm327_vm1, %v15513_v2  ;;  %v384_v56 = vld [vmem:[%s10776_s15 + $0x48] sm:$0xf]  ;;  %v385_v57 = vld [vmem:[%s10776_s15 + $0x4c] sm:$0xf] }
  0x30   : > { %690 = vperm.xlu1 %10455, %v287_v14   ;;  %681 = vperm.xlu0 %10454, %v286_v15   ;;  %353 = vst.msk [vmem:[#allocation2 + $0x64] sm:$0xf] %vm327_vm1, %v15513_v2  ;;  %v8688_v58 = vld [vmem:[%s15509_s3 + $0x120] sm:$0xf]  ;;  %v376_v59 = vld [vmem:[%s10776_s15 + $0x28] sm:$0xf] }
  0x31   : > { %354 = vst.msk [vmem:[#allocation2 + $0x68] sm:$0xf] %vm327_vm1, %v15513_v2  ;;  %v377_v60 = vld [vmem:[%s10776_s15 + $0x2c] sm:$0xf]  ;;  %v270_v61 = vld [vmem:[%s15509_s3 + $0x20] sm:$0xf] }
  0x32   : > { %355 = vst.msk [vmem:[#allocation2 + $0x6c] sm:$0xf] %vm327_vm1, %v15513_v2  ;;  %v271_v62 = vld [vmem:[%s15509_s3 + $0x24] sm:$0xf]  ;;  %v273_v3 = vld [vmem:[%s15509_s3 + $0x2c] sm:$0xf] }
  0x33   : > { %356 = vst.msk [vmem:[#allocation2 + $0x70] sm:$0xf] %vm327_vm1, %v15513_v2  ;;  %v8689_v4 = vld [vmem:[%s15509_s3 + $0x124] sm:$0xf]  ;;  %v272_v5 = vld [vmem:[%s15509_s3 + $0x28] sm:$0xf] }
  0x34   : > { %357 = vst.msk [vmem:[#allocation2 + $0x74] sm:$0xf] %vm327_vm1, %v15513_v2  ;;  %v386_v6 = vld [vmem:[%s10776_s15 + $0x50] sm:$0xf]  ;;  %v387_v7 = vld [vmem:[%s10776_s15 + $0x54] sm:$0xf] }
  0x35   : > { %358 = vst.msk [vmem:[#allocation2 + $0x78] sm:$0xf] %vm327_vm1, %v15513_v2  ;;  %v378_v9 = vld [vmem:[%s10776_s15 + $0x30] sm:$0xf]  ;;  %v379_v10 = vld [vmem:[%s10776_s15 + $0x34] sm:$0xf] }
  0x36   : > { %359 = vst.msk [vmem:[#allocation2 + $0x7c] sm:$0xf] %vm327_vm1, %v15513_v2  ;;  %v274_v11 = vld [vmem:[%s15509_s3 + $0x30] sm:$0xf]  ;;  %v8690_v12 = vld [vmem:[%s15509_s3 + $0x128] sm:$0xf] }
  0x37   : > { %726 = vperm.xlu2 %10456, %v291_v16   ;;  %360 = vst.msk [vmem:[#allocation2 + $0x80] sm:$0xf] %vm327_vm1, %v15513_v2  ;;  %v8691_v13 = vld [vmem:[%s15509_s3 + $0x12c] sm:$0xf]  ;;  %v8693_v16 = vld [vmem:[%s15509_s3 + $0x134] sm:$0xf] }
  0x38   : > { %717 = vperm.xlu1 %10455, %v290_v17   ;;  %708 = vperm.xlu0 %10454, %v289_v18   ;;  %361 = vst.msk [vmem:[#allocation2 + $0x84] sm:$0xf] %vm327_vm1, %v15513_v2  ;;  %v275_v18 = vld [vmem:[%s15509_s3 + $0x34] sm:$0xf]  ;;  %vm1220_vm4 = vsmask.f32 4352 }
  0x39   : > { %362 = vst.msk [vmem:[#allocation2 + $0x88] sm:$0xf] %vm327_vm1, %v15513_v2  ;;  %vm2080_vm6 = vsmask.f32 7424  ;;  %vm5138_vm8 = vcmask 1043456   ;;  %vm5089_vm9 = vcmask 64512  }
  0x3a   : > { %363 = vst.msk [vmem:[#allocation2 + $0x8c] sm:$0xf] %vm327_vm1, %v15513_v2  ;;  %s15453_s16 = sand.u32 1, %s10557_s22   ;;  %s9504_s19 = sshll.u32 %s10625_s25, 4 }
  0x3b   : > { %364 = vst.msk [vmem:[#allocation2 + $0x90] sm:$0xf] %vm327_vm1, %v15513_v2  ;;  %s8677_s17 = sshll.u32 %s15453_s16, 4  ;;  %s8575_s28 = scalar_lea.hbm %s15512_s6, %s9504_s19 }
  0x3c   : > { %365 = vst.msk [vmem:[#allocation2 + $0x94] sm:$0xf] %vm327_vm1, %v15513_v2  ;;  %s255_s18 = scalar_lea.vmem [#allocation7], %s8677_s17  ;;  %s8550_s9 = scalar_lea.sflag [#allocation8], %s15453_s16 }
  0x3d   : > { %398 = vst.msk [vmem:[#allocation2 + $0xc] sm:$0xf] %vm327_vm1, %v366_v19  ;;  %v10568_v19 = vmov 839922192   ;;  %s8577_s29 = sshll.u32 %s255_s18, 4  ;;  %s10491_s14 = scalar_lea.hbm %s15512_s6, 32  ;;  %s8578_s29 = int_to_ptr.vmem [resolvable:$true] %s8577_s29 }
  0x3e   : > { %399 = vst.msk [vmem:[#allocation2 + $0x10] sm:$0xf] %vm327_vm1, %v367_v20  ;;  %v469_v20 = vunpack.c.l.s4 %v10568_v19 }
  0x3f   : > { %1548 = vperm.xlu2 %10456, %v8680_v21   ;;  %400 = vst.msk [vmem:[#allocation2 + $0x14] sm:$0xf] %vm327_vm1, %v368_v24  ;;  %v8692_v21 = vld [vmem:[%s15509_s3 + $0x130] sm:$0xf]  ;;  %v8843_v24 = vld [vmem:[%s15507_s1 + $0x8] sm:$0x3] }
  0x40   : > { %744 = vperm.xlu1 %10455, %v293_v22   ;;  %735 = vperm.xlu0 %10454, %v292_v23   ;;  %401 = vst.msk [vmem:[#allocation2 + $0x18] sm:$0xf] %vm327_vm1, %v369_v25  ;;  %v388_v22 = vld [vmem:[%s10776_s15 + $0x58] sm:$0xf]  ;;  %v389_v23 = vld [vmem:[%s10776_s15 + $0x5c] sm:$0xf]  ;;  %v10941_v25 = vunpack.c.0.s8 %v469_v20 }
  0x41   : > { %402 = vst.msk [vmem:[#allocation2 + $0x1c] sm:$0xf] %vm327_vm1, %v370_v26  ;;  %v393_v20 = vld [vmem:[%s10776_s15 + $0x6c] sm:$0xf] }
  0x42   : > { %403 = vst.msk [vmem:[#allocation2 + $0x20] sm:$0xf] %vm327_vm1, %v371_v27 }
  0x43   : > { %412 = vst.msk [vmem:[#allocation2 + $0x44] sm:$0xf] %vm327_vm1, %v380_v32 }
  0x44   : > { %413 = vst.msk [vmem:[#allocation2 + $0x48] sm:$0xf] %vm327_vm1, %v381_v33  ;;  %v8694_v33 = vld [vmem:[%s15509_s3 + $0x138] sm:$0xf] }
  0x45   : > { %v9409_v30 = vld [vmem:[#allocation2 + $0xc] sm:$0xff]  ;;  %404 = vst.msk [vmem:[#allocation2 + $0x24] sm:$0xf] %vm327_vm1, %v372_v35 }
  0x46   : > { %8778 = vmatmul.msk.bf16.gmra.mxu0 %vm1078_vm2, %v9409_v30  ;;  %405 = vst.msk [vmem:[#allocation2 + $0x28] sm:$0xf] %vm327_vm1, %v373_v36  ;;  %v390_v36 = vld [vmem:[%s10776_s15 + $0x60] sm:$0xf] }
  0x47   : > { %474 = vperm.xlu2 %10456, %v263_v28   ;;  %v9410_v40 = vld [vmem:[#allocation2 + $0x14] sm:$0xff]  ;;  %414 = vst.msk [vmem:[#allocation2 + $0x4c] sm:$0xf] %vm327_vm1, %v382_v44  ;;  %v2958_v28 = vsel %vm1127_vm0, %v8843_v24, 0 }
  0x48   : > { %1557 = vperm.xlu0 %10454, %v8681_v29   ;;  %465 = vperm.xlu1 %10455, %v262_v31   ;;  %415 = vst.msk [vmem:[#allocation2 + $0x50] sm:$0xf] %vm327_vm1, %v383_v45  ;;  %v8695_v29 = vld [vmem:[%s15509_s3 + $0x13c] sm:$0xf]  ;;  %v276_v31 = vld [vmem:[%s15509_s3 + $0x38] sm:$0xf] }
  0x49   : > { %406 = vst.msk [vmem:[#allocation2 + $0x2c] sm:$0xf] %vm327_vm1, %v374_v46  ;;  %v9411_v52 = vld [vmem:[#allocation2 + $0x1c] sm:$0xff]  ;;  %2967 = vmatpush.bf16.msrb.mxu0 %v2958_v28  ;;  %v8699_v28 = vld [vmem:[%s15509_s3 + $0x14c] sm:$0xf] }
  0x4a   : > { %407 = vst.msk [vmem:[#allocation2 + $0x30] sm:$0xf] %vm327_vm1, %v375_v47 }
  0x4b   : > { %v9416_v39 = vld [vmem:[#allocation2 + $0x44] sm:$0xff]  ;;  %416 = vst.msk [vmem:[#allocation2 + $0x54] sm:$0xf] %vm327_vm1, %v384_v56 }
  0x4c   : > { %8785 = vmatmul.msk.bf16.vlgmr.msra.gmra.mxu2 %vm1078_vm2, %v9416_v39  ;;  %417 = vst.msk [vmem:[#allocation2 + $0x58] sm:$0xf] %vm327_vm1, %v385_v57 }
  0x4d   : > { %408 = vst.msk [vmem:[#allocation2 + $0x34] sm:$0xf] %vm327_vm1, %v376_v59  ;;  %v9412_v1 = vld [vmem:[#allocation2 + $0x24] sm:$0xff] }
  0x4e   : > { %409 = vst.msk [vmem:[#allocation2 + $0x38] sm:$0xf] %vm327_vm1, %v377_v60 }
  0x4f   : > { %1566 = vperm.xlu2 %10456, %v8682_v34   ;;  %v9417_v51 = vld [vmem:[#allocation2 + $0x4c] sm:$0xff]  ;;  %418 = vst.msk [vmem:[#allocation2 + $0x5c] sm:$0xf] %vm327_vm1, %v386_v6 }
  0x50   : > { %483 = vperm.xlu0 %10454, %v264_v37   ;;  %492 = vperm.xlu1 %10455, %v265_v38   ;;  %419 = vst.msk [vmem:[#allocation2 + $0x60] sm:$0xf] %vm327_vm1, %v387_v7 }
  0x51   : > { %410 = vst.msk [vmem:[#allocation2 + $0x3c] sm:$0xf] %vm327_vm1, %v378_v9  ;;  %v9413_v15 = vld [vmem:[#allocation2 + $0x2c] sm:$0xff]  ;;  %v8826_v9 = vld [vmem:[%s15507_s1 + $0x6] sm:$0x3] }
  0x52   : > { %411 = vst.msk [vmem:[#allocation2 + $0x40] sm:$0xf] %vm327_vm1, %v379_v10  ;;  %v392_v10 = vld [vmem:[%s10776_s15 + $0x68] sm:$0xf]  ;;  %v2704_v19 = vsel %vm1127_vm0, %v8826_v9, 0 }
  0x53   : > { %v9418_v0 = vld [vmem:[#allocation2 + $0x54] sm:$0xff]  ;;  %420 = vst.msk [vmem:[#allocation2 + $0x64] sm:$0xf] %vm327_vm1, %v388_v22 }
  0x54   : > { %421 = vst.msk [vmem:[#allocation2 + $0x68] sm:$0xf] %vm327_vm1, %v389_v23  ;;  %v8701_v22 = vld [vmem:[%s15509_s3 + $0x154] sm:$0xf] }
  0x55   : > { %422 = vst.msk [vmem:[#allocation2 + $0x6c] sm:$0xf] %vm327_vm1, %v390_v36  ;;  %v9414_v47 = vld [vmem:[#allocation2 + $0x34] sm:$0xff] }
  0x56   : > { %8779 = vmatmul.msk.bf16.gmra.mxu0 %vm1078_vm2, %v9410_v40  ;;  %424 = vst.msk [vmem:[#allocation2 + $0x74] sm:$0xf] %vm327_vm1, %v392_v10 }
  0x57   : > { %510 = vperm.xlu2 %10456, %v267_v41   ;;  %v9419_v14 = vld [vmem:[#allocation2 + $0x5c] sm:$0xff]  ;;  %425 = vst.msk [vmem:[#allocation2 + $0x78] sm:$0xf] %vm327_vm1, %v393_v20  ;;  %v8705_v20 = vld [vmem:[%s15509_s3 + $0x164] sm:$0xf] }
  0x58   : > { %1575 = vperm.xlu0 %10454, %v8683_v42   ;;  %501 = vperm.xlu1 %10455, %v266_v43  }
  0x59   : > { %v10232_v45 = vld [vmem:[#allocation2 + $0x40] sm:$0xff]  }
  0x5a   : > { %v9535_v56 = vunpack.c.l.bf16 %v10232_v45  ;;  %v9536_v60 = vunpack.c.h.bf16 %v10232_v45 }
  0x5b   : > { %v9420_v38 = vld [vmem:[#allocation2 + $0x64] sm:$0xff] }
  0x5c   : > { %8786 = vmatmul.msk.bf16.gmra.mxu2 %vm1078_vm2, %v9417_v51 }
  0x5f   : > { %519 = vperm.xlu2 %10456, %v268_v48   ;;  %v8698_v48 = vld [vmem:[%s15509_s3 + $0x148] sm:$0xf] }
  0x60   : > { %1584 = vperm.xlu0 %10454, %v8684_v49   ;;  %1593 = vperm.xlu1 %10455, %v8685_v50  }
  0x66   : > { %8780 = vmatmul.msk.bf16.gmra.mxu0 %vm1078_vm2, %v9411_v52  ;;  %v8696_v52 = vld [vmem:[%s15509_s3 + $0x140] sm:$0xf] }
  0x67   : > { %1611 = vperm.xlu2 %10456, %v8687_v53   ;;  %v10233_v53 = vld [vmem:[#allocation2 + $0x48] sm:$0xff]  }
  0x68   : > { %528 = vperm.xlu0 %10454, %v269_v54   ;;  %1602 = vperm.xlu1 %10455, %v8686_v55   ;;  %v8697_v55 = vld [vmem:[%s15509_s3 + $0x144] sm:$0xf] }
  0x6c   : > { %8787 = vmatmul.msk.bf16.gmra.mxu2 %vm1078_vm2, %v9418_v0  ;;  %v8809_v0 = vld [vmem:[%s15507_s1 + $0x4] sm:$0x3] }
  0x6f   : > { %1620 = vperm.xlu2 %10456, %v8688_v58  }
  0x70   : > { %537 = vperm.xlu0 %10454, %v270_v61   ;;  %546 = vperm.xlu1 %10455, %v271_v62   ;;  %v391_v61 = vld [vmem:[%s10776_s15 + $0x64] sm:$0xf] }
  0x71   : > { %v637_v63 = vpop.permute.xlu2 %636  ;;  %423 = vst.msk [vmem:[#allocation2 + $0x70] sm:$0xf] %vm327_vm1, %v391_v61 }
  0x72   : > { %v642_v30 = vperm.slane %v637_v63, %v10941_v25  ;;  %v995_v63 = vld [vmem:[%s15507_s1] sm:$0x3] }
  0x74   : > { %v10961_v37 = vunpack.c.l.bf16 %v642_v30  ;;  %v10234_v30 = vld [vmem:[#allocation2 + $0x50] sm:$0xff]  }
  0x76   : > { %8781 = vmatmul.msk.bf16.gmra.mxu0 %vm1078_vm2, %v9412_v1  ;;  %v886_v49 = vrot.slane %v10961_v37, 1  ;;  %v9539_v1 = vunpack.c.l.bf16 %v10233_v53 }
  0x77   : > { %564 = vperm.xlu2 %10456, %v273_v3   ;;  %v9540_v3 = vunpack.c.h.bf16 %v10233_v53 }
  0x78   : > { %1629 = vperm.xlu0 %10454, %v8689_v4   ;;  %555 = vperm.xlu1 %10455, %v272_v5  }
  0x79   : > { %v10906_v8 = vpop.permute.xlu2 %645 }
  0x7a   : > { %v651_v46 = vperm.slane %v10906_v8, %v10941_v25 }
  0x7c   : > { %8788 = vmatmul.msk.bf16.gmra.mxu2 %vm1078_vm2, %v9419_v14  ;;  %v804_v62 = vunpack.c.l.bf16 %v651_v46  ;;  %v2262_v14 = vsel %vm1127_vm0, %v8809_v0, 0  ;;  %v8703_v0 = vld [vmem:[%s15509_s3 + $0x15c] sm:$0xf] }
  0x7d   : > { %2271 = vmatpush.bf16.msrb.mxu2 %v2262_v14  ;;  %v10235_v14 = vld [vmem:[#allocation2 + $0x58] sm:$0xff]  }
  0x7f   : > { %573 = vperm.xlu2 %10456, %v274_v11  }
  0x80   : > { %1638 = vperm.xlu0 %10454, %v8690_v12   ;;  %1647 = vperm.xlu1 %10455, %v8691_v13   ;;  %v1422_v13 = vsel %vm1127_vm0, %v995_v63, 0 }
  0x81   : > { %v10926_v17 = vpop.permute.xlu2 %672  ;;  %10406 = vmatpush.bf16.msra.mxu3 %v1422_v13  ;;  %1431 = vmatpush.bf16.msra.mxu1 %v1422_v13 }
  0x82   : > { %v678_v61 = vperm.slane %v10926_v17, %v10941_v25 }
  0x84   : > { %v807_v17 = vunpack.c.l.bf16 %v678_v61  ;;  %v1513_v61 = vld [vmem:[#allocation2 + $0x4] sm:$0xf] }
  0x85   : > { %2713 = vmatpush.bf16.msrb.mxu3 %v2704_v19 }
  0x86   : > { %8782 = vmatmul.msk.bf16.gmra.mxu0 %vm1078_vm2, %v9413_v15  ;;  %v894_v19 = vrot.slane %v807_v17, 1 }
  0x87   : > { %1665 = vperm.xlu2 %10456, %v8693_v16  }
  0x88   : > { %582 = vperm.xlu0 %10454, %v275_v18   ;;  %1656 = vperm.xlu1 %10455, %v8692_v21   ;;  %v394_v21 = vld [vmem:[%s10776_s15 + $0x70] sm:$0xf] }
  0x89   : > { %v10956_v34 = vpop.permute.xlu2 %699  ;;  %426 = vst.msk [vmem:[#allocation2 + $0x7c] sm:$0xf] %vm327_vm1, %v394_v21 }
  0x8a   : > { %v619_v26 = vpop.permute.xlu1 %618  ;;  %v601_v27 = vpop.permute.xlu0 %600 }
  0x8b   : > { %v624_v32 = vperm.slane %v619_v26, %v10941_v25  ;;  %v606_v35 = vperm.slane %v601_v27, %v10941_v25  ;;  %v888_v26 = vrot.slane %v804_v62, 1  ;;  %v8702_v62 = vld [vmem:[%s15509_s3 + $0x158] sm:$0xf] }
  0x8c   : > { %8789 = vmatmul.msk.bf16.gmra.mxu2 %vm1078_vm2, %v9420_v38  ;;  %v9544_v38 = vunpack.c.h.bf16 %v10234_v30 }
  0x8d   : > { %v801_v39 = vunpack.c.l.bf16 %v624_v32  ;;  %v10963_v42 = vunpack.c.l.bf16 %v606_v35 }
  0x8f   : > { %1683 = vperm.xlu2 %10456, %v8695_v29   ;;  %v882_v54 = vrot.slane %v801_v39, 1  ;;  %v15515_v57 = vrot.slane %v10963_v42, 1  ;;  %v395_v39 = vld [vmem:[%s10776_s15 + $0x74] sm:$0xf] }
  0x90   : > { %591 = vperm.xlu0 %10454, %v276_v31   ;;  %1674 = vperm.xlu1 %10455, %v8694_v33   ;;  %v8700_v31 = vld [vmem:[%s15509_s3 + $0x150] sm:$0xf]  ;;  %427 = vst.msk [vmem:[#allocation2 + $0x80] sm:$0xf] %vm327_vm1, %v395_v39 }
  0x91   : > { %v10989_v4 = vpop.permute.xlu2 %726 }
  0x92   : > { %v628_v40 = vpop.permute.xlu1 %627  ;;  %v610_v41 = vpop.permute.xlu0 %609 }
  0x93   : > { %v633_v43 = vperm.slane %v628_v40, %v10941_v25  ;;  %v615_v44 = vperm.slane %v610_v41, %v10941_v25 }
  0x95   : > { %v802_v50 = vunpack.c.l.bf16 %v633_v43  ;;  %v800_v51 = vunpack.c.l.bf16 %v615_v44  ;;  %v9543_v43 = vunpack.c.l.bf16 %v10234_v30  ;;  %v11044_v44 = vsel %vm848_vm3, %v886_v49, %v888_v26 }
  0x96   : > { %8783 = vmatmul.msk.bf16.gmra.mxu0 %vm1078_vm2, %v9414_v47  ;;  %15745 = vst [vmem:[#allocation15_spill] sm:$0xff] %v11044_v44  ;;  %v9421_v47 = vld [vmem:[#allocation2 + $0x6c] sm:$0xff] }
  0x97   : > { %v884_v58 = vrot.slane %v802_v50, 1  ;;  %v880_v59 = vrot.slane %v800_v51, 1  ;;  %1710 = vperm.xlu2 %10456, %v8698_v48  }
  0x98   : > { %1692 = vperm.xlu0 %10454, %v8696_v52   ;;  %1701 = vperm.xlu1 %10455, %v8697_v55   ;;  %v9415_v55 = vld [vmem:[#allocation2 + $0x3c] sm:$0xff] }
  0x99   : > { %v10992_v5 = vsel %vm848_vm3, %v882_v54, %v884_v58  ;;  %v10997_v6 = vsel %vm848_vm3, %v884_v58, %v886_v49  ;;  %v11002_v7 = vsel %vm848_vm3, %v15515_v57, %v880_v59  ;;  %v11005_v8 = vsel %vm848_vm3, %v880_v59, %v882_v54  ;;  %v1549_v49 = vpop.permute.xlu2 %1548  ;;  %v8704_v59 = vld [vmem:[%s15509_s3 + $0x160] sm:$0xf] }
  0x9a   : > { %15741 = vst [vmem:[#allocation11_spill] sm:$0xff] %v10992_v5  ;;  %v11011_v11 = vpop.permute.xlu1 %663  ;;  %v655_v12 = vpop.permute.xlu0 %654  ;;  %v961_v15 = vmul.f32 %v9535_v56, %v11002_v7  ;;  %v962_v18 = vmul.f32 %v9536_v60, %v11005_v8  ;;  %v963_v23 = vmul.f32 %v9539_v1, %v10992_v5  ;;  %v964_v24 = vmul.f32 %v9540_v3, %v10997_v6 }
  0x9b   : > { %15742 = vst [vmem:[#allocation12_spill] sm:$0xff] %v10997_v6  ;;  %v660_v16 = vperm.slane %v655_v12, %v10941_v25  ;;  %v669_v54 = vperm.slane %v11011_v11, %v10941_v25  ;;  %v965_v60 = vmul.f32 %v9543_v43, %v11044_v44  ;;  %v9424_v43 = vld [vmem:[#allocation2 + $0xc] sm:$0xff] }
  0x9c   : > { %15743 = vst [vmem:[#allocation13_spill] sm:$0xff] %v11002_v7  ;;  %v986_v29 = vpack.c.bf16 %v962_v18, %v961_v15  ;;  %v987_v32 = vpack.c.bf16 %v964_v24, %v963_v23  ;;  %8790 = vmatmul.msk.bf16.gmra.mxu2 %vm1078_vm2, %v9421_v47  ;;  %v8707_v18 = vld [vmem:[%s15509_s3 + $0x16c] sm:$0xf] }
  0x9d   : > { %15744 = vst [vmem:[#allocation14_spill] sm:$0xff] %v11005_v8  ;;  %v11028_v27 = vunpack.c.l.bf16 %v660_v16  ;;  %v806_v3 = vunpack.c.l.bf16 %v669_v54 }
  0x9e   : > { %v1293_v35 = vshrl.u32 %v986_v29, 16  ;;  %v1296_v36 = vshll.u32 %v986_v29, 16  ;;  %v1302_v40 = vshrl.u32 %v987_v32, 16  ;;  %v1305_v41 = vshll.u32 %v987_v32, 16  ;;  %v9422_v32 = vld [vmem:[#allocation2 + $0x74] sm:$0xff] }
  0x9f   : > { %v890_v33 = vrot.slane %v11028_v27, 1  ;;  %1737 = vperm.xlu2 %10456, %v8701_v22   ;;  %v892_v13 = vrot.slane %v806_v3, 1  ;;  %v8706_v22 = vld [vmem:[%s15509_s3 + $0x168] sm:$0xf]  ;;  %v9548_v27 = vunpack.c.h.bf16 %v10235_v14 }
  0xa0   : > { %1719 = vperm.xlu0 %10454, %v8699_v28   ;;  %1728 = vperm.xlu1 %10455, %v8700_v31   ;;  %v1295_v46 = vrot.slane %v1293_v35, 3  ;;  %v1298_v51 = vrot.slane %v1296_v36, 4  ;;  %v1304_v52 = vrot.slane %v1302_v40, 3  ;;  %v1307_v53 = vrot.slane %v1305_v41, 4  ;;  %v11094_v35 = vpop.f32.mrf.mxu0 }
  0xa1   : > { %v11047_v45 = vsel %vm848_vm3, %v888_v26, %v890_v33  ;;  %v475_v21 = vpop.permute.xlu2 %474  ;;  %v9547_v26 = vunpack.c.l.bf16 %v10235_v14  ;;  %v11087_v28 = vsel %vm848_vm3, %v892_v13, %v894_v19  ;;  %v11090_v29 = vsel %vm848_vm3, %v890_v33, %v892_v13 }
  0xa2   : > { %15746 = vst [vmem:[#allocation16_spill] sm:$0xff] %v11047_v45  ;;  %v691_v48 = vpop.permute.xlu1 %690  ;;  %v682_v50 = vpop.permute.xlu0 %681  ;;  %v966_v37 = vmul.f32 %v9544_v38, %v11047_v45  ;;  %v11052_v56 = vor.u32 %v1298_v51, %v1295_v46  ;;  %v1308_v58 = vor.u32 %v1307_v53, %v1304_v52  ;;  %v968_v33 = vmul.f32 %v9548_v27, %v11087_v28  ;;  %v8708_v52 = vld [vmem:[%s15509_s3 + $0x170] sm:$0xf]  ;;  %v8711_v27 = vld [vmem:[%s15509_s3 + $0x17c] sm:$0xf] }
  0xa3   : > { %v696_v15 = vperm.slane %v691_v48, %v10941_v25  ;;  %v687_v16 = vperm.slane %v682_v50, %v10941_v25  ;;  %15747 = vst [vmem:[#allocation17_spill] sm:$0xff] %v11087_v28  ;;  %v967_v40 = vmul.f32 %v9547_v26, %v11090_v29  ;;  %v1554_v41 = vperm.slane %v1549_v49, %v10941_v25  ;;  %v8710_v48 = vld [vmem:[%s15509_s3 + $0x178] sm:$0xf]  ;;  %v10236_v50 = vld [vmem:[#allocation2 + $0x60] sm:$0xff]  }
  0xa4   : > { %v1309_v63 = vsel %vm1220_vm4, %v11052_v56, %v1308_v58  ;;  %v988_v1 = vpack.c.bf16 %v966_v37, %v965_v60  ;;  %15748 = vst [vmem:[#allocation18_spill] sm:$0xff] %v11090_v29  ;;  %v705_v51 = vperm.slane %v10956_v34, %v10941_v25  ;;  %v732_v53 = vperm.slane %v10989_v4, %v10941_v25  ;;  %v8709_v37 = vld [vmem:[%s15509_s3 + $0x174] sm:$0xf] }
  0xa5   : > { %8801 = vmatmul.msk.bf16.vlgmr.msra.gmra.mxu3 %vm1078_vm2, %v1309_v63  ;;  %v11092_v30 = vunpack.c.l.bf16 %v696_v15  ;;  %v808_v31 = vunpack.c.l.bf16 %v687_v16  ;;  %v1867_v49 = vunpack.c.l.bf16 %v1554_v41  ;;  %v9551_v34 = vunpack.c.l.bf16 %v10236_v50 }
  0xa6   : > { %8784 = vmatmul.msk.bf16.gmra.mxu0 %vm1078_vm2, %v9415_v55  ;;  %v1311_v11 = vshrl.u32 %v988_v1, 16  ;;  %v1314_v12 = vshll.u32 %v988_v1, 16  ;;  %v989_v55 = vpack.c.bf16 %v968_v33, %v967_v40  ;;  %v9552_v60 = vunpack.c.h.bf16 %v10236_v50 }
  0xa7   : > { %1764 = vperm.xlu2 %10456, %v8704_v59   ;;  %v898_v46 = vrot.slane %v11092_v30, 1  ;;  %v896_v47 = vrot.slane %v808_v31, 1  ;;  %v480_v59 = vperm.slane %v475_v21, %v10941_v25  ;;  %v11135_v1 = vunpack.c.l.bf16 %v732_v53  ;;  %v10237_v30 = vld [vmem:[#allocation2 + $0x68] sm:$0xff]   ;;  %v9423_v53 = vld [vmem:[#allocation2 + $0x7c] sm:$0xff] }
  0xa8   : > { %1746 = vperm.xlu0 %10454, %v8702_v62   ;;  %1755 = vperm.xlu1 %10455, %v8703_v0   ;;  %v1313_v23 = vrot.slane %v1311_v11, 3  ;;  %v1316_v24 = vrot.slane %v1314_v12, 4  ;;  %v810_v0 = vunpack.c.l.bf16 %v705_v51  ;;  %v1320_v17 = vshrl.u32 %v989_v55, 16  ;;  %v11139_v14 = vpop.f32.mrf.mxu0 }
  0xa9   : > { %v11126_v4 = vsel %vm848_vm3, %v894_v19, %v896_v47  ;;  %v11133_v63 = vpop.permute.xlu2 %1566  ;;  %v1323_v11 = vshll.u32 %v989_v55, 16  ;;  %v1834_v12 = vunpack.c.l.bf16 %v1513_v61  ;;  %v11137_v13 = vrot.slane %v1867_v49, 7 }
  0xaa   : > { %v11071_v9 = vpop.permute.xlu1 %717  ;;  %v11073_v10 = vpop.permute.xlu0 %708  ;;  %v11100_v39 = vor.u32 %v1316_v24, %v1313_v23  ;;  %15749 = vst [vmem:[#allocation19_spill] sm:$0xff] %v11126_v4  ;;  %v11144_v19 = vunpack.c.l.bf16 %v480_v59  ;;  %v431_v23 = vld [vmem:[#allocation2 + $0x4] sm:$0xf]  ;;  %v900_v24 = vrot.slane %v810_v0, 1  ;;  %v1322_v40 = vrot.slane %v1320_v17, 3  ;;  %v11168_v59 = vld [vmem:[#allocation2 + $0x8] sm:$0xff]  }
  0xab   : > { %v714_v62 = vperm.slane %v11073_v10, %v10941_v25  ;;  %15751 = vst [vmem:[#allocation21_spill] sm:$0xff] %v11137_v13  ;;  %v969_v10 = vmul.f32 %v9551_v34, %v11126_v4  ;;  %v1325_v33 = vrot.slane %v1323_v11, 4  ;;  %v1572_v55 = vperm.slane %v11133_v63, %v10941_v25 }
  0xac   : > { %8791 = vmatmul.msk.bf16.gmra.mxu2 %vm1078_vm2, %v9422_v32  ;;  %v1318_v54 = vsel %vm1220_vm4, %v1308_v58, %v11100_v39  ;;  %v11129_v58 = vsel %vm848_vm3, %v896_v47, %v898_v46  ;;  %v850_v50 = vrot.slane %v11144_v19, 1  ;;  %v9556_v34 = vunpack.c.h.bf16 %v10237_v30 }
  0xad   : > { %15750 = vst [vmem:[#allocation20_spill] sm:$0xff] %v11129_v58  ;;  %v11172_v0 = vor.u32 %v1325_v33, %v1322_v40 }
  0xaf   : > { %1791 = vperm.xlu2 %10456, %v8707_v18   ;;  %v970_v18 = vmul.f32 %v9552_v60, %v11129_v58  ;;  %v723_v60 = vperm.slane %v11071_v9, %v10941_v25  ;;  %v1327_v40 = vsel %vm1220_vm4, %v11100_v39, %v11172_v0 }
  0xb0   : > { %1773 = vperm.xlu0 %10454, %v8705_v20   ;;  %1782 = vperm.xlu1 %10455, %v8706_v22   ;;  %v11146_v20 = vunpack.c.l.bf16 %v714_v62  ;;  %v430_v22 = vld [vmem:[#allocation2] sm:$0x8] }
  0xb1   : > { %v751_v41 = vunpack.c.l.bf16 %v430_v22  ;;  %v990_v47 = vpack.c.bf16 %v970_v18, %v969_v10  ;;  %v511_v61 = vpop.permute.xlu2 %510  ;;  %v9507_v18 = vunpack.c.l.bf16 %v11168_v59 }
  0xb2   : > { %v11096_v36 = vpop.permute.xlu1 %744  ;;  %v11098_v38 = vpop.permute.xlu0 %735  ;;  %v15516_v51 = vrot.slane %v11146_v20, 1  ;;  %v516_v22 = vperm.slane %v511_v61, %v10941_v25 }
  0xb3   : > { %v1332_v19 = vshll.u32 %v990_v47, 16 }
  0xb4   : > { %v11184_v9 = vsel %vm848_vm3, %v900_v24, %v15516_v51  ;;  %v10241_v51 = vld [vmem:[#allocation2 + $0x10] sm:$0xff]  }
  0xb5   : > { %8802 = vmatmul.msk.bf16.gmra.mxu3 %vm1078_vm2, %v1318_v54  ;;  %v9555_v54 = vunpack.c.l.bf16 %v10237_v30  ;;  %15755 = vst [vmem:[#allocation25_spill] sm:$0xff] %v11184_v9  ;;  %v1869_v30 = vunpack.c.l.bf16 %v1572_v55 }
  0xb6   : > { %8908 = vmatmul.msk.bf16.vlgmr.msrb.gmra.mxu0 %vm1078_vm2, %v9424_v43  ;;  %v752_v43 = vunpack.c.l.bf16 %v431_v23 }
  0xb7   : > { %1818 = vperm.xlu2 %10456, %v8710_v48   ;;  %v11156_v48 = vmul.f32 %v11137_v13, %v1834_v12  ;;  %v1329_v12 = vshrl.u32 %v990_v47, 16 }
  0xb8   : > { %1800 = vperm.xlu0 %10454, %v8708_v52   ;;  %1809 = vperm.xlu1 %10455, %v8709_v37   ;;  %v11163_v37 = vsel %vm848_vm3, %v898_v46, %v900_v24 }
  0xb9   : > { %15753 = vst [vmem:[#allocation23_spill] sm:$0xff] %v11163_v37  ;;  %v971_v33 = vmul.f32 %v9555_v54, %v11163_v37  ;;  %v9508_v54 = vunpack.c.h.bf16 %v11168_v59 }
  0xba   : > { %v1558_v3 = vpop.permute.xlu0 %1557  ;;  %v466_v16 = vpop.permute.xlu1 %465 }
  0xbb   : > { %v1563_v15 = vperm.slane %v1558_v3, %v10941_v25  ;;  %v471_v21 = vperm.slane %v466_v16, %v10941_v25  ;;  %v10300_v16 = vld [vmem:[#allocation2 + $0x18] sm:$0xff]  }
  0xbc   : > { %8792 = vmatmul.msk.bf16.gmra.mxu2 %vm1078_vm2, %v9423_v53  ;;  %v1331_v53 = vrot.slane %v1329_v12, 3 }
  0xbd   : > { %v11149_v26 = vunpack.c.l.bf16 %v1563_v15  ;;  %v784_v32 = vunpack.c.l.bf16 %v471_v21  ;;  %v9425_v15 = vld [vmem:[#allocation2 + $0x14] sm:$0xff] }
  0xbf   : > { %v11160_v52 = vrot.slane %v784_v32, 1  ;;  %v15517_v49 = vrot.slane %v11149_v26, 7 }
  0xc0   : > { %1827 = vperm.xlu0 %10454, %v8711_v27  }
  0xc1   : > { %15752 = vst [vmem:[#allocation22_spill] sm:$0xff] %v11160_v52  ;;  %v11176_v46 = vsel %vm848_vm3, %v11160_v52, %v850_v50  ;;  %v945_v17 = vmul.f32 %v11160_v52, %v751_v41  ;;  %v11196_v23 = vsel %vm1931_vm5, %v11137_v13, %v15517_v49  ;;  %v11202_v41 = vunpack.c.l.bf16 %v10300_v16 }
  0xc2   : > { %v484_v62 = vpop.permute.xlu0 %483  ;;  %15754 = vst [vmem:[#allocation24_spill] sm:$0xff] %v11176_v46  ;;  %v493_v63 = vpop.permute.xlu1 %492  ;;  %v946_v11 = vmul.f32 %v11176_v46, %v752_v43  ;;  %v11204_v43 = vunpack.c.h.bf16 %v10300_v16  ;;  %v2029_v55 = vmul.f32 %v9507_v18, %v11196_v23 }
  0xc3   : > { %v489_v3 = vperm.slane %v484_v62, %v10941_v25  ;;  %v498_v10 = vperm.slane %v493_v63, %v10941_v25  ;;  %v11189_v21 = vpop.f32.mrf.mxu0  ;;  %15756 = vst [vmem:[#allocation26_spill] sm:$0xff] %v11196_v23  ;;  %v1334_v62 = vrot.slane %v1332_v19, 4  ;;  %v11210_v63 = vunpack.c.l.bf16 %v516_v22 }
  0xc4   : > { %v978_v27 = vpack.c.bf16 %v946_v11, %v945_v17  ;;  %v11222_v19 = vunpack.c.l.bf16 %v723_v60 }
  0xc5   : > { %v786_v24 = vunpack.c.l.bf16 %v489_v3  ;;  %v787_v32 = vunpack.c.l.bf16 %v498_v10  ;;  %8803 = vmatmul.msk.bf16.gmra.mxu3 %vm1078_vm2, %v1327_v40  ;;  %v972_v3 = vmul.f32 %v9556_v34, %v11184_v9  ;;  %v11229_v40 = vor.u32 %v1334_v62, %v1331_v53 }
  0xc6   : > { %8909 = vmatmul.msk.bf16.gmra.mxu0 %vm1078_vm2, %v9425_v15  ;;  %v1222_v17 = vshrl.u32 %v978_v27, 16  ;;  %v1225_v10 = vshll.u32 %v978_v27, 16  ;;  %v15761_v53 = vrot.slane %v11149_v26, 7 }
  0xc7   : > { %v852_v47 = vrot.slane %v786_v24, 1  ;;  %v854_v61 = vrot.slane %v787_v32, 1  ;;  %v1935_v24 = vrot.slane %v1869_v30, 7  ;;  %v11236_v31 = vpack.c.bf16 %v972_v3, %v971_v33 }
  0xc8   : > { %v1224_v30 = vrot.slane %v1222_v17, 3  ;;  %v1227_v9 = vrot.slane %v1225_v10, 4  ;;  %v9512_v17 = vunpack.c.h.bf16 %v10241_v51 }
  0xc9   : > { %v11213_v39 = vsel %vm848_vm3, %v850_v50, %v852_v47  ;;  %v11219_v12 = vsel %vm848_vm3, %v852_v47, %v854_v61  ;;  %v2061_v47 = vpack.c.bf16 %v2029_v55, %v11156_v48  ;;  %v11242_v62 = vsel %vm1931_vm5, %v15761_v53, %v1935_v24 }
  0xca   : > { %15757 = vst [vmem:[#allocation27_spill] sm:$0xff] %v11213_v39  ;;  %v3571_v11 = vmul.f32 %v11202_v41, %v11213_v39  ;;  %v1576_v15 = vpop.permute.xlu0 %1575  ;;  %v947_v16 = vmul.f32 %v9507_v18, %v11213_v39  ;;  %v3572_v34 = vmul.f32 %v11204_v43, %v11219_v12  ;;  %v502_v22 = vpop.permute.xlu1 %501  ;;  %v948_v59 = vmul.f32 %v9508_v54, %v11219_v12 }
  0xcb   : > { %15758 = vst [vmem:[#allocation28_spill] sm:$0xff] %v11219_v12  ;;  %v1581_v50 = vperm.slane %v1576_v15, %v10941_v25  ;;  %v507_v32 = vperm.slane %v502_v22, %v10941_v25  ;;  %v11232_v2 = vpop.f32.mrf.mxu0  ;;  %v520_v18 = vpop.permute.xlu2 %519  ;;  %v15520_v15 = vrot.slane %v11210_v63, 1 }
  0xcc   : > { %15759 = vst [vmem:[#allocation29_spill] sm:$0xff] %v11232_v2  ;;  %v11234_v60 = vpack.c.bf16 %v3572_v34, %v3571_v11  ;;  %v979_v57 = vpack.c.bf16 %v948_v59, %v947_v16  ;;  %v525_v11 = vperm.slane %v520_v18, %v10941_v25  ;;  %v9571_v16 = vunpack.c.l.bf16 %v10241_v51 }
  0xcd   : > { %v1870_v27 = vunpack.c.l.bf16 %v1581_v50  ;;  %v788_v49 = vunpack.c.l.bf16 %v507_v32  ;;  %15762 = vst [vmem:[#allocation31_spill] sm:$0xff] %v11242_v62  ;;  %v2084_v50 = vshll.u32 %v2061_v47, 16  ;;  %v1228_v32 = vor.u32 %v1227_v9, %v1224_v30 }
  0xce   : > { %15760 = vst [vmem:[#allocation30_spill] sm:$0xff] %v11234_v60  ;;  %v1230_v55 = vshrl.u32 %v979_v57, 16  ;;  %v1233_v22 = vshll.u32 %v979_v57, 16  ;;  %v790_v60 = vunpack.c.l.bf16 %v525_v11 }
  0xcf   : > { %v1937_v48 = vrot.slane %v1870_v27, 7  ;;  %v856_v34 = vrot.slane %v788_v49, 1  ;;  %v2030_v49 = vmul.f32 %v9508_v54, %v11242_v62 }
  0xd0   : > { %v1232_v3 = vrot.slane %v1230_v55, 3  ;;  %v1235_v59 = vrot.slane %v1233_v22, 4  ;;  %v1336_v22 = vsel %vm1220_vm4, %v11172_v0, %v11229_v40  ;;  %v2454_v0 = vmul.f32 %v9512_v17, %v11219_v12 }
  0xd1   : > { %v11246_v33 = vsel %vm1931_vm5, %v1935_v24, %v1937_v48  ;;  %v11249_v10 = vsel %vm848_vm3, %v854_v61, %v856_v34  ;;  %v11254_v26 = vsel %vm848_vm3, %v856_v34, %v15520_v15  ;;  %v9426_v61 = vld [vmem:[#allocation2 + $0x1c] sm:$0xff]  ;;  %v2086_v34 = vrot.slane %v2084_v50, 1 }
  0xd2   : > { %15763 = vst [vmem:[#allocation32_spill] sm:$0xff] %v11246_v33  ;;  %v1585_v57 = vpop.permute.xlu0 %1584  ;;  %v1594_v27 = vpop.permute.xlu1 %1593  ;;  %v11258_v24 = vor.u32 %v1235_v59, %v1232_v3  ;;  %v2031_v53 = vmul.f32 %v9571_v16, %v11246_v33  ;;  %v949_v51 = vmul.f32 %v9571_v16, %v11249_v10  ;;  %v950_v9 = vmul.f32 %v9512_v17, %v11254_v26 }
  0xd3   : > { %15764 = vst [vmem:[#allocation33_spill] sm:$0xff] %v11249_v10  ;;  %v1590_v18 = vperm.slane %v1585_v57, %v10941_v25  ;;  %v1599_v55 = vperm.slane %v1594_v27, %v10941_v25  ;;  %v11267_v54 = vpop.f32.mrf.mxu0  ;;  %v2453_v57 = vmul.f32 %v9571_v16, %v11213_v39  ;;  %v2082_v27 = vshrl.u32 %v2061_v47, 16 }
  0xd4   : > { %15765 = vst [vmem:[#allocation34_spill] sm:$0xff] %v11254_v26  ;;  %v1237_v3 = vsel %vm1220_vm4, %v1228_v32, %v11258_v24  ;;  %v11271_v59 = vpack.c.bf16 %v2031_v53, %v2030_v49  ;;  %v980_v37 = vpack.c.bf16 %v950_v9, %v949_v51  ;;  %v904_v50 = vrot.slane %v11222_v19, 1  ;;  %v11281_v49 = vpop.f32.mrf.mxu2 }
  0xd5   : > { %15766 = vst [vmem:[#allocation35_spill] sm:$0xff] %v11267_v54  ;;  %v1871_v30 = vunpack.c.l.bf16 %v1590_v18  ;;  %v11274_v15 = vunpack.c.l.bf16 %v1599_v55  ;;  %8793 = vmatmul.msk.bf16.vlgmr.msra.gmra.mxu1 %vm1078_vm2, %v1237_v3  ;;  %8804 = vmatmul.msk.bf16.gmra.mxu3 %vm1078_vm2, %v1336_v22  ;;  %v10238_v18 = vld [vmem:[#allocation2 + $0x70] sm:$0xff]   ;;  %v2087_v47 = vor.u32 %v2086_v34, %v2082_v27  ;;  %v11290_v55 = vpack.c.bf16 %v2454_v0, %v2453_v57  ;;  %v1612_v3 = vpop.permute.xlu2 %1611 }
  0xd6   : > { %v2089_v32 = vshll.u32 %v11271_v59, 16  ;;  %15767 = vst [vmem:[#allocation36_spill] sm:$0xff] %v11281_v49  ;;  %8910 = vmatmul.msk.bf16.gmra.mxu0 %vm1078_vm2, %v9426_v61  ;;  %v1239_v53 = vshrl.u32 %v980_v37, 16  ;;  %v1242_v11 = vshll.u32 %v980_v37, 16  ;;  %v1338_v61 = vshrl.u32 %v11236_v31, 16 }
  0xd7   : > { %v1939_v58 = vrot.slane %v1871_v30, 7  ;;  %v15526_v16 = vrot.slane %v11274_v15, 7  ;;  %v1341_v30 = vshll.u32 %v11236_v31, 16  ;;  %v9559_v34 = vunpack.c.l.bf16 %v10238_v18 }
  0xd8   : > { %v11288_v19 = vrot.slane %v2089_v32, 1  ;;  %v15772_v12 = vrot.slane %v11146_v20, 1  ;;  %v1241_v49 = vrot.slane %v1239_v53, 3  ;;  %v1244_v4 = vrot.slane %v1242_v11, 4 }
  0xd9   : > { %v11286_v51 = vsel %vm1931_vm5, %v1937_v48, %v1939_v58  ;;  %v11295_v22 = vsel %vm1931_vm5, %v1939_v58, %v15526_v16  ;;  %v15770_v58 = vrot.slane %v11135_v1, 1  ;;  %v860_v16 = vrot.slane %v790_v60, 1 }
  0xda   : > { %15768 = vst [vmem:[#allocation37_spill] sm:$0xff] %v11286_v51  ;;  %v529_v9 = vpop.permute.xlu0 %528  ;;  %v1603_v27 = vpop.permute.xlu1 %1602  ;;  %v2092_v37 = vsel %vm2080_vm6, %v2087_v47, %v11288_v19  ;;  %v2032_v57 = vmul.f32 %v9512_v17, %v11286_v51  ;;  %v2033_v0 = vmul.f32 %v11202_v41, %v11295_v22  ;;  %v11315_v47 = vsel %vm848_vm3, %v15772_v12, %v904_v50 }
  0xdb   : > { %15769 = vst [vmem:[#allocation38_spill] sm:$0xff] %v11295_v22  ;;  %v534_v48 = vperm.slane %v529_v9, %v10941_v25  ;;  %v11308_v32 = vsel %vm848_vm3, %v904_v50, %v15770_v58  ;;  %v1608_v31 = vperm.slane %v1603_v27, %v10941_v25  ;;  %8810 = vmatmul.msk.bf16.vlgmr.msrb.gmra.mxu2 %vm1078_vm2, %v2092_v37  ;;  %v9560_v9 = vunpack.c.h.bf16 %v10238_v18  ;;  %v11317_v17 = vpop.f32.mrf.mxu0 }
  0xdc   : > { %15771 = vst [vmem:[#allocation39_spill] sm:$0xff] %v11308_v32  ;;  %v1617_v58 = vperm.slane %v1612_v3, %v10941_v25  ;;  %v1340_v28 = vrot.slane %v1338_v61, 3  ;;  %v1343_v60 = vrot.slane %v1341_v30, 4  ;;  %v741_v27 = vperm.slane %v11098_v38, %v10941_v25  ;;  %v11325_v37 = vpop.f32.mrf.mxu2 }
  0xdd   : > { %15773 = vst [vmem:[#allocation40_spill] sm:$0xff] %v11315_v47  ;;  %v11319_v39 = vunpack.c.l.bf16 %v534_v48  ;;  %v11327_v20 = vpack.c.bf16 %v2033_v0, %v2032_v57  ;;  %v15776_v12 = vrot.slane %v11210_v63, 1  ;;  %v1873_v53 = vunpack.c.l.bf16 %v1608_v31 }
  0xde   : > { %15774 = vst [vmem:[#allocation41_spill] sm:$0xff] %v11317_v17  ;;  %v973_v11 = vmul.f32 %v9559_v34, %v11315_v47  ;;  %v974_v61 = vmul.f32 %v9560_v9, %v11308_v32  ;;  %v11341_v30 = vor.u32 %v1244_v4, %v1241_v49  ;;  %v11343_v3 = vunpack.c.l.bf16 %v1617_v58 }
  0xdf   : > { %v15535_v18 = vrot.slane %v11319_v39, 1  ;;  %15775 = vst [vmem:[#allocation42_spill] sm:$0xff] %v11325_v37  ;;  %v11332_v50 = vsel %vm848_vm3, %v15776_v12, %v860_v16  ;;  %v11345_v57 = vor.u32 %v1343_v60, %v1340_v28  ;;  %v750_v34 = vperm.slane %v11096_v36, %v10941_v25  ;;  %v11362_v37 = vld [vmem:[#allocation2 + $0x20] sm:$0xff]  }
  0xe0   : > { %15777 = vst [vmem:[#allocation43_spill] sm:$0xff] %v11332_v50  ;;  %v2097_v9 = vshll.u32 %v11327_v20, 16  ;;  %v951_v4 = vmul.f32 %v11202_v41, %v11332_v50  ;;  %v814_v49 = vunpack.c.l.bf16 %v741_v27  ;;  %v1943_v58 = vrot.slane %v1873_v53, 7 }
  0xe1   : > { %v11339_v38 = vsel %vm848_vm3, %v860_v16, %v15535_v18  ;;  %v9427_v16 = vld [vmem:[#allocation2 + $0x24] sm:$0xff]  ;;  %v992_v60 = vpack.c.bf16 %v974_v61, %v973_v11  ;;  %v1246_v36 = vsel %vm1220_vm4, %v11258_v24, %v11341_v30  ;;  %v1345_v27 = vsel %vm1220_vm4, %v11229_v40, %v11345_v57  ;;  %v1621_v11 = vpop.permute.xlu2 %1620 }
  0xe2   : > { %15778 = vst [vmem:[#allocation44_spill] sm:$0xff] %v11339_v38  ;;  %v538_v48 = vpop.permute.xlu0 %537  ;;  %v952_v63 = vmul.f32 %v11204_v43, %v11339_v38  ;;  %v547_v31 = vpop.permute.xlu1 %546  ;;  %v815_v53 = vunpack.c.l.bf16 %v750_v34  ;;  %v2093_v24 = vshrl.u32 %v11271_v59, 16  ;;  %v11372_v61 = vrot.slane %v2097_v9, 1 }
  0xe3   : > { %v543_v0 = vperm.slane %v538_v48, %v10941_v25  ;;  %v552_v28 = vperm.slane %v547_v31, %v10941_v25  ;;  %v11356_v12 = vpop.f32.mrf.mxu0  ;;  %v15540_v48 = vrot.slane %v11343_v3, 7  ;;  %v908_v31 = vrot.slane %v814_v49, 1 }
  0xe4   : > { %15779 = vst [vmem:[#allocation45_spill] sm:$0xff] %v11356_v12  ;;  %v981_v18 = vpack.c.bf16 %v952_v63, %v951_v4  ;;  %v11374_v63 = vpop.f32.mrf.mxu2  ;;  %v1347_v34 = vshrl.u32 %v992_v60, 16  ;;  %v11388_v59 = vunpack.c.l.bf16 %v11362_v37  ;;  %v2095_v9 = vor.u32 %v2093_v24, %v11288_v19 }
  0xe5   : > { %v792_v32 = vunpack.c.l.bf16 %v543_v0  ;;  %v11364_v47 = vunpack.c.l.bf16 %v552_v28  ;;  %8794 = vmatmul.msk.bf16.gmra.mxu1 %vm1078_vm2, %v1246_v36  ;;  %8805 = vmatmul.msk.bf16.gmra.mxu3 %vm1078_vm2, %v1345_v27  ;;  %15780 = vst [vmem:[#allocation46_spill] sm:$0xff] %v11374_v63  ;;  %v15781_v0 = vrot.slane %v11274_v15, 7  ;;  %v11385_v40 = vsel %vm1931_vm5, %v1943_v58, %v15540_v48  ;;  %v10239_v36 = vld [vmem:[#allocation2 + $0x78] sm:$0xff]  }
  0xe6   : > { %8911 = vmatmul.msk.bf16.gmra.mxu0 %vm1078_vm2, %v9427_v16  ;;  %15783 = vst [vmem:[#allocation48_spill] sm:$0xff] %v11385_v40  ;;  %v1248_v28 = vshrl.u32 %v981_v18, 16  ;;  %v1251_v49 = vshll.u32 %v981_v18, 16  ;;  %v11392_v63 = vrot.slane %v815_v53, 1  ;;  %v2035_v29 = vmul.f32 %v11388_v59, %v11385_v40 }
  0xe7   : > { %v11380_v4 = vsel %vm1931_vm5, %v15781_v0, %v1943_v58  ;;  %v864_v16 = vrot.slane %v792_v32, 1  ;;  %v1350_v0 = vshll.u32 %v992_v60, 16  ;;  %v2100_v58 = vsel %vm2080_vm6, %v2095_v9, %v11372_v61 }
  0xe8   : > { %15782 = vst [vmem:[#allocation47_spill] sm:$0xff] %v11380_v4  ;;  %v2034_v48 = vmul.f32 %v11204_v43, %v11380_v4  ;;  %v9563_v32 = vunpack.c.l.bf16 %v10239_v36  ;;  %v9564_v18 = vunpack.c.h.bf16 %v10239_v36  ;;  %v15785_v24 = vrot.slane %v11135_v1, 1 }
  0xe9   : > { %15784 = vst [vmem:[#allocation49_spill] sm:$0xff] %v11392_v63  ;;  %v1250_v9 = vrot.slane %v1248_v28, 3  ;;  %v1253_v15 = vrot.slane %v1251_v49, 4  ;;  %v1349_v44 = vrot.slane %v1347_v34, 3  ;;  %v1626_v45 = vperm.slane %v1621_v11, %v10941_v25 }
  0xea   : > { %v1630_v27 = vpop.permute.xlu0 %1629  ;;  %v11405_v60 = vsel %vm848_vm3, %v15785_v24, %v908_v31  ;;  %v15788_v6 = vrot.slane %v11319_v39, 1  ;;  %v1352_v1 = vrot.slane %v1350_v0, 4  ;;  %v11422_v24 = vsel %vm848_vm3, %v908_v31, %v11392_v63  ;;  %v556_v28 = vpop.permute.xlu1 %555 }
  0xeb   : > { %v1635_v19 = vperm.slane %v1630_v27, %v10941_v25  ;;  %8811 = vmatmul.msk.bf16.gmra.mxu2 %vm1078_vm2, %v2100_v58  ;;  %15786 = vst [vmem:[#allocation50_spill] sm:$0xff] %v11405_v60  ;;  %v11407_v53 = vpop.f32.mrf.mxu0  ;;  %v15790_v58 = vrot.slane %v11364_v47, 1  ;;  %v11426_v34 = vpack.c.bf16 %v2035_v29, %v2034_v48  ;;  %v9520_v39 = vunpack.c.h.bf16 %v11362_v37 }
  0xec   : > { %15787 = vst [vmem:[#allocation51_spill] sm:$0xff] %v11407_v53  ;;  %v11413_v27 = vsel %vm848_vm3, %v15788_v6, %v864_v16  ;;  %v11424_v49 = vpop.f32.mrf.mxu2  ;;  %v565_v6 = vpop.permute.xlu2 %564  ;;  %v11431_v53 = vor.u32 %v1253_v15, %v1250_v9  ;;  %v975_v31 = vmul.f32 %v9563_v32, %v11405_v60  ;;  %v561_v5 = vperm.slane %v556_v28, %v10941_v25  ;;  %v9428_v15 = vld [vmem:[#allocation2 + $0x2c] sm:$0xff] }
  0xed   : > { %15789 = vst [vmem:[#allocation52_spill] sm:$0xff] %v11413_v27  ;;  %v11418_v36 = vsel %vm848_vm3, %v864_v16, %v15790_v58  ;;  %v11429_v11 = vunpack.c.l.bf16 %v1635_v19  ;;  %v953_v16 = vmul.f32 %v11388_v59, %v11413_v27  ;;  %v1875_v58 = vunpack.c.l.bf16 %v1626_v45 }
  0xee   : > { %15791 = vst [vmem:[#allocation53_spill] sm:$0xff] %v11418_v36  ;;  %v954_v0 = vmul.f32 %v9520_v39, %v11418_v36  ;;  %v976_v29 = vmul.f32 %v9564_v18, %v11422_v24  ;;  %v2105_v37 = vshll.u32 %v11426_v34, 16  ;;  %v570_v48 = vperm.slane %v565_v6, %v10941_v25 }
  0xef   : > { %15792 = vst [vmem:[#allocation54_spill] sm:$0xff] %v11422_v24  ;;  %v1255_v45 = vsel %vm1220_vm4, %v11341_v30, %v11431_v53  ;;  %v1947_v28 = vrot.slane %v1875_v58, 7  ;;  %v2101_v6 = vshrl.u32 %v11327_v20, 16 }
  0xf0   : > { %15793 = vst [vmem:[#allocation55_spill] sm:$0xff] %v11424_v49  ;;  %v11438_v49 = vor.u32 %v1352_v1, %v1349_v44  ;;  %v982_v32 = vpack.c.bf16 %v954_v0, %v953_v16  ;;  %v794_v44 = vunpack.c.l.bf16 %v561_v5  ;;  %v993_v1 = vpack.c.bf16 %v976_v29, %v975_v31  ;;  %v10244_v16 = vld [vmem:[#allocation2 + $0x28] sm:$0xff]  }
  0xf1   : > { %v11455_v19 = vrot.slane %v2105_v37, 1  ;;  %v11459_v60 = vunpack.c.l.bf16 %v570_v48  ;;  %v15796_v5 = vrot.slane %v11429_v11, 7  ;;  %v2103_v0 = vor.u32 %v2101_v6, %v11372_v61 }
  0xf2   : > { %v1639_v12 = vpop.permute.xlu0 %1638  ;;  %v1354_v18 = vsel %vm1220_vm4, %v11345_v57, %v11438_v49  ;;  %v1648_v57 = vpop.permute.xlu1 %1647  ;;  %v1257_v31 = vshrl.u32 %v982_v32, 16  ;;  %v1260_v58 = vshll.u32 %v982_v32, 16  ;;  %v11468_v20 = vunpack.c.l.bf16 %v10244_v16 }
  0xf3   : > { %v11444_v9 = vpop.f32.mrf.mxu0  ;;  %v11465_v30 = vsel %vm1931_vm5, %v1947_v28, %v15796_v5  ;;  %v15798_v29 = vrot.slane %v11343_v3, 7  ;;  %v868_v48 = vrot.slane %v794_v44, 1  ;;  %v2108_v5 = vsel %vm2080_vm6, %v2103_v0, %v11455_v19 }
  0xf4   : > { %15794 = vst [vmem:[#allocation56_spill] sm:$0xff] %v11444_v9  ;;  %v11457_v24 = vpop.f32.mrf.mxu2  ;;  %v15557_v61 = vrot.slane %v11459_v60, 1  ;;  %v1644_v32 = vperm.slane %v1639_v12, %v10941_v25  ;;  %v1653_v6 = vperm.slane %v1648_v57, %v10941_v25  ;;  %v1262_v44 = vrot.slane %v1260_v58, 4 }
  0xf5   : > { %8795 = vmatmul.msk.bf16.gmra.mxu1 %vm1078_vm2, %v1255_v45  ;;  %8806 = vmatmul.msk.bf16.gmra.mxu3 %vm1078_vm2, %v1354_v18  ;;  %15795 = vst [vmem:[#allocation57_spill] sm:$0xff] %v11457_v24  ;;  %v11473_v37 = vsel %vm1931_vm5, %v15798_v29, %v1947_v28  ;;  %v1359_v45 = vshll.u32 %v993_v1, 16  ;;  %v462_v18 = vld [vmem:[#allocation2 + $0x80] sm:$0xf]  ;;  %v2037_v24 = vmul.f32 %v11468_v20, %v11465_v30  ;;  %v1259_v28 = vrot.slane %v1257_v31, 3 }
  0xf6   : > { %8912 = vmatmul.msk.bf16.gmra.mxu0 %vm1078_vm2, %v9428_v15  ;;  %15797 = vst [vmem:[#allocation58_spill] sm:$0xff] %v11465_v30  ;;  %v1356_v15 = vshrl.u32 %v993_v1, 16  ;;  %v2036_v1 = vmul.f32 %v9520_v39, %v11473_v37  ;;  %v783_v29 = vunpack.c.l.bf16 %v462_v18  ;;  %v15801_v0 = vrot.slane %v11364_v47, 1  ;;  %v574_v47 = vpop.permute.xlu2 %573 }
  0xf7   : > { %15799 = vst [vmem:[#allocation59_spill] sm:$0xff] %v11473_v37  ;;  %v11494_v12 = vsel %vm848_vm3, %v868_v48, %v15557_v61  ;;  %v1361_v17 = vrot.slane %v1359_v45, 4  ;;  %v11500_v58 = vunpack.c.h.bf16 %v10244_v16  ;;  %v1877_v39 = vunpack.c.l.bf16 %v1644_v32 }
  0xf8   : > { %v11489_v9 = vsel %vm848_vm3, %v15801_v0, %v868_v48  ;;  %15803 = vst [vmem:[#allocation62_spill] sm:$0xff] %v11494_v12  ;;  %v1358_v57 = vrot.slane %v1356_v15, 3  ;;  %v11498_v31 = vpack.c.bf16 %v2037_v24, %v2036_v1  ;;  %v11502_v18 = vunpack.c.l.bf16 %v1653_v6  ;;  %v9429_v6 = vld [vmem:[#allocation2 + $0x34] sm:$0xff] }
  0xf9   : > { %15802 = vst [vmem:[#allocation61_spill] sm:$0xff] %v11489_v9  ;;  %v11504_v0 = vor.u32 %v1262_v44, %v1259_v28  ;;  %v956_v48 = vmul.f32 %v11500_v58, %v11494_v12  ;;  %v977_v24 = vmul.f32 %v11392_v63, %v783_v29  ;;  %v579_v32 = vperm.slane %v574_v47, %v10941_v25  ;;  %v10245_v47 = vld [vmem:[#allocation2 + $0x30] sm:$0xff]  }
  0xfa   : > { %v11511_v45 = vor.u32 %v1361_v17, %v1358_v57  ;;  %v2113_v16 = vshll.u32 %v11498_v31, 16  ;;  %v1951_v28 = vrot.slane %v1877_v39, 7  ;;  %v2109_v39 = vshrl.u32 %v11426_v34, 16  ;;  %v1657_v34 = vpop.permute.xlu1 %1656 }
  0xfb   : > { %8812 = vmatmul.msk.bf16.gmra.mxu2 %vm1078_vm2, %v2108_v5  ;;  %v11483_v3 = vpop.f32.mrf.mxu0  ;;  %v583_v5 = vpop.permute.xlu0 %582  ;;  %v1264_v61 = vsel %vm1220_vm4, %v11431_v53, %v11504_v0  ;;  %v994_v57 = vpack.c.bf16 %v977_v24, %v977_v24  ;;  %v396_v53 = vld [vmem:[%s10776_s15 + $0x78] sm:$0xf]  ;;  %v11572_v2 = vunpack.c.h.bf16 %v10245_v47 }
  0xfc   : > { %15800 = vst [vmem:[#allocation60_spill] sm:$0xff] %v11483_v3  ;;  %v11496_v8 = vpop.f32.mrf.mxu2  ;;  %v955_v3 = vmul.f32 %v11468_v20, %v11489_v9  ;;  %v588_v15 = vperm.slane %v583_v5, %v10941_v25  ;;  %v1363_v29 = vsel %vm1220_vm4, %v11438_v49, %v11511_v45  ;;  %v11530_v44 = vrot.slane %v2113_v16, 1 }
  0xfd   : > { %15804 = vst [vmem:[#allocation63_spill] sm:$0xff] %v11496_v8  ;;  %v15809_v49 = vrot.slane %v11502_v18, 7  ;;  %v2111_v24 = vor.u32 %v2109_v39, %v11455_v19  ;;  %v2385_v39 = vld [vmem:[#allocation2 + $0x8] sm:$0x8] }
  0xfe   : > { %v983_v5 = vpack.c.bf16 %v956_v48, %v955_v3  ;;  %v11522_v17 = vunpack.c.l.bf16 %v588_v15  ;;  %v796_v3 = vunpack.c.l.bf16 %v579_v32  ;;  %428 = vst.msk [vmem:[#allocation2 + $0x84] sm:$0xf] %vm327_vm1, %v396_v53  ;;  %v11548_v32 = vunpack.c.l.bf16 %v10245_v47 }
  0xff   : > { %v11544_v15 = vsel %vm1931_vm5, %v1951_v28, %v15809_v49  ;;  %v2116_v63 = vsel %vm2080_vm6, %v2111_v24, %v11530_v44  ;;  %v2386_v49 = vld [vmem:[#allocation2 + $0xc] sm:$0xf] }
 0x100   : > { %15810 = vst [vmem:[#allocation67_spill] sm:$0xff] %v11544_v15  ;;  %v1266_v16 = vshrl.u32 %v983_v5, 16  ;;  %v2039_v53 = vmul.f32 %v11548_v32, %v11544_v15  ;;  %v872_v19 = vrot.slane %v796_v3, 1  ;;  %v15812_v24 = vrot.slane %v11522_v17, 1  ;;  %v397_v3 = vld [vmem:[%s10776_s15 + $0x7c] sm:$0xf] }
 0x101   : > { %429 = vst.msk [vmem:[#allocation2 + $0x88] sm:$0xf] %vm327_vm1, %v397_v3  ;;  %v2117_v3 = vshrl.u32 %v11498_v31, 16  ;;  %s8579_s15 = sshll.u32 %s8575_s28, 4  ;;  %s8580_s15 = int_to_ptr.hbm [resolvable:$true] %s8579_s15 }
 0x102   : > { %s10485_s10 = sshra.s32 %s8580_s15, 4  ;;  %s10486_s10 = int_to_ptr.hbm [resolvable:$true] %s10485_s10 }
 0x103   : > { %v11517_v1 = vpop.f32.mrf.mxu0  ;;  %v592_v37 = vpop.permute.xlu0 %591  ;;  %s10487_s11 = scalar_lea.hbm %s10486_s10, 16  ;;  %p10492_p0 = scmp.lt.s32.totalorder %s10486_s10, %s15512_s6 }
 0x104   : > { %15805 = vst [vmem:[#allocation64_spill] sm:$0xff] %v11517_v1  ;;  %v11532_v8 = vpop.f32.mrf.mxu2  ;;  %v597_v47 = vperm.slane %v592_v37, %v10941_v25  ;;  %v10246_v37 = vld [vmem:[#allocation2 + $0x38] sm:$0xff]   ;;  %p10488_p11 = scmp.ne.s32.totalorder %s10486_s10, %s10487_s11  ;;  %p10493_p1 = scmp.lt.s32.totalorder %s10491_s14, %s10487_s11 }
 0x105   : > { %8796 = vmatmul.msk.bf16.gmra.mxu1 %vm1078_vm2, %v1264_v61  ;;  %8807 = vmatmul.msk.bf16.gmra.mxu3 %vm1078_vm2, %v1363_v29  ;;  %15806 = vst [vmem:[#allocation65_spill] sm:$0xff] %v11532_v8  ;;  %v15807_v61 = vrot.slane %v11429_v11, 7  ;;  %v1269_v29 = vshll.u32 %v983_v5, 16  ;;  %v1365_v11 = vshrl.u32 %v994_v57, 16  ;;  %v1368_v8 = vshll.u32 %v994_v57, 16 }
 0x106   : > { %8913 = vmatmul.msk.bf16.gmra.mxu0 %vm1078_vm2, %v9429_v6  ;;  %v1662_v5 = vperm.slane %v1657_v34, %v10941_v25  ;;  %v1268_v57 = vrot.slane %v1266_v16, 3  ;;  %v2419_v16 = vunpack.c.l.bf16 %v2386_v49  ;;  %p10489_p12 = pnand %p10488_p11, %p10642_p5  ;;  %p10494_p2 = por %p10493_p1, %p10492_p0 }
 0x107   : > { %v11539_v48 = vsel %vm1931_vm5, %v15807_v61, %v1951_v28  ;;  %v1666_v61 = vpop.permute.xlu2 %1665  ;;  %v1271_v1 = vrot.slane %v1269_v29, 4  ;;  %v1367_v54 = vrot.slane %v1365_v11, 3  ;;  %v1370_v15 = vrot.slane %v1368_v8, 4 }
 0x108   : > { %15808 = vst [vmem:[#allocation66_spill] sm:$0xff] %v11539_v48  ;;  %v2038_v28 = vmul.f32 %v11500_v58, %v11539_v48  ;;  %v1671_v7 = vperm.slane %v1666_v61, %v10941_v25  ;;  %v11565_v48 = vsel %vm848_vm3, %v872_v19, %v15812_v24  ;;  %v15815_v29 = vrot.slane %v11459_v60, 1  ;;  %p10490_p13 = pneg %p10489_p12 }
 0x109   : > { %15813 = vst [vmem:[#allocation69_spill] sm:$0xff] %v11565_v48  ;;  %v1879_v24 = vunpack.c.l.bf16 %v1662_v5  ;;  %v11580_v11 = vor.u32 %v1271_v1, %v1268_v57  ;;  %v958_v8 = vmul.f32 %v11572_v2, %v11565_v48  ;;  %v9430_v1 = vld [vmem:[#allocation2 + $0x3c] sm:$0xff] }
 0x10a   : > { %v11578_v61 = vsel %vm848_vm3, %v15815_v29, %v872_v19  ;;  %v2452_v19 = vmul.f32 %v2419_v16, %v11176_v46  ;;  %p10495_p3 = pnand %p10494_p2, %p10490_p13 }
 0x10b   : > { %8813 = vmatmul.msk.bf16.gmra.mxu2 %vm1078_vm2, %v2116_v63  ;;  %v11559_v6 = vpop.f32.mrf.mxu0  ;;  %v11570_v63 = vpack.c.bf16 %v2039_v53, %v2038_v28  ;;  %15816 = vst [vmem:[#allocation71_spill] sm:$0xff] %v11578_v61  ;;  %v1371_v28 = vor.u32 %v1370_v15, %v1367_v54  ;;  %v1955_v5 = vrot.slane %v1879_v24, 7  ;;  %v798_v15 = vunpack.c.l.bf16 %v597_v47 }
 0x10c   : > { %15811 = vst [vmem:[#allocation68_spill] sm:$0xff] %v11559_v6  ;;  %v11568_v34 = vpop.f32.mrf.mxu2  ;;  %v2418_v6 = vunpack.c.l.bf16 %v2385_v39  ;;  %v957_v39 = vmul.f32 %v11548_v32, %v11578_v61  ;;  %v15819_v47 = vrot.slane %v11502_v18, 7  ;;  %v11627_v18 = vunpack.c.l.bf16 %v10246_v37 }
 0x10d   : > { %15814 = vst [vmem:[#allocation70_spill] sm:$0xff] %v11568_v34  ;;  %v11584_v34 = vunpack.c.l.bf16 %v1671_v7  ;;  %v2121_v53 = vshll.u32 %v11570_v63, 16  ;;  %v1273_v7 = vsel %vm1220_vm4, %v11504_v0, %v11580_v11  ;;  %v2512_v0 = vshrl.u32 %v11290_v55, 16 }
 0x10e   : > { %v2451_v60 = vmul.f32 %v2418_v6, %v11160_v52  ;;  %v984_v57 = vpack.c.bf16 %v958_v8, %v957_v39  ;;  %v1372_v6 = vsel %vm1220_vm4, %v11511_v45, %v1371_v28  ;;  %v2515_v8 = vshll.u32 %v11290_v55, 16  ;;  %v8941_v28 = vld [vmem:[%s15507_s1 + $0xc] sm:$0x3]  ;;  %v8958_v55 = vld [vmem:[%s15507_s1 + $0xe] sm:$0x3] }
 0x10f   : > { %v15568_v54 = vrot.slane %v11584_v34, 7  ;;  %v11603_v16 = vrot.slane %v2121_v53, 1  ;;  %v11612_v39 = vsel %vm1931_vm5, %v15819_v47, %v1955_v5  ;;  %v2119_v45 = vor.u32 %v2117_v3, %v11530_v44  ;;  %v1675_v53 = vpop.permute.xlu1 %1674  ;;  %v11631_v44 = vld [vmem:[#allocation2 + $0x18] sm:$0xff]   ;;  %v9039_v52 = vld [vmem:[%s15507_s1 + $0x10] sm:$0x3] }
 0x110   : > { %v2484_v24 = vpack.c.bf16 %v2452_v19, %v2451_v60  ;;  %15820 = vst [vmem:[#allocation74_spill] sm:$0xff] %v11612_v39  ;;  %v3822_v60 = vsel %vm1127_vm0, %v8941_v28, 0  ;;  %v1275_v19 = vshrl.u32 %v984_v57, 16 }
 0x111   : > { %v11617_v31 = vsel %vm1931_vm5, %v1955_v5, %v15568_v54  ;;  %v1278_v5 = vshll.u32 %v984_v57, 16  ;;  %3831 = vmatpush.bf16.msra.mxu2 %v3822_v60  ;;  %v2124_v3 = vsel %vm2080_vm6, %v2119_v45, %v11603_v16  ;;  %v2040_v54 = vmul.f32 %v11572_v2, %v11612_v39 }
 0x112   : > { %15821 = vst [vmem:[#allocation75_spill] sm:$0xff] %v11617_v31  ;;  %v2504_v47 = vshrl.u32 %v2484_v24, 16  ;;  %v2041_v28 = vmul.f32 %v11627_v18, %v11617_v31  ;;  %v1680_v57 = vperm.slane %v1675_v53, %v10941_v25  ;;  %v2517_v60 = vrot.slane %v2515_v8, 4 }
 0x113   : > { %v11592_v49 = vpop.f32.mrf.mxu0  ;;  %v1277_v46 = vrot.slane %v1275_v19, 3  ;;  %v1280_v45 = vrot.slane %v1278_v5, 4  ;;  %v15823_v31 = vrot.slane %v11522_v17, 1  ;;  %v4498_v8 = vsel %vm1127_vm0, %v9039_v52, 0 }
 0x114   : > { %15817 = vst [vmem:[#allocation72_spill] sm:$0xff] %v11592_v49  ;;  %v11605_v29 = vpop.f32.mrf.mxu2  ;;  %v15575_v19 = vunpack.c.h.bf16 %v11631_v44  ;;  %4507 = vmatpush.bf16.msra.mxu0 %v4498_v8  ;;  %v1881_v17 = vunpack.c.l.bf16 %v1680_v57  ;;  %v2506_v49 = vrot.slane %v2504_v47, 3  ;;  %v9431_v57 = vld [vmem:[#allocation2 + $0x44] sm:$0xff] }
 0x115   : > { %8797 = vmatmul.msk.bf16.gmra.mxu1 %vm1078_vm2, %v1273_v7  ;;  %8808 = vmatmul.msk.bf16.gmra.mxu3 %vm1078_vm2, %v1372_v6  ;;  %15818 = vst [vmem:[#allocation73_spill] sm:$0xff] %v11605_v29  ;;  %v4076_v7 = vsel %vm1127_vm0, %v8958_v55, 0  ;;  %v876_v6 = vrot.slane %v798_v15, 1  ;;  %v2507_v55 = vshll.u32 %v2484_v24, 16  ;;  %v2514_v15 = vrot.slane %v2512_v0, 3 }
 0x116   : > { %8914 = vmatmul.msk.bf16.gmra.mxu0 %vm1078_vm2, %v9430_v1  ;;  %v1684_v1 = vpop.permute.xlu2 %1683  ;;  %4085 = vmatpush.bf16.msra.mxu3 %v4076_v7  ;;  %v15825_v24 = vrot.slane %v10963_v42, 1  ;;  %v2456_v47 = vmul.f32 %v15575_v19, %v11254_v26  ;;  %v11734_v26 = vld [vmem:[#allocation2 + $0x20] sm:$0xff]  }
 0x117   : > { %v1689_v7 = vperm.slane %v1684_v1, %v10941_v25  ;;  %v11651_v53 = vsel %vm848_vm3, %v15823_v31, %v876_v6  ;;  %v11662_v1 = vpack.c.bf16 %v2041_v28, %v2040_v54  ;;  %v2509_v31 = vrot.slane %v2507_v55, 4 }
 0x118   : > { %15824 = vst [vmem:[#allocation77_spill] sm:$0xff] %v11651_v53  ;;  %v11656_v0 = vsel %vm848_vm3, %v876_v6, %v15825_v24  ;;  %v959_v42 = vmul.f32 %v11627_v18, %v11651_v53  ;;  %v11674_v24 = vor.u32 %v2517_v60, %v2514_v15  ;;  %v15828_v54 = vunpack.c.l.bf16 %v11631_v44 }
 0x119   : > { %15826 = vst [vmem:[#allocation78_spill] sm:$0xff] %v11656_v0  ;;  %v11672_v6 = vunpack.c.l.bf16 %v1689_v7  ;;  %v1959_v28 = vrot.slane %v1881_v17, 7  ;;  %v2510_v55 = vor.u32 %v2509_v31, %v2506_v49  ;;  %v2125_v49 = vshrl.u32 %v11570_v63, 16  ;;  %v1693_v63 = vpop.permute.xlu0 %1692 }
 0x11b   : > { %8814 = vmatmul.msk.bf16.gmra.mxu2 %vm1078_vm2, %v2124_v3  ;;  %v11642_v29 = vpop.f32.mrf.mxu0  ;;  %v11664_v3 = vunpack.c.h.bf16 %v10246_v37  ;;  %v2455_v37 = vmul.f32 %v15828_v54, %v11249_v10  ;;  %v15576_v7 = vrot.slane %v11672_v6, 7  ;;  %v2519_v54 = vsel %vm1220_vm4, %v2510_v55, %v11674_v24 }
 0x11c   : > { %15822 = vst [vmem:[#allocation76_spill] sm:$0xff] %v11642_v29  ;;  %v11660_v5 = vpop.f32.mrf.mxu2  ;;  %v11666_v29 = vor.u32 %v1280_v45, %v1277_v46  ;;  %v2129_v46 = vshll.u32 %v11662_v1, 16  ;;  %v4199_v45 = vld [vmem:[#allocation2 + $0x14] sm:$0xf] }
 0x11d   : > { %15827 = vst [vmem:[#allocation79_spill] sm:$0xff] %v11660_v5  ;;  %v960_v52 = vmul.f32 %v11664_v3, %v11656_v0  ;;  %v2486_v19 = vpack.c.bf16 %v2456_v47, %v2455_v37  ;;  %v11692_v5 = vld [vmem:[#allocation2 + $0x40] sm:$0xff]   ;;  %v11710_v37 = vsel %vm1931_vm5, %v1959_v28, %v15576_v7  ;;  %v1702_v47 = vpop.permute.xlu1 %1701 }
 0x11e   : > { %v1282_v15 = vsel %vm1220_vm4, %v11580_v11, %v11666_v29  ;;  %v11696_v17 = vrot.slane %v2129_v46, 1  ;;  %v4232_v11 = vunpack.c.l.bf16 %v4199_v45  ;;  %15833 = vst [vmem:[#allocation83_spill] sm:$0xff] %v11710_v37  ;;  %v2127_v46 = vor.u32 %v2125_v49, %v11603_v16 }
 0x11f   : > { %v985_v60 = vpack.c.bf16 %v960_v52, %v959_v42  ;;  %v4266_v42 = vmul.f32 %v11202_v41, %v11196_v23  ;;  %v15831_v52 = vrot.slane %v11584_v34, 7  ;;  %v11715_v41 = vunpack.c.l.bf16 %v11692_v5 }
 0x120   : > { %v4265_v16 = vmul.f32 %v4232_v11, %v11137_v13  ;;  %v1707_v49 = vperm.slane %v1702_v47, %v10941_v25 }
 0x121   : > { %v1284_v55 = vshrl.u32 %v985_v60, 16  ;;  %v1287_v45 = vshll.u32 %v985_v60, 16  ;;  %v1698_v60 = vperm.slane %v1693_v63, %v10941_v25  ;;  %v15585_v63 = vunpack.c.h.bf16 %v11734_v26 }
 0x122   : > { %v4298_v10 = vpack.c.bf16 %v4266_v42, %v4265_v16 }
 0x123   : > { %v11683_v8 = vpop.f32.mrf.mxu0 }
 0x124   : > { %15829 = vst [vmem:[#allocation80_spill] sm:$0xff] %v11683_v8  ;;  %v11698_v31 = vpop.f32.mrf.mxu2 }
 0x125   : > { %8798 = vmatmul.msk.bf16.gmra.mxu1 %vm1078_vm2, %v1282_v15  ;;  %8827 = vmatmul.msk.bf16.vlgmr.msrb.gmra.mxu3 %vm1078_vm2, %v2519_v54  ;;  %15830 = vst [vmem:[#allocation81_spill] sm:$0xff] %v11698_v31  ;;  %v11705_v15 = vsel %vm1931_vm5, %v15831_v52, %v1959_v28  ;;  %v2521_v54 = vshrl.u32 %v2486_v19, 16  ;;  %v2524_v52 = vshll.u32 %v2486_v19, 16  ;;  %v2132_v31 = vsel %vm2080_vm6, %v2127_v46, %v11696_v17  ;;  %v8924_v46 = vld [vmem:[%s15507_s1 + $0xa] sm:$0x3] }
 0x126   : > { %15832 = vst [vmem:[#allocation82_spill] sm:$0xff] %v11705_v15  ;;  %8915 = vmatmul.msk.bf16.gmra.mxu0 %vm1078_vm2, %v9431_v57  ;;  %v2042_v28 = vmul.f32 %v11664_v3, %v11705_v15  ;;  %v2043_v57 = vmul.f32 %v11715_v41, %v11710_v37  ;;  %v1286_v19 = vrot.slane %v1284_v55, 3  ;;  %v3380_v11 = vsel %vm1127_vm0, %v8924_v46, 0 }
 0x127   : > { %v2523_v8 = vrot.slane %v2521_v54, 3  ;;  %v2526_v37 = vrot.slane %v2524_v52, 4  ;;  %3389 = vmatpush.bf16.msrb.mxu1 %v3380_v11  ;;  %v1883_v55 = vunpack.c.l.bf16 %v1698_v60  ;;  %v4268_v15 = vmul.f32 %v11388_v59, %v11246_v33  ;;  %v9432_v59 = vld [vmem:[#allocation2 + $0x4c] sm:$0xff] }
 0x128   : > { %v11717_v34 = vpop.f32.mrf.mxu3  ;;  %v4320_v54 = vshll.u32 %v4298_v10, 16 }
 0x129   : > { %15834 = vst [vmem:[#allocation84_spill] sm:$0xff] %v11717_v34  ;;  %v1289_v34 = vrot.slane %v1287_v45, 4  ;;  %v11742_v45 = vunpack.c.l.bf16 %v1707_v49  ;;  %v11751_v16 = vor.u32 %v2526_v37, %v2523_v8  ;;  %v1963_v49 = vrot.slane %v1883_v55, 7  ;;  %v11768_v37 = vld [vmem:[#allocation2 + $0x48] sm:$0xff]  }
 0x12b   : > { %8815 = vmatmul.msk.bf16.gmra.mxu2 %vm1078_vm2, %v2132_v31  ;;  %v11729_v7 = vpop.f32.mrf.mxu0  ;;  %v11740_v31 = vpack.c.bf16 %v2043_v57, %v2042_v28  ;;  %v11747_v42 = vor.u32 %v1289_v34, %v1286_v19  ;;  %v2458_v28 = vmul.f32 %v15585_v63, %v11339_v38  ;;  %v4267_v57 = vmul.f32 %v11204_v43, %v11242_v62 }
 0x12c   : > { %15835 = vst [vmem:[#allocation85_spill] sm:$0xff] %v11729_v7  ;;  %v11738_v47 = vpop.f32.mrf.mxu2  ;;  %v15586_v7 = vunpack.c.l.bf16 %v11734_v26  ;;  %v4322_v43 = vrot.slane %v4320_v54, 1  ;;  %v2528_v55 = vsel %vm1220_vm4, %v11674_v24, %v11751_v16 }
 0x12d   : > { %15836 = vst [vmem:[#allocation86_spill] sm:$0xff] %v11738_v47  ;;  %v2137_v60 = vshll.u32 %v11740_v31, 16  ;;  %v1291_v8 = vsel %vm1220_vm4, %v11666_v29, %v11747_v42  ;;  %v11770_v11 = vpack.c.bf16 %v4268_v15, %v4267_v57  ;;  %v4318_v29 = vshrl.u32 %v4298_v10, 16 }
 0x12e   : > { %v2457_v34 = vmul.f32 %v15586_v7, %v11332_v50  ;;  %v2133_v7 = vshrl.u32 %v11662_v1, 16  ;;  %v15840_v15 = vrot.slane %v11672_v6, 7  ;;  %v15842_v57 = vrot.slane %v11742_v45, 7 }
 0x12f   : > { %v2139_v46 = vrot.slane %v2137_v60, 1  ;;  %v4325_v50 = vshll.u32 %v11770_v11, 16  ;;  %v11793_v1 = vunpack.c.l.bf16 %v11768_v37  ;;  %v11797_v10 = vunpack.c.h.bf16 %v11692_v5 }
 0x130   : > { %v11749_v52 = vpop.f32.mrf.mxu3  ;;  %v2487_v63 = vpack.c.bf16 %v2458_v28, %v2457_v34  ;;  %v11784_v54 = vsel %vm1931_vm5, %v15840_v15, %v1963_v49  ;;  %v11789_v24 = vsel %vm1931_vm5, %v1963_v49, %v15842_v57  ;;  %v2135_v28 = vor.u32 %v2133_v7, %v11696_v17  ;;  %v1720_v15 = vpop.permute.xlu0 %1719 }
 0x131   : > { %15837 = vst [vmem:[#allocation87_spill] sm:$0xff] %v11749_v52  ;;  %v4323_v60 = vor.u32 %v4322_v43, %v4318_v29  ;;  %v11799_v6 = vrot.slane %v4325_v50, 1  ;;  %v2045_v57 = vmul.f32 %v11793_v1, %v11789_v24  ;;  %v10270_v50 = vld [vmem:[#allocation2 + $0x10] sm:$0xff]   ;;  %v1711_v7 = vpop.permute.xlu2 %1710 }
 0x132   : > { %15841 = vst [vmem:[#allocation90_spill] sm:$0xff] %v11784_v54  ;;  %v2140_v49 = vsel %vm2080_vm6, %v2135_v28, %v2139_v46  ;;  %v3081_v28 = vld [vmem:[#allocation2 + $0xc] sm:$0xf]  ;;  %v1716_v52 = vperm.slane %v1711_v7, %v10941_v25 }
 0x133   : > { %v11763_v19 = vpop.f32.mrf.mxu0  ;;  %15843 = vst [vmem:[#allocation91_spill] sm:$0xff] %v11789_v24  ;;  %v11810_v5 = vsel %vm2080_vm6, %v4323_v60, %v11799_v6  ;;  %v3114_v60 = vunpack.c.l.bf16 %v3081_v28 }
 0x134   : > { %15838 = vst [vmem:[#allocation88_spill] sm:$0xff] %v11763_v19  ;;  %v11778_v47 = vpop.f32.mrf.mxu2  ;;  %v1885_v7 = vunpack.c.l.bf16 %v1716_v52 }
 0x135   : > { %8799 = vmatmul.msk.bf16.gmra.mxu1 %vm1078_vm2, %v1291_v8  ;;  %8828 = vmatmul.msk.bf16.gmra.mxu3 %vm1078_vm2, %v2528_v55  ;;  %15839 = vst [vmem:[#allocation89_spill] sm:$0xff] %v11778_v47  ;;  %v2530_v8 = vshrl.u32 %v2487_v63, 16  ;;  %v2533_v55 = vshll.u32 %v2487_v63, 16  ;;  %v1725_v63 = vperm.slane %v1720_v15, %v10941_v25  ;;  %v2459_v15 = vmul.f32 %v11468_v20, %v11413_v27 }
 0x136   : > { %8916 = vmatmul.msk.bf16.gmra.mxu0 %vm1078_vm2, %v9432_v59  ;;  %15844 = vst [vmem:[#allocation92_spill] sm:$0xff] %v11799_v6  ;;  %v2044_v59 = vmul.f32 %v11797_v10, %v11784_v54 }
 0x137   : > { %v2532_v43 = vrot.slane %v2530_v8, 3  ;;  %v2535_v29 = vrot.slane %v2533_v55, 4  ;;  %v11821_v19 = vunpack.c.l.bf16 %v1725_v63  ;;  %v2460_v8 = vmul.f32 %v11500_v58, %v11418_v36 }
 0x138   : > { %v11801_v34 = vpop.f32.mrf.mxu3  ;;  %v11816_v47 = vpack.c.bf16 %v2045_v57, %v2044_v59  ;;  %v9688_v59 = vunpack.c.h.bf16 %v10270_v50  ;;  %v1300_v63 = vsel %vm1220_vm4, %v11747_v42, %v11052_v56 }
 0x139   : > { %15845 = vst [vmem:[#allocation93_spill] sm:$0xff] %v11801_v34  ;;  %v9687_v34 = vunpack.c.l.bf16 %v10270_v50  ;;  %v11825_v6 = vor.u32 %v2535_v29, %v2532_v43  ;;  %v3147_v43 = vmul.f32 %v3114_v60, %v11137_v13  ;;  %v15850_v29 = vunpack.c.l.bf16 %v11631_v44 }
 0x13a   : > { %v2145_v55 = vshll.u32 %v11816_v47, 16  ;;  %v2141_v50 = vshrl.u32 %v11740_v31, 16  ;;  %v3149_v42 = vmul.f32 %v9688_v59, %v11242_v62 }
 0x13b   : > { %8816 = vmatmul.msk.bf16.gmra.mxu2 %vm1078_vm2, %v2140_v49  ;;  %v11813_v17 = vpop.f32.mrf.mxu0  ;;  %v3148_v57 = vmul.f32 %v9687_v34, %v11196_v23  ;;  %v3150_v27 = vmul.f32 %v15850_v29, %v11246_v33  ;;  %v2537_v52 = vsel %vm1220_vm4, %v11751_v16, %v11825_v6  ;;  %v2488_v34 = vpack.c.bf16 %v2460_v8, %v2459_v15  ;;  %v11851_v29 = vld [vmem:[#allocation2 + $0x50] sm:$0xff]  }
 0x13c   : > { %15846 = vst [vmem:[#allocation94_spill] sm:$0xff] %v11813_v17  ;;  %v11819_v38 = vpop.f32.mrf.mxu2  ;;  %v2147_v56 = vrot.slane %v2145_v55, 1  ;;  %v1967_v23 = vrot.slane %v1885_v7, 7  ;;  %v2143_v36 = vor.u32 %v2141_v50, %v2139_v46  ;;  %v15851_v33 = vrot.slane %v11742_v45, 7 }
 0x13d   : > { %15847 = vst [vmem:[#allocation95_spill] sm:$0xff] %v11819_v38  ;;  %v9433_v38 = vld [vmem:[#allocation2 + $0x54] sm:$0xff]  ;;  %v3180_v60 = vpack.c.bf16 %v3148_v57, %v3147_v43  ;;  %v15853_v15 = vrot.slane %v11821_v19, 7  ;;  %v2539_v55 = vshrl.u32 %v2488_v34, 16  ;;  %v2542_v59 = vshll.u32 %v2488_v34, 16 }
 0x13e   : > { %v11858_v16 = vsel %vm1931_vm5, %v15851_v33, %v1967_v23  ;;  %v2148_v57 = vsel %vm2080_vm6, %v2143_v36, %v2147_v56  ;;  %v11871_v45 = vunpack.c.h.bf16 %v11768_v37  ;;  %v11874_v33 = vunpack.c.l.bf16 %v11851_v29 }
 0x13f   : > { %15852 = vst [vmem:[#allocation98_spill] sm:$0xff] %v11858_v16  ;;  %v11863_v31 = vsel %vm1931_vm5, %v1967_v23, %v15853_v15  ;;  %v1738_v23 = vpop.permute.xlu2 %1737  ;;  %v2541_v37 = vrot.slane %v2539_v55, 3  ;;  %v2544_v50 = vrot.slane %v2542_v59, 4  ;;  %v3200_v62 = vshrl.u32 %v3180_v60, 16 }
 0x140   : > { %v11823_v49 = vpop.f32.mrf.mxu3  ;;  %15854 = vst [vmem:[#allocation99_spill] sm:$0xff] %v11863_v31  ;;  %v2047_v36 = vmul.f32 %v11874_v33, %v11863_v31 }
 0x141   : > { %15848 = vst [vmem:[#allocation96_spill] sm:$0xff] %v11823_v49  ;;  %v11890_v49 = vor.u32 %v2544_v50, %v2541_v37 }
 0x143   : > { %v11833_v28 = vpop.f32.mrf.mxu0 }
 0x144   : > { %15849 = vst [vmem:[#allocation97_spill] sm:$0xff] %v11833_v28  ;;  %v11868_v46 = vpop.f32.mrf.mxu2 }
 0x145   : > { %8800 = vmatmul.msk.bf16.gmra.mxu1 %vm1078_vm2, %v1300_v63  ;;  %8829 = vmatmul.msk.bf16.gmra.mxu3 %vm1078_vm2, %v2537_v52  ;;  %v11853_v63 = vpack.c.bf16 %v3150_v27, %v3149_v42  ;;  %15856 = vst [vmem:[#allocation101_spill] sm:$0xff] %v11868_v46  ;;  %v3202_v27 = vshll.u32 %v3180_v60, 16  ;;  %v2046_v52 = vmul.f32 %v11871_v45, %v11858_v16  ;;  %v15859_v60 = vunpack.c.h.bf16 %v11631_v44 }
 0x146   : > { %8917 = vmatmul.msk.bf16.gmra.mxu0 %vm1078_vm2, %v9433_v38  ;;  %v1729_v38 = vpop.permute.xlu1 %1728  ;;  %v2149_v44 = vshrl.u32 %v11816_v47, 16 }
 0x147   : > { %v3207_v43 = vshll.u32 %v11853_v63, 16  ;;  %v1734_v34 = vperm.slane %v1729_v38, %v10941_v25  ;;  %v3204_v42 = vrot.slane %v3202_v27, 1  ;;  %v11885_v15 = vpack.c.bf16 %v2047_v36, %v2046_v52 }
 0x148   : > { %v11865_v8 = vpop.f32.mrf.mxu3  ;;  %v2462_v38 = vmul.f32 %v11572_v2, %v11494_v12  ;;  %v15860_v36 = vunpack.c.l.bf16 %v11734_v26 }
 0x149   : > { %15855 = vst [vmem:[#allocation100_spill] sm:$0xff] %v11865_v8  ;;  %v3209_v13 = vrot.slane %v3207_v43, 1  ;;  %v1887_v46 = vunpack.c.l.bf16 %v1734_v34  ;;  %v3205_v59 = vor.u32 %v3204_v42, %v3200_v62  ;;  %v2153_v27 = vshll.u32 %v11885_v15, 16 }
 0x14a   : > { %v3151_v43 = vmul.f32 %v15859_v60, %v11286_v51  ;;  %v3152_v34 = vmul.f32 %v15860_v36, %v11295_v22  ;;  %v2546_v42 = vsel %vm1220_vm4, %v11825_v6, %v11890_v49  ;;  %v15863_v6 = vrot.slane %v11821_v19, 7 }
 0x14b   : > { %8817 = vmatmul.msk.bf16.gmra.mxu2 %vm1078_vm2, %v2148_v57  ;;  %v11877_v7 = vpop.f32.mrf.mxu0  ;;  %v1743_v57 = vperm.slane %v1738_v23, %v10941_v25  ;;  %v9434_v23 = vld [vmem:[#allocation2 + $0x5c] sm:$0xff]  ;;  %v3210_v50 = vsel %vm2080_vm6, %v3205_v59, %v3209_v13  ;;  %v1971_v62 = vrot.slane %v1887_v46, 7  ;;  %v2155_v60 = vrot.slane %v2153_v27, 1  ;;  %v1747_v46 = vpop.permute.xlu0 %1746 }
 0x14c   : > { %15857 = vst [vmem:[#allocation102_spill] sm:$0xff] %v11877_v7  ;;  %v2461_v7 = vmul.f32 %v11548_v32, %v11489_v9  ;;  %v11908_v12 = vpop.f32.mrf.mxu2  ;;  %v11918_v59 = vpack.c.bf16 %v3152_v34, %v3151_v43  ;;  %v2151_v9 = vor.u32 %v2149_v44, %v2147_v56  ;;  %v11934_v34 = vunpack.c.h.bf16 %v11851_v29 }
 0x14d   : > { %v11897_v52 = vunpack.c.l.bf16 %v1743_v57  ;;  %15862 = vst [vmem:[#allocation105_spill] sm:$0xff] %v11908_v12  ;;  %v11920_v12 = vld [vmem:[#allocation2 + $0x58] sm:$0xff]   ;;  %v1752_v19 = vperm.slane %v1747_v46, %v10941_v25 }
 0x14e   : > { %v2489_v57 = vpack.c.bf16 %v2462_v38, %v2461_v7  ;;  %v2156_v43 = vsel %vm2080_vm6, %v2151_v9, %v2155_v60  ;;  %v11937_v56 = vunpack.c.l.bf16 %v11920_v12 }
 0x14f   : > { %v1973_v36 = vrot.slane %v11897_v52, 7  ;;  %v1756_v52 = vpop.permute.xlu1 %1755  ;;  %v1889_v46 = vunpack.c.l.bf16 %v1752_v19 }
 0x150   : > { %v11888_v8 = vpop.f32.mrf.mxu3  ;;  %v2548_v38 = vshrl.u32 %v2489_v57, 16  ;;  %v2551_v27 = vshll.u32 %v2489_v57, 16  ;;  %v1761_v29 = vperm.slane %v1756_v52, %v10941_v25 }
 0x151   : > { %15858 = vst [vmem:[#allocation103_spill] sm:$0xff] %v11888_v8  ;;  %v11928_v7 = vsel %vm1931_vm5, %v1971_v62, %v1973_v36 }
 0x152   : > { %v1433_v55 = vpop.f32.mrf.mxu1  ;;  %15865 = vst [vmem:[#allocation107_spill] sm:$0xff] %v11928_v7  ;;  %v2049_v9 = vmul.f32 %v11937_v56, %v11928_v7  ;;  %v11955_v17 = vunpack.c.l.bf16 %v1761_v29 }
 0x153   : > { %v11905_v37 = vpop.f32.mrf.mxu0  ;;  %v1434_v44 = vadd.f32 %v1433_v55, %v11094_v35  ;;  %v2464_v35 = vmul.f32 %v11664_v3, %v11565_v48 }
 0x154   : > { %15861 = vst [vmem:[#allocation104_spill] sm:$0xff] %v11905_v37  ;;  %v15612_v29 = vrot.slane %v11955_v17, 7 }
 0x155   : > { %8925 = vmatmul.msk.bf16.vlgmr.msrb.gmra.mxu1 %vm1078_vm2, %v3210_v50  ;;  %8830 = vmatmul.msk.bf16.gmra.mxu3 %vm1078_vm2, %v2546_v42  ;;  %v11925_v50 = vsel %vm1931_vm5, %v15863_v6, %v1971_v62  ;;  %v3215_v62 = vshll.u32 %v11918_v59, 16  ;;  %v2550_v6 = vrot.slane %v2548_v38, 3  ;;  %v1975_v38 = vrot.slane %v1889_v46, 7 }
 0x156   : > { %8918 = vmatmul.msk.bf16.gmra.mxu0 %vm1078_vm2, %v9434_v23  ;;  %15864 = vst [vmem:[#allocation106_spill] sm:$0xff] %v11925_v50  ;;  %v2048_v57 = vmul.f32 %v11934_v34, %v11925_v50 }
 0x157   : > { %v3217_v28 = vrot.slane %v3215_v62, 1  ;;  %v2157_v62 = vshrl.u32 %v11885_v15, 16 }
 0x158   : > { %v11930_v47 = vpop.f32.mrf.mxu3 }
 0x159   : > { %15866 = vst [vmem:[#allocation108_spill] sm:$0xff] %v11930_v47  ;;  %v2553_v47 = vrot.slane %v2551_v27, 4  ;;  %v9435_v27 = vld [vmem:[#allocation2 + $0x64] sm:$0xff] }
 0x15a   : > { %v1435_v23 = vpop.f32.mrf.mxu1 }
 0x15b   : > { %8818 = vmatmul.msk.bf16.gmra.mxu2 %vm1078_vm2, %v2156_v43  ;;  %v11942_v42 = vpop.f32.mrf.mxu0  ;;  %v3211_v43 = vshrl.u32 %v11853_v63, 16  ;;  %v11959_v7 = vor.u32 %v2553_v47, %v2550_v6  ;;  %v2463_v63 = vmul.f32 %v11627_v18, %v11578_v61  ;;  %v3219_v61 = vshrl.u32 %v11918_v59, 16 }
 0x15c   : > { %15867 = vst [vmem:[#allocation109_spill] sm:$0xff] %v11942_v42  ;;  %v11953_v42 = vpack.c.bf16 %v2049_v9, %v2048_v57  ;;  %v3154_v9 = vmul.f32 %v11468_v20, %v11385_v40  ;;  %v11985_v20 = vld [vmem:[#allocation2 + $0x60] sm:$0xff]  }
 0x15d   : > { %v3213_v52 = vor.u32 %v3211_v43, %v3209_v13  ;;  %v15870_v13 = vunpack.c.h.bf16 %v11734_v26  ;;  %v2555_v6 = vsel %vm1220_vm4, %v11890_v49, %v11959_v7  ;;  %v2490_v15 = vpack.c.bf16 %v2464_v35, %v2463_v63 }
 0x15e   : > { %v2273_v8 = vpop.f32.mrf.mxu2  ;;  %v2161_v57 = vshll.u32 %v11953_v42, 16  ;;  %v2159_v43 = vor.u32 %v2157_v62, %v2155_v60  ;;  %v11995_v49 = vsel %vm1931_vm5, %v1975_v38, %v15612_v29  ;;  %v12001_v62 = vunpack.c.h.bf16 %v11920_v12 }
 0x15f   : > { %v11950_v37 = vadd.f32 %v2273_v8, %v1434_v44  ;;  %v3218_v8 = vsel %vm2080_vm6, %v3213_v52, %v3217_v28  ;;  %v3153_v47 = vmul.f32 %v15870_v13, %v11380_v4  ;;  %v1436_v44 = vadd.f32 %v1435_v23, %v11139_v14  ;;  %15872 = vst [vmem:[#allocation113_spill] sm:$0xff] %v11995_v49 }
 0x160   : > { %v11957_v50 = vpop.f32.mrf.mxu3  ;;  %v2163_v52 = vrot.slane %v2161_v57, 1  ;;  %v11990_v14 = vsel %vm1931_vm5, %v1973_v36, %v1975_v38  ;;  %v2557_v60 = vshrl.u32 %v2490_v15, 16  ;;  %v2560_v35 = vshll.u32 %v2490_v15, 16  ;;  %v1765_v36 = vpop.permute.xlu2 %1764 }
 0x161   : > { %15868 = vst [vmem:[#allocation110_spill] sm:$0xff] %v11957_v50  ;;  %v11987_v13 = vpack.c.bf16 %v3154_v9, %v3153_v47  ;;  %v12004_v57 = vunpack.c.l.bf16 %v11985_v20  ;;  %v2050_v9 = vmul.f32 %v12001_v62, %v11990_v14 }
 0x162   : > { %v1438_v55 = vpop.f32.mrf.mxu1  ;;  %15871 = vst [vmem:[#allocation112_spill] sm:$0xff] %v11990_v14  ;;  %v2164_v63 = vsel %vm2080_vm6, %v2159_v43, %v2163_v52  ;;  %v2559_v15 = vrot.slane %v2557_v60, 3 }
 0x163   : > { %v11966_v19 = vpop.f32.mrf.mxu0  ;;  %v3223_v38 = vshll.u32 %v11987_v13, 16  ;;  %v1439_v12 = vadd.f32 %v1438_v55, %v11189_v21  ;;  %v2465_v21 = vmul.f32 %v11715_v41, %v11651_v53  ;;  %v2466_v55 = vmul.f32 %v11797_v10, %v11656_v0 }
 0x164   : > { %15869 = vst [vmem:[#allocation111_spill] sm:$0xff] %v11966_v19 }
 0x165   : > { %8926 = vmatmul.msk.bf16.gmra.mxu1 %vm1078_vm2, %v3218_v8  ;;  %8831 = vmatmul.msk.bf16.gmra.mxu3 %vm1078_vm2, %v2555_v6  ;;  %v3225_v48 = vrot.slane %v3223_v38, 1 }
 0x166   : > { %v2275_v46 = vpop.f32.mrf.mxu2  ;;  %8919 = vmatmul.msk.bf16.gmra.mxu0 %vm1078_vm2, %v9435_v27  ;;  %v1774_v27 = vpop.permute.xlu0 %1773 }
 0x167   : > { %v11983_v26 = vadd.f32 %v2275_v46, %v1436_v44  ;;  %v2051_v44 = vmul.f32 %v12004_v57, %v11995_v49  ;;  %v1779_v6 = vperm.slane %v1774_v27, %v10941_v25  ;;  %v2562_v46 = vrot.slane %v2560_v35, 4 }
 0x168   : > { %v11997_v23 = vpop.f32.mrf.mxu3  ;;  %v3221_v35 = vor.u32 %v3219_v61, %v3217_v28  ;;  %v2491_v61 = vpack.c.bf16 %v2466_v55, %v2465_v21  ;;  %v15879_v21 = vrot.slane %v11955_v17, 7 }
 0x169   : > { %15873 = vst [vmem:[#allocation114_spill] sm:$0xff] %v11997_v23  ;;  %v12016_v29 = vpack.c.bf16 %v2051_v44, %v2050_v9  ;;  %v12022_v50 = vunpack.c.l.bf16 %v1779_v6  ;;  %v12026_v19 = vor.u32 %v2562_v46, %v2559_v15  ;;  %v9436_v9 = vld [vmem:[#allocation2 + $0x6c] sm:$0xff]  ;;  %v3156_v44 = vmul.f32 %v11548_v32, %v11465_v30 }
 0x16a   : > { %v1440_v8 = vpop.f32.mrf.mxu1  ;;  %v3226_v38 = vsel %vm2080_vm6, %v3221_v35, %v3225_v48  ;;  %v15878_v35 = vld [vmem:[#allocation59_spill] sm:$0xff] }
 0x16b   : > { %8819 = vmatmul.msk.bf16.gmra.mxu2 %vm1078_vm2, %v2164_v63  ;;  %v12007_v47 = vpop.f32.mrf.mxu0  ;;  %v1770_v63 = vperm.slane %v1765_v36, %v10941_v25  ;;  %v2169_v27 = vshll.u32 %v12016_v29, 16  ;;  %v2564_v46 = vsel %vm1220_vm4, %v11959_v7, %v12026_v19  ;;  %v3155_v32 = vmul.f32 %v11500_v58, %v15878_v35 }
 0x16c   : > { %15874 = vst [vmem:[#allocation115_spill] sm:$0xff] %v12007_v47 }
 0x16d   : > { %v1891_v36 = vunpack.c.l.bf16 %v1770_v63  ;;  %v12046_v63 = vrot.slane %v2169_v27, 1 }
 0x16e   : > { %v2278_v43 = vpop.f32.mrf.mxu2 }
 0x16f   : > { %v12019_v23 = vadd.f32 %v2278_v43, %v1439_v12  ;;  %v15877_v12 = vld [vmem:[#allocation29_spill] sm:$0xff]  ;;  %v2165_v43 = vshrl.u32 %v11953_v42, 16  ;;  %v1979_v6 = vrot.slane %v1891_v36, 7  ;;  %v15881_v42 = vrot.slane %v12022_v50, 7 }
 0x170   : > { %v12024_v47 = vpop.f32.mrf.mxu3  ;;  %v1441_v15 = vadd.f32 %v1440_v8, %v15877_v12  ;;  %v12053_v12 = vld [vmem:[#allocation2 + $0x68] sm:$0xff]   ;;  %v2566_v36 = vshrl.u32 %v2491_v61, 16 }
 0x171   : > { %15875 = vst [vmem:[#allocation116_spill] sm:$0xff] %v12024_v47  ;;  %v2167_v7 = vor.u32 %v2165_v43, %v2163_v52  ;;  %v12060_v55 = vsel %vm1931_vm5, %v15879_v21, %v1979_v6  ;;  %v12065_v27 = vsel %vm1931_vm5, %v1979_v6, %v15881_v42  ;;  %v12075_v17 = vunpack.c.l.bf16 %v12053_v12 }
 0x172   : > { %v1443_v60 = vpop.f32.mrf.mxu1  ;;  %15880 = vst [vmem:[#allocation29_spill] sm:$0xff] %v12060_v55  ;;  %v2568_v42 = vrot.slane %v2566_v36, 3  ;;  %v3227_v47 = vshrl.u32 %v11987_v13, 16  ;;  %v15887_v36 = vld [vmem:[#allocation13_spill] sm:$0xff]  ;;  %v15889_v13 = vld [vmem:[#allocation66_spill] sm:$0xff] }
 0x173   : > { %v12033_v59 = vpop.f32.mrf.mxu0  ;;  %15882 = vst [vmem:[#allocation118_spill] sm:$0xff] %v12065_v27  ;;  %v2172_v52 = vsel %vm2080_vm6, %v2167_v7, %v12046_v63 }
 0x174   : > { %15876 = vst [vmem:[#allocation117_spill] sm:$0xff] %v12033_v59  ;;  %v3229_v14 = vor.u32 %v3227_v47, %v3225_v48 }
 0x175   : > { %8927 = vmatmul.msk.bf16.gmra.mxu1 %vm1078_vm2, %v3226_v38  ;;  %8832 = vmatmul.msk.bf16.gmra.mxu3 %vm1078_vm2, %v2564_v46  ;;  %v12055_v38 = vpack.c.bf16 %v3156_v44, %v3155_v32  ;;  %v12072_v44 = vunpack.c.h.bf16 %v11985_v20  ;;  %v2053_v32 = vmul.f32 %v12075_v17, %v12065_v27  ;;  %v15885_v20 = vld [vmem:[#allocation35_spill] sm:$0xff] }
 0x176   : > { %v2280_v28 = vpop.f32.mrf.mxu2  ;;  %8920 = vmatmul.msk.bf16.gmra.mxu0 %vm1078_vm2, %v9436_v9  ;;  %v2569_v9 = vshll.u32 %v2491_v61, 16  ;;  %v1444_v21 = vadd.f32 %v1443_v60, %v15885_v20 }
 0x177   : > { %v12051_v8 = vadd.f32 %v2280_v28, %v1441_v15  ;;  %v1783_v15 = vpop.permute.xlu1 %1782  ;;  %v1792_v28 = vpop.permute.xlu2 %1791  ;;  %v3231_v43 = vshll.u32 %v12055_v38, 16  ;;  %v2052_v61 = vmul.f32 %v12072_v44, %v12060_v55 }
 0x178   : > { %v12067_v58 = vpop.f32.mrf.mxu3  ;;  %v1788_v7 = vperm.slane %v1783_v15, %v10941_v25 }
 0x179   : > { %15883 = vst [vmem:[#allocation119_spill] sm:$0xff] %v12067_v58  ;;  %v2571_v58 = vrot.slane %v2569_v9, 4  ;;  %v12087_v53 = vpack.c.bf16 %v2053_v32, %v2052_v61  ;;  %v3233_v59 = vrot.slane %v3231_v43, 1  ;;  %v2467_v9 = vmul.f32 %v11793_v1, %v15887_v36  ;;  %v15888_v61 = vld [vmem:[#allocation14_spill] sm:$0xff] }
 0x17a   : > { %v1445_v46 = vpop.f32.mrf.mxu1  ;;  %v1893_v55 = vunpack.c.l.bf16 %v1788_v7  ;;  %v9437_v32 = vld [vmem:[#allocation2 + $0x74] sm:$0xff]  ;;  %v3157_v43 = vmul.f32 %v11572_v2, %v15889_v13  ;;  %v15890_v7 = vld [vmem:[#allocation67_spill] sm:$0xff]  ;;  %v2173_v2 = vshrl.u32 %v12016_v29, 16 }
 0x17b   : > { %8820 = vmatmul.msk.bf16.gmra.mxu2 %vm1078_vm2, %v2172_v52  ;;  %v12078_v6 = vpop.f32.mrf.mxu0  ;;  %v1797_v52 = vperm.slane %v1792_v28, %v10941_v25  ;;  %v12095_v27 = vor.u32 %v2571_v58, %v2568_v42  ;;  %v2177_v60 = vshll.u32 %v12087_v53, 16  ;;  %v2468_v28 = vmul.f32 %v11871_v45, %v15888_v61 }
 0x17c   : > { %15884 = vst [vmem:[#allocation120_spill] sm:$0xff] %v12078_v6  ;;  %v3158_v58 = vmul.f32 %v11627_v18, %v15890_v7  ;;  %v3234_v48 = vsel %vm2080_vm6, %v3229_v14, %v3233_v59  ;;  %v1983_v47 = vrot.slane %v1893_v55, 7  ;;  %v1801_v55 = vpop.permute.xlu0 %1800 }
 0x17d   : > { %v2573_v61 = vsel %vm1220_vm4, %v12026_v19, %v12095_v27  ;;  %v2179_v36 = vrot.slane %v2177_v60, 1  ;;  %v2492_v18 = vpack.c.bf16 %v2468_v28, %v2467_v9  ;;  %v12138_v28 = vunpack.c.h.bf16 %v12053_v12 }
 0x17e   : > { %v2283_v0 = vpop.f32.mrf.mxu2 }
 0x17f   : > { %v12090_v6 = vadd.f32 %v2283_v0, %v1444_v21  ;;  %v12102_v0 = vunpack.c.l.bf16 %v1797_v52  ;;  %v15892_v21 = vld [vmem:[#allocation41_spill] sm:$0xff]  ;;  %v1810_v19 = vpop.permute.xlu1 %1809 }
 0x180   : > { %v12093_v49 = vpop.f32.mrf.mxu3  ;;  %v1446_v42 = vadd.f32 %v1445_v46, %v15892_v21  ;;  %v12124_v21 = vpack.c.bf16 %v3158_v58, %v3157_v43  ;;  %v2578_v58 = vshll.u32 %v2492_v18, 16 }
 0x181   : > { %15886 = vst [vmem:[#allocation35_spill] sm:$0xff] %v12093_v49  ;;  %v12118_v49 = vld [vmem:[#allocation2 + $0x70] sm:$0xff]   ;;  %v1985_v14 = vrot.slane %v12102_v0, 7 }
 0x182   : > { %v1448_v15 = vpop.f32.mrf.mxu1  ;;  %v12141_v0 = vunpack.c.l.bf16 %v12118_v49 }
 0x183   : > { %v12108_v20 = vpop.f32.mrf.mxu0  ;;  %v12133_v60 = vsel %vm1931_vm5, %v1983_v47, %v1985_v14 }
 0x184   : > { %15891 = vst [vmem:[#allocation121_spill] sm:$0xff] %v12108_v20 }
 0x185   : > { %8928 = vmatmul.msk.bf16.gmra.mxu1 %vm1078_vm2, %v3234_v48  ;;  %8833 = vmatmul.msk.bf16.gmra.mxu3 %vm1078_vm2, %v2573_v61  ;;  %v2175_v48 = vor.u32 %v2173_v2, %v12046_v63  ;;  %v15893_v61 = vrot.slane %v12022_v50, 7  ;;  %15895 = vst [vmem:[#allocation122_spill] sm:$0xff] %v12133_v60  ;;  %v2575_v50 = vshrl.u32 %v2492_v18, 16  ;;  %v2055_v2 = vmul.f32 %v12141_v0, %v12133_v60  ;;  %v15900_v60 = vld [vmem:[#allocation11_spill] sm:$0xff] }
 0x186   : > { %v2285_v52 = vpop.f32.mrf.mxu2  ;;  %8921 = vmatmul.msk.bf16.gmra.mxu0 %vm1078_vm2, %v9437_v32  ;;  %v1806_v32 = vperm.slane %v1801_v55, %v10941_v25  ;;  %v15898_v55 = vld [vmem:[#allocation45_spill] sm:$0xff]  ;;  %v2580_v18 = vrot.slane %v2578_v58, 4 }
 0x187   : > { %v12122_v46 = vadd.f32 %v2285_v52, %v1446_v42  ;;  %v12130_v29 = vsel %vm1931_vm5, %v15893_v61, %v1983_v47  ;;  %v2180_v63 = vsel %vm2080_vm6, %v2175_v48, %v2179_v36  ;;  %v1815_v42 = vperm.slane %v1810_v19, %v10941_v25 }
 0x188   : > { %15894 = vst [vmem:[#allocation41_spill] sm:$0xff] %v12130_v29  ;;  %v12135_v9 = vpop.f32.mrf.mxu3  ;;  %v3239_v47 = vshll.u32 %v12124_v21, 16  ;;  %v2054_v12 = vmul.f32 %v12138_v28, %v12130_v29  ;;  %v1449_v61 = vadd.f32 %v1448_v15, %v15898_v55  ;;  %v2577_v20 = vrot.slane %v2575_v50, 3 }
 0x189   : > { %15896 = vst [vmem:[#allocation123_spill] sm:$0xff] %v12135_v9  ;;  %v1895_v9 = vunpack.c.l.bf16 %v1806_v32  ;;  %v12155_v7 = vunpack.c.l.bf16 %v1815_v42  ;;  %v2469_v15 = vmul.f32 %v11874_v33, %v15900_v60  ;;  %v15901_v32 = vld [vmem:[#allocation12_spill] sm:$0xff] }
 0x18a   : > { %v1450_v43 = vpop.f32.mrf.mxu1  ;;  %v12160_v13 = vrot.slane %v3239_v47, 1  ;;  %v2470_v50 = vmul.f32 %v11934_v34, %v15901_v32  ;;  %v12170_v42 = vor.u32 %v2580_v18, %v2577_v20  ;;  %v15905_v32 = vmov 0  }
 0x18b   : > { %8821 = vmatmul.msk.bf16.gmra.mxu2 %vm1078_vm2, %v2180_v63  ;;  %v12148_v52 = vpop.f32.mrf.mxu0  ;;  %v3235_v63 = vshrl.u32 %v12055_v38, 16  ;;  %v1987_v55 = vrot.slane %v1895_v9, 7  ;;  %v9438_v38 = vld [vmem:[#allocation2 + $0x7c] sm:$0xff]  ;;  %4791 = vst.msk [vmem:[#allocation3 + $0xc] sm:$0xf] %vm4787_vm7, %v15905_v32 }
 0x18c   : > { %15897 = vst [vmem:[#allocation124_spill] sm:$0xff] %v12148_v52  ;;  %v12162_v52 = vpack.c.bf16 %v2055_v2, %v2054_v12  ;;  %v3159_v12 = vmul.f32 %v11664_v3, %v11612_v39  ;;  %v2181_v2 = vshrl.u32 %v12087_v53, 16  ;;  %v15904_v9 = vld [vmem:[#allocation51_spill] sm:$0xff]  ;;  %v12188_v3 = vld [vmem:[#allocation2 + $0x78] sm:$0xff]  }
 0x18d   : > { %v3237_v35 = vor.u32 %v3235_v63, %v3233_v59  ;;  %v15903_v63 = vld [vmem:[#allocation75_spill] sm:$0xff]  ;;  %v1451_v18 = vadd.f32 %v1450_v43, %v15904_v9  ;;  %4788 = vst.msk [vmem:[#allocation3] sm:$0xf] %vm4787_vm7, %v15905_v32 }
 0x18e   : > { %v2288_v48 = vpop.f32.mrf.mxu2  ;;  %v3160_v20 = vmul.f32 %v11715_v41, %v15903_v63  ;;  %v2183_v60 = vor.u32 %v2181_v2, %v2179_v36  ;;  %v12196_v41 = vsel %vm1931_vm5, %v1985_v14, %v1987_v55  ;;  %v12211_v36 = vunpack.c.h.bf16 %v12118_v49  ;;  %4789 = vst.msk [vmem:[#allocation3 + $0x4] sm:$0xf] %vm4787_vm7, %v15905_v32 }
 0x18f   : > { %v12157_v19 = vadd.f32 %v2288_v48, %v1449_v61  ;;  %v3242_v47 = vsel %vm2080_vm6, %v3237_v35, %v12160_v13  ;;  %v2185_v48 = vshll.u32 %v12162_v52, 16  ;;  %v2582_v61 = vsel %vm1220_vm4, %v12095_v27, %v12170_v42  ;;  %15906 = vst [vmem:[#allocation51_spill] sm:$0xff] %v12196_v41 }
 0x190   : > { %v12164_v29 = vpop.f32.mrf.mxu3  ;;  %v2493_v35 = vpack.c.bf16 %v2470_v50, %v2469_v15  ;;  %v15907_v27 = vrot.slane %v12155_v7, 7  ;;  %v1828_v50 = vpop.permute.xlu0 %1827  ;;  %v12214_v14 = vunpack.c.l.bf16 %v12188_v3  ;;  %4790 = vst.msk [vmem:[#allocation3 + $0x8] sm:$0xf] %vm4787_vm7, %v15905_v32  ;;  %v2056_v49 = vmul.f32 %v12211_v36, %v12196_v41  ;;  %v15912_v41 = vld [vmem:[#allocation16_spill] sm:$0xff] }
 0x191   : > { %15899 = vst [vmem:[#allocation45_spill] sm:$0xff] %v12164_v29  ;;  %v2472_v63 = vmul.f32 %v12001_v62, %v15912_v41 }
 0x192   : > { %v1453_v58 = vpop.f32.mrf.mxu1  ;;  %v12201_v43 = vsel %vm1931_vm5, %v1987_v55, %v15907_v27  ;;  %v2584_v2 = vshrl.u32 %v2493_v35, 16  ;;  %4792 = vst.msk [vmem:[#allocation3 + $0x10] sm:$0xf] %vm4787_vm7, %v15905_v32  ;;  %v15911_v27 = vld [vmem:[#allocation56_spill] sm:$0xff] }
 0x193   : > { %v12177_v59 = vpop.f32.mrf.mxu0  ;;  %15908 = vst [vmem:[#allocation126_spill] sm:$0xff] %v12201_v43 }
 0x194   : > { %15902 = vst [vmem:[#allocation125_spill] sm:$0xff] %v12177_v59  ;;  %v2586_v29 = vrot.slane %v2584_v2, 3 }
 0x195   : > { %8929 = vmatmul.msk.bf16.gmra.mxu1 %vm1078_vm2, %v3242_v47  ;;  %8834 = vmatmul.msk.bf16.gmra.mxu3 %vm1078_vm2, %v2582_v61  ;;  %v12206_v47 = vrot.slane %v2185_v48, 1  ;;  %v12208_v61 = vpack.c.bf16 %v3160_v20, %v3159_v12  ;;  %v1819_v48 = vpop.permute.xlu2 %1818  ;;  %v2057_v20 = vmul.f32 %v12214_v14, %v12201_v43  ;;  %4793 = vst.msk [vmem:[#allocation3 + $0x14] sm:$0xf] %vm4787_vm7, %v15905_v32 }
 0x196   : > { %v2290_v53 = vpop.f32.mrf.mxu2  ;;  %8922 = vmatmul.msk.bf16.gmra.mxu0 %vm1078_vm2, %v9438_v38  ;;  %v2587_v38 = vshll.u32 %v2493_v35, 16  ;;  %4794 = vst.msk [vmem:[#allocation3 + $0x18] sm:$0xf] %vm4787_vm7, %v15905_v32 }
 0x197   : > { %v12204_v15 = vadd.f32 %v2290_v53, %v1451_v18  ;;  %v2188_v12 = vsel %vm2080_vm6, %v2183_v60, %v12206_v47  ;;  %v1833_v18 = vperm.slane %v1828_v50, %v10941_v25  ;;  %v3247_v60 = vshll.u32 %v12208_v61, 16  ;;  %4795 = vst.msk [vmem:[#allocation3 + $0x1c] sm:$0xf] %vm4787_vm7, %v15905_v32 }
 0x198   : > { %v12218_v55 = vpop.f32.mrf.mxu3  ;;  %v1824_v53 = vperm.slane %v1819_v48, %v10941_v25  ;;  %v2589_v59 = vrot.slane %v2587_v38, 4  ;;  %4796 = vst.msk [vmem:[#allocation3 + $0x20] sm:$0xf] %vm4787_vm7, %v15905_v32  ;;  %v3243_v25 = vshrl.u32 %v12124_v21, 16 }
 0x199   : > { %15909 = vst [vmem:[#allocation127_spill] sm:$0xff] %v12218_v55  ;;  %v1454_v55 = vadd.f32 %v1453_v58, %v15911_v27  ;;  %v12254_v58 = vrot.slane %v3247_v60, 1 }
 0x19a   : > { %v1455_v9 = vpop.f32.mrf.mxu1  ;;  %4797 = vst.msk [vmem:[#allocation3 + $0x24] sm:$0xf] %vm4787_vm7, %v15905_v32  ;;  %v1897_v2 = vunpack.c.l.bf16 %v1824_v53  ;;  %v12260_v48 = vor.u32 %v2589_v59, %v2586_v29  ;;  %v9439_v53 = vld [vmem:[#allocation2 + $0x84] sm:$0xff]  ;;  %v1544_v29 = vld [vmem:[#allocation2 + $0x80] sm:$0xf] }
 0x19b   : > { %8822 = vmatmul.msk.bf16.gmra.mxu2 %vm1078_vm2, %v2188_v12  ;;  %v12234_v35 = vpop.f32.mrf.mxu0  ;;  %v12243_v12 = vpack.c.bf16 %v2057_v20, %v2056_v49  ;;  %4798 = vst.msk [vmem:[#allocation3 + $0x28] sm:$0xf] %vm4787_vm7, %v15905_v32 }
 0x19c   : > { %15910 = vst [vmem:[#allocation128_spill] sm:$0xff] %v12234_v35  ;;  %v1898_v35 = vunpack.c.l.bf16 %v1833_v18  ;;  %v3245_v18 = vor.u32 %v3243_v25, %v12160_v13  ;;  %v15918_v25 = vld [vmem:[#allocation83_spill] sm:$0xff] }
 0x19d   : > { %4799 = vst.msk [vmem:[#allocation3 + $0x2c] sm:$0xf] %vm4787_vm7, %v15905_v32  ;;  %v2193_v21 = vshll.u32 %v12243_v12, 16  ;;  %v3162_v41 = vmul.f32 %v11793_v1, %v15918_v25  ;;  %v2189_v1 = vshrl.u32 %v12162_v52, 16  ;;  %v12449_v25 = vld [vmem:[#allocation2 + $0x30] sm:$0xff]  }
 0x19e   : > { %v2293_v50 = vpop.f32.mrf.mxu2  ;;  %4800 = vst.msk [vmem:[#allocation3 + $0x30] sm:$0xf] %vm4787_vm7, %v15905_v32  ;;  %v12270_v60 = vrot.slane %v1898_v35, 7  ;;  %v1991_v35 = vrot.slane %v1897_v2, 7 }
 0x19f   : > { %v12247_v43 = vadd.f32 %v2293_v50, %v1454_v55  ;;  %v15914_v55 = vld [vmem:[#allocation15_spill] sm:$0xff]  ;;  %4801 = vst.msk [vmem:[#allocation3 + $0x34] sm:$0xf] %vm4787_vm7, %v15905_v32  ;;  %v3250_v50 = vsel %vm2080_vm6, %v3245_v18, %v12254_v58  ;;  %v12293_v18 = vrot.slane %v2193_v21, 1  ;;  %v2191_v52 = vor.u32 %v2189_v1, %v12206_v47 }
 0x1a0   : > { %v12258_v38 = vpop.f32.mrf.mxu3  ;;  %v2471_v49 = vmul.f32 %v11937_v56, %v15914_v55  ;;  %15915 = vst [vmem:[#allocation129_spill] sm:$0xff] %v12270_v60  ;;  %v15917_v55 = vld [vmem:[#allocation82_spill] sm:$0xff]  ;;  %v15921_v21 = vrot.slane %v12155_v7, 7  ;;  %v12324_v47 = vunpack.c.h.bf16 %v12188_v3 }
 0x1a1   : > { %15913 = vst [vmem:[#allocation56_spill] sm:$0xff] %v12258_v38  ;;  %v3161_v13 = vmul.f32 %v11797_v10, %v15917_v55  ;;  %v2591_v38 = vsel %vm1220_vm4, %v12170_v42, %v12260_v48 }
 0x1a2   : > { %v1458_v20 = vpop.f32.mrf.mxu1  ;;  %v2494_v27 = vpack.c.bf16 %v2472_v63, %v2471_v49  ;;  %4802 = vst.msk [vmem:[#allocation3 + $0x38] sm:$0xf] %vm4787_vm7, %v15905_v32  ;;  %v15919_v63 = vld [vmem:[#allocation60_spill] sm:$0xff] }
 0x1a3   : > { %v12274_v59 = vpop.f32.mrf.mxu0  ;;  %v1456_v49 = vadd.f32 %v1455_v9, %v15919_v63  ;;  %4803 = vst.msk [vmem:[#allocation3 + $0x3c] sm:$0xf] %vm4787_vm7, %v15905_v32 }
 0x1a4   : > { %15916 = vst [vmem:[#allocation130_spill] sm:$0xff] %v12274_v59  ;;  %v1865_v59 = vunpack.c.l.bf16 %v1544_v29  ;;  %v2593_v42 = vshrl.u32 %v2494_v27, 16  ;;  %v2596_v2 = vshll.u32 %v2494_v27, 16 }
 0x1a5   : > { %8930 = vmatmul.msk.bf16.gmra.mxu1 %vm1078_vm2, %v3250_v50  ;;  %8835 = vmatmul.msk.bf16.gmra.mxu3 %vm1078_vm2, %v2591_v38  ;;  %4804 = vst.msk [vmem:[#allocation3 + $0x40] sm:$0xf] %vm4787_vm7, %v15905_v32  ;;  %v12302_v50 = vsel %vm1931_vm5, %v1991_v35, %v12270_v60  ;;  %v12307_v38 = vpack.c.bf16 %v3162_v41, %v3161_v13 }
 0x1a6   : > { %v2295_v10 = vpop.f32.mrf.mxu2  ;;  %8923 = vmatmul.msk.bf16.gmra.mxu0 %vm1078_vm2, %v9439_v53  ;;  %15920 = vst [vmem:[#allocation60_spill] sm:$0xff] %v12302_v50  ;;  %v12314_v53 = vsel %vm1931_vm5, %v15921_v21, %v1991_v35  ;;  %v2196_v41 = vsel %vm2080_vm6, %v2191_v52, %v12293_v18  ;;  %v2059_v13 = vmul.f32 %v12302_v50, %v1865_v59  ;;  %v2595_v7 = vrot.slane %v2593_v42, 3  ;;  %v15924_v59 = vld [vmem:[#allocation64_spill] sm:$0xff] }
 0x1a7   : > { %v12298_v9 = vadd.f32 %v2295_v10, %v1456_v49  ;;  %4805 = vst.msk [vmem:[#allocation3 + $0x44] sm:$0xf] %vm4787_vm7, %v15905_v32  ;;  %v2598_v35 = vrot.slane %v2596_v2, 4  ;;  %v9056_v10 = vld [vmem:[%s15508_s2 + $0x4] sm:$0xf]  ;;  %v2058_v3 = vmul.f32 %v12324_v47, %v12314_v53  ;;  %v1459_v1 = vadd.f32 %v1458_v20, %v15924_v59 }
 0x1a8   : > { %4806 = vst.msk [vmem:[#allocation3 + $0x48] sm:$0xf] %vm4787_vm7, %v15905_v32  ;;  %v2715_v27 = vpop.f32.mrf.mxu3  ;;  %v5140_v42 = vsel %vm5138_vm8, %v9056_v10, 0  ;;  %v12356_v10 = vld [vmem:[#allocation2 + $0x28] sm:$0xff]  }
 0x1a9   : > { %15922 = vst [vmem:[#allocation131_spill] sm:$0xff] %v12314_v53  ;;  %v12319_v29 = vadd.f32 %v2715_v27, %v11950_v37  ;;  %v3255_v37 = vshll.u32 %v12307_v38, 16  ;;  %5149 = vmatpush.bf16.msra.mxu1 %v5140_v42  ;;  %v12344_v52 = vpack.c.bf16 %v2059_v13, %v2058_v3  ;;  %v15925_v27 = vld [vmem:[#allocation18_spill] sm:$0xff]  ;;  %v12358_v59 = vor.u32 %v2598_v35, %v2595_v7  ;;  %v10464_v42 = vld [vmem:[#allocation2 + $0x20] sm:$0xff]  }
 0x1aa   : > { %4807 = vst.msk [vmem:[#allocation3 + $0x4c] sm:$0xf] %vm4787_vm7, %v15905_v32  ;;  %v1460_v63 = vpop.f32.mrf.mxu1  ;;  %v3251_v13 = vshrl.u32 %v12208_v61, 16 }
 0x1ab   : > { %4808 = vst.msk [vmem:[#allocation3 + $0x50] sm:$0xf] %vm4787_vm7, %v15905_v32  ;;  %8823 = vmatmul.msk.bf16.gmra.mxu2 %vm1078_vm2, %v2196_v41  ;;  %v12330_v49 = vpop.f32.mrf.mxu0  ;;  %v2473_v41 = vmul.f32 %v12004_v57, %v15925_v27  ;;  %v12361_v3 = vrot.slane %v3255_v37, 1  ;;  %v2201_v35 = vshll.u32 %v12344_v52, 16 }
 0x1ac   : > { %15923 = vst [vmem:[#allocation132_spill] sm:$0xff] %v12330_v49  ;;  %v15926_v49 = vld [vmem:[#allocation17_spill] sm:$0xff]  ;;  %v3253_v7 = vor.u32 %v3251_v13, %v12254_v58  ;;  %v3163_v13 = vmul.f32 %v11871_v45, %v11784_v54 }
 0x1ad   : > { %4809 = vst.msk [vmem:[#allocation3 + $0x54] sm:$0xf] %vm4787_vm7, %v15905_v32  ;;  %v2474_v20 = vmul.f32 %v12072_v44, %v15926_v49  ;;  %v12400_v53 = vrot.slane %v2201_v35, 1 }
 0x1ae   : > { %4810 = vst.msk [vmem:[#allocation3 + $0x58] sm:$0xf] %vm4787_vm7, %v15905_v32  ;;  %v2298_v2 = vpop.f32.mrf.mxu2  ;;  %v3258_v58 = vsel %vm2080_vm6, %v3253_v7, %v12361_v3  ;;  %v1545_v7 = vld [vmem:[#allocation2 + $0x84] sm:$0x1] }
 0x1af   : > { %4811 = vst.msk [vmem:[#allocation3 + $0x5c] sm:$0xf] %vm4787_vm7, %v15905_v32  ;;  %v12348_v21 = vadd.f32 %v2298_v2, %v1459_v1  ;;  %v9812_v2 = vunpack.c.h.bf16 %v10464_v42  ;;  %v2495_v37 = vpack.c.bf16 %v2474_v20, %v2473_v41  ;;  %v15928_v41 = vld [vmem:[#allocation68_spill] sm:$0xff] }
 0x1b0   : > { %4812 = vst.msk [vmem:[#allocation3 + $0x60] sm:$0xf] %vm4787_vm7, %v15905_v32  ;;  %v2717_v1 = vpop.f32.mrf.mxu3  ;;  %v1461_v20 = vadd.f32 %v1460_v63, %v15928_v41 }
 0x1b1   : > { %4813 = vst.msk [vmem:[#allocation3 + $0x64] sm:$0xf] %vm4787_vm7, %v15905_v32  ;;  %v12368_v49 = vadd.f32 %v2717_v1, %v11983_v26  ;;  %v2600_v26 = vsel %vm1220_vm4, %v12260_v48, %v12358_v59  ;;  %v3164_v1 = vmul.f32 %v11874_v33, %v11789_v24  ;;  %v4269_v61 = vmul.f32 %v9812_v2, %v11286_v51  ;;  %v3503_v24 = vld [vmem:[#allocation2 + $0x10] sm:$0x8] }
 0x1b2   : > { %4814 = vst.msk [vmem:[#allocation3 + $0x68] sm:$0xf] %vm4787_vm7, %v15905_v32  ;;  %v1463_v27 = vpop.f32.mrf.mxu1  ;;  %v2197_v33 = vshrl.u32 %v12243_v12, 16  ;;  %v2605_v41 = vshll.u32 %v2495_v37, 16 }
 0x1b3   : > { %4815 = vst.msk [vmem:[#allocation3 + $0x6c] sm:$0xf] %vm4787_vm7, %v15905_v32  ;;  %v12377_v42 = vpop.f32.mrf.mxu0 }
 0x1b4   : > { %4816 = vst.msk [vmem:[#allocation3 + $0x70] sm:$0xf] %vm4787_vm7, %v15905_v32  ;;  %v2199_v2 = vor.u32 %v2197_v33, %v12293_v18  ;;  %v15933_v33 = vld [vmem:[#allocation72_spill] sm:$0xff] }
 0x1b5   : > { %15927 = vst [vmem:[#allocation64_spill] sm:$0xff] %v12377_v42  ;;  %v15929_v42 = vunpack.c.l.bf16 %v12356_v10  ;;  %8931 = vmatmul.msk.bf16.gmra.mxu1 %vm1078_vm2, %v3258_v58  ;;  %8836 = vmatmul.msk.bf16.gmra.mxu3 %vm1078_vm2, %v2600_v26  ;;  %v1866_v26 = vunpack.c.l.bf16 %v1545_v7  ;;  %v2602_v58 = vshrl.u32 %v2495_v37, 16 }
 0x1b6   : > { %4817 = vst.msk [vmem:[#allocation3 + $0x74] sm:$0xf] %vm4787_vm7, %v15905_v32  ;;  %v2300_v45 = vpop.f32.mrf.mxu2  ;;  %9040 = vmatmul.msk.bf16.vlgmr.msra.gmra.mxu0 %vm1078_vm2, %v11810_v5  ;;  %v2204_v18 = vsel %vm2080_vm6, %v2199_v2, %v12400_v53  ;;  %v1464_v2 = vadd.f32 %v1463_v27, %v15933_v33 }
 0x1b7   : > { %v4270_v48 = vmul.f32 %v15929_v42, %v11295_v22  ;;  %4818 = vst.msk [vmem:[#allocation3 + $0x78] sm:$0xf] %vm4787_vm7, %v15905_v32  ;;  %v12406_v63 = vadd.f32 %v2300_v45, %v1461_v20  ;;  %v12411_v42 = vpack.c.bf16 %v3164_v1, %v3163_v13  ;;  %v15931_v1 = vld [vmem:[#allocation20_spill] sm:$0xff]  ;;  %v2060_v7 = vmul.f32 %v12270_v60, %v1866_v26  ;;  %v3504_v26 = vld [vmem:[#allocation2 + $0x14] sm:$0xf] }
 0x1b8   : > { %4819 = vst.msk [vmem:[#allocation3 + $0x7c] sm:$0xf] %vm4787_vm7, %v15905_v32  ;;  %v2720_v35 = vpop.f32.mrf.mxu3  ;;  %v2476_v37 = vmul.f32 %v12138_v28, %v15931_v1  ;;  %v4329_v60 = vshrl.u32 %v11770_v11, 16 }
 0x1b9   : > { %4820 = vst.msk [vmem:[#allocation3 + $0x80] sm:$0xf] %vm4787_vm7, %v15905_v32  ;;  %v12415_v12 = vpack.c.bf16 %v4270_v48, %v4269_v61  ;;  %v12420_v5 = vadd.f32 %v2720_v35, %v12019_v23  ;;  %v15930_v61 = vld [vmem:[#allocation19_spill] sm:$0xff]  ;;  %v3263_v48 = vshll.u32 %v12411_v42, 16  ;;  %v2604_v35 = vrot.slane %v2602_v58, 3 }
 0x1ba   : > { %4821 = vst.msk [vmem:[#allocation3 + $0x84] sm:$0xf] %vm4787_vm7, %v15905_v32  ;;  %v1465_v20 = vpop.f32.mrf.mxu1  ;;  %v2475_v13 = vmul.f32 %v12075_v17, %v15930_v61  ;;  %v3259_v61 = vshrl.u32 %v12307_v38, 16  ;;  %v2077_v50 = vpack.c.bf16 %v2060_v7, %v2060_v7  ;;  %v15652_v58 = vunpack.c.h.bf16 %v12356_v10 }
 0x1bb   : > { %4822 = vst.msk [vmem:[#allocation3 + $0x88] sm:$0xf] %vm4787_vm7, %v15905_v32  ;;  %8824 = vmatmul.msk.bf16.gmra.mxu2 %vm1078_vm2, %v2204_v18  ;;  %v12433_v23 = vpop.f32.mrf.mxu0  ;;  %v4333_v45 = vshll.u32 %v12415_v12, 16  ;;  %v2607_v18 = vrot.slane %v2605_v41, 4  ;;  %v15651_v38 = vunpack.c.l.bf16 %v12449_v25  ;;  %v3536_v7 = vunpack.c.l.bf16 %v3503_v24 }
 0x1bc   : > { %4823 = vst.msk [vmem:[#allocation3 + $0x8c] sm:$0xf] %vm4787_vm7, %v15905_v32  ;;  %v2496_v1 = vpack.c.bf16 %v2476_v37, %v2475_v13  ;;  %v3261_v13 = vor.u32 %v3259_v61, %v12361_v3  ;;  %v15934_v37 = vld [vmem:[#allocation92_spill] sm:$0xff] }
 0x1bd   : > { %4824 = vst.msk [vmem:[#allocation3 + $0x90] sm:$0xf] %vm4787_vm7, %v15905_v32  ;;  %v12451_v27 = vor.u32 %v2607_v18, %v2604_v35  ;;  %v3166_v35 = vmul.f32 %v11937_v56, %v11863_v31  ;;  %v15936_v3 = vld [vmem:[#allocation76_spill] sm:$0xff]  ;;  %v4272_v56 = vmul.f32 %v15651_v38, %v11385_v40 }
 0x1be   : > { %15932 = vst [vmem:[#allocation68_spill] sm:$0xff] %v12433_v23  ;;  %v2303_v51 = vpop.f32.mrf.mxu2  ;;  %v12444_v23 = vrot.slane %v3263_v48, 1  ;;  %v4331_v48 = vor.u32 %v4329_v60, %v15934_v37  ;;  %v2611_v11 = vshrl.u32 %v2496_v1, 16  ;;  %v1466_v61 = vadd.f32 %v1465_v20, %v15936_v3  ;;  %v15938_v37 = vld [vmem:[#allocation24_spill] sm:$0xff] }
 0x1bf   : > { %4825 = vst.msk [vmem:[#allocation3 + $0x94] sm:$0xf] %vm4787_vm7, %v15905_v32  ;;  %v12441_v22 = vadd.f32 %v2303_v51, %v1464_v2  ;;  %v12447_v32 = vrot.slane %v4333_v45, 1  ;;  %v3537_v45 = vunpack.c.l.bf16 %v3504_v26  ;;  %v2609_v24 = vsel %vm1220_vm4, %v12358_v59, %v12451_v27 }
 0x1c0   : > { %v2722_v54 = vpop.f32.mrf.mxu3  ;;  %v3266_v2 = vsel %vm2080_vm6, %v3261_v13, %v12444_v23  ;;  %v2614_v60 = vshll.u32 %v2496_v1, 16  ;;  %v3165_v26 = vmul.f32 %v11934_v34, %v11858_v16  ;;  %v15937_v1 = vld [vmem:[#allocation22_spill] sm:$0xff] }
 0x1c1   : > { %v12454_v51 = vadd.f32 %v2722_v54, %v12051_v8  ;;  %v2205_v54 = vshrl.u32 %v12344_v52, 16  ;;  %v2209_v8 = vshll.u32 %v2077_v50, 16  ;;  %v4336_v18 = vsel %vm2080_vm6, %v4331_v48, %v12447_v32 }
 0x1c2   : > { %v1468_v41 = vpop.f32.mrf.mxu1  ;;  %v4271_v52 = vmul.f32 %v15652_v58, %v11380_v4  ;;  %v3569_v13 = vmul.f32 %v3536_v7, %v15937_v1  ;;  %v3570_v48 = vmul.f32 %v3537_v45, %v15938_v37  ;;  %v12489_v3 = vpack.c.bf16 %v3166_v35, %v3165_v26  ;;  %v10286_v26 = vld [vmem:[#allocation2 + $0x20] sm:$0xff]   ;;  %v15944_v37 = vld [vmem:[#allocation88_spill] sm:$0xff] }
 0x1c3   : > { %v12460_v33 = vpop.f32.mrf.mxu0  ;;  %v2207_v20 = vor.u32 %v2205_v54, %v12400_v53  ;;  %v2613_v58 = vrot.slane %v2611_v11, 3  ;;  %v9752_v1 = vunpack.c.h.bf16 %v10286_v26 }
 0x1c4   : > { %15935 = vst [vmem:[#allocation72_spill] sm:$0xff] %v12460_v33  ;;  %v3271_v45 = vshll.u32 %v12489_v3, 16 }
 0x1c5   : > { %8932 = vmatmul.msk.bf16.gmra.mxu1 %vm1078_vm2, %v3266_v2  ;;  %8837 = vmatmul.msk.bf16.gmra.mxu3 %vm1078_vm2, %v2609_v24  ;;  %v2211_v2 = vrot.slane %v2209_v8, 1  ;;  %v12491_v24 = vpack.c.bf16 %v4272_v56, %v4271_v52  ;;  %v15940_v8 = vld [vmem:[#allocation30_spill] sm:$0xff]  ;;  %v15941_v52 = vld [vmem:[#allocation80_spill] sm:$0xff] }
 0x1c6   : > { %v2305_v50 = vpop.f32.mrf.mxu2  ;;  %9041 = vmatmul.msk.bf16.gmra.mxu0 %vm1078_vm2, %v4336_v18  ;;  %v2616_v18 = vrot.slane %v2614_v60, 4  ;;  %v3630_v35 = vshrl.u32 %v15940_v8, 16  ;;  %v3633_v11 = vshll.u32 %v15940_v8, 16  ;;  %v1469_v56 = vadd.f32 %v1468_v41, %v15941_v52 }
 0x1c7   : > { %v12485_v59 = vadd.f32 %v2305_v50, %v1466_v61  ;;  %v2212_v34 = vsel %vm2080_vm6, %v2207_v20, %v2211_v2  ;;  %v3602_v61 = vpack.c.bf16 %v3570_v48, %v3569_v13  ;;  %v15942_v20 = vld [vmem:[#allocation23_spill] sm:$0xff]  ;;  %v12511_v48 = vld [vmem:[#allocation2 + $0x38] sm:$0xff]   ;;  %v3267_v41 = vshrl.u32 %v12411_v42, 16 }
 0x1c8   : > { %v2725_v38 = vpop.f32.mrf.mxu3  ;;  %v12505_v50 = vor.u32 %v2616_v18, %v2613_v58  ;;  %v2477_v60 = vmul.f32 %v12141_v0, %v15942_v20  ;;  %v12516_v52 = vrot.slane %v3271_v45, 1  ;;  %v3632_v40 = vrot.slane %v3630_v35, 3  ;;  %v15949_v35 = vld [vmem:[#allocation34_spill] sm:$0xff] }
 0x1c9   : > { %v12494_v53 = vadd.f32 %v2725_v38, %v12090_v6  ;;  %v4341_v6 = vshll.u32 %v12491_v24, 16  ;;  %v3622_v2 = vshrl.u32 %v3602_v61, 16  ;;  %v3635_v58 = vrot.slane %v3633_v11, 4 }
 0x1ca   : > { %v1470_v54 = vpop.f32.mrf.mxu1  ;;  %v4337_v18 = vshrl.u32 %v12415_v12, 16  ;;  %v3269_v45 = vor.u32 %v3267_v41, %v12444_v23 }
 0x1cb   : > { %8825 = vmatmul.msk.bf16.gmra.mxu2 %vm1078_vm2, %v2212_v34  ;;  %v12498_v7 = vpop.f32.mrf.mxu0  ;;  %v3625_v34 = vshll.u32 %v3602_v61, 16  ;;  %v12521_v20 = vrot.slane %v4341_v6, 1  ;;  %v12541_v41 = vor.u32 %v3635_v58, %v3632_v40 }
 0x1cc   : > { %15939 = vst [vmem:[#allocation92_spill] sm:$0xff] %v12498_v7  ;;  %v15943_v7 = vld [vmem:[#allocation25_spill] sm:$0xff]  ;;  %v4339_v6 = vor.u32 %v4337_v18, %v12447_v32  ;;  %v15950_v32 = vunpack.c.l.bf16 %v12511_v48  ;;  %v15954_v18 = vunpack.c.h.bf16 %v12449_v25 }
 0x1cd   : > { %v2478_v8 = vmul.f32 %v12211_v36, %v15943_v7  ;;  %v15947_v7 = vld [vmem:[#allocation85_spill] sm:$0xff] }
 0x1ce   : > { %v2308_v38 = vpop.f32.mrf.mxu2  ;;  %v1471_v23 = vadd.f32 %v1470_v54, %v15947_v7  ;;  %v15952_v7 = vld [vmem:[#allocation107_spill] sm:$0xff] }
 0x1cf   : > { %v12509_v13 = vadd.f32 %v2308_v38, %v1469_v56  ;;  %v3049_v56 = vadd.f32 %v15944_v37, %v12319_v29  ;;  %v9751_v38 = vunpack.c.l.bf16 %v10286_v26  ;;  %v2618_v29 = vsel %vm1220_vm4, %v12451_v27, %v12505_v50 }
 0x1d0   : > { %v2727_v4 = vpop.f32.mrf.mxu3  ;;  %v2497_v12 = vpack.c.bf16 %v2478_v8, %v2477_v60  ;;  %v3627_v26 = vrot.slane %v3625_v34, 4  ;;  %v3574_v27 = vmul.f32 %v9752_v1, %v15949_v35  ;;  %v4344_v60 = vsel %vm2080_vm6, %v4339_v6, %v12521_v20  ;;  %v15951_v34 = vld [vmem:[#allocation106_spill] sm:$0xff]  ;;  %v15953_v1 = vld [vmem:[#allocation59_spill] sm:$0xff] }
 0x1d1   : > { %v12524_v61 = vadd.f32 %v2727_v4, %v12122_v46  ;;  %v3274_v4 = vsel %vm2080_vm6, %v3269_v45, %v12516_v52  ;;  %v3624_v46 = vrot.slane %v3622_v2, 3  ;;  %v4274_v8 = vmul.f32 %v15950_v32, %v11465_v30 }
 0x1d2   : > { %v3391_v42 = vpop.f32.mrf.mxu1  ;;  %v3167_v54 = vmul.f32 %v12001_v62, %v15951_v34  ;;  %v3168_v40 = vmul.f32 %v12004_v57, %v15952_v7  ;;  %v2620_v32 = vshrl.u32 %v2497_v12, 16  ;;  %v2623_v30 = vshll.u32 %v2497_v12, 16 }
 0x1d3   : > { %v12529_v11 = vadd.f32 %v3391_v42, %v3049_v56  ;;  %v12534_v37 = vpop.f32.mrf.mxu0  ;;  %v15948_v56 = vld [vmem:[#allocation33_spill] sm:$0xff]  ;;  %v3628_v45 = vor.u32 %v3627_v26, %v3624_v46  ;;  %v15959_v26 = vld [vmem:[#allocation39_spill] sm:$0xff] }
 0x1d4   : > { %15946 = vst [vmem:[#allocation30_spill] sm:$0xff] %v12534_v37  ;;  %v3573_v42 = vmul.f32 %v9751_v38, %v15948_v56  ;;  %v4273_v38 = vmul.f32 %v15954_v18, %v15953_v1 }
 0x1d5   : > { %15945 = vst [vmem:[#allocation76_spill] sm:$0xff] %v12529_v11  ;;  %8933 = vmatmul.msk.bf16.gmra.mxu1 %vm1078_vm2, %v3274_v4  ;;  %8838 = vmatmul.msk.bf16.gmra.mxu3 %vm1078_vm2, %v2618_v29  ;;  %v15955_v4 = vld [vmem:[#allocation94_spill] sm:$0xff] }
 0x1d6   : > { %v2310_v2 = vpop.f32.mrf.mxu2  ;;  %9042 = vmatmul.msk.bf16.gmra.mxu0 %vm1078_vm2, %v4344_v60  ;;  %v3050_v29 = vadd.f32 %v15955_v4, %v12368_v49  ;;  %v3604_v35 = vpack.c.bf16 %v3574_v27, %v3573_v42  ;;  %v12563_v62 = vpack.c.bf16 %v4274_v8, %v4273_v38  ;;  %v15958_v49 = vld [vmem:[#allocation40_spill] sm:$0xff]  ;;  %v2480_v42 = vmul.f32 %v12324_v47, %v15959_v26 }
 0x1d7   : > { %v12556_v58 = vadd.f32 %v2310_v2, %v1471_v23  ;;  %v3637_v23 = vsel %vm1220_vm4, %v3628_v45, %v12541_v41  ;;  %v12570_v2 = vpack.c.bf16 %v3168_v40, %v3167_v54  ;;  %v2479_v12 = vmul.f32 %v12214_v14, %v15958_v49  ;;  %v15961_v27 = vld [vmem:[#allocation84_spill] sm:$0xff] }
 0x1d8   : > { %v2730_v6 = vpop.f32.mrf.mxu3  ;;  %v2622_v38 = vrot.slane %v2620_v32, 3  ;;  %v3639_v45 = vshrl.u32 %v3604_v35, 16  ;;  %v4349_v54 = vshll.u32 %v12563_v62, 16  ;;  %v3275_v4 = vshrl.u32 %v12489_v3, 16 }
 0x1d9   : > { %v12566_v57 = vadd.f32 %v2730_v6, %v12157_v19  ;;  %v15960_v19 = vld [vmem:[#allocation36_spill] sm:$0xff]  ;;  %v2625_v6 = vrot.slane %v2623_v30, 4  ;;  %v2498_v56 = vpack.c.bf16 %v2480_v42, %v2479_v12  ;;  %v15962_v30 = vld [vmem:[#allocation97_spill] sm:$0xff] }
 0x1da   : > { %v3393_v60 = vpop.f32.mrf.mxu1  ;;  %v1474_v8 = vadd.f32 %v15961_v27, %v15960_v19  ;;  %v3277_v1 = vor.u32 %v3275_v4, %v12516_v52  ;;  %v4345_v19 = vshrl.u32 %v12491_v24, 16  ;;  %v3051_v27 = vadd.f32 %v15962_v30, %v12420_v5  ;;  %v15964_v42 = vld [vmem:[#allocation44_spill] sm:$0xff]  ;;  %v15974_v24 = vld [vmem:[#allocation67_spill] sm:$0xff] }
 0x1db   : > { %v12572_v18 = vadd.f32 %v3393_v60, %v3050_v29  ;;  %8942 = vmatmul.msk.bf16.vlgmr.msra.gmra.mxu2 %vm1078_vm2, %v3637_v23  ;;  %v12575_v46 = vpop.f32.mrf.mxu0  ;;  %v3279_v29 = vshll.u32 %v12570_v2, 16  ;;  %v3642_v60 = vshll.u32 %v3604_v35, 16  ;;  %v3641_v11 = vrot.slane %v3639_v45, 3 }
 0x1dc   : > { %15957 = vst [vmem:[#allocation88_spill] sm:$0xff] %v12575_v46  ;;  %v12588_v46 = vld [vmem:[#allocation2 + $0x40] sm:$0xff]   ;;  %v12596_v3 = vrot.slane %v4349_v54, 1  ;;  %v4347_v52 = vor.u32 %v4345_v19, %v12521_v20  ;;  %v15965_v5 = vunpack.c.h.bf16 %v12356_v10  ;;  %v15659_v45 = vunpack.c.h.bf16 %v12511_v48  ;;  %v15967_v54 = vld [vmem:[#allocation112_spill] sm:$0xff] }
 0x1dd   : > { %15956 = vst [vmem:[#allocation80_spill] sm:$0xff] %v12572_v18  ;;  %v12594_v18 = vor.u32 %v2625_v6, %v2622_v38  ;;  %v3644_v26 = vrot.slane %v3642_v60, 4  ;;  %v3169_v4 = vmul.f32 %v12072_v44, %v15967_v54  ;;  %v15969_v60 = vld [vmem:[#allocation42_spill] sm:$0xff]  ;;  %v15970_v19 = vld [vmem:[#allocation87_spill] sm:$0xff] }
 0x1de   : > { %v2313_v40 = vpop.f32.mrf.mxu2  ;;  %v3576_v38 = vmul.f32 %v15965_v5, %v15964_v42  ;;  %v15973_v44 = vld [vmem:[#allocation66_spill] sm:$0xff] }
 0x1df   : > { %v12586_v23 = vadd.f32 %v2313_v40, %v1474_v8  ;;  %v12601_v40 = vrot.slane %v3279_v29, 1  ;;  %v15968_v29 = vld [vmem:[#allocation113_spill] sm:$0xff]  ;;  %v2627_v30 = vsel %vm1220_vm4, %v12505_v50, %v12594_v18  ;;  %v12637_v42 = vor.u32 %v3644_v26, %v3641_v11 }
 0x1e0   : > { %v2732_v32 = vpop.f32.mrf.mxu3  ;;  %v3170_v20 = vmul.f32 %v12075_v17, %v15968_v29  ;;  %v4275_v17 = vmul.f32 %v15659_v45, %v15973_v44  ;;  %v15976_v44 = vld [vmem:[#allocation102_spill] sm:$0xff] }
 0x1e1   : > { %v12599_v35 = vadd.f32 %v2732_v32, %v12204_v15  ;;  %v3282_v15 = vsel %vm2080_vm6, %v3277_v1, %v12601_v40  ;;  %v1476_v32 = vadd.f32 %v15970_v19, %v15969_v60  ;;  %v4352_v1 = vsel %vm2080_vm6, %v4347_v52, %v12596_v3 }
 0x1e2   : > { %v3396_v8 = vpop.f32.mrf.mxu1  ;;  %v15975_v60 = vunpack.c.l.bf16 %v12588_v46  ;;  %v12642_v52 = vpack.c.bf16 %v3170_v20, %v3169_v4  ;;  %v3052_v49 = vadd.f32 %v15976_v44, %v12454_v51  ;;  %v3646_v26 = vsel %vm1220_vm4, %v12541_v41, %v12637_v42 }
 0x1e3   : > { %v12605_v12 = vadd.f32 %v3396_v8, %v3051_v27  ;;  %v12610_v6 = vpop.f32.mrf.mxu0  ;;  %v15971_v27 = vld [vmem:[#allocation43_spill] sm:$0xff]  ;;  %v15972_v8 = vunpack.c.l.bf16 %v12356_v10 }
 0x1e4   : > { %15966 = vst [vmem:[#allocation94_spill] sm:$0xff] %v12610_v6  ;;  %v4276_v19 = vmul.f32 %v15975_v60, %v15974_v24 }
 0x1e5   : > { %15963 = vst [vmem:[#allocation85_spill] sm:$0xff] %v12605_v12  ;;  %8934 = vmatmul.msk.bf16.gmra.mxu1 %vm1078_vm2, %v3282_v15  ;;  %v3575_v5 = vmul.f32 %v15972_v8, %v15971_v27  ;;  %8839 = vmatmul.msk.bf16.gmra.mxu3 %vm1078_vm2, %v2627_v30  ;;  %v2629_v15 = vshrl.u32 %v2498_v56, 16  ;;  %v2632_v8 = vshll.u32 %v2498_v56, 16  ;;  %v10269_v12 = vld [vmem:[#allocation2 + $0x80] sm:$0xff]  }
 0x1e6   : > { %v2315_v50 = vpop.f32.mrf.mxu2  ;;  %9043 = vmatmul.msk.bf16.gmra.mxu0 %vm1078_vm2, %v4352_v1  ;;  %v12646_v60 = vpack.c.bf16 %v4276_v19, %v4275_v17  ;;  %v12657_v56 = vunpack.c.l.bf16 %v10269_v12  ;;  %v15980_v1 = vld [vmem:[#allocation93_spill] sm:$0xff]  ;;  %v12667_v19 = vld [vmem:[#allocation2 + $0x48] sm:$0xff]  }
 0x1e7   : > { %v12640_v10 = vadd.f32 %v2315_v50, %v1476_v32  ;;  %v3605_v27 = vpack.c.bf16 %v3576_v38, %v3575_v5  ;;  %v12659_v38 = vunpack.c.h.bf16 %v10269_v12  ;;  %v2631_v51 = vrot.slane %v2629_v15, 3  ;;  %v15979_v5 = vld [vmem:[#allocation46_spill] sm:$0xff] }
 0x1e8   : > { %v2735_v45 = vpop.f32.mrf.mxu3  ;;  %v2634_v20 = vrot.slane %v2632_v8, 4  ;;  %v1479_v44 = vadd.f32 %v15980_v1, %v15979_v5  ;;  %v4357_v41 = vshll.u32 %v12646_v60, 16  ;;  %v15981_v12 = vld [vmem:[#allocation50_spill] sm:$0xff] }
 0x1e9   : > { %v12649_v30 = vadd.f32 %v2735_v45, %v12247_v43  ;;  %v3287_v43 = vshll.u32 %v12642_v52, 16  ;;  %v3648_v45 = vshrl.u32 %v3605_v27, 16  ;;  %v3651_v17 = vshll.u32 %v3605_v27, 16 }
 0x1ea   : > { %v3398_v11 = vpop.f32.mrf.mxu1  ;;  %v12675_v8 = vor.u32 %v2634_v20, %v2631_v51  ;;  %v12685_v37 = vrot.slane %v4357_v41, 1 }
 0x1eb   : > { %v12654_v32 = vadd.f32 %v3398_v11, %v3052_v49  ;;  %8943 = vmatmul.msk.bf16.gmra.mxu2 %vm1078_vm2, %v3646_v26  ;;  %v12661_v4 = vpop.f32.mrf.mxu0  ;;  %v2481_v11 = vmul.f32 %v12657_v56, %v15981_v12  ;;  %v15982_v26 = vld [vmem:[#allocation54_spill] sm:$0xff]  ;;  %v12678_v24 = vrot.slane %v3287_v43, 1  ;;  %v3650_v27 = vrot.slane %v3648_v45, 3  ;;  %v15985_v43 = vld [vmem:[#allocation55_spill] sm:$0xff]  ;;  %v15986_v45 = vld [vmem:[#allocation96_spill] sm:$0xff] }
 0x1ec   : > { %15978 = vst [vmem:[#allocation84_spill] sm:$0xff] %v12661_v4  ;;  %v2482_v15 = vmul.f32 %v12659_v38, %v15982_v26  ;;  %v3283_v4 = vshrl.u32 %v12570_v2, 16  ;;  %v3653_v6 = vrot.slane %v3651_v17, 4  ;;  %v4353_v12 = vshrl.u32 %v12563_v62, 16  ;;  %v15987_v17 = vld [vmem:[#allocation118_spill] sm:$0xff] }
 0x1ed   : > { %15977 = vst [vmem:[#allocation36_spill] sm:$0xff] %v12654_v32  ;;  %v1481_v26 = vadd.f32 %v15986_v45, %v15985_v43  ;;  %v2636_v62 = vsel %vm1220_vm4, %v12594_v18, %v12675_v8  ;;  %v15995_v45 = vld [vmem:[#allocation29_spill] sm:$0xff] }
 0x1ee   : > { %v2318_v49 = vpop.f32.mrf.mxu2  ;;  %v3285_v20 = vor.u32 %v3283_v4, %v12601_v40  ;;  %v2499_v32 = vpack.c.bf16 %v2482_v15, %v2481_v11  ;;  %v3172_v40 = vmul.f32 %v12141_v0, %v15987_v17  ;;  %v15988_v4 = vunpack.c.h.bf16 %v12588_v46 }
 0x1ef   : > { %v12669_v50 = vadd.f32 %v2318_v49, %v1479_v44  ;;  %v15983_v44 = vld [vmem:[#allocation104_spill] sm:$0xff]  ;;  %v15990_v11 = vunpack.c.l.bf16 %v12667_v19  ;;  %v12721_v43 = vor.u32 %v3653_v6, %v3650_v27 }
 0x1f0   : > { %v2737_v5 = vpop.f32.mrf.mxu3  ;;  %v3053_v49 = vadd.f32 %v15983_v44, %v12494_v53  ;;  %v4355_v53 = vor.u32 %v4353_v12, %v12596_v3  ;;  %v4277_v41 = vmul.f32 %v15988_v4, %v11612_v39  ;;  %v15991_v3 = vld [vmem:[#allocation52_spill] sm:$0xff]  ;;  %v15992_v12 = vunpack.c.l.bf16 %v12449_v25  ;;  %v15993_v44 = vld [vmem:[#allocation53_spill] sm:$0xff] }
 0x1f1   : > { %v12688_v51 = vadd.f32 %v2737_v5, %v12298_v9  ;;  %v3290_v9 = vsel %vm2080_vm6, %v3285_v20, %v12678_v24  ;;  %v15989_v5 = vld [vmem:[#allocation75_spill] sm:$0xff]  ;;  %v3171_v4 = vmul.f32 %v12138_v28, %v15995_v45  ;;  %v2417_v6 = vld [vmem:[#allocation2 + $0x88] sm:$0xf] }
 0x1f2   : > { %v3401_v2 = vpop.f32.mrf.mxu1  ;;  %v4278_v15 = vmul.f32 %v15990_v11, %v15989_v5  ;;  %v3577_v18 = vmul.f32 %v15992_v12, %v15991_v3  ;;  %v4360_v0 = vsel %vm2080_vm6, %v4355_v53, %v12685_v37  ;;  %v2638_v11 = vshrl.u32 %v2499_v32, 16  ;;  %v15996_v53 = vld [vmem:[#allocation109_spill] sm:$0xff] }
 0x1f3   : > { %15984 = vst [vmem:[#allocation97_spill] sm:$0xff] %v12688_v51  ;;  %v12693_v1 = vadd.f32 %v3401_v2, %v3053_v49  ;;  %v12695_v33 = vpop.f32.mrf.mxu0  ;;  %v15994_v49 = vunpack.c.h.bf16 %v12449_v25  ;;  %v2641_v12 = vshll.u32 %v2499_v32, 16  ;;  %v12728_v39 = vpack.c.bf16 %v3172_v40, %v3171_v4  ;;  %v16006_v51 = vld [vmem:[#allocation103_spill] sm:$0xff] }
 0x1f4   : > { %v12730_v25 = vpack.c.bf16 %v4278_v15, %v4277_v41  ;;  %v2640_v32 = vrot.slane %v2638_v11, 3  ;;  %v2450_v15 = vunpack.c.l.bf16 %v2417_v6  ;;  %v4361_v11 = vshrl.u32 %v12646_v60, 16  ;;  %v16001_v6 = vld [vmem:[#allocation49_spill] sm:$0xff] }
 0x1f5   : > { %8935 = vmatmul.msk.bf16.gmra.mxu1 %vm1078_vm2, %v3290_v9  ;;  %v3578_v2 = vmul.f32 %v15994_v49, %v15993_v44  ;;  %8840 = vmatmul.msk.bf16.gmra.mxu3 %vm1078_vm2, %v2636_v62  ;;  %v3054_v62 = vadd.f32 %v15996_v53, %v12524_v61  ;;  %v2643_v40 = vrot.slane %v2641_v12, 4  ;;  %v3295_v61 = vshll.u32 %v12728_v39, 16  ;;  %v12754_v12 = vld [vmem:[#allocation2 + $0x50] sm:$0xff]  }
 0x1f6   : > { %v2320_v20 = vpop.f32.mrf.mxu2  ;;  %9044 = vmatmul.msk.bf16.gmra.mxu0 %vm1078_vm2, %v4360_v0  ;;  %v15662_v60 = vunpack.c.h.bf16 %v12667_v19 }
 0x1f7   : > { %v12726_v9 = vadd.f32 %v2320_v20, %v1481_v26  ;;  %v3606_v5 = vpack.c.bf16 %v3578_v2, %v3577_v18  ;;  %v3655_v26 = vsel %vm1220_vm4, %v12637_v42, %v12721_v43  ;;  %v15999_v18 = vld [vmem:[#allocation57_spill] sm:$0xff]  ;;  %v16000_v2 = vld [vmem:[#allocation100_spill] sm:$0xff]  ;;  %v4365_v20 = vshll.u32 %v12730_v25, 16 }
 0x1f8   : > { %v2740_v49 = vpop.f32.mrf.mxu3 }
 0x1f9   : > { %v12735_v27 = vadd.f32 %v2740_v49, %v12348_v21  ;;  %v1484_v21 = vadd.f32 %v16000_v2, %v15999_v18  ;;  %v3657_v4 = vshrl.u32 %v3606_v5, 16  ;;  %v3660_v49 = vshll.u32 %v3606_v5, 16  ;;  %v16002_v2 = vld [vmem:[#allocation111_spill] sm:$0xff] }
 0x1fa   : > { %v3403_v28 = vpop.f32.mrf.mxu1  ;;  %v12758_v44 = vrot.slane %v4365_v20, 1  ;;  %v3055_v5 = vadd.f32 %v16002_v2, %v12566_v57  ;;  %v16005_v20 = vld [vmem:[#allocation63_spill] sm:$0xff]  ;;  %v16010_v2 = vunpack.c.h.bf16 %v12511_v48 }
 0x1fb   : > { %v12740_v0 = vadd.f32 %v3403_v28, %v3054_v62  ;;  %8944 = vmatmul.msk.bf16.gmra.mxu2 %vm1078_vm2, %v3655_v26  ;;  %v12743_v41 = vpop.f32.mrf.mxu0  ;;  %v12751_v62 = vor.u32 %v2643_v40, %v2640_v32  ;;  %v3291_v28 = vshrl.u32 %v12642_v52, 16  ;;  %v3297_v26 = vrot.slane %v3295_v61, 1 }
 0x1fc   : > { %15998 = vst [vmem:[#allocation87_spill] sm:$0xff] %v12743_v41  ;;  %v2483_v41 = vmul.f32 %v2450_v15, %v16001_v6  ;;  %v3659_v3 = vrot.slane %v3657_v4, 3  ;;  %v4363_v52 = vor.u32 %v4361_v11, %v12685_v37  ;;  %v15664_v61 = vunpack.c.l.bf16 %v12754_v12  ;;  %v16007_v11 = vld [vmem:[#allocation61_spill] sm:$0xff] }
 0x1fd   : > { %15997 = vst [vmem:[#allocation42_spill] sm:$0xff] %v12740_v0  ;;  %v1486_v0 = vadd.f32 %v16006_v51, %v16005_v20 }
 0x1fe   : > { %v2323_v53 = vpop.f32.mrf.mxu2 }
 0x1ff   : > { %v12749_v42 = vadd.f32 %v2323_v53, %v1484_v21  ;;  %v3662_v21 = vrot.slane %v3660_v49, 4  ;;  %v3293_v53 = vor.u32 %v3291_v28, %v12678_v24  ;;  %v2500_v49 = vpack.c.bf16 %v2483_v41, %v2483_v41  ;;  %v16011_v41 = vld [vmem:[#allocation83_spill] sm:$0xff] }
 0x200   : > { %v2742_v18 = vpop.f32.mrf.mxu3  ;;  %v4368_v24 = vsel %vm2080_vm6, %v4363_v52, %v12758_v44  ;;  %v16008_v28 = vunpack.c.l.bf16 %v12511_v48  ;;  %v16013_v52 = vld [vmem:[#allocation122_spill] sm:$0xff] }
 0x201   : > { %v12763_v32 = vadd.f32 %v2742_v18, %v12406_v63  ;;  %v2645_v63 = vsel %vm1220_vm4, %v12675_v8, %v12751_v62  ;;  %v3298_v4 = vsel %vm2080_vm6, %v3293_v53, %v3297_v26  ;;  %v12782_v37 = vor.u32 %v3662_v21, %v3659_v3  ;;  %v16009_v18 = vld [vmem:[#allocation62_spill] sm:$0xff]  ;;  %v16012_v21 = vld [vmem:[#allocation41_spill] sm:$0xff] }
 0x202   : > { %v3406_v40 = vpop.f32.mrf.mxu1  ;;  %v3579_v51 = vmul.f32 %v16008_v28, %v16007_v11  ;;  %v4279_v8 = vmul.f32 %v15662_v60, %v15917_v55  ;;  %v3173_v53 = vmul.f32 %v12211_v36, %v16012_v21  ;;  %v3174_v20 = vmul.f32 %v12214_v14, %v16013_v52  ;;  %v16014_v28 = vld [vmem:[#allocation115_spill] sm:$0xff] }
 0x203   : > { %16003 = vst [vmem:[#allocation102_spill] sm:$0xff] %v12763_v32  ;;  %v12769_v15 = vadd.f32 %v3406_v40, %v3055_v5  ;;  %v12773_v57 = vpop.f32.mrf.mxu0  ;;  %v3580_v5 = vmul.f32 %v16010_v2, %v16009_v18  ;;  %v4280_v40 = vmul.f32 %v15664_v61, %v16011_v41  ;;  %v3056_v2 = vadd.f32 %v16014_v28, %v12599_v35  ;;  %v16016_v35 = vld [vmem:[#allocation65_spill] sm:$0xff] }
 0x204   : > { %v2647_v60 = vshrl.u32 %v2500_v49, 16  ;;  %v2650_v55 = vshll.u32 %v2500_v49, 16  ;;  %v3664_v14 = vsel %vm1220_vm4, %v12721_v43, %v12782_v37  ;;  %v3299_v43 = vshrl.u32 %v12728_v39, 16 }
 0x205   : > { %16004 = vst [vmem:[#allocation46_spill] sm:$0xff] %v12769_v15  ;;  %8936 = vmatmul.msk.bf16.gmra.mxu1 %vm1078_vm2, %v3298_v4  ;;  %8841 = vmatmul.msk.bf16.gmra.mxu3 %vm1078_vm2, %v2645_v63  ;;  %v3607_v61 = vpack.c.bf16 %v3580_v5, %v3579_v51  ;;  %v12806_v41 = vpack.c.bf16 %v4280_v40, %v4279_v8  ;;  %v16039_v15 = vld [vmem:[#allocation60_spill] sm:$0xff] }
 0x206   : > { %v2325_v3 = vpop.f32.mrf.mxu2  ;;  %9045 = vmatmul.msk.bf16.gmra.mxu0 %vm1078_vm2, %v4368_v24  ;;  %v12814_v24 = vpack.c.bf16 %v3174_v20, %v3173_v53  ;;  %v2649_v5 = vrot.slane %v2647_v60, 3  ;;  %v2652_v8 = vrot.slane %v2650_v55, 4 }
 0x207   : > { %v12802_v48 = vadd.f32 %v2325_v3, %v1486_v0  ;;  %v16017_v3 = vld [vmem:[#allocation108_spill] sm:$0xff]  ;;  %v3669_v40 = vshll.u32 %v3607_v61, 16 }
 0x208   : > { %v2745_v4 = vpop.f32.mrf.mxu3  ;;  %v1489_v49 = vadd.f32 %v16017_v3, %v16016_v35  ;;  %v3303_v53 = vshll.u32 %v12814_v24, 16  ;;  %v16019_v35 = vld [vmem:[#allocation117_spill] sm:$0xff]  ;;  %v2653_v60 = vor.u32 %v2652_v8, %v2649_v5  ;;  %v16022_v8 = vld [vmem:[#allocation51_spill] sm:$0xff] }
 0x209   : > { %v12809_v63 = vadd.f32 %v2745_v4, %v12441_v22  ;;  %v3666_v22 = vshrl.u32 %v3607_v61, 16  ;;  %v4373_v4 = vshll.u32 %v12806_v41, 16  ;;  %v3057_v3 = vadd.f32 %v16019_v35, %v12649_v30  ;;  %v16026_v35 = vld [vmem:[#allocation69_spill] sm:$0xff] }
 0x20a   : > { %v3408_v36 = vpop.f32.mrf.mxu1  ;;  %v4369_v61 = vshrl.u32 %v12730_v25, 16  ;;  %v3305_v32 = vrot.slane %v3303_v53, 1  ;;  %v3175_v25 = vmul.f32 %v12324_v47, %v16022_v8 }
 0x20b   : > { %v12816_v0 = vadd.f32 %v3408_v36, %v3056_v2  ;;  %8945 = vmatmul.msk.bf16.gmra.mxu2 %vm1078_vm2, %v3664_v14  ;;  %v12821_v51 = vpop.f32.mrf.mxu0  ;;  %v12828_v2 = vld [vmem:[#allocation2 + $0x58] sm:$0xff]   ;;  %v3301_v36 = vor.u32 %v3299_v43, %v3297_v26  ;;  %v3668_v55 = vrot.slane %v3666_v22, 3  ;;  %v4375_v18 = vrot.slane %v4373_v4, 1 }
 0x20c   : > { %16018 = vst [vmem:[#allocation104_spill] sm:$0xff] %v12821_v51  ;;  %v3671_v51 = vrot.slane %v3669_v40, 4  ;;  %v4371_v30 = vor.u32 %v4369_v61, %v12758_v44  ;;  %v16023_v22 = vld [vmem:[#allocation126_spill] sm:$0xff] }
 0x20d   : > { %16015 = vst [vmem:[#allocation93_spill] sm:$0xff] %v12816_v0  ;;  %v3306_v5 = vsel %vm2080_vm6, %v3301_v36, %v3305_v32  ;;  %v16024_v40 = vld [vmem:[#allocation70_spill] sm:$0xff] }
 0x20e   : > { %v2328_v28 = vpop.f32.mrf.mxu2  ;;  %v16025_v4 = vld [vmem:[#allocation110_spill] sm:$0xff]  ;;  %v4376_v36 = vsel %vm2080_vm6, %v4371_v30, %v4375_v18 }
 0x20f   : > { %v12826_v20 = vadd.f32 %v2328_v28, %v1489_v49  ;;  %v15665_v49 = vunpack.c.h.bf16 %v12754_v12  ;;  %v15666_v28 = vunpack.c.l.bf16 %v12828_v2  ;;  %v1491_v53 = vadd.f32 %v16025_v4, %v16024_v40  ;;  %v16028_v61 = vld [vmem:[#allocation90_spill] sm:$0xff] }
 0x210   : > { %v2747_v14 = vpop.f32.mrf.mxu3  ;;  %v16031_v4 = vunpack.c.l.bf16 %v12588_v46 }
 0x211   : > { %v12834_v11 = vadd.f32 %v2747_v14, %v12485_v59  ;;  %v3176_v59 = vmul.f32 %v12657_v56, %v16023_v22  ;;  %v2654_v14 = vsel %vm1220_vm4, %v12751_v62, %v2653_v60  ;;  %v4281_v47 = vmul.f32 %v15665_v49, %v16028_v61 }
 0x212   : > { %v3411_v39 = vpop.f32.mrf.mxu1  ;;  %v3672_v62 = vor.u32 %v3671_v51, %v3668_v55 }
 0x213   : > { %16020 = vst [vmem:[#allocation55_spill] sm:$0xff] %v12834_v11  ;;  %v12838_v26 = vadd.f32 %v3411_v39, %v3057_v3  ;;  %v12840_v43 = vpop.f32.mrf.mxu0  ;;  %v16027_v3 = vunpack.c.h.bf16 %v12588_v46  ;;  %v16029_v39 = vld [vmem:[#allocation91_spill] sm:$0xff] }
 0x214   : > { %v4282_v11 = vmul.f32 %v15666_v28, %v16029_v39  ;;  %v3673_v51 = vsel %vm1220_vm4, %v12782_v37, %v3672_v62  ;;  %v16036_v39 = vld [vmem:[#allocation121_spill] sm:$0xff] }
 0x215   : > { %16021 = vst [vmem:[#allocation96_spill] sm:$0xff] %v12838_v26  ;;  %8937 = vmatmul.msk.bf16.gmra.mxu1 %vm1078_vm2, %v3306_v5  ;;  %v3582_v44 = vmul.f32 %v16027_v3, %v16026_v35  ;;  %8842 = vmatmul.msk.bf16.gmra.mxu3 %vm1078_vm2, %v2654_v14  ;;  %v16030_v5 = vld [vmem:[#allocation71_spill] sm:$0xff]  ;;  %v12870_v3 = vpack.c.bf16 %v3176_v59, %v3175_v25  ;;  %v16034_v25 = vld [vmem:[#allocation73_spill] sm:$0xff]  ;;  %v16035_v59 = vld [vmem:[#allocation114_spill] sm:$0xff] }
 0x216   : > { %v2330_v40 = vpop.f32.mrf.mxu2  ;;  %9046 = vmatmul.msk.bf16.gmra.mxu0 %vm1078_vm2, %v4376_v36  ;;  %v3581_v30 = vmul.f32 %v16031_v4, %v16030_v5  ;;  %v12872_v61 = vpack.c.bf16 %v4282_v11, %v4281_v47  ;;  %v3112_v11 = vld [vmem:[#allocation2 + $0x88] sm:$0xf] }
 0x217   : > { %v12865_v60 = vadd.f32 %v2330_v40, %v1491_v53  ;;  %v3311_v46 = vshll.u32 %v12870_v3, 16  ;;  %v1494_v53 = vadd.f32 %v16035_v59, %v16034_v25  ;;  %v3307_v40 = vshrl.u32 %v12814_v24, 16 }
 0x218   : > { %v2750_v35 = vpop.f32.mrf.mxu3  ;;  %v3608_v49 = vpack.c.bf16 %v3582_v44, %v3581_v30  ;;  %v4381_v36 = vshll.u32 %v12872_v61, 16  ;;  %v3145_v4 = vunpack.c.l.bf16 %v3112_v11  ;;  %v4377_v30 = vshrl.u32 %v12806_v41, 16 }
 0x219   : > { %v12875_v28 = vadd.f32 %v2750_v35, %v12509_v13  ;;  %v3313_v37 = vrot.slane %v3311_v46, 1  ;;  %v3059_v25 = vadd.f32 %v16036_v39, %v12735_v27  ;;  %v16040_v39 = vld [vmem:[#allocation79_spill] sm:$0xff] }
 0x21a   : > { %v12877_v14 = vpop.f32.mrf.mxu1  ;;  %v3675_v44 = vshrl.u32 %v3608_v49, 16  ;;  %v3678_v35 = vshll.u32 %v3608_v49, 16  ;;  %v4383_v5 = vrot.slane %v4381_v36, 1  ;;  %v4379_v41 = vor.u32 %v4377_v30, %v4375_v18 }
 0x21b   : > { %16032 = vst [vmem:[#allocation109_spill] sm:$0xff] %v12877_v14  ;;  %8946 = vmatmul.msk.bf16.gmra.mxu2 %vm1078_vm2, %v3673_v51  ;;  %v12882_v55 = vpop.f32.mrf.mxu0  ;;  %v3178_v27 = vmul.f32 %v3145_v4, %v16039_v15  ;;  %v16045_v18 = vunpack.c.h.bf16 %v12667_v19 }
 0x21c   : > { %16033 = vst [vmem:[#allocation57_spill] sm:$0xff] %v12882_v55  ;;  %v12892_v55 = vld [vmem:[#allocation2 + $0x60] sm:$0xff]   ;;  %v3677_v59 = vrot.slane %v3675_v44, 3  ;;  %v3680_v26 = vrot.slane %v3678_v35, 4  ;;  %v16041_v44 = vld [vmem:[#allocation116_spill] sm:$0xff]  ;;  %v16043_v35 = vunpack.c.l.bf16 %v12667_v19 }
 0x21d   : > { %v15667_v11 = vunpack.c.l.bf16 %v12892_v55  ;;  %v1496_v36 = vadd.f32 %v16041_v44, %v16040_v39  ;;  %v16046_v39 = vld [vmem:[#allocation131_spill] sm:$0xff] }
 0x21e   : > { %v2333_v13 = vpop.f32.mrf.mxu2 }
 0x21f   : > { %v12888_v47 = vadd.f32 %v2333_v13, %v1494_v53  ;;  %v3309_v53 = vor.u32 %v3307_v40, %v3305_v32  ;;  %v9440_v13 = vld [vmem:[#allocation2 + $0x14] sm:$0xff]  ;;  %v4284_v4 = vmul.f32 %v15667_v11, %v11863_v31 }
 0x220   : > { %v2752_v51 = vpop.f32.mrf.mxu3  ;;  %v16042_v32 = vld [vmem:[#allocation77_spill] sm:$0xff] }
 0x221   : > { %v12897_v14 = vadd.f32 %v2752_v51, %v12556_v58  ;;  %v3314_v0 = vsel %vm2080_vm6, %v3309_v53, %v3313_v37  ;;  %v15668_v58 = vunpack.c.h.bf16 %v12828_v2  ;;  %v3583_v40 = vmul.f32 %v16043_v35, %v16042_v32  ;;  %v16044_v51 = vld [vmem:[#allocation78_spill] sm:$0xff] }
 0x222   : > { %v3416_v49 = vpop.f32.mrf.mxu1  ;;  %v3584_v30 = vmul.f32 %v16045_v18, %v16044_v51  ;;  %v3681_v53 = vor.u32 %v3680_v26, %v3677_v59 }
 0x223   : > { %16037 = vst [vmem:[#allocation100_spill] sm:$0xff] %v12897_v14  ;;  %v12899_v24 = vadd.f32 %v3416_v49, %v3059_v25  ;;  %v12901_v46 = vpop.f32.mrf.mxu0  ;;  %v4384_v25 = vsel %vm2080_vm6, %v4379_v41, %v4383_v5  ;;  %v4283_v19 = vmul.f32 %v15668_v58, %v11858_v16 }
 0x224   : > { %v3609_v18 = vpack.c.bf16 %v3584_v30, %v3583_v40  ;;  %v3682_v59 = vsel %vm1220_vm4, %v3672_v62, %v3681_v53 }
 0x225   : > { %16038 = vst [vmem:[#allocation111_spill] sm:$0xff] %v12899_v24  ;;  %8938 = vmatmul.msk.bf16.gmra.mxu1 %vm1078_vm2, %v3314_v0  ;;  %9023 = vmatmul.msk.bf16.vlgmr.msra.gmra.mxu3 %vm1078_vm2, %v9440_v13  ;;  %v3177_v0 = vmul.f32 %v12659_v38, %v16046_v39  ;;  %v12931_v11 = vpack.c.bf16 %v4284_v4, %v4283_v19  ;;  %v3113_v19 = vld [vmem:[#allocation2 + $0x8c] sm:$0x1] }
 0x226   : > { %v2335_v49 = vpop.f32.mrf.mxu2  ;;  %9047 = vmatmul.msk.bf16.gmra.mxu0 %vm1078_vm2, %v4384_v25  ;;  %v3684_v58 = vshrl.u32 %v3609_v18, 16  ;;  %v3687_v40 = vshll.u32 %v3609_v18, 16 }
 0x227   : > { %v12924_v44 = vadd.f32 %v2335_v49, %v1496_v36  ;;  %v12929_v41 = vpack.c.bf16 %v3178_v27, %v3177_v0  ;;  %v16049_v49 = vld [vmem:[#allocation81_spill] sm:$0xff]  ;;  %v16050_v27 = vld [vmem:[#allocation119_spill] sm:$0xff]  ;;  %v4389_v30 = vshll.u32 %v12931_v11, 16 }
 0x228   : > { %v2755_v35 = vpop.f32.mrf.mxu3  ;;  %v1499_v0 = vadd.f32 %v16050_v27, %v16049_v49  ;;  %v3686_v51 = vrot.slane %v3684_v58, 3  ;;  %v3689_v32 = vrot.slane %v3687_v40, 4  ;;  %v16054_v58 = vld [vmem:[#allocation35_spill] sm:$0xff]  ;;  %v15673_v40 = vunpack.c.h.bf16 %v12892_v55 }
 0x229   : > { %v12934_v13 = vadd.f32 %v2755_v35, %v12586_v23  ;;  %v3319_v25 = vshll.u32 %v12929_v41, 16  ;;  %v3315_v35 = vshrl.u32 %v12870_v3, 16  ;;  %v4391_v49 = vrot.slane %v4389_v30, 1  ;;  %v16055_v30 = vld [vmem:[#allocation129_spill] sm:$0xff] }
 0x22a   : > { %v12936_v26 = vpop.f32.mrf.mxu1 }
 0x22b   : > { %16047 = vst [vmem:[#allocation63_spill] sm:$0xff] %v12936_v26  ;;  %8947 = vmatmul.msk.bf16.gmra.mxu2 %vm1078_vm2, %v3682_v59  ;;  %v12940_v36 = vpop.f32.mrf.mxu0  ;;  %v3321_v62 = vrot.slane %v3319_v25, 1  ;;  %v4385_v59 = vshrl.u32 %v12872_v61, 16  ;;  %v3317_v14 = vor.u32 %v3315_v35, %v3313_v37  ;;  %v12955_v26 = vld [vmem:[#allocation2 + $0x68] sm:$0xff]   ;;  %v3690_v37 = vor.u32 %v3689_v32, %v3686_v51 }
 0x22c   : > { %16048 = vst [vmem:[#allocation103_spill] sm:$0xff] %v12940_v36  ;;  %v16051_v36 = vld [vmem:[#allocation125_spill] sm:$0xff]  ;;  %v16057_v35 = vunpack.c.l.bf16 %v12754_v12 }
 0x22d   : > { %v3061_v31 = vadd.f32 %v16051_v36, %v12809_v63  ;;  %v4387_v61 = vor.u32 %v4385_v59, %v4383_v5  ;;  %v3322_v24 = vsel %vm2080_vm6, %v3317_v14, %v3321_v62  ;;  %v16053_v63 = vld [vmem:[#allocation86_spill] sm:$0xff]  ;;  %v16056_v14 = vld [vmem:[#allocation13_spill] sm:$0xff] }
 0x22e   : > { %v2338_v4 = vpop.f32.mrf.mxu2  ;;  %v1501_v36 = vadd.f32 %v16054_v58, %v16053_v63  ;;  %v3585_v59 = vmul.f32 %v16057_v35, %v16056_v14  ;;  %v3691_v58 = vsel %vm1220_vm4, %v3681_v53, %v3690_v37  ;;  %v16060_v35 = vld [vmem:[#allocation89_spill] sm:$0xff]  ;;  %v4393_v53 = vshrl.u32 %v12931_v11, 16 }
 0x22f   : > { %v12946_v23 = vadd.f32 %v2338_v4, %v1499_v0  ;;  %v9441_v0 = vld [vmem:[#allocation2 + $0x1c] sm:$0xff]  ;;  %v3146_v4 = vunpack.c.l.bf16 %v3113_v19 }
 0x230   : > { %v2757_v16 = vpop.f32.mrf.mxu3 }
 0x231   : > { %v12953_v18 = vadd.f32 %v2757_v16, %v12640_v10  ;;  %v4392_v16 = vsel %vm2080_vm6, %v4387_v61, %v4391_v49  ;;  %v15674_v10 = vunpack.c.l.bf16 %v12955_v26  ;;  %v3179_v19 = vmul.f32 %v3146_v4, %v16055_v30 }
 0x232   : > { %v3421_v27 = vpop.f32.mrf.mxu1 }
 0x233   : > { %16052 = vst [vmem:[#allocation115_spill] sm:$0xff] %v12953_v18  ;;  %v12957_v3 = vadd.f32 %v3421_v27, %v3061_v31  ;;  %v12959_v25 = vpop.f32.mrf.mxu0  ;;  %v16058_v27 = vld [vmem:[#allocation14_spill] sm:$0xff]  ;;  %v4286_v32 = vmul.f32 %v15674_v10, %v15952_v7 }
 0x235   : > { %8939 = vmatmul.msk.bf16.gmra.mxu1 %vm1078_vm2, %v3322_v24  ;;  %9024 = vmatmul.msk.bf16.gmra.mxu3 %vm1078_vm2, %v9441_v0  ;;  %v16059_v24 = vunpack.c.h.bf16 %v12754_v12  ;;  %v4285_v0 = vmul.f32 %v15673_v40, %v15951_v34  ;;  %v3323_v34 = vshrl.u32 %v12929_v41, 16 }
 0x236   : > { %v2340_v31 = vpop.f32.mrf.mxu2  ;;  %9048 = vmatmul.msk.bf16.gmra.mxu0 %vm1078_vm2, %v4392_v16 }
 0x237   : > { %v12971_v5 = vadd.f32 %v2340_v31, %v1501_v36  ;;  %v3586_v61 = vmul.f32 %v16059_v24, %v16058_v27  ;;  %v3196_v36 = vpack.c.bf16 %v3179_v19, %v3179_v19  ;;  %v12994_v31 = vpack.c.bf16 %v4286_v32, %v4285_v0  ;;  %v16061_v24 = vld [vmem:[#allocation123_spill] sm:$0xff]  ;;  %v16062_v32 = vld [vmem:[#allocation130_spill] sm:$0xff] }
 0x238   : > { %v2760_v51 = vpop.f32.mrf.mxu3  ;;  %v1504_v40 = vadd.f32 %v16061_v24, %v16060_v35  ;;  %v3063_v27 = vadd.f32 %v16062_v32, %v12875_v28  ;;  %v4395_v35 = vor.u32 %v4393_v53, %v4391_v49  ;;  %v16064_v49 = vld [vmem:[#allocation95_spill] sm:$0xff]  ;;  %v16065_v53 = vld [vmem:[#allocation45_spill] sm:$0xff] }
 0x239   : > { %v12986_v4 = vadd.f32 %v2760_v51, %v12669_v50  ;;  %v3610_v12 = vpack.c.bf16 %v3586_v61, %v3585_v59  ;;  %v3327_v50 = vshll.u32 %v3196_v36, 16  ;;  %v4397_v19 = vshll.u32 %v12994_v31, 16  ;;  %v16068_v36 = vld [vmem:[#allocation12_spill] sm:$0xff] }
 0x23a   : > { %v12988_v63 = vpop.f32.mrf.mxu1  ;;  %v3325_v59 = vor.u32 %v3323_v34, %v3321_v62 }
 0x23b   : > { %8948 = vmatmul.msk.bf16.gmra.mxu2 %vm1078_vm2, %v3691_v58  ;;  %v12992_v16 = vpop.f32.mrf.mxu0  ;;  %v3693_v7 = vshrl.u32 %v3610_v12, 16  ;;  %v13003_v58 = vld [vmem:[#allocation2 + $0x70] sm:$0xff]   ;;  %v3696_v61 = vshll.u32 %v3610_v12, 16  ;;  %v4399_v34 = vrot.slane %v4397_v19, 1  ;;  %v16070_v19 = vunpack.c.h.bf16 %v12955_v26 }
 0x23d   : > { %v3695_v12 = vrot.slane %v3693_v7, 3  ;;  %v3698_v28 = vrot.slane %v3696_v61, 4  ;;  %v4400_v11 = vsel %vm2080_vm6, %v4395_v35, %v4399_v34  ;;  %v4287_v7 = vmul.f32 %v16070_v19, %v15967_v54 }
 0x23e   : > { %v2343_v10 = vpop.f32.mrf.mxu2 }
 0x23f   : > { %v12999_v51 = vadd.f32 %v2343_v10, %v1504_v40  ;;  %v3329_v40 = vrot.slane %v3327_v50, 1  ;;  %v9442_v10 = vld [vmem:[#allocation2 + $0x24] sm:$0xff] }
 0x240   : > { %v2762_v0 = vpop.f32.mrf.mxu3  ;;  %v16066_v50 = vld [vmem:[#allocation11_spill] sm:$0xff] }
 0x241   : > { %v13008_v24 = vadd.f32 %v2762_v0, %v12726_v9  ;;  %v3330_v62 = vsel %vm2080_vm6, %v3325_v59, %v3329_v40  ;;  %v1506_v9 = vadd.f32 %v16065_v53, %v16064_v49  ;;  %v16067_v0 = vunpack.c.l.bf16 %v12828_v2 }
 0x242   : > { %v3426_v41 = vpop.f32.mrf.mxu1  ;;  %v16071_v59 = vunpack.c.l.bf16 %v13003_v58  ;;  %v3699_v49 = vor.u32 %v3698_v28, %v3695_v12 }
 0x243   : > { %16063 = vst [vmem:[#allocation65_spill] sm:$0xff] %v13008_v24  ;;  %v13012_v14 = vadd.f32 %v3426_v41, %v3063_v27  ;;  %v13014_v18 = vpop.f32.mrf.mxu0  ;;  %v3587_v32 = vmul.f32 %v16067_v0, %v16066_v50  ;;  %v16069_v27 = vunpack.c.h.bf16 %v12828_v2  ;;  %v16077_v24 = vld [vmem:[#allocation105_spill] sm:$0xff] }
 0x244   : > { %v4288_v61 = vmul.f32 %v16071_v59, %v15968_v29  ;;  %v3700_v19 = vsel %vm1220_vm4, %v3690_v37, %v3699_v49  ;;  %v16074_v29 = vld [vmem:[#allocation127_spill] sm:$0xff] }
 0x245   : > { %8940 = vmatmul.msk.bf16.gmra.mxu1 %vm1078_vm2, %v3330_v62  ;;  %v3588_v41 = vmul.f32 %v16069_v27, %v16068_v36  ;;  %9025 = vmatmul.msk.bf16.gmra.mxu3 %vm1078_vm2, %v9442_v10  ;;  %v16073_v10 = vld [vmem:[#allocation101_spill] sm:$0xff] }
 0x246   : > { %v2345_v40 = vpop.f32.mrf.mxu2  ;;  %9049 = vmatmul.msk.bf16.gmra.mxu0 %vm1078_vm2, %v4400_v11  ;;  %v4309_v0 = vpack.c.bf16 %v4288_v61, %v4287_v7  ;;  %v1509_v11 = vadd.f32 %v16074_v29, %v16073_v10  ;;  %v16075_v7 = vld [vmem:[#allocation64_spill] sm:$0xff] }
 0x247   : > { %v13035_v62 = vadd.f32 %v2345_v40, %v1506_v9  ;;  %v3611_v53 = vpack.c.bf16 %v3588_v41, %v3587_v32  ;;  %v3065_v61 = vadd.f32 %v16075_v7, %v12934_v13  ;;  %v9443_v10 = vld [vmem:[#allocation2 + $0x2c] sm:$0xff] }
 0x248   : > { %v2765_v2 = vpop.f32.mrf.mxu3  ;;  %v4405_v40 = vshll.u32 %v4309_v0, 16 }
 0x249   : > { %v13038_v35 = vadd.f32 %v2765_v2, %v12749_v42  ;;  %v3702_v9 = vshrl.u32 %v3611_v53, 16  ;;  %v3705_v28 = vshll.u32 %v3611_v53, 16  ;;  %v13050_v42 = vld [vmem:[#allocation2 + $0x78] sm:$0xff]   ;;  %v4401_v2 = vshrl.u32 %v12994_v31, 16 }
 0x24a   : > { %v13040_v27 = vpop.f32.mrf.mxu1  ;;  %v16080_v31 = vunpack.c.h.bf16 %v12892_v55 }
 0x24b   : > { %16072 = vst [vmem:[#allocation108_spill] sm:$0xff] %v13040_v27  ;;  %8949 = vmatmul.msk.bf16.gmra.mxu2 %vm1078_vm2, %v3700_v19  ;;  %v13044_v59 = vpop.f32.mrf.mxu0  ;;  %v3704_v37 = vrot.slane %v3702_v9, 3  ;;  %v4407_v19 = vrot.slane %v4405_v40, 1  ;;  %v3707_v36 = vrot.slane %v3705_v28, 4  ;;  %v16078_v27 = vld [vmem:[#allocation56_spill] sm:$0xff] }
 0x24c   : > { %v1511_v13 = vadd.f32 %v16078_v27, %v16077_v24  ;;  %v16079_v9 = vld [vmem:[#allocation16_spill] sm:$0xff]  ;;  %v16081_v24 = vld [vmem:[#allocation15_spill] sm:$0xff]  ;;  %v16082_v27 = vunpack.c.l.bf16 %v12892_v55 }
 0x24d   : > { %v3590_v40 = vmul.f32 %v16080_v31, %v16079_v9  ;;  %v3708_v7 = vor.u32 %v3707_v36, %v3704_v37 }
 0x24e   : > { %v2348_v12 = vpop.f32.mrf.mxu2 }
 0x24f   : > { %v13048_v32 = vadd.f32 %v2348_v12, %v1509_v11  ;;  %v4403_v11 = vor.u32 %v4401_v2, %v4399_v34  ;;  %v15679_v12 = vunpack.c.l.bf16 %v13050_v42  ;;  %v3589_v2 = vmul.f32 %v16082_v27, %v16081_v24 }
 0x250   : > { %v2767_v41 = vpop.f32.mrf.mxu3  ;;  %v3709_v36 = vsel %vm1220_vm4, %v3699_v49, %v3708_v7 }
 0x251   : > { %v13056_v54 = vadd.f32 %v2767_v41, %v12802_v48  ;;  %v4408_v48 = vsel %vm2080_vm6, %v4403_v11, %v4407_v19  ;;  %v15680_v41 = vunpack.c.h.bf16 %v13003_v58  ;;  %v4290_v28 = vmul.f32 %v15679_v12, %v15987_v17 }
 0x252   : > { %v3431_v29 = vpop.f32.mrf.mxu1  ;;  %v3612_v31 = vpack.c.bf16 %v3590_v40, %v3589_v2  ;;  %v16083_v40 = vld [vmem:[#allocation72_spill] sm:$0xff] }
 0x253   : > { %16076 = vst [vmem:[#allocation117_spill] sm:$0xff] %v13056_v54  ;;  %v13058_v50 = vadd.f32 %v3431_v29, %v3065_v61  ;;  %v13060_v53 = vpop.f32.mrf.mxu0  ;;  %v4289_v29 = vmul.f32 %v15680_v41, %v15995_v45  ;;  %v9444_v41 = vld [vmem:[#allocation2 + $0x34] sm:$0xff] }
 0x254   : > { %v3711_v55 = vshrl.u32 %v3612_v31, 16 }
 0x255   : > { %9026 = vmatmul.msk.bf16.gmra.mxu3 %vm1078_vm2, %v9443_v10  ;;  %v4310_v9 = vpack.c.bf16 %v4290_v28, %v4289_v29  ;;  %v3067_v28 = vadd.f32 %v16083_v40, %v12986_v4 }
 0x256   : > { %v2350_v34 = vpop.f32.mrf.mxu2  ;;  %9050 = vmatmul.msk.bf16.gmra.mxu0 %vm1078_vm2, %v4408_v48  ;;  %v3713_v2 = vrot.slane %v3711_v55, 3  ;;  %v16086_v55 = vld [vmem:[#allocation18_spill] sm:$0xff] }
 0x257   : > { %v13075_v61 = vadd.f32 %v2350_v34, %v1511_v13  ;;  %v4413_v13 = vshll.u32 %v4310_v9, 16  ;;  %v3714_v34 = vshll.u32 %v3612_v31, 16  ;;  %v15683_v31 = vunpack.c.h.bf16 %v13050_v42 }
 0x258   : > { %v2770_v11 = vpop.f32.mrf.mxu3 }
 0x259   : > { %v13084_v12 = vadd.f32 %v2770_v11, %v12826_v20  ;;  %v4409_v20 = vshrl.u32 %v4309_v0, 16  ;;  %v4415_v29 = vrot.slane %v4413_v13, 1 }
 0x25a   : > { %v13086_v10 = vpop.f32.mrf.mxu1 }
 0x25b   : > { %8950 = vmatmul.msk.bf16.gmra.mxu2 %vm1078_vm2, %v3709_v36  ;;  %v13090_v37 = vpop.f32.mrf.mxu0  ;;  %v3716_v36 = vrot.slane %v3714_v34, 4  ;;  %v4411_v24 = vor.u32 %v4409_v20, %v4407_v19  ;;  %v16089_v34 = vunpack.c.h.bf16 %v12955_v26  ;;  %v4291_v19 = vmul.f32 %v15683_v31, %v16012_v21  ;;  %v13131_v21 = vld [vmem:[#allocation2 + $0x88] sm:$0xff]  }
 0x25c   : > { %v4417_v31 = vshrl.u32 %v4310_v9, 16 }
 0x25d   : > { %v4416_v54 = vsel %vm2080_vm6, %v4411_v24, %v4415_v29  ;;  %v3717_v0 = vor.u32 %v3716_v36, %v3713_v2 }
 0x25e   : > { %v13092_v48 = vpop.f32.mrf.mxu2 }
 0x25f   : > { %v3718_v20 = vsel %vm1220_vm4, %v3708_v7, %v3717_v0 }
 0x260   : > { %v2772_v27 = vpop.f32.mrf.mxu3 }
 0x261   : > { %v13097_v11 = vadd.f32 %v2772_v27, %v12865_v60  ;;  %v16087_v60 = vunpack.c.l.bf16 %v12955_v26  ;;  %v16088_v27 = vld [vmem:[#allocation17_spill] sm:$0xff] }
 0x262   : > { %v3436_v49 = vpop.f32.mrf.mxu1  ;;  %v3592_v40 = vmul.f32 %v16089_v34, %v16088_v27  ;;  %v4419_v27 = vor.u32 %v4417_v31, %v4415_v29  ;;  %v16097_v29 = vunpack.c.h.bf16 %v13003_v58  ;;  %v4293_v31 = vmul.f32 %v12659_v38, %v16022_v8  ;;  %v9446_v8 = vld [vmem:[#allocation2 + $0x44] sm:$0xff] }
 0x263   : > { %16084 = vst [vmem:[#allocation70_spill] sm:$0xff] %v13097_v11  ;;  %v13099_v45 = vadd.f32 %v3436_v49, %v3067_v28  ;;  %v13101_v17 = vpop.f32.mrf.mxu0  ;;  %v3591_v13 = vmul.f32 %v16087_v60, %v16086_v55  ;;  %v16094_v11 = vld [vmem:[#allocation19_spill] sm:$0xff] }
 0x265   : > { %16085 = vst [vmem:[#allocation110_spill] sm:$0xff] %v13099_v45  ;;  %9027 = vmatmul.msk.bf16.gmra.mxu3 %vm1078_vm2, %v9444_v41  ;;  %v4292_v41 = vmul.f32 %v12657_v56, %v16013_v52  ;;  %v3613_v49 = vpack.c.bf16 %v3592_v40, %v3591_v13  ;;  %v9445_v40 = vld [vmem:[#allocation2 + $0x3c] sm:$0xff] }
 0x266   : > { %v13106_v4 = vpop.f32.mrf.mxu2  ;;  %9051 = vmatmul.msk.bf16.gmra.mxu0 %vm1078_vm2, %v4416_v54 }
 0x267   : > { %v4311_v54 = vpack.c.bf16 %v4292_v41, %v4291_v19  ;;  %v3720_v60 = vshrl.u32 %v3613_v49, 16  ;;  %v3723_v34 = vshll.u32 %v3613_v49, 16  ;;  %v15686_v49 = vunpack.c.l.bf16 %v13131_v21 }
 0x268   : > { %v2775_v24 = vpop.f32.mrf.mxu3 }
 0x269   : > { %v13121_v28 = vadd.f32 %v2775_v24, %v12888_v47  ;;  %v4421_v56 = vshll.u32 %v4311_v54, 16  ;;  %v16091_v47 = vld [vmem:[#allocation30_spill] sm:$0xff]  ;;  %v3725_v19 = vrot.slane %v3723_v34, 4 }
 0x26a   : > { %v13123_v2 = vpop.f32.mrf.mxu1  ;;  %v3069_v24 = vadd.f32 %v16091_v47, %v13038_v35  ;;  %v16096_v35 = vld [vmem:[#allocation20_spill] sm:$0xff] }
 0x26b   : > { %16090 = vst [vmem:[#allocation73_spill] sm:$0xff] %v13123_v2  ;;  %8951 = vmatmul.msk.bf16.gmra.mxu2 %vm1078_vm2, %v3718_v20  ;;  %v13127_v26 = vpop.f32.mrf.mxu0  ;;  %v3722_v20 = vrot.slane %v3720_v60, 3  ;;  %v4423_v9 = vrot.slane %v4421_v56, 1  ;;  %v16095_v2 = vunpack.c.l.bf16 %v13003_v58  ;;  %v4294_v60 = vmul.f32 %v15686_v49, %v16023_v22 }
 0x26d   : > { %v3593_v45 = vmul.f32 %v16095_v2, %v16094_v11  ;;  %v3726_v56 = vor.u32 %v3725_v19, %v3722_v20  ;;  %v4312_v58 = vpack.c.bf16 %v4294_v60, %v4293_v31  ;;  %v4230_v19 = vld [vmem:[#allocation2 + $0x90] sm:$0xf]  ;;  %v4425_v60 = vshrl.u32 %v4311_v54, 16 }
 0x26e   : > { %v13129_v36 = vpop.f32.mrf.mxu2  ;;  %v15689_v54 = vunpack.c.h.bf16 %v13131_v21 }
 0x26f   : > { %v3727_v38 = vsel %vm1220_vm4, %v3717_v0, %v3726_v56  ;;  %v4429_v49 = vshll.u32 %v4312_v58, 16  ;;  %v4427_v11 = vor.u32 %v4425_v60, %v4423_v9 }
 0x270   : > { %v2777_v52 = vpop.f32.mrf.mxu3 }
 0x271   : > { %v13136_v7 = vadd.f32 %v2777_v52, %v12924_v44  ;;  %v3594_v52 = vmul.f32 %v16097_v29, %v16096_v35  ;;  %v4424_v44 = vsel %vm2080_vm6, %v4419_v27, %v4423_v9  ;;  %v16104_v9 = vunpack.c.l.bf16 %v13050_v42 }
 0x272   : > { %v3441_v13 = vpop.f32.mrf.mxu1 }
 0x273   : > { %16092 = vst [vmem:[#allocation114_spill] sm:$0xff] %v13136_v7  ;;  %v13138_v41 = vadd.f32 %v3441_v13, %v3069_v24  ;;  %v13140_v55 = vpop.f32.mrf.mxu0  ;;  %v3614_v47 = vpack.c.bf16 %v3594_v52, %v3593_v45  ;;  %v16099_v45 = vld [vmem:[#allocation94_spill] sm:$0xff]  ;;  %v16101_v7 = vld [vmem:[#allocation25_spill] sm:$0xff] }
 0x274   : > { %v3071_v52 = vadd.f32 %v16099_v45, %v13084_v12 }
 0x275   : > { %16093 = vst [vmem:[#allocation121_spill] sm:$0xff] %v13138_v41  ;;  %9028 = vmatmul.msk.bf16.gmra.mxu3 %vm1078_vm2, %v9445_v40  ;;  %v3729_v40 = vshrl.u32 %v3614_v47, 16  ;;  %v3732_v29 = vshll.u32 %v3614_v47, 16 }
 0x276   : > { %v13156_v34 = vpop.f32.mrf.mxu2  ;;  %9052 = vmatmul.msk.bf16.gmra.mxu0 %vm1078_vm2, %v4424_v44 }
 0x277   : > { %v3734_v31 = vrot.slane %v3732_v29, 4 }
 0x278   : > { %v2780_v2 = vpop.f32.mrf.mxu3 }
 0x279   : > { %v13160_v24 = vadd.f32 %v2780_v2, %v12946_v23  ;;  %v3731_v23 = vrot.slane %v3729_v40, 3  ;;  %v4431_v2 = vrot.slane %v4429_v49, 1 }
 0x27a   : > { %v13162_v27 = vpop.f32.mrf.mxu1 }
 0x27b   : > { %16098 = vst [vmem:[#allocation79_spill] sm:$0xff] %v13162_v27  ;;  %8952 = vmatmul.msk.bf16.gmra.mxu2 %vm1078_vm2, %v3727_v38  ;;  %v13166_v13 = vpop.f32.mrf.mxu0  ;;  %v4263_v38 = vunpack.c.l.bf16 %v4230_v19  ;;  %v16102_v27 = vunpack.c.h.bf16 %v13050_v42  ;;  %v4432_v12 = vsel %vm2080_vm6, %v4427_v11, %v4431_v2  ;;  %v3735_v40 = vor.u32 %v3734_v31, %v3731_v23 }
 0x27d   : > { %v3596_v41 = vmul.f32 %v16102_v27, %v16101_v7  ;;  %v4296_v49 = vmul.f32 %v4263_v38, %v16039_v15  ;;  %v4295_v27 = vmul.f32 %v15689_v54, %v16046_v39  ;;  %v9447_v39 = vld [vmem:[#allocation2 + $0x4c] sm:$0xff] }
 0x27e   : > { %v13168_v20 = vpop.f32.mrf.mxu2 }
 0x280   : > { %v2782_v44 = vpop.f32.mrf.mxu3 }
 0x281   : > { %v13173_v0 = vadd.f32 %v2782_v44, %v12971_v5  ;;  %v4313_v44 = vpack.c.bf16 %v4296_v49, %v4295_v27 }
 0x282   : > { %v3446_v22 = vpop.f32.mrf.mxu1 }
 0x283   : > { %16100 = vst [vmem:[#allocation116_spill] sm:$0xff] %v13173_v0  ;;  %v13175_v35 = vadd.f32 %v3446_v22, %v3071_v52  ;;  %v13177_v47 = vpop.f32.mrf.mxu0  ;;  %v16103_v22 = vld [vmem:[#allocation23_spill] sm:$0xff]  ;;  %v3736_v52 = vsel %vm1220_vm4, %v3726_v56, %v3735_v40  ;;  %v4437_v60 = vshll.u32 %v4313_v44, 16 }
 0x284   : > { %v3595_v29 = vmul.f32 %v16104_v9, %v16103_v22 }
 0x285   : > { %9029 = vmatmul.msk.bf16.gmra.mxu3 %vm1078_vm2, %v9446_v8  ;;  %v4439_v56 = vrot.slane %v4437_v60, 1 }
 0x286   : > { %v13186_v5 = vpop.f32.mrf.mxu2  ;;  %9053 = vmatmul.msk.bf16.gmra.mxu0 %vm1078_vm2, %v4432_v12  ;;  %v3615_v19 = vpack.c.bf16 %v3596_v41, %v3595_v29  ;;  %v10298_v12 = vld [vmem:[#allocation2 + $0x80] sm:$0xff]   ;;  %v4231_v41 = vld [vmem:[#allocation2 + $0x94] sm:$0x1] }
 0x287   : > { %v9799_v27 = vunpack.c.l.bf16 %v10298_v12  ;;  %v4264_v22 = vunpack.c.l.bf16 %v4231_v41  ;;  %v5006_v41 = vld [vmem:[%s15508_s2] sm:$0xf] }
 0x288   : > { %v2785_v11 = vpop.f32.mrf.mxu3  ;;  %v3738_v42 = vshrl.u32 %v3615_v19, 16  ;;  %v3741_v31 = vshll.u32 %v3615_v19, 16  ;;  %v9800_v19 = vunpack.c.h.bf16 %v10298_v12 }
 0x289   : > { %v13196_v45 = vadd.f32 %v2785_v11, %v12999_v51  ;;  %v3073_v51 = vadd.f32 %v12695_v33, %v13121_v28  ;;  %v4433_v11 = vshrl.u32 %v4312_v58, 16  ;;  %v16108_v58 = vld [vmem:[#allocation40_spill] sm:$0xff] }
 0x28a   : > { %v13198_v8 = vpop.f32.mrf.mxu1  ;;  %v3740_v49 = vrot.slane %v3738_v42, 3  ;;  %v3743_v29 = vrot.slane %v3741_v31, 4  ;;  %v3597_v42 = vmul.f32 %v9799_v27, %v16108_v58 }
 0x28b   : > { %16105 = vst [vmem:[#allocation81_spill] sm:$0xff] %v13198_v8  ;;  %8953 = vmatmul.msk.bf16.gmra.mxu2 %vm1078_vm2, %v3736_v52  ;;  %v13202_v23 = vpop.f32.mrf.mxu0  ;;  %v4435_v7 = vor.u32 %v4433_v11, %v4431_v2  ;;  %v3075_v11 = vadd.f32 %v12773_v57, %v13160_v24  ;;  %v16113_v57 = vld [vmem:[#allocation50_spill] sm:$0xff]  ;;  %v16114_v24 = vunpack.c.l.bf16 %v13131_v21 }
 0x28c   : > { %v3744_v28 = vor.u32 %v3743_v29, %v3740_v49  ;;  %v5432_v49 = vsel %vm5138_vm8, %v5006_v41, 0  ;;  %v4441_v29 = vshrl.u32 %v4313_v44, 16  ;;  %v9153_v44 = vld [vmem:[%s15508_s2 + $0x8] sm:$0xf] }
 0x28d   : > { %v4440_v8 = vsel %vm2080_vm6, %v4435_v7, %v4439_v56  ;;  %5441 = vmatpush.bf16.msrb.mxu2 %v5432_v49  ;;  %v5822_v49 = vsel %vm5138_vm8, %v9153_v44, 0 }
 0x28e   : > { %v13204_v38 = vpop.f32.mrf.mxu2  ;;  %v3745_v7 = vsel %vm1220_vm4, %v3735_v40, %v3744_v28  ;;  %5831 = vmatpush.bf16.msrb.mxu3 %v5822_v49 }
 0x290   : > { %v2787_v9 = vpop.f32.mrf.mxu3 }
 0x291   : > { %v13209_v52 = vadd.f32 %v2787_v9, %v13035_v62  ;;  %v16109_v62 = vld [vmem:[#allocation39_spill] sm:$0xff] }
 0x292   : > { %v3451_v54 = vpop.f32.mrf.mxu1  ;;  %v3598_v31 = vmul.f32 %v9800_v19, %v16109_v62  ;;  %v4443_v19 = vor.u32 %v4441_v29, %v4439_v56  ;;  %v16115_v56 = vld [vmem:[#allocation54_spill] sm:$0xff]  ;;  %v16116_v29 = vunpack.c.h.bf16 %v13131_v21 }
 0x293   : > { %16106 = vst [vmem:[#allocation119_spill] sm:$0xff] %v13209_v52  ;;  %v13211_v15 = vadd.f32 %v3451_v54, %v3073_v51  ;;  %v13213_v0 = vpop.f32.mrf.mxu0  ;;  %v4297_v54 = vmul.f32 %v4264_v22, %v16055_v30 }
 0x295   : > { %16107 = vst [vmem:[#allocation125_spill] sm:$0xff] %v13211_v15  ;;  %9030 = vmatmul.msk.bf16.gmra.mxu3 %vm1078_vm2, %v9447_v39  ;;  %v3616_v39 = vpack.c.bf16 %v3598_v31, %v3597_v42  ;;  %v4314_v9 = vpack.c.bf16 %v4297_v54, %v4297_v54  ;;  %v9448_v54 = vld [vmem:[#allocation2 + $0x54] sm:$0xff] }
 0x296   : > { %v13217_v33 = vpop.f32.mrf.mxu2  ;;  %9054 = vmatmul.msk.bf16.gmra.mxu0 %vm1078_vm2, %v4440_v8 }
 0x297   : > { %v3747_v8 = vshrl.u32 %v3616_v39, 16  ;;  %v3750_v22 = vshll.u32 %v3616_v39, 16  ;;  %v4445_v27 = vshll.u32 %v4314_v9, 16  ;;  %v9456_v9 = vld [vmem:[#allocation3 + $0x4] sm:$0xff] }
 0x298   : > { %v2790_v60 = vpop.f32.mrf.mxu3  ;;  %9121 = vmatmul.msk.bf16.vlgmr.msra.gmra.mxu1 %vm5089_vm9, %v9456_v9  ;;  %v9187_v9 = vld [vmem:[%s15508_s2 + $0x10] sm:$0xf] }
 0x299   : > { %v13224_v2 = vadd.f32 %v2790_v60, %v13048_v32  ;;  %v3749_v60 = vrot.slane %v3747_v8, 3  ;;  %v4447_v41 = vrot.slane %v4445_v27, 1  ;;  %v3600_v8 = vmul.f32 %v16116_v29, %v16115_v56 }
 0x29a   : > { %v13226_v12 = vpop.f32.mrf.mxu1 }
 0x29b   : > { %16110 = vst [vmem:[#allocation86_spill] sm:$0xff] %v13226_v12  ;;  %8954 = vmatmul.msk.bf16.gmra.mxu2 %vm1078_vm2, %v3745_v7  ;;  %v13236_v32 = vpop.f32.mrf.mxu0  ;;  %v3752_v7 = vrot.slane %v3750_v22, 4  ;;  %v4448_v22 = vsel %vm2080_vm6, %v4443_v19, %v4447_v41  ;;  %v13268_v19 = vld [vmem:[%s15510_s4] ss:$0 sm:$0xff]  ;;  %v9170_v41 = vld [vmem:[%s15508_s2 + $0xc] sm:$0xf] }
 0x29c   : > { %v6264_v49 = vsel %vm5138_vm8, %v9170_v41, 0 }
 0x29d   : > { %6273 = vmatpush.bf16.msrb.mxu0 %v6264_v49  ;;  %v9449_v49 = vld [vmem:[#allocation2 + $0x5c] sm:$0xff] }
 0x29e   : > { %v13233_v51 = vpop.f32.mrf.mxu2 }
 0x2a0   : > { %v2792_v40 = vpop.f32.mrf.mxu3 }
 0x2a1   : > { %v13241_v42 = vadd.f32 %v2792_v40, %v13075_v61  ;;  %v3599_v61 = vmul.f32 %v16114_v24, %v16113_v57  ;;  %v3753_v40 = vor.u32 %v3752_v7, %v3749_v60 }
 0x2a2   : > { %v3456_v31 = vpop.f32.mrf.mxu1 }
 0x2a3   : > { %16111 = vst [vmem:[#allocation35_spill] sm:$0xff] %v13241_v42  ;;  %v13243_v39 = vadd.f32 %v3456_v31, %v3075_v11  ;;  %v16117_v11 = vld [vmem:[#allocation76_spill] sm:$0xff]  ;;  %v13263_v44 = vpop.f32.mrf.mxu0  ;;  %v3617_v21 = vpack.c.bf16 %v3600_v8, %v3599_v61  ;;  %v3754_v60 = vsel %vm1220_vm4, %v3744_v28, %v3753_v40  ;;  %v6518_v28 = vsel %vm5138_vm8, %v9187_v9, 0  ;;  %v13292_v8 = vld [vmem:[%s15510_s4 + $0x2] ss:$0 sm:$0xff] }
 0x2a4   : > { %v3913_v31 = vadd.f32 %v13092_v48, %v16117_v11  ;;  %v13278_v48 = vld [vmem:[%s15510_s4 + $0x1] ss:$0 sm:$0xff]  ;;  %6527 = vmatpush.bf16.msrb.mxu1 %v6518_v28 }
 0x2a5   : > { %16112 = vst [vmem:[#allocation89_spill] sm:$0xff] %v13243_v39  ;;  %9031 = vmatmul.msk.bf16.gmra.mxu3 %vm1078_vm2, %v9448_v54  ;;  %v3756_v61 = vshrl.u32 %v3617_v21, 16  ;;  %v3759_v11 = vshll.u32 %v3617_v21, 16 }
 0x2a6   : > { %v13257_v27 = vpop.f32.mrf.mxu2  ;;  %9055 = vmatmul.msk.bf16.gmra.mxu0 %vm1078_vm2, %v4448_v22 }
 0x2a7   : > { %v3758_v9 = vrot.slane %v3756_v61, 3  ;;  %v3761_v28 = vrot.slane %v3759_v11, 4  ;;  %v16121_v11 = vld [vmem:[#allocation85_spill] sm:$0xff] }
 0x2a8   : > { %v4087_v24 = vpop.f32.mrf.mxu3 }
 0x2a9   : > { %v4167_v29 = vadd.f32 %v4087_v24, %v3913_v31  ;;  %v3535_v31 = vld [vmem:[#allocation2 + $0x90] sm:$0xf]  ;;  %v16119_v24 = vld [vmem:[#allocation80_spill] sm:$0xff]  ;;  %v3762_v61 = vor.u32 %v3761_v28, %v3758_v9  ;;  %v4890_v28 = vld [vmem:[#allocation3] sm:$0x8] }
 0x2aa   : > { %v13270_v54 = vpop.f32.mrf.mxu1  ;;  %v3568_v30 = vunpack.c.l.bf16 %v3535_v31  ;;  %v3915_v31 = vadd.f32 %v13129_v36, %v16121_v11 }
 0x2ab   : > { %16118 = vst [vmem:[#allocation123_spill] sm:$0xff] %v13270_v54  ;;  %8955 = vmatmul.msk.bf16.gmra.mxu2 %vm1078_vm2, %v3754_v60  ;;  %v4589_v7 = vadd.f32 %v12959_v25, %v4167_v29  ;;  %v3914_v29 = vadd.f32 %v13106_v4, %v16119_v24  ;;  %v13302_v21 = vpop.f32.mrf.mxu0 }
 0x2ac   : > { %v3601_v58 = vmul.f32 %v3568_v30, %v16001_v6 }
 0x2ad   : > { %v4623_v25 = vmul.f32 %v13268_v19, %v4589_v7  ;;  %v3077_v7 = vadd.f32 %v12840_v43, %v13196_v45 }
 0x2ae   : > { %v13294_v22 = vpop.f32.mrf.mxu2 }
 0x2af   : > { %v4657_v60 = vadd.f32 %v13278_v48, %v4623_v25 }
 0x2b0   : > { %v4089_v41 = vpop.f32.mrf.mxu3 }
 0x2b1   : > { %vm4689_vm10 = vcmp.gt.f32.partialorder %v4657_v60, 0.0  ;;  %v4723_v56 = vmul.f32 %v13292_v8, %v4657_v60  ;;  %v4168_v57 = vadd.f32 %v4089_v41, %v3914_v29  ;;  %v3618_v29 = vpack.c.bf16 %v3601_v58, %v3601_v58 }
 0x2b2   : > { %v3461_v42 = vpop.f32.mrf.mxu1 }
 0x2b3   : > { %v13304_v62 = vadd.f32 %v3461_v42, %v3077_v7  ;;  %v4755_v4 = vsel %vm4689_vm10, %v4657_v60, %v4723_v56  ;;  %v4590_v25 = vadd.f32 %v12992_v16, %v4168_v57  ;;  %v3763_v60 = vsel %vm1220_vm4, %v3753_v40, %v3762_v61  ;;  %v13322_v9 = vpop.f32.mrf.mxu0 }
 0x2b4   : > { %v4826_v24 = vpack.c.bf16 %v4755_v4, %v4755_v4  ;;  %v4891_v4 = vld [vmem:[#allocation3 + $0x4] sm:$0xf] }
 0x2b5   : > { %16120 = vst [vmem:[#allocation130_spill] sm:$0xff] %v13304_v62  ;;  %v4624_v43 = vmul.f32 %v13268_v19, %v4590_v25  ;;  %9032 = vmatmul.msk.bf16.gmra.mxu3 %vm1078_vm2, %v9449_v49  ;;  %v3765_v49 = vshrl.u32 %v3618_v29, 16 }
 0x2b6   : > { %v13310_v45 = vpop.f32.mrf.mxu2  ;;  %4858 = vst.msk [vmem:[#allocation3 + $0xc] sm:$0xf] %vm4787_vm7, %v4826_v24  ;;  %v3768_v24 = vshll.u32 %v3618_v29, 16  ;;  %v9450_v29 = vld [vmem:[#allocation2 + $0x64] sm:$0xff] }
 0x2b7   : > { %v4658_v42 = vadd.f32 %v13278_v48, %v4624_v43  ;;  %v16123_v43 = vld [vmem:[#allocation36_spill] sm:$0xff] }
 0x2b8   : > { %v4092_v56 = vpop.f32.mrf.mxu3  ;;  %v3916_v40 = vadd.f32 %v13156_v34, %v16123_v43 }
 0x2b9   : > { %vm4690_vm11 = vcmp.gt.f32.partialorder %v4658_v42, 0.0  ;;  %v4724_v16 = vmul.f32 %v13292_v8, %v4658_v42  ;;  %v4169_v30 = vadd.f32 %v4092_v56, %v3915_v31  ;;  %v4923_v31 = vunpack.c.l.bf16 %v4890_v28 }
 0x2ba   : > { %v13317_v57 = vpop.f32.mrf.mxu1  ;;  %v3079_v56 = vadd.f32 %v12901_v46, %v13224_v2 }
 0x2bb   : > { %16122 = vst [vmem:[#allocation95_spill] sm:$0xff] %v13317_v57  ;;  %8956 = vmatmul.msk.bf16.gmra.mxu2 %vm1078_vm2, %v3763_v60  ;;  %v4756_v41 = vsel %vm4690_vm11, %v4658_v42, %v4724_v16  ;;  %v4591_v7 = vadd.f32 %v13014_v18, %v4169_v30  ;;  %v4924_v18 = vunpack.c.l.bf16 %v4891_v4  ;;  %v3767_v16 = vrot.slane %v3765_v49, 3  ;;  %v16126_v4 = vld [vmem:[#allocation24_spill] sm:$0xff] }
 0x2bc   : > { %v4827_v36 = vpack.c.bf16 %v4756_v41, %v4756_v41 }
 0x2bd   : > { %v4625_v58 = vmul.f32 %v13268_v19, %v4591_v7  ;;  %v3770_v7 = vrot.slane %v3768_v24, 4  ;;  %v4957_v43 = vmul.f32 %v4924_v18, %v16126_v4 }
 0x2be   : > { %v13325_v25 = vpop.f32.mrf.mxu2  ;;  %4859 = vst.msk [vmem:[#allocation3 + $0x10] sm:$0xf] %vm4787_vm7, %v4827_v36 }
 0x2bf   : > { %v4659_v11 = vadd.f32 %v13278_v48, %v4625_v58  ;;  %v16125_v58 = vld [vmem:[#allocation22_spill] sm:$0xff] }
 0x2c0   : > { %v4094_v42 = vpop.f32.mrf.mxu3  ;;  %v4956_v28 = vmul.f32 %v4923_v31, %v16125_v58  ;;  %v5945_v31 = vld [vmem:[#allocation3 + $0x8] sm:$0x8] }
 0x2c1   : > { %vm4691_vm12 = vcmp.gt.f32.partialorder %v4659_v11, 0.0  ;;  %v4725_v30 = vmul.f32 %v13292_v8, %v4659_v11  ;;  %v4170_v60 = vadd.f32 %v4094_v42, %v3916_v40  ;;  %v3771_v40 = vor.u32 %v3770_v7, %v3767_v16  ;;  %v13343_v42 = vpop.f32.mrf.mxu0 }
 0x2c2   : > { %v3466_v41 = vpop.f32.mrf.mxu1 }
 0x2c3   : > { %v13334_v36 = vadd.f32 %v3466_v41, %v3079_v56  ;;  %v4757_v6 = vsel %vm4691_vm12, %v4659_v11, %v4725_v30  ;;  %v4592_v34 = vadd.f32 %v13044_v59, %v4170_v60  ;;  %v3917_v59 = vadd.f32 %v13168_v20, %v12693_v1  ;;  %v13354_v60 = vld [vmem:[#allocation3 + $0x8] sm:$0xff]  }
 0x2c4   : > { %v4828_v57 = vpack.c.bf16 %v4757_v6, %v4757_v6  ;;  %v4989_v6 = vpack.c.bf16 %v4957_v43, %v4956_v28  ;;  %v3772_v16 = vsel %vm1220_vm4, %v3762_v61, %v3771_v40  ;;  %v5946_v20 = vld [vmem:[#allocation3 + $0xc] sm:$0xf]  ;;  %v5978_v41 = vunpack.c.l.bf16 %v5945_v31  ;;  %v16128_v40 = vld [vmem:[#allocation28_spill] sm:$0xff]  ;;  %v16129_v31 = vld [vmem:[#allocation42_spill] sm:$0xff] }
 0x2c5   : > { %16124 = vst [vmem:[#allocation45_spill] sm:$0xff] %v13334_v36  ;;  %v4626_v46 = vmul.f32 %v13268_v19, %v4592_v34  ;;  %9033 = vmatmul.msk.bf16.gmra.mxu3 %vm1078_vm2, %v9450_v29  ;;  %v9457_v49 = vld [vmem:[#allocation3 + $0xc] sm:$0xff]  ;;  %v15694_v7 = vunpack.c.l.bf16 %v13354_v60  ;;  %v15695_v34 = vunpack.c.h.bf16 %v13354_v60  ;;  %v5979_v28 = vunpack.c.l.bf16 %v5946_v20 }
 0x2c6   : > { %v13341_v2 = vpop.f32.mrf.mxu2  ;;  %4860 = vst.msk [vmem:[#allocation3 + $0x14] sm:$0xf] %vm4787_vm7, %v4828_v57  ;;  %9122 = vmatmul.msk.bf16.gmra.mxu1 %vm5089_vm9, %v9457_v49  ;;  %v5232_v1 = vshrl.u32 %v4989_v6, 16  ;;  %v16127_v49 = vld [vmem:[#allocation27_spill] sm:$0xff]  ;;  %v6011_v36 = vmul.f32 %v5978_v41, %v16125_v58 }
 0x2c7   : > { %v4660_v24 = vadd.f32 %v13278_v48, %v4626_v46 }
 0x2c8   : > { %v4097_v11 = vpop.f32.mrf.mxu3 }
 0x2c9   : > { %vm4692_vm13 = vcmp.gt.f32.partialorder %v4660_v24, 0.0  ;;  %v4726_v18 = vmul.f32 %v13292_v8, %v4660_v24  ;;  %v4171_v56 = vadd.f32 %v4097_v11, %v3917_v59  ;;  %v4959_v59 = vmul.f32 %v15695_v34, %v16128_v40 }
 0x2cb   : > { %8957 = vmatmul.msk.bf16.gmra.mxu2 %vm1078_vm2, %v3772_v16  ;;  %v4758_v30 = vsel %vm4692_vm13, %v4660_v24, %v4726_v18  ;;  %v4593_v57 = vadd.f32 %v13060_v53, %v4171_v56  ;;  %v4958_v53 = vmul.f32 %v15694_v7, %v16127_v49  ;;  %v5235_v24 = vshll.u32 %v4989_v6, 16 }
 0x2cc   : > { %v4829_v29 = vpack.c.bf16 %v4758_v30, %v4758_v30  ;;  %v3918_v18 = vadd.f32 %v13186_v5, %v16129_v31  ;;  %v6012_v30 = vmul.f32 %v5979_v28, %v16126_v4  ;;  %v5234_v7 = vrot.slane %v5232_v1, 3  ;;  %v9451_v31 = vld [vmem:[#allocation2 + $0x6c] sm:$0xff] }
 0x2cd   : > { %v4627_v43 = vmul.f32 %v13268_v19, %v4593_v57  ;;  %v10345_v61 = vld [vmem:[#allocation3 + $0x10] sm:$0xff]   ;;  %v13376_v57 = vpop.f32.mrf.mxu0 }
 0x2ce   : > { %v13359_v46 = vpop.f32.mrf.mxu2  ;;  %4861 = vst.msk [vmem:[#allocation3 + $0x18] sm:$0xf] %vm4787_vm7, %v4829_v29  ;;  %v13368_v11 = vunpack.c.l.bf16 %v10345_v61  ;;  %v13373_v16 = vunpack.c.h.bf16 %v10345_v61  ;;  %v4990_v29 = vpack.c.bf16 %v4959_v59, %v4958_v53  ;;  %v5237_v61 = vrot.slane %v5235_v24, 4 }
 0x2cf   : > { %v4661_v56 = vadd.f32 %v13278_v48, %v4627_v43  ;;  %v6044_v52 = vpack.c.bf16 %v6012_v30, %v6011_v36 }
 0x2d0   : > { %v4099_v20 = vpop.f32.mrf.mxu3  ;;  %v6013_v6 = vmul.f32 %v13368_v11, %v16127_v49  ;;  %v6014_v43 = vmul.f32 %v13373_v16, %v16128_v40  ;;  %v5240_v28 = vshrl.u32 %v4990_v29, 16  ;;  %v5243_v4 = vshll.u32 %v4990_v29, 16  ;;  %v16130_v29 = vld [vmem:[#allocation46_spill] sm:$0xff] }
 0x2d1   : > { %vm4693_vm14 = vcmp.gt.f32.partialorder %v4661_v56, 0.0  ;;  %v4727_v34 = vmul.f32 %v13292_v8, %v4661_v56  ;;  %v4172_v5 = vadd.f32 %v4099_v20, %v3918_v18  ;;  %v6064_v49 = vshrl.u32 %v6044_v52, 16 }
 0x2d2   : > { %v6045_v53 = vpack.c.bf16 %v6014_v43, %v6013_v6  ;;  %v5242_v59 = vrot.slane %v5240_v28, 3  ;;  %v5245_v58 = vrot.slane %v5243_v4, 4  ;;  %v6067_v40 = vshll.u32 %v6044_v52, 16 }
 0x2d3   : > { %v4759_v62 = vsel %vm4693_vm14, %v4661_v56, %v4727_v34  ;;  %v4594_v1 = vadd.f32 %v13090_v37, %v4172_v5  ;;  %v3919_v36 = vadd.f32 %v13204_v38, %v16130_v29  ;;  %v5238_v37 = vor.u32 %v5237_v61, %v5234_v7  ;;  %v16132_v61 = vld [vmem:[#allocation34_spill] sm:$0xff] }
 0x2d4   : > { %v4830_v41 = vpack.c.bf16 %v4759_v62, %v4759_v62  ;;  %v6072_v24 = vshrl.u32 %v6045_v53, 16  ;;  %v6075_v39 = vshll.u32 %v6045_v53, 16  ;;  %v13392_v62 = vor.u32 %v5245_v58, %v5242_v59 }
 0x2d5   : > { %v4628_v54 = vmul.f32 %v13268_v19, %v4594_v1  ;;  %9034 = vmatmul.msk.bf16.gmra.mxu3 %vm1078_vm2, %v9451_v31  ;;  %v9458_v20 = vld [vmem:[#allocation3 + $0x14] sm:$0xff]  ;;  %v6066_v4 = vrot.slane %v6064_v49, 3  ;;  %v6069_v56 = vrot.slane %v6067_v40, 4  ;;  %v13399_v43 = vpop.f32.mrf.mxu0  ;;  %v4961_v28 = vmul.f32 %v13373_v16, %v16132_v61 }
 0x2d6   : > { %v13387_v18 = vpop.f32.mrf.mxu2  ;;  %4862 = vst.msk [vmem:[#allocation3 + $0x1c] sm:$0xf] %vm4787_vm7, %v4830_v41  ;;  %9123 = vmatmul.msk.bf16.gmra.mxu1 %vm5089_vm9, %v9458_v20  ;;  %v6074_v30 = vrot.slane %v6072_v24, 3  ;;  %v6077_v6 = vrot.slane %v6075_v39, 4  ;;  %v5247_v38 = vsel %vm1220_vm4, %v5238_v37, %v13392_v62  ;;  %v16131_v40 = vld [vmem:[#allocation33_spill] sm:$0xff] }
 0x2d7   : > { %v4662_v34 = vadd.f32 %v13278_v48, %v4628_v54  ;;  %v6070_v58 = vor.u32 %v6069_v56, %v6066_v4  ;;  %v4960_v39 = vmul.f32 %v13368_v11, %v16131_v40 }
 0x2d8   : > { %v4102_v5 = vpop.f32.mrf.mxu3  ;;  %v6078_v7 = vor.u32 %v6077_v6, %v6074_v30 }
 0x2d9   : > { %vm4694_vm15 = vcmp.gt.f32.partialorder %v4662_v34, 0.0  ;;  %v4728_v52 = vmul.f32 %v13292_v8, %v4662_v34  ;;  %v4173_v31 = vadd.f32 %v4102_v5, %v3919_v36  ;;  %v4991_v20 = vpack.c.bf16 %v4961_v28, %v4960_v39  ;;  %v16133_v36 = vld [vmem:[#allocation93_spill] sm:$0xff] }
 0x2da   : > { %v6079_v53 = vsel %vm1220_vm4, %v6070_v58, %v6078_v7  ;;  %v3920_v37 = vadd.f32 %v13217_v33, %v16133_v36 }
 0x2db   : > { %9137 = vmatmul.msk.bf16.vlgmr.msrb.gmra.mxu2 %vm5089_vm9, %v5247_v38  ;;  %v4760_v54 = vsel %vm4694_vm15, %v4662_v34, %v4728_v52  ;;  %v4595_v49 = vadd.f32 %v13101_v17, %v4173_v31  ;;  %9171 = vmatmul.msk.bf16.vlgmr.msrb.gmra.mxu0 %vm5089_vm9, %v6079_v53  ;;  %v5249_v34 = vshrl.u32 %v4991_v20, 16  ;;  %v5252_v56 = vshll.u32 %v4991_v20, 16  ;;  %v9452_v38 = vld [vmem:[#allocation2 + $0x74] sm:$0xff] }
 0x2dc   : > { %v4831_v1 = vpack.c.bf16 %v4760_v54, %v4760_v54 }
 0x2dd   : > { %v4629_v41 = vmul.f32 %v13268_v19, %v4595_v49  ;;  %v10346_v24 = vld [vmem:[#allocation3 + $0x18] sm:$0xff]   ;;  %v5251_v58 = vrot.slane %v5249_v34, 3  ;;  %v5254_v54 = vrot.slane %v5252_v56, 4  ;;  %v13426_v28 = vpop.f32.mrf.mxu0  ;;  %v16134_v56 = vld [vmem:[#allocation96_spill] sm:$0xff] }
 0x2de   : > { %v13410_v59 = vpop.f32.mrf.mxu2  ;;  %4863 = vst.msk [vmem:[#allocation3 + $0x20] sm:$0xf] %vm4787_vm7, %v4831_v1  ;;  %v13413_v17 = vunpack.c.l.bf16 %v10346_v24  ;;  %v13415_v29 = vunpack.c.h.bf16 %v10346_v24 }
 0x2df   : > { %v4663_v4 = vadd.f32 %v13278_v48, %v4629_v41 }
 0x2e0   : > { %v4104_v30 = vpop.f32.mrf.mxu3  ;;  %v6015_v6 = vmul.f32 %v13413_v17, %v16131_v40  ;;  %v6016_v5 = vmul.f32 %v13415_v29, %v16132_v61 }
 0x2e1   : > { %vm4695_vm0 = vcmp.gt.f32.partialorder %v4663_v4, 0.0  ;;  %v4729_v52 = vmul.f32 %v13292_v8, %v4663_v4  ;;  %v4174_v31 = vadd.f32 %v4104_v30, %v3920_v37  ;;  %v13432_v37 = vor.u32 %v5254_v54, %v5251_v58  ;;  %v16135_v58 = vld [vmem:[#allocation97_spill] sm:$0xff]  ;;  %v16136_v54 = vld [vmem:[#allocation120_spill] sm:$0xff] }
 0x2e2   : > { %v6046_v49 = vpack.c.bf16 %v6016_v5, %v6015_v6 }
 0x2e3   : > { %v4761_v33 = vsel %vm4695_vm0, %v4663_v4, %v4729_v52  ;;  %v4596_v39 = vadd.f32 %v13127_v26, %v4174_v31  ;;  %v3921_v26 = vadd.f32 %v13233_v51, %v16134_v56 }
 0x2e4   : > { %v4832_v1 = vpack.c.bf16 %v4761_v33, %v4761_v33  ;;  %v6081_v53 = vshrl.u32 %v6046_v49, 16  ;;  %v6084_v41 = vshll.u32 %v6046_v49, 16  ;;  %v3058_v49 = vadd.f32 %v16136_v54, %v16135_v58 }
 0x2e5   : > { %v4630_v20 = vmul.f32 %v13268_v19, %v4596_v39  ;;  %9035 = vmatmul.msk.bf16.gmra.mxu3 %vm1078_vm2, %v9452_v38  ;;  %v9459_v36 = vld [vmem:[#allocation3 + $0x1c] sm:$0xff]  ;;  %v5256_v38 = vsel %vm1220_vm4, %v13392_v62, %v13432_v37 }
 0x2e6   : > { %v13430_v24 = vpop.f32.mrf.mxu2  ;;  %4864 = vst.msk [vmem:[#allocation3 + $0x24] sm:$0xf] %vm4787_vm7, %v4832_v1  ;;  %v6083_v34 = vrot.slane %v6081_v53, 3  ;;  %v6086_v4 = vrot.slane %v6084_v41, 4  ;;  %9124 = vmatmul.msk.bf16.gmra.mxu1 %vm5089_vm9, %v9459_v36  ;;  %v16137_v1 = vld [vmem:[#allocation43_spill] sm:$0xff]  ;;  %v16138_v41 = vld [vmem:[#allocation44_spill] sm:$0xff] }
 0x2e7   : > { %v4664_v30 = vadd.f32 %v13278_v48, %v4630_v20  ;;  %v4962_v53 = vmul.f32 %v13413_v17, %v16137_v1  ;;  %v4963_v20 = vmul.f32 %v13415_v29, %v16138_v41 }
 0x2e8   : > { %v4107_v6 = vpop.f32.mrf.mxu3  ;;  %v13439_v5 = vor.u32 %v6086_v4, %v6083_v34  ;;  %v16139_v34 = vld [vmem:[#allocation109_spill] sm:$0xff] }
 0x2e9   : > { %vm4696_vm1 = vcmp.gt.f32.partialorder %v4664_v30, 0.0  ;;  %v4730_v52 = vmul.f32 %v13292_v8, %v4664_v30  ;;  %v4175_v31 = vadd.f32 %v4107_v6, %v3921_v26  ;;  %v3480_v62 = vadd.f32 %v16139_v34, %v3058_v49 }
 0x2ea   : > { %v6088_v51 = vsel %vm1220_vm4, %v6078_v7, %v13439_v5  ;;  %v4992_v26 = vpack.c.bf16 %v4963_v20, %v4962_v53  ;;  %v9453_v53 = vld [vmem:[#allocation2 + $0x7c] sm:$0xff] }
 0x2eb   : > { %9138 = vmatmul.msk.bf16.gmra.mxu2 %vm5089_vm9, %v5256_v38  ;;  %v4762_v33 = vsel %vm4696_vm1, %v4664_v30, %v4730_v52  ;;  %v4597_v39 = vadd.f32 %v13140_v55, %v4175_v31  ;;  %9172 = vmatmul.msk.bf16.gmra.mxu0 %vm5089_vm9, %v6088_v51  ;;  %v13460_v30 = vpop.f32.mrf.mxu0  ;;  %v3922_v52 = vadd.f32 %v13257_v27, %v3480_v62 }
 0x2ec   : > { %v4833_v36 = vpack.c.bf16 %v4762_v33, %v4762_v33  ;;  %v5258_v38 = vshrl.u32 %v4992_v26, 16  ;;  %v5261_v58 = vshll.u32 %v4992_v26, 16 }
 0x2ed   : > { %v4631_v4 = vmul.f32 %v13268_v19, %v4597_v39  ;;  %v10347_v7 = vld [vmem:[#allocation3 + $0x20] sm:$0xff]  }
 0x2ee   : > { %v13458_v56 = vpop.f32.mrf.mxu2  ;;  %4865 = vst.msk [vmem:[#allocation3 + $0x28] sm:$0xf] %vm4787_vm7, %v4833_v36  ;;  %v13463_v55 = vunpack.c.l.bf16 %v10347_v7  ;;  %v13465_v6 = vunpack.c.h.bf16 %v10347_v7  ;;  %v5260_v20 = vrot.slane %v5258_v38, 3  ;;  %v5263_v36 = vrot.slane %v5261_v58, 4  ;;  %v16140_v58 = vld [vmem:[#allocation111_spill] sm:$0xff] }
 0x2ef   : > { %v4665_v31 = vadd.f32 %v13278_v48, %v4631_v4 }
 0x2f0   : > { %v4109_v54 = vpop.f32.mrf.mxu3  ;;  %v6017_v49 = vmul.f32 %v13463_v55, %v16137_v1  ;;  %v6018_v51 = vmul.f32 %v13465_v6, %v16138_v41  ;;  %v13479_v40 = vor.u32 %v5263_v36, %v5260_v20  ;;  %v16141_v20 = vld [vmem:[#allocation102_spill] sm:$0xff]  ;;  %v16142_v36 = vld [vmem:[#allocation124_spill] sm:$0xff] }
 0x2f1   : > { %vm4697_vm3 = vcmp.gt.f32.partialorder %v4665_v31, 0.0  ;;  %v4731_v33 = vmul.f32 %v13292_v8, %v4665_v31  ;;  %v4176_v39 = vadd.f32 %v4109_v54, %v3922_v52 }
 0x2f2   : > { %v6047_v34 = vpack.c.bf16 %v6018_v51, %v6017_v49 }
 0x2f3   : > { %v4763_v27 = vsel %vm4697_vm3, %v4665_v31, %v4731_v33  ;;  %v4598_v62 = vadd.f32 %v13166_v13, %v4176_v39  ;;  %v3923_v31 = vadd.f32 %v13294_v22, %v16140_v58  ;;  %v13486_v54 = vpop.f32.mrf.mxu0  ;;  %v3060_v22 = vadd.f32 %v16142_v36, %v16141_v20 }
 0x2f4   : > { %v4834_v4 = vpack.c.bf16 %v4763_v27, %v4763_v27  ;;  %v6090_v26 = vshrl.u32 %v6047_v34, 16  ;;  %v6093_v7 = vshll.u32 %v6047_v34, 16  ;;  %v16143_v27 = vld [vmem:[#allocation52_spill] sm:$0xff] }
 0x2f5   : > { %v4632_v61 = vmul.f32 %v13268_v19, %v4598_v62  ;;  %9036 = vmatmul.msk.bf16.gmra.mxu3 %vm1078_vm2, %v9453_v53  ;;  %v9460_v41 = vld [vmem:[#allocation3 + $0x24] sm:$0xff]  ;;  %v5265_v53 = vsel %vm1220_vm4, %v13432_v37, %v13479_v40  ;;  %v4964_v62 = vmul.f32 %v13463_v55, %v16143_v27 }
 0x2f6   : > { %v13477_v1 = vpop.f32.mrf.mxu2  ;;  %4866 = vst.msk [vmem:[#allocation3 + $0x2c] sm:$0xf] %vm4787_vm7, %v4834_v4  ;;  %v6092_v52 = vrot.slane %v6090_v26, 3  ;;  %v6095_v38 = vrot.slane %v6093_v7, 4  ;;  %9125 = vmatmul.msk.bf16.gmra.mxu1 %vm5089_vm9, %v9460_v41  ;;  %v16144_v4 = vld [vmem:[#allocation53_spill] sm:$0xff]  ;;  %v16145_v37 = vld [vmem:[#allocation63_spill] sm:$0xff] }
 0x2f7   : > { %v4666_v13 = vadd.f32 %v13278_v48, %v4632_v61  ;;  %v4965_v26 = vmul.f32 %v13465_v6, %v16144_v4 }
 0x2f8   : > { %v4112_v49 = vpop.f32.mrf.mxu3  ;;  %v13488_v51 = vor.u32 %v6095_v38, %v6092_v52  ;;  %v3482_v52 = vadd.f32 %v16145_v37, %v3060_v22 }
 0x2f9   : > { %vm4698_vm5 = vcmp.gt.f32.partialorder %v4666_v13, 0.0  ;;  %v4732_v33 = vmul.f32 %v13292_v8, %v4666_v13  ;;  %v4177_v39 = vadd.f32 %v4112_v49, %v3923_v31  ;;  %v4993_v31 = vpack.c.bf16 %v4965_v26, %v4964_v62 }
 0x2fa   : > { %v6097_v61 = vsel %vm1220_vm4, %v13439_v5, %v13488_v51  ;;  %v3924_v49 = vadd.f32 %v13310_v45, %v3482_v52 }
 0x2fb   : > { %9139 = vmatmul.msk.bf16.gmra.mxu2 %vm5089_vm9, %v5265_v53  ;;  %v4764_v41 = vsel %vm4698_vm5, %v4666_v13, %v4732_v33  ;;  %v4599_v34 = vadd.f32 %v13177_v47, %v4177_v39  ;;  %9173 = vmatmul.msk.bf16.gmra.mxu0 %vm5089_vm9, %v6097_v61  ;;  %v5267_v39 = vshrl.u32 %v4993_v31, 16  ;;  %v5270_v53 = vshll.u32 %v4993_v31, 16  ;;  %v13522_v26 = vpop.f32.mrf.mxu0 }
 0x2fc   : > { %v4835_v7 = vpack.c.bf16 %v4764_v41, %v4764_v41  ;;  %16146 = vst [vmem:[#allocation101_spill] sm:$0xff] %v13522_v26 }
 0x2fd   : > { %v4633_v38 = vmul.f32 %v13268_v19, %v4599_v34  ;;  %v10348_v5 = vld [vmem:[#allocation3 + $0x28] sm:$0xff]   ;;  %v5269_v62 = vrot.slane %v5267_v39, 3  ;;  %v5272_v45 = vrot.slane %v5270_v53, 4  ;;  %v5523_v39 = vld [vmem:[#allocation3 + $0x4] sm:$0xf] }
 0x2fe   : > { %v13508_v58 = vpop.f32.mrf.mxu2  ;;  %4867 = vst.msk [vmem:[#allocation3 + $0x30] sm:$0xf] %vm4787_vm7, %v4835_v7  ;;  %v13511_v47 = vunpack.c.l.bf16 %v10348_v5  ;;  %v13513_v13 = vunpack.c.h.bf16 %v10348_v5  ;;  %v9454_v34 = vld [vmem:[#allocation2 + $0x84] sm:$0xff] }
 0x2ff   : > { %v4667_v33 = vadd.f32 %v13278_v48, %v4633_v38 }
 0x300   : > { %v4114_v20 = vpop.f32.mrf.mxu3  ;;  %v6019_v36 = vmul.f32 %v13511_v47, %v16143_v27  ;;  %v6020_v22 = vmul.f32 %v13513_v13, %v16144_v4 }
 0x301   : > { %vm4699_vm10 = vcmp.gt.f32.partialorder %v4667_v33, 0.0  ;;  %v4733_v61 = vmul.f32 %v13292_v8, %v4667_v33  ;;  %v4178_v41 = vadd.f32 %v4114_v20, %v3924_v49  ;;  %v13529_v49 = vor.u32 %v5272_v45, %v5269_v62  ;;  %v16147_v45 = vld [vmem:[#allocation55_spill] sm:$0xff] }
 0x302   : > { %v6048_v7 = vpack.c.bf16 %v6020_v22, %v6019_v36 }
 0x303   : > { %v4765_v37 = vsel %vm4699_vm10, %v4667_v33, %v4733_v61  ;;  %v4600_v52 = vadd.f32 %v13202_v23, %v4178_v41  ;;  %v3925_v23 = vadd.f32 %v13325_v25, %v12957_v3  ;;  %v5556_v61 = vunpack.c.l.bf16 %v5523_v39 }
 0x304   : > { %v4836_v38 = vpack.c.bf16 %v4765_v37, %v4765_v37  ;;  %v6099_v31 = vshrl.u32 %v6048_v7, 16  ;;  %v6102_v5 = vshll.u32 %v6048_v7, 16  ;;  %v5274_v62 = vsel %vm1220_vm4, %v13479_v40, %v13529_v49  ;;  %v16148_v7 = vld [vmem:[#allocation128_spill] sm:$0xff] }
 0x305   : > { %v4634_v27 = vmul.f32 %v13268_v19, %v4600_v52  ;;  %9037 = vmatmul.msk.bf16.gmra.mxu3 %vm1078_vm2, %v9454_v34  ;;  %v9461_v12 = vld [vmem:[#allocation3 + $0x2c] sm:$0xff]  ;;  %v3062_v37 = vadd.f32 %v16148_v7, %v16147_v45 }
 0x306   : > { %v13527_v4 = vpop.f32.mrf.mxu2  ;;  %4868 = vst.msk [vmem:[#allocation3 + $0x34] sm:$0xf] %vm4787_vm7, %v4836_v38  ;;  %v6101_v53 = vrot.slane %v6099_v31, 3  ;;  %v6104_v20 = vrot.slane %v6102_v5, 4  ;;  %9126 = vmatmul.msk.bf16.gmra.mxu1 %vm5089_vm9, %v9461_v12  ;;  %v16150_v38 = vld [vmem:[#allocation62_spill] sm:$0xff]  ;;  %v13554_v5 = vpop.f32.mrf.mxu0 }
 0x307   : > { %v4668_v33 = vadd.f32 %v13278_v48, %v4634_v27  ;;  %v16149_v27 = vld [vmem:[#allocation61_spill] sm:$0xff]  ;;  %v4967_v31 = vmul.f32 %v13513_v13, %v16150_v38  ;;  %v3484_v40 = vadd.f32 %v12988_v63, %v3062_v37  ;;  %16151 = vst [vmem:[#allocation127_spill] sm:$0xff] %v13554_v5 }
 0x308   : > { %v4117_v36 = vpop.f32.mrf.mxu3  ;;  %v13536_v22 = vor.u32 %v6104_v20, %v6101_v53  ;;  %v4966_v52 = vmul.f32 %v13511_v47, %v16149_v27 }
 0x309   : > { %vm4700_vm11 = vcmp.gt.f32.partialorder %v4668_v33, 0.0  ;;  %v4734_v41 = vmul.f32 %v13292_v8, %v4668_v33  ;;  %v4179_v34 = vadd.f32 %v4117_v36, %v3925_v23  ;;  %v3926_v36 = vadd.f32 %v13341_v2, %v3484_v40  ;;  %v16157_v40 = vld [vmem:[#allocation32_spill] sm:$0xff] }
 0x30a   : > { %v6106_v3 = vsel %vm1220_vm4, %v13488_v51, %v13536_v22  ;;  %v4994_v51 = vpack.c.bf16 %v4967_v31, %v4966_v52 }
 0x30b   : > { %9140 = vmatmul.msk.bf16.gmra.mxu2 %vm5089_vm9, %v5274_v62  ;;  %v4766_v12 = vsel %vm4700_vm11, %v4668_v33, %v4734_v41  ;;  %v4601_v25 = vadd.f32 %v13213_v0, %v4179_v34  ;;  %9174 = vmatmul.msk.bf16.gmra.mxu0 %vm5089_vm9, %v6106_v3  ;;  %v16152_v0 = vld [vmem:[#allocation21_spill] sm:$0xff]  ;;  %v16153_v34 = vld [vmem:[#allocation26_spill] sm:$0xff]  ;;  %v16154_v62 = vunpack.c.l.bf16 %v13354_v60 }
 0x30c   : > { %v4837_v39 = vpack.c.bf16 %v4766_v12, %v4766_v12  ;;  %v5589_v33 = vmul.f32 %v5556_v61, %v16152_v0  ;;  %v5276_v37 = vshrl.u32 %v4994_v51, 16  ;;  %v5279_v3 = vshll.u32 %v4994_v51, 16  ;;  %v16155_v12 = vld [vmem:[#allocation31_spill] sm:$0xff]  ;;  %v9455_v51 = vld [vmem:[#allocation2 + $0x8c] sm:$0xff] }
 0x30d   : > { %v4635_v53 = vmul.f32 %v13268_v19, %v4601_v25  ;;  %v10349_v23 = vld [vmem:[#allocation3 + $0x30] sm:$0xff]   ;;  %v5590_v45 = vmul.f32 %v16154_v62, %v16153_v34  ;;  %v16156_v25 = vunpack.c.h.bf16 %v13354_v60 }
 0x30e   : > { %v13558_v20 = vpop.f32.mrf.mxu2  ;;  %4869 = vst.msk [vmem:[#allocation3 + $0x38] sm:$0xf] %vm4787_vm7, %v4837_v39  ;;  %v13563_v41 = vunpack.c.l.bf16 %v10349_v23  ;;  %v13565_v63 = vunpack.c.h.bf16 %v10349_v23  ;;  %v5592_v39 = vmul.f32 %v13368_v11, %v16157_v40  ;;  %v5278_v0 = vrot.slane %v5276_v37, 3 }
 0x30f   : > { %v4669_v7 = vadd.f32 %v13278_v48, %v4635_v53  ;;  %v5591_v61 = vmul.f32 %v16156_v25, %v16155_v12  ;;  %v5622_v23 = vpack.c.bf16 %v5590_v45, %v5589_v33  ;;  %v5281_v34 = vrot.slane %v5279_v3, 4 }
 0x310   : > { %v4119_v52 = vpop.f32.mrf.mxu3  ;;  %v6021_v2 = vmul.f32 %v13563_v41, %v16149_v27  ;;  %v6022_v31 = vmul.f32 %v13565_v63, %v16150_v38 }
 0x311   : > { %vm4701_vm12 = vcmp.gt.f32.partialorder %v4669_v7, 0.0  ;;  %v4735_v53 = vmul.f32 %v13292_v8, %v4669_v7  ;;  %v4180_v62 = vadd.f32 %v4119_v52, %v3926_v36  ;;  %v13581_v25 = vpack.c.bf16 %v5592_v39, %v5591_v61  ;;  %v16159_v39 = vld [vmem:[#allocation69_spill] sm:$0xff] }
 0x312   : > { %v6049_v60 = vpack.c.bf16 %v6022_v31, %v6021_v2  ;;  %v5644_v5 = vshll.u32 %v5622_v23, 16  ;;  %v13584_v38 = vor.u32 %v5281_v34, %v5278_v0  ;;  %v5642_v37 = vshrl.u32 %v5622_v23, 16  ;;  %v16158_v2 = vld [vmem:[#allocation71_spill] sm:$0xff] }
 0x313   : > { %v4767_v12 = vsel %vm4701_vm12, %v4669_v7, %v4735_v53  ;;  %v4602_v27 = vadd.f32 %v13236_v32, %v4180_v62  ;;  %v5649_v61 = vshll.u32 %v13581_v25, 16  ;;  %v3927_v32 = vadd.f32 %v13359_v46, %v13012_v14  ;;  %v13593_v7 = vpop.f32.mrf.mxu0 }
 0x314   : > { %v4838_v15 = vpack.c.bf16 %v4767_v12, %v4767_v12  ;;  %v6108_v26 = vshrl.u32 %v6049_v60, 16  ;;  %v6111_v11 = vshll.u32 %v6049_v60, 16  ;;  %v5646_v3 = vrot.slane %v5644_v5, 1  ;;  %v16160_v60 = vld [vmem:[#allocation100_spill] sm:$0xff] }
 0x315   : > { %v4636_v33 = vmul.f32 %v13268_v19, %v4602_v27  ;;  %9038 = vmatmul.msk.bf16.gmra.mxu3 %vm1078_vm2, %v9455_v51  ;;  %v9462_v45 = vld [vmem:[#allocation3 + $0x34] sm:$0xff]  ;;  %v5651_v52 = vrot.slane %v5649_v61, 1  ;;  %v4968_v5 = vmul.f32 %v13563_v41, %v16158_v2  ;;  %v5283_v14 = vsel %vm1220_vm4, %v13529_v49, %v13584_v38 }
 0x316   : > { %v13588_v36 = vpop.f32.mrf.mxu2  ;;  %4870 = vst.msk [vmem:[#allocation3 + $0x3c] sm:$0xf] %vm4787_vm7, %v4838_v15  ;;  %v6110_v0 = vrot.slane %v6108_v26, 3  ;;  %v6113_v34 = vrot.slane %v6111_v11, 4  ;;  %9127 = vmatmul.msk.bf16.gmra.mxu1 %vm5089_vm9, %v9462_v45  ;;  %v5647_v12 = vor.u32 %v5646_v3, %v5642_v37  ;;  %v4969_v15 = vmul.f32 %v13565_v63, %v16159_v39  ;;  %v16161_v49 = vld [vmem:[#allocation132_spill] sm:$0xff] }
 0x317   : > { %v4670_v27 = vadd.f32 %v13278_v48, %v4636_v33  ;;  %v3064_v11 = vadd.f32 %v16161_v49, %v16160_v60  ;;  %v16164_v49 = vld [vmem:[#allocation37_spill] sm:$0xff] }
 0x318   : > { %v4122_v31 = vpop.f32.mrf.mxu3  ;;  %v13603_v46 = vor.u32 %v6113_v34, %v6110_v0  ;;  %v5652_v53 = vsel %vm2080_vm6, %v5647_v12, %v5651_v52  ;;  %v4995_v51 = vpack.c.bf16 %v4969_v15, %v4968_v5  ;;  %v16162_v0 = vld [vmem:[#allocation108_spill] sm:$0xff] }
 0x319   : > { %vm4702_vm2 = vcmp.gt.f32.partialorder %v4670_v27, 0.0  ;;  %v4736_v26 = vmul.f32 %v13292_v8, %v4670_v27  ;;  %v4181_v23 = vadd.f32 %v4122_v31, %v3927_v32  ;;  %v3486_v32 = vadd.f32 %v16162_v0, %v3064_v11 }
 0x31a   : > { %v6115_v62 = vsel %vm1220_vm4, %v13536_v22, %v13603_v46  ;;  %v5285_v3 = vshrl.u32 %v4995_v51, 16  ;;  %v5288_v61 = vshll.u32 %v4995_v51, 16  ;;  %v5593_v11 = vmul.f32 %v13373_v16, %v16164_v49 }
 0x31b   : > { %9141 = vmatmul.msk.bf16.gmra.mxu2 %vm5089_vm9, %v5283_v14  ;;  %v4768_v33 = vsel %vm4702_vm2, %v4670_v27, %v4736_v26  ;;  %v4603_v45 = vadd.f32 %v13263_v44, %v4181_v23  ;;  %9175 = vmatmul.msk.bf16.gmra.mxu0 %vm5089_vm9, %v6115_v62  ;;  %v3928_v27 = vadd.f32 %v13387_v18, %v3486_v32  ;;  %v16163_v14 = vld [vmem:[#allocation38_spill] sm:$0xff]  ;;  %v13630_v26 = vpop.f32.mrf.mxu0 }
 0x31c   : > { %v4839_v37 = vpack.c.bf16 %v4768_v33, %v4768_v33  ;;  %v5594_v15 = vmul.f32 %v13413_v17, %v16163_v14  ;;  %v5287_v62 = vrot.slane %v5285_v3, 3  ;;  %v5290_v51 = vrot.slane %v5288_v61, 4 }
 0x31d   : > { %v4637_v34 = vmul.f32 %v13268_v19, %v4603_v45  ;;  %v10350_v31 = vld [vmem:[#allocation3 + $0x38] sm:$0xff]  }
 0x31e   : > { %v13619_v12 = vpop.f32.mrf.mxu2  ;;  %4871 = vst.msk [vmem:[#allocation3 + $0x40] sm:$0xf] %vm4787_vm7, %v4839_v37  ;;  %v13622_v22 = vunpack.c.l.bf16 %v10350_v31  ;;  %v13626_v5 = vunpack.c.h.bf16 %v10350_v31  ;;  %v13639_v37 = vpack.c.bf16 %v5594_v15, %v5593_v11  ;;  %v13642_v32 = vor.u32 %v5290_v51, %v5287_v62  ;;  %v16166_v51 = vld [vmem:[#allocation78_spill] sm:$0xff] }
 0x31f   : > { %v4671_v44 = vadd.f32 %v13278_v48, %v4637_v34  ;;  %v5653_v34 = vshrl.u32 %v13581_v25, 16 }
 0x320   : > { %v4124_v23 = vpop.f32.mrf.mxu3  ;;  %v6023_v60 = vmul.f32 %v13622_v22, %v16158_v2  ;;  %v6024_v45 = vmul.f32 %v13626_v5, %v16159_v39  ;;  %v5657_v16 = vshll.u32 %v13639_v37, 16  ;;  %v4971_v25 = vmul.f32 %v13626_v5, %v16166_v51 }
 0x321   : > { %vm4703_vm13 = vcmp.gt.f32.partialorder %v4671_v44, 0.0  ;;  %v4737_v18 = vmul.f32 %v13292_v8, %v4671_v44  ;;  %v4182_v33 = vadd.f32 %v4124_v23, %v3928_v27 }
 0x322   : > { %v6050_v3 = vpack.c.bf16 %v6024_v45, %v6023_v60  ;;  %v16165_v60 = vld [vmem:[#allocation77_spill] sm:$0xff] }
 0x323   : > { %v4769_v17 = vsel %vm4703_vm13, %v4671_v44, %v4737_v18  ;;  %v4604_v0 = vadd.f32 %v13302_v21, %v4182_v33  ;;  %v5655_v21 = vor.u32 %v5653_v34, %v5651_v52  ;;  %v5659_v44 = vrot.slane %v5657_v16, 1 }
 0x324   : > { %v4840_v61 = vpack.c.bf16 %v4769_v17, %v4769_v17  ;;  %v6117_v15 = vshrl.u32 %v6050_v3, 16  ;;  %v6120_v11 = vshll.u32 %v6050_v3, 16  ;;  %v4970_v62 = vmul.f32 %v13622_v22, %v16165_v60 }
 0x325   : > { %v4638_v31 = vmul.f32 %v13268_v19, %v4604_v0  ;;  %9154 = vmatmul.msk.bf16.vlgmr.msrb.gmra.mxu3 %vm5089_vm9, %v5652_v53  ;;  %v9463_v23 = vld [vmem:[#allocation3 + $0x3c] sm:$0xff]  ;;  %v3929_v18 = vadd.f32 %v13410_v59, %v13058_v50  ;;  %v5292_v52 = vsel %vm1220_vm4, %v13584_v38, %v13642_v32  ;;  %v5660_v0 = vsel %vm2080_vm6, %v5655_v21, %v5659_v44  ;;  %v13666_v50 = vpop.f32.mrf.mxu1  ;;  %v13668_v59 = vpop.f32.mrf.mxu0 }
 0x326   : > { %v13648_v27 = vpop.f32.mrf.mxu2  ;;  %4872 = vst.msk [vmem:[#allocation3 + $0x44] sm:$0xf] %vm4787_vm7, %v4840_v61  ;;  %9128 = vmatmul.msk.bf16.gmra.mxu1 %vm5089_vm9, %v9463_v23  ;;  %v6119_v33 = vrot.slane %v6117_v15, 3  ;;  %v6122_v45 = vrot.slane %v6120_v11, 4  ;;  %v4996_v3 = vpack.c.bf16 %v4971_v25, %v4970_v62  ;;  %v16168_v23 = vld [vmem:[#allocation68_spill] sm:$0xff] }
 0x327   : > { %v4672_v53 = vadd.f32 %v13278_v48, %v4638_v31  ;;  %v16167_v31 = vld [vmem:[#allocation115_spill] sm:$0xff] }
 0x328   : > { %v4127_v17 = vpop.f32.mrf.mxu3  ;;  %v13664_v16 = vor.u32 %v6122_v45, %v6119_v33  ;;  %v3066_v15 = vadd.f32 %v16168_v23, %v16167_v31  ;;  %v5294_v25 = vshrl.u32 %v4996_v3, 16 }
 0x329   : > { %vm4704_vm14 = vcmp.gt.f32.partialorder %v4672_v53, 0.0  ;;  %v4738_v61 = vmul.f32 %v13292_v8, %v4672_v53  ;;  %v4183_v34 = vadd.f32 %v4127_v17, %v3929_v18  ;;  %v5297_v18 = vshll.u32 %v4996_v3, 16  ;;  %v16169_v3 = vld [vmem:[#allocation47_spill] sm:$0xff] }
 0x32a   : > { %v6124_v21 = vsel %vm1220_vm4, %v13603_v46, %v13664_v16  ;;  %v3488_v33 = vadd.f32 %v13086_v10, %v3066_v15  ;;  %v5595_v10 = vmul.f32 %v13415_v29, %v16169_v3  ;;  %v5296_v15 = vrot.slane %v5294_v25, 3 }
 0x32b   : > { %9142 = vmatmul.msk.bf16.gmra.mxu2 %vm5089_vm9, %v5292_v52  ;;  %v4770_v11 = vsel %vm4704_vm14, %v4672_v53, %v4738_v61  ;;  %v4605_v38 = vadd.f32 %v13322_v9, %v4183_v34  ;;  %9176 = vmatmul.msk.bf16.gmra.mxu0 %vm5089_vm9, %v6124_v21  ;;  %v16170_v34 = vld [vmem:[#allocation48_spill] sm:$0xff]  ;;  %v5661_v25 = vshrl.u32 %v13639_v37, 16 }
 0x32c   : > { %v4841_v62 = vpack.c.bf16 %v4770_v11, %v4770_v11  ;;  %v3930_v46 = vadd.f32 %v13430_v24, %v3488_v33  ;;  %v5596_v31 = vmul.f32 %v13463_v55, %v16170_v34  ;;  %v5299_v11 = vrot.slane %v5297_v18, 4 }
 0x32d   : > { %v4639_v45 = vmul.f32 %v13268_v19, %v4605_v38  ;;  %v10351_v52 = vld [vmem:[#allocation3 + $0x40] sm:$0xff]  }
 0x32e   : > { %v13680_v17 = vpop.f32.mrf.mxu2  ;;  %4873 = vst.msk [vmem:[#allocation3 + $0x48] sm:$0xf] %vm4787_vm7, %v4841_v62  ;;  %v13683_v53 = vunpack.c.l.bf16 %v10351_v52  ;;  %v13685_v9 = vunpack.c.h.bf16 %v10351_v52  ;;  %v13698_v33 = vpack.c.bf16 %v5596_v31, %v5595_v10  ;;  %v5663_v31 = vor.u32 %v5661_v25, %v5659_v44  ;;  %v16173_v44 = vld [vmem:[#allocation14_spill] sm:$0xff]  ;;  %v16175_v25 = vld [vmem:[#allocation92_spill] sm:$0xff] }
 0x32f   : > { %v4673_v61 = vadd.f32 %v13278_v48, %v4639_v45  ;;  %v13700_v45 = vpop.f32.mrf.mxu1 }
 0x330   : > { %v4129_v23 = vpop.f32.mrf.mxu3  ;;  %v6025_v38 = vmul.f32 %v13683_v53, %v16165_v60  ;;  %v6026_v21 = vmul.f32 %v13685_v9, %v16166_v51  ;;  %v5665_v18 = vshll.u32 %v13698_v33, 16  ;;  %v13705_v60 = vpop.f32.mrf.mxu0  ;;  %v13707_v51 = vor.u32 %v5299_v11, %v5296_v15  ;;  %v16172_v11 = vld [vmem:[#allocation110_spill] sm:$0xff] }
 0x331   : > { %vm4705_vm15 = vcmp.gt.f32.partialorder %v4673_v61, 0.0  ;;  %v4739_v24 = vmul.f32 %v13292_v8, %v4673_v61  ;;  %v4184_v62 = vadd.f32 %v4129_v23, %v3930_v46 }
 0x332   : > { %v6051_v29 = vpack.c.bf16 %v6026_v21, %v6025_v38  ;;  %v16171_v38 = vld [vmem:[#allocation13_spill] sm:$0xff]  ;;  %v3931_v21 = vadd.f32 %v13458_v56, %v16172_v11 }
 0x333   : > { %v4771_v52 = vsel %vm4705_vm15, %v4673_v61, %v4739_v24  ;;  %v4606_v55 = vadd.f32 %v13343_v42, %v4184_v62  ;;  %v13713_v42 = vrot.slane %v5665_v18, 1  ;;  %v4972_v15 = vmul.f32 %v13683_v53, %v16171_v38 }
 0x334   : > { %v4842_v39 = vpack.c.bf16 %v4771_v52, %v4771_v52  ;;  %v6126_v2 = vshrl.u32 %v6051_v29, 16  ;;  %v6129_v8 = vshll.u32 %v6051_v29, 16  ;;  %v4973_v24 = vmul.f32 %v13685_v9, %v16173_v44 }
 0x335   : > { %v4640_v46 = vmul.f32 %v13268_v19, %v4606_v55  ;;  %9155 = vmatmul.msk.bf16.gmra.mxu3 %vm5089_vm9, %v5660_v0  ;;  %v9464_v61 = vld [vmem:[#allocation3 + $0x44] sm:$0xff]  ;;  %v5668_v0 = vsel %vm2080_vm6, %v5663_v31, %v13713_v42  ;;  %v16174_v55 = vld [vmem:[#allocation65_spill] sm:$0xff] }
 0x336   : > { %v13711_v10 = vpop.f32.mrf.mxu2  ;;  %4874 = vst.msk [vmem:[#allocation3 + $0x4c] sm:$0xf] %vm4787_vm7, %v4842_v39  ;;  %v6128_v37 = vrot.slane %v6126_v2, 3  ;;  %v6131_v23 = vrot.slane %v6129_v8, 4  ;;  %9129 = vmatmul.msk.bf16.gmra.mxu1 %vm5089_vm9, %v9464_v61  ;;  %v5301_v2 = vsel %vm1220_vm4, %v13642_v32, %v13707_v51  ;;  %v4997_v52 = vpack.c.bf16 %v4973_v24, %v4972_v15  ;;  %v13750_v15 = vld [vmem:[%s15510_s4] ss:$0 sm:$0xff] }
 0x337   : > { %v4674_v19 = vadd.f32 %v13278_v48, %v4640_v46  ;;  %v13734_v48 = vld [vmem:[%s15510_s4 + $0x2] ss:$0 sm:$0xff]  ;;  %v3068_v18 = vadd.f32 %v16175_v25, %v16174_v55  ;;  %v13745_v3 = vpop.f32.mrf.mxu1  ;;  %v16177_v25 = vld [vmem:[#allocation58_spill] sm:$0xff] }
 0x338   : > { %v4132_v62 = vpop.f32.mrf.mxu3  ;;  %v13729_v39 = vor.u32 %v6131_v23, %v6128_v37  ;;  %v5303_v61 = vshrl.u32 %v4997_v52, 16  ;;  %v5306_v31 = vshll.u32 %v4997_v52, 16  ;;  %v16176_v37 = vld [vmem:[#allocation73_spill] sm:$0xff]  ;;  %v13757_v24 = vpop.f32.mrf.mxu0 }
 0x339   : > { %vm4706_vm0 = vcmp.gt.f32.partialorder %v4674_v19, 0.0  ;;  %v4740_v56 = vmul.f32 %v13734_v48, %v4674_v19  ;;  %v4185_v29 = vadd.f32 %v4132_v62, %v3931_v21  ;;  %v3490_v23 = vadd.f32 %v16176_v37, %v3068_v18 }
 0x33a   : > { %v6133_v32 = vsel %vm1220_vm4, %v13664_v16, %v13729_v39  ;;  %v5305_v52 = vrot.slane %v5303_v61, 3  ;;  %v5308_v55 = vrot.slane %v5306_v31, 4 }
 0x33b   : > { %9143 = vmatmul.msk.bf16.gmra.mxu2 %vm5089_vm9, %v5301_v2  ;;  %v4772_v8 = vsel %vm4706_vm0, %v4674_v19, %v4740_v56  ;;  %v4607_v46 = vadd.f32 %v13376_v57, %v4185_v29  ;;  %9177 = vmatmul.msk.bf16.gmra.mxu0 %vm5089_vm9, %v6133_v32  ;;  %v3932_v57 = vadd.f32 %v13477_v1, %v3490_v23  ;;  %v13767_v56 = vld [vmem:[%s15510_s4 + $0x1] ss:$0 sm:$0xff] }
 0x33c   : > { %v4843_v11 = vpack.c.bf16 %v4772_v8, %v4772_v8  ;;  %v5598_v1 = vmul.f32 %v13511_v47, %v16177_v25 }
 0x33d   : > { %v4641_v21 = vmul.f32 %v13750_v15, %v4607_v46  ;;  %v10352_v19 = vld [vmem:[#allocation3 + $0x48] sm:$0xff]  }
 0x33e   : > { %v13754_v16 = vpop.f32.mrf.mxu2  ;;  %4875 = vst.msk [vmem:[#allocation3 + $0x50] sm:$0xf] %vm4787_vm7, %v4843_v11  ;;  %v13760_v62 = vunpack.c.l.bf16 %v10352_v19  ;;  %v13762_v2 = vunpack.c.h.bf16 %v10352_v19  ;;  %v16178_v46 = vld [vmem:[#allocation59_spill] sm:$0xff]  ;;  %v13782_v19 = vor.u32 %v5308_v55, %v5305_v52 }
 0x33f   : > { %v4675_v29 = vadd.f32 %v13767_v56, %v4641_v21  ;;  %v5597_v37 = vmul.f32 %v13465_v6, %v16178_v46 }
 0x340   : > { %v4134_v18 = vpop.f32.mrf.mxu3  ;;  %v6027_v32 = vmul.f32 %v13760_v62, %v16171_v38  ;;  %v6028_v8 = vmul.f32 %v13762_v2, %v16173_v44  ;;  %v5669_v38 = vshrl.u32 %v13698_v33, 16 }
 0x341   : > { %vm4707_vm1 = vcmp.gt.f32.partialorder %v4675_v29, 0.0  ;;  %v4741_v23 = vmul.f32 %v13734_v48, %v4675_v29  ;;  %v4186_v11 = vadd.f32 %v4134_v18, %v3932_v57  ;;  %v13779_v61 = vpack.c.bf16 %v5598_v1, %v5597_v37  ;;  %v16179_v1 = vld [vmem:[#allocation121_spill] sm:$0xff]  ;;  %v16181_v37 = vld [vmem:[#allocation12_spill] sm:$0xff] }
 0x342   : > { %v6052_v21 = vpack.c.bf16 %v6028_v8, %v6027_v32  ;;  %v5671_v33 = vor.u32 %v5669_v38, %v13713_v42  ;;  %v3933_v18 = vadd.f32 %v13508_v58, %v16179_v1  ;;  %v16180_v8 = vld [vmem:[#allocation11_spill] sm:$0xff]  ;;  %v5310_v42 = vsel %vm1220_vm4, %v13707_v51, %v13782_v19 }
 0x343   : > { %v4773_v31 = vsel %vm4707_vm1, %v4675_v29, %v4741_v23  ;;  %v4608_v47 = vadd.f32 %v13399_v43, %v4186_v11  ;;  %v13785_v34 = vpop.f32.mrf.mxu1  ;;  %v5673_v6 = vshll.u32 %v13779_v61, 16  ;;  %v4975_v23 = vmul.f32 %v13762_v2, %v16181_v37 }
 0x344   : > { %v4844_v25 = vpack.c.bf16 %v4773_v31, %v4773_v31  ;;  %v6135_v44 = vshrl.u32 %v6052_v21, 16  ;;  %v6138_v49 = vshll.u32 %v6052_v21, 16  ;;  %v16182_v21 = vld [vmem:[#allocation117_spill] sm:$0xff]  ;;  %v16183_v31 = vld [vmem:[#allocation88_spill] sm:$0xff] }
 0x345   : > { %v4642_v46 = vmul.f32 %v13750_v15, %v4608_v47  ;;  %9156 = vmatmul.msk.bf16.gmra.mxu3 %vm5089_vm9, %v5668_v0  ;;  %v9465_v29 = vld [vmem:[#allocation3 + $0x4c] sm:$0xff]  ;;  %v13794_v55 = vrot.slane %v5673_v6, 1  ;;  %v4974_v0 = vmul.f32 %v13760_v62, %v16180_v8  ;;  %v3070_v47 = vadd.f32 %v16183_v31, %v16182_v21 }
 0x346   : > { %v13790_v57 = vpop.f32.mrf.mxu2  ;;  %4876 = vst.msk [vmem:[#allocation3 + $0x54] sm:$0xf] %vm4787_vm7, %v4844_v25  ;;  %v6137_v43 = vrot.slane %v6135_v44, 3  ;;  %v6140_v52 = vrot.slane %v6138_v49, 4  ;;  %9130 = vmatmul.msk.bf16.gmra.mxu1 %vm5089_vm9, %v9465_v29  ;;  %v13804_v25 = vpop.f32.mrf.mxu0 }
 0x347   : > { %v4676_v32 = vadd.f32 %v13767_v56, %v4642_v46  ;;  %v5676_v58 = vsel %vm2080_vm6, %v5671_v33, %v13794_v55  ;;  %v4998_v11 = vpack.c.bf16 %v4975_v23, %v4974_v0  ;;  %v16184_v33 = vld [vmem:[#allocation79_spill] sm:$0xff] }
 0x348   : > { %v4137_v49 = vpop.f32.mrf.mxu3  ;;  %v13809_v38 = vor.u32 %v6140_v52, %v6137_v43  ;;  %v3492_v1 = vadd.f32 %v16184_v33, %v3070_v47  ;;  %v16186_v47 = vld [vmem:[#allocation66_spill] sm:$0xff] }
 0x349   : > { %vm4708_vm3 = vcmp.gt.f32.partialorder %v4676_v32, 0.0  ;;  %v4742_v44 = vmul.f32 %v13734_v48, %v4676_v32  ;;  %v4187_v46 = vadd.f32 %v4137_v49, %v3933_v18  ;;  %v5312_v43 = vshrl.u32 %v4998_v11, 16 }
 0x34a   : > { %v6142_v6 = vsel %vm1220_vm4, %v13729_v39, %v13809_v38  ;;  %v5315_v52 = vshll.u32 %v4998_v11, 16  ;;  %v3934_v49 = vadd.f32 %v13527_v4, %v3492_v1 }
 0x34b   : > { %9144 = vmatmul.msk.bf16.gmra.mxu2 %vm5089_vm9, %v5310_v42  ;;  %v4774_v51 = vsel %vm4708_vm3, %v4676_v32, %v4742_v44  ;;  %v4609_v29 = vadd.f32 %v13426_v28, %v4187_v46  ;;  %v13822_v40 = vpop.f32.mrf.mxu1  ;;  %9178 = vmatmul.msk.bf16.gmra.mxu0 %vm5089_vm9, %v6142_v6  ;;  %v5314_v42 = vrot.slane %v5312_v43, 3  ;;  %v16185_v46 = vld [vmem:[#allocation67_spill] sm:$0xff] }
 0x34c   : > { %v4845_v14 = vpack.c.bf16 %v4774_v51, %v4774_v51  ;;  %v5317_v44 = vrot.slane %v5315_v52, 4  ;;  %v5600_v11 = vmul.f32 %v13563_v41, %v16185_v46 }
 0x34d   : > { %v4643_v18 = vmul.f32 %v13750_v15, %v4609_v29  ;;  %v10353_v23 = vld [vmem:[#allocation3 + $0x50] sm:$0xff]  }
 0x34e   : > { %v13826_v0 = vpop.f32.mrf.mxu2  ;;  %4877 = vst.msk [vmem:[#allocation3 + $0x58] sm:$0xf] %vm4787_vm7, %v4845_v14  ;;  %v13830_v39 = vunpack.c.l.bf16 %v10353_v23  ;;  %v13832_v28 = vunpack.c.h.bf16 %v10353_v23  ;;  %v5599_v14 = vmul.f32 %v13513_v13, %v16186_v47  ;;  %v13844_v29 = vpop.f32.mrf.mxu0  ;;  %v13849_v1 = vor.u32 %v5317_v44, %v5314_v42 }
 0x34f   : > { %v4677_v32 = vadd.f32 %v13767_v56, %v4643_v18  ;;  %v5677_v18 = vshrl.u32 %v13779_v61, 16 }
 0x350   : > { %v4139_v21 = vpop.f32.mrf.mxu3  ;;  %v6029_v31 = vmul.f32 %v13830_v39, %v16180_v8  ;;  %v6030_v4 = vmul.f32 %v13832_v28, %v16181_v37  ;;  %v13846_v52 = vpack.c.bf16 %v5600_v11, %v5599_v14  ;;  %v16188_v14 = vld [vmem:[#allocation16_spill] sm:$0xff] }
 0x351   : > { %vm4709_vm5 = vcmp.gt.f32.partialorder %v4677_v32, 0.0  ;;  %v4743_v6 = vmul.f32 %v13734_v48, %v4677_v32  ;;  %v4188_v51 = vadd.f32 %v4139_v21, %v3934_v49  ;;  %v5679_v61 = vor.u32 %v5677_v18, %v13794_v55 }
 0x352   : > { %v6053_v43 = vpack.c.bf16 %v6030_v4, %v6029_v31  ;;  %v5681_v47 = vshll.u32 %v13846_v52, 16  ;;  %v3935_v21 = vadd.f32 %v13558_v20, %v13175_v35  ;;  %v16187_v4 = vld [vmem:[#allocation15_spill] sm:$0xff] }
 0x353   : > { %v4775_v41 = vsel %vm4709_vm5, %v4677_v32, %v4743_v6  ;;  %v4610_v33 = vadd.f32 %v13460_v30, %v4188_v51  ;;  %v13852_v37 = vpop.f32.mrf.mxu1  ;;  %v4977_v6 = vmul.f32 %v13832_v28, %v16188_v14 }
 0x354   : > { %v4846_v23 = vpack.c.bf16 %v4775_v41, %v4775_v41  ;;  %v6144_v13 = vshrl.u32 %v6053_v43, 16  ;;  %v6147_v8 = vshll.u32 %v6053_v43, 16  ;;  %v5683_v44 = vrot.slane %v5681_v47, 1  ;;  %v16189_v41 = vld [vmem:[#allocation70_spill] sm:$0xff] }
 0x355   : > { %v4644_v49 = vmul.f32 %v13750_v15, %v4610_v33  ;;  %9157 = vmatmul.msk.bf16.gmra.mxu3 %vm5089_vm9, %v5676_v58  ;;  %v9466_v32 = vld [vmem:[#allocation3 + $0x54] sm:$0xff]  ;;  %v4976_v58 = vmul.f32 %v13830_v39, %v16187_v4 }
 0x356   : > { %v13857_v11 = vpop.f32.mrf.mxu2  ;;  %4878 = vst.msk [vmem:[#allocation3 + $0x5c] sm:$0xf] %vm4787_vm7, %v4846_v23  ;;  %v6146_v30 = vrot.slane %v6144_v13, 3  ;;  %v6149_v42 = vrot.slane %v6147_v8, 4  ;;  %9131 = vmatmul.msk.bf16.gmra.mxu1 %vm5089_vm9, %v9466_v32  ;;  %v5319_v8 = vsel %vm1220_vm4, %v13782_v19, %v13849_v1  ;;  %v5684_v47 = vsel %vm2080_vm6, %v5679_v61, %v5683_v44  ;;  %v16190_v33 = vld [vmem:[#allocation84_spill] sm:$0xff] }
 0x357   : > { %v4678_v31 = vadd.f32 %v13767_v56, %v4644_v49  ;;  %v4999_v43 = vpack.c.bf16 %v4977_v6, %v4976_v58  ;;  %v3072_v18 = vadd.f32 %v16190_v33, %v16189_v41  ;;  %v16193_v33 = vld [vmem:[#allocation75_spill] sm:$0xff] }
 0x358   : > { %v4142_v51 = vpop.f32.mrf.mxu3  ;;  %v13872_v55 = vor.u32 %v6149_v42, %v6146_v30  ;;  %v13878_v23 = vpop.f32.mrf.mxu0  ;;  %v16192_v42 = vld [vmem:[#allocation81_spill] sm:$0xff] }
 0x359   : > { %vm4710_vm10 = vcmp.gt.f32.partialorder %v4678_v31, 0.0  ;;  %v4744_v35 = vmul.f32 %v13734_v48, %v4678_v31  ;;  %v4189_v20 = vadd.f32 %v4142_v51, %v3935_v21  ;;  %16191 = vst [vmem:[#allocation64_spill] sm:$0xff] %v13878_v23  ;;  %v5321_v32 = vshrl.u32 %v4999_v43, 16 }
 0x35a   : > { %v6151_v19 = vsel %vm1220_vm4, %v13809_v38, %v13872_v55  ;;  %v5324_v30 = vshll.u32 %v4999_v43, 16  ;;  %v3494_v61 = vadd.f32 %v16192_v42, %v3072_v18  ;;  %v5602_v18 = vmul.f32 %v13622_v22, %v16193_v33 }
 0x35b   : > { %9145 = vmatmul.msk.bf16.gmra.mxu2 %vm5089_vm9, %v5319_v8  ;;  %v4776_v13 = vsel %vm4710_vm10, %v4678_v31, %v4744_v35  ;;  %v4611_v49 = vadd.f32 %v13486_v54, %v4189_v20  ;;  %v13886_v58 = vpop.f32.mrf.mxu1  ;;  %9179 = vmatmul.msk.bf16.gmra.mxu0 %vm5089_vm9, %v6151_v19  ;;  %v5323_v20 = vrot.slane %v5321_v32, 3 }
 0x35c   : > { %v4847_v21 = vpack.c.bf16 %v4776_v13, %v4776_v13  ;;  %v3936_v41 = vadd.f32 %v13588_v36, %v3494_v61  ;;  %v5326_v43 = vrot.slane %v5324_v30, 4 }
 0x35d   : > { %v4645_v6 = vmul.f32 %v13750_v15, %v4611_v49  ;;  %v10354_v8 = vld [vmem:[#allocation3 + $0x58] sm:$0xff]  }
 0x35e   : > { %v5443_v51 = vpop.f32.mrf.mxu2  ;;  %4879 = vst.msk [vmem:[#allocation3 + $0x60] sm:$0xf] %vm4787_vm7, %v4847_v21  ;;  %v13895_v54 = vunpack.c.l.bf16 %v10354_v8  ;;  %v13897_v31 = vunpack.c.h.bf16 %v10354_v8  ;;  %v13914_v8 = vor.u32 %v5326_v43, %v5323_v20 }
 0x35f   : > { %v13893_v38 = vadd.f32 %v5443_v51, %v13700_v45  ;;  %v4679_v35 = vadd.f32 %v13767_v56, %v4645_v6  ;;  %v16194_v45 = vld [vmem:[#allocation74_spill] sm:$0xff]  ;;  %v16196_v6 = vld [vmem:[#allocation101_spill] sm:$0xff] }
 0x360   : > { %v4144_v19 = vpop.f32.mrf.mxu3  ;;  %v6031_v36 = vmul.f32 %v13895_v54, %v16187_v4  ;;  %v6032_v13 = vmul.f32 %v13897_v31, %v16188_v14  ;;  %v5601_v49 = vmul.f32 %v13565_v63, %v16194_v45  ;;  %v13909_v21 = vpop.f32.mrf.mxu0  ;;  %v5685_v4 = vshrl.u32 %v13846_v52, 16 }
 0x361   : > { %vm4711_vm11 = vcmp.gt.f32.partialorder %v4679_v35, 0.0  ;;  %v4745_v42 = vmul.f32 %v13734_v48, %v4679_v35  ;;  %v4190_v61 = vadd.f32 %v4144_v19, %v3936_v41  ;;  %16195 = vst [vmem:[#allocation105_spill] sm:$0xff] %v13909_v21 }
 0x362   : > { %v6054_v32 = vpack.c.bf16 %v6032_v13, %v6031_v36  ;;  %v13911_v30 = vpack.c.bf16 %v5602_v18, %v5601_v49  ;;  %v16197_v13 = vld [vmem:[#allocation125_spill] sm:$0xff] }
 0x363   : > { %v4777_v22 = vsel %vm4711_vm11, %v4679_v35, %v4745_v42  ;;  %v4612_v51 = vadd.f32 %v16196_v6, %v4190_v61  ;;  %v13917_v23 = vpop.f32.mrf.mxu1  ;;  %v5687_v35 = vor.u32 %v5685_v4, %v5683_v44  ;;  %v3937_v49 = vadd.f32 %v13619_v12, %v16197_v13  ;;  %v16198_v61 = vld [vmem:[#allocation18_spill] sm:$0xff] }
 0x364   : > { %v4848_v14 = vpack.c.bf16 %v4777_v22, %v4777_v22  ;;  %v6153_v63 = vshrl.u32 %v6054_v32, 16  ;;  %v6156_v45 = vshll.u32 %v6054_v32, 16  ;;  %v5689_v33 = vshll.u32 %v13911_v30, 16  ;;  %v16199_v32 = vld [vmem:[#allocation17_spill] sm:$0xff]  ;;  %v16200_v6 = vld [vmem:[#allocation114_spill] sm:$0xff] }
 0x365   : > { %v4646_v41 = vmul.f32 %v13750_v15, %v4612_v51  ;;  %9158 = vmatmul.msk.bf16.gmra.mxu3 %vm5089_vm9, %v5684_v47  ;;  %v9467_v19 = vld [vmem:[#allocation3 + $0x5c] sm:$0xff]  ;;  %v4978_v47 = vmul.f32 %v13895_v54, %v16198_v61  ;;  %v4979_v44 = vmul.f32 %v13897_v31, %v16199_v32  ;;  %v16201_v51 = vld [vmem:[#allocation87_spill] sm:$0xff] }
 0x366   : > { %v5445_v18 = vpop.f32.mrf.mxu2  ;;  %4880 = vst.msk [vmem:[#allocation3 + $0x64] sm:$0xf] %vm4787_vm7, %v4848_v14  ;;  %v6155_v52 = vrot.slane %v6153_v63, 3  ;;  %v6158_v43 = vrot.slane %v6156_v45, 4  ;;  %v5691_v36 = vrot.slane %v5689_v33, 1  ;;  %9132 = vmatmul.msk.bf16.gmra.mxu1 %vm5089_vm9, %v9467_v19  ;;  %v3074_v63 = vadd.f32 %v16201_v51, %v16200_v6  ;;  %v16203_v19 = vld [vmem:[#allocation127_spill] sm:$0xff] }
 0x367   : > { %v13924_v20 = vadd.f32 %v5445_v18, %v13745_v3  ;;  %v4680_v42 = vadd.f32 %v13767_v56, %v4646_v41  ;;  %v5328_v3 = vsel %vm1220_vm4, %v13849_v1, %v13914_v8  ;;  %v5000_v22 = vpack.c.bf16 %v4979_v44, %v4978_v47  ;;  %v16204_v13 = vld [vmem:[#allocation86_spill] sm:$0xff] }
 0x368   : > { %v4147_v4 = vpop.f32.mrf.mxu3  ;;  %v13937_v14 = vor.u32 %v6158_v43, %v6155_v52  ;;  %v5692_v33 = vsel %vm2080_vm6, %v5687_v35, %v5691_v36  ;;  %v13943_v41 = vpop.f32.mrf.mxu0  ;;  %v3496_v21 = vadd.f32 %v16204_v13, %v3074_v63  ;;  %v16205_v63 = vld [vmem:[#allocation83_spill] sm:$0xff] }
 0x369   : > { %vm4712_vm12 = vcmp.gt.f32.partialorder %v4680_v42, 0.0  ;;  %v4746_v12 = vmul.f32 %v13734_v48, %v4680_v42  ;;  %v4191_v45 = vadd.f32 %v4147_v4, %v3937_v49  ;;  %16202 = vst [vmem:[#allocation56_spill] sm:$0xff] %v13943_v41  ;;  %v5330_v35 = vshrl.u32 %v5000_v22, 16 }
 0x36a   : > { %v6160_v1 = vsel %vm1220_vm4, %v13872_v55, %v13937_v14  ;;  %v5333_v43 = vshll.u32 %v5000_v22, 16  ;;  %v3938_v6 = vadd.f32 %v13648_v27, %v3496_v21 }
 0x36b   : > { %9146 = vmatmul.msk.bf16.gmra.mxu2 %vm5089_vm9, %v5328_v3  ;;  %v4778_v18 = vsel %vm4712_vm12, %v4680_v42, %v4746_v12  ;;  %v4613_v52 = vadd.f32 %v16203_v19, %v4191_v45  ;;  %v13951_v47 = vpop.f32.mrf.mxu1  ;;  %9180 = vmatmul.msk.bf16.gmra.mxu0 %vm5089_vm9, %v6160_v1  ;;  %v5332_v22 = vrot.slane %v5330_v35, 3  ;;  %v5604_v1 = vmul.f32 %v13683_v53, %v16205_v63 }
 0x36c   : > { %v4849_v49 = vpack.c.bf16 %v4778_v18, %v4778_v18  ;;  %v5335_v51 = vrot.slane %v5333_v43, 4 }
 0x36d   : > { %v4647_v44 = vmul.f32 %v13750_v15, %v4613_v52  ;;  %v10355_v3 = vld [vmem:[#allocation3 + $0x60] sm:$0xff]  }
 0x36e   : > { %v5448_v4 = vpop.f32.mrf.mxu2  ;;  %4881 = vst.msk [vmem:[#allocation3 + $0x68] sm:$0xf] %vm4787_vm7, %v4849_v49  ;;  %v13960_v42 = vunpack.c.l.bf16 %v10355_v3  ;;  %v13962_v12 = vunpack.c.h.bf16 %v10355_v3  ;;  %v5693_v3 = vshrl.u32 %v13911_v30, 16 }
 0x36f   : > { %v13958_v55 = vadd.f32 %v5448_v4, %v13785_v34  ;;  %v4681_v45 = vadd.f32 %v13767_v56, %v4647_v44  ;;  %v16206_v34 = vld [vmem:[#allocation82_spill] sm:$0xff]  ;;  %v13979_v4 = vor.u32 %v5335_v51, %v5332_v22 }
 0x370   : > { %v4149_v18 = vpop.f32.mrf.mxu3  ;;  %v6033_v27 = vmul.f32 %v13960_v42, %v16198_v61  ;;  %v6034_v21 = vmul.f32 %v13962_v12, %v16199_v32  ;;  %v5603_v19 = vmul.f32 %v13626_v5, %v16206_v34  ;;  %v13974_v49 = vpop.f32.mrf.mxu0 }
 0x371   : > { %vm4713_vm2 = vcmp.gt.f32.partialorder %v4681_v45, 0.0  ;;  %v4747_v52 = vmul.f32 %v13734_v48, %v4681_v45  ;;  %v4192_v13 = vadd.f32 %v4149_v18, %v3938_v6  ;;  %16207 = vst [vmem:[#allocation72_spill] sm:$0xff] %v13974_v49 }
 0x372   : > { %v6055_v35 = vpack.c.bf16 %v6034_v21, %v6033_v27  ;;  %v13976_v43 = vpack.c.bf16 %v5604_v1, %v5603_v19  ;;  %v16208_v27 = vld [vmem:[#allocation89_spill] sm:$0xff] }
 0x373   : > { %v4779_v53 = vsel %vm4713_vm2, %v4681_v45, %v4747_v52  ;;  %v4614_v44 = vadd.f32 %v13593_v7, %v4192_v13  ;;  %v13982_v61 = vpop.f32.mrf.mxu1  ;;  %v5695_v45 = vor.u32 %v5693_v3, %v5691_v36  ;;  %v3939_v21 = vadd.f32 %v13680_v17, %v16208_v27  ;;  %v16209_v52 = vld [vmem:[#allocation19_spill] sm:$0xff]  ;;  %v16210_v13 = vld [vmem:[#allocation20_spill] sm:$0xff] }
 0x374   : > { %v4850_v32 = vpack.c.bf16 %v4779_v53, %v4779_v53  ;;  %v6162_v5 = vshrl.u32 %v6055_v35, 16  ;;  %v6165_v41 = vshll.u32 %v6055_v35, 16  ;;  %v5697_v34 = vshll.u32 %v13976_v43, 16  ;;  %v16212_v3 = vld [vmem:[#allocation104_spill] sm:$0xff] }
 0x375   : > { %v4648_v6 = vmul.f32 %v13750_v15, %v4614_v44  ;;  %9159 = vmatmul.msk.bf16.gmra.mxu3 %vm5089_vm9, %v5692_v33  ;;  %v9468_v18 = vld [vmem:[#allocation3 + $0x64] sm:$0xff]  ;;  %v4980_v33 = vmul.f32 %v13960_v42, %v16209_v52  ;;  %v4981_v36 = vmul.f32 %v13962_v12, %v16210_v13  ;;  %v16211_v44 = vld [vmem:[#allocation116_spill] sm:$0xff] }
 0x376   : > { %v5450_v1 = vpop.f32.mrf.mxu2  ;;  %4882 = vst.msk [vmem:[#allocation3 + $0x6c] sm:$0xf] %vm4787_vm7, %v4850_v32  ;;  %v6164_v30 = vrot.slane %v6162_v5, 3  ;;  %v6167_v22 = vrot.slane %v6165_v41, 4  ;;  %v5699_v51 = vrot.slane %v5697_v34, 1  ;;  %9133 = vmatmul.msk.bf16.gmra.mxu1 %vm5089_vm9, %v9468_v18  ;;  %v3076_v5 = vadd.f32 %v16212_v3, %v16211_v44  ;;  %v16215_v3 = vld [vmem:[#allocation91_spill] sm:$0xff] }
 0x377   : > { %v13989_v7 = vadd.f32 %v5450_v1, %v13822_v40  ;;  %v4682_v19 = vadd.f32 %v13767_v56, %v4648_v6  ;;  %v5337_v40 = vsel %vm1220_vm4, %v13914_v8, %v13979_v4  ;;  %v5001_v53 = vpack.c.bf16 %v4981_v36, %v4980_v33 }
 0x378   : > { %v4152_v32 = vpop.f32.mrf.mxu3  ;;  %v14002_v41 = vor.u32 %v6167_v22, %v6164_v30  ;;  %v5700_v34 = vsel %vm2080_vm6, %v5695_v45, %v5699_v51  ;;  %v14008_v6 = vpop.f32.mrf.mxu0  ;;  %v16214_v22 = vld [vmem:[#allocation123_spill] sm:$0xff] }
 0x379   : > { %vm4714_vm13 = vcmp.gt.f32.partialorder %v4682_v19, 0.0  ;;  %v4748_v17 = vmul.f32 %v13734_v48, %v4682_v19  ;;  %v4193_v35 = vadd.f32 %v4152_v32, %v3939_v21  ;;  %16213 = vst [vmem:[#allocation30_spill] sm:$0xff] %v14008_v6  ;;  %v5339_v45 = vshrl.u32 %v5001_v53, 16 }
 0x37a   : > { %v6169_v8 = vsel %vm1220_vm4, %v13937_v14, %v14002_v41  ;;  %v5342_v30 = vshll.u32 %v5001_v53, 16  ;;  %v3498_v27 = vadd.f32 %v16214_v22, %v3076_v5  ;;  %v5606_v5 = vmul.f32 %v13760_v62, %v16215_v3 }
 0x37b   : > { %9147 = vmatmul.msk.bf16.gmra.mxu2 %vm5089_vm9, %v5337_v40  ;;  %v4780_v1 = vsel %vm4714_vm13, %v4682_v19, %v4748_v17  ;;  %v4615_v18 = vadd.f32 %v13630_v26, %v4193_v35  ;;  %v14016_v33 = vpop.f32.mrf.mxu1  ;;  %9181 = vmatmul.msk.bf16.gmra.mxu0 %vm5089_vm9, %v6169_v8  ;;  %v5341_v35 = vrot.slane %v5339_v45, 3 }
 0x37c   : > { %v4851_v21 = vpack.c.bf16 %v4780_v1, %v4780_v1  ;;  %v3940_v44 = vadd.f32 %v13711_v10, %v3498_v27  ;;  %v5344_v53 = vrot.slane %v5342_v30, 4 }
 0x37d   : > { %v4649_v36 = vmul.f32 %v13750_v15, %v4615_v18  ;;  %v10356_v40 = vld [vmem:[#allocation3 + $0x68] sm:$0xff]  }
 0x37e   : > { %v5453_v32 = vpop.f32.mrf.mxu2  ;;  %4883 = vst.msk [vmem:[#allocation3 + $0x70] sm:$0xf] %vm4787_vm7, %v4851_v21  ;;  %v14025_v26 = vunpack.c.l.bf16 %v10356_v40  ;;  %v14027_v19 = vunpack.c.h.bf16 %v10356_v40  ;;  %v5701_v40 = vshrl.u32 %v13976_v43, 16 }
 0x37f   : > { %v14023_v14 = vadd.f32 %v5453_v32, %v13852_v37  ;;  %v4683_v17 = vadd.f32 %v13767_v56, %v4649_v36  ;;  %v16216_v37 = vld [vmem:[#allocation90_spill] sm:$0xff]  ;;  %v14044_v32 = vor.u32 %v5344_v53, %v5341_v35 }
 0x380   : > { %v4154_v8 = vpop.f32.mrf.mxu3  ;;  %v6035_v10 = vmul.f32 %v14025_v26, %v16209_v52  ;;  %v6036_v1 = vmul.f32 %v14027_v19, %v16210_v13  ;;  %v5605_v18 = vmul.f32 %v13685_v9, %v16216_v37  ;;  %v14039_v21 = vpop.f32.mrf.mxu0 }
 0x381   : > { %vm4715_vm14 = vcmp.gt.f32.partialorder %v4683_v17, 0.0  ;;  %v4749_v22 = vmul.f32 %v13734_v48, %v4683_v17  ;;  %v4194_v27 = vadd.f32 %v4154_v8, %v3940_v44  ;;  %16217 = vst [vmem:[#allocation94_spill] sm:$0xff] %v14039_v21 }
 0x382   : > { %v6056_v45 = vpack.c.bf16 %v6036_v1, %v6035_v10  ;;  %v14041_v30 = vpack.c.bf16 %v5606_v5, %v5605_v18  ;;  %v16218_v10 = vld [vmem:[#allocation130_spill] sm:$0xff] }
 0x383   : > { %v4781_v62 = vsel %vm4715_vm14, %v4683_v17, %v4749_v22  ;;  %v4616_v36 = vadd.f32 %v13668_v59, %v4194_v27  ;;  %v14047_v52 = vpop.f32.mrf.mxu1  ;;  %v5703_v17 = vor.u32 %v5701_v40, %v5699_v51  ;;  %v3941_v1 = vadd.f32 %v13754_v16, %v16218_v10  ;;  %v16220_v51 = vld [vmem:[#allocation25_spill] sm:$0xff] }
 0x384   : > { %v4852_v13 = vpack.c.bf16 %v4781_v62, %v4781_v62  ;;  %v6171_v9 = vshrl.u32 %v6056_v45, 16  ;;  %v6174_v6 = vshll.u32 %v6056_v45, 16  ;;  %v5705_v49 = vshll.u32 %v14041_v30, 16 }
 0x385   : > { %v4650_v44 = vmul.f32 %v13750_v15, %v4616_v36  ;;  %9160 = vmatmul.msk.bf16.gmra.mxu3 %vm5089_vm9, %v5700_v34  ;;  %v9469_v8 = vld [vmem:[#allocation3 + $0x6c] sm:$0xff] }
 0x386   : > { %v5455_v5 = vpop.f32.mrf.mxu2  ;;  %4884 = vst.msk [vmem:[#allocation3 + $0x74] sm:$0xf] %vm4787_vm7, %v4852_v13  ;;  %v6173_v43 = vrot.slane %v6171_v9, 3  ;;  %v6176_v35 = vrot.slane %v6174_v6, 4  ;;  %v14056_v53 = vrot.slane %v5705_v49, 1  ;;  %9134 = vmatmul.msk.bf16.gmra.mxu1 %vm5089_vm9, %v9469_v8  ;;  %v16219_v34 = vld [vmem:[#allocation23_spill] sm:$0xff]  ;;  %v4983_v13 = vmul.f32 %v14027_v19, %v16220_v51 }
 0x387   : > { %v14054_v59 = vadd.f32 %v5455_v5, %v13886_v58  ;;  %v4684_v18 = vadd.f32 %v13767_v56, %v4650_v44  ;;  %v4982_v22 = vmul.f32 %v14025_v26, %v16219_v34  ;;  %v5346_v58 = vsel %vm1220_vm4, %v13979_v4, %v14044_v32  ;;  %v16222_v9 = vld [vmem:[#allocation119_spill] sm:$0xff]  ;;  %v16223_v4 = vld [vmem:[#allocation57_spill] sm:$0xff] }
 0x388   : > { %v4157_v27 = vpop.f32.mrf.mxu3  ;;  %v14069_v49 = vor.u32 %v6176_v35, %v6173_v43  ;;  %v5708_v16 = vsel %vm2080_vm6, %v5703_v17, %v14056_v53  ;;  %v14074_v36 = vpop.f32.mrf.mxu0  ;;  %v3078_v44 = vadd.f32 %v16223_v4, %v16222_v9  ;;  %v16225_v9 = vld [vmem:[#allocation99_spill] sm:$0xff] }
 0x389   : > { %vm4716_vm15 = vcmp.gt.f32.partialorder %v4684_v18, 0.0  ;;  %v4750_v6 = vmul.f32 %v13734_v48, %v4684_v18  ;;  %v4195_v45 = vadd.f32 %v4157_v27, %v3941_v1  ;;  %v5002_v62 = vpack.c.bf16 %v4983_v13, %v4982_v22  ;;  %16221 = vst [vmem:[#allocation76_spill] sm:$0xff] %v14074_v36  ;;  %v16224_v1 = vld [vmem:[#allocation95_spill] sm:$0xff] }
 0x38a   : > { %v6178_v40 = vsel %vm1220_vm4, %v14002_v41, %v14069_v49  ;;  %v3500_v22 = vadd.f32 %v16224_v1, %v3078_v44  ;;  %v5608_v4 = vmul.f32 %v13830_v39, %v16225_v9  ;;  %v5709_v1 = vshrl.u32 %v14041_v30, 16 }
 0x38b   : > { %9148 = vmatmul.msk.bf16.gmra.mxu2 %vm5089_vm9, %v5346_v58  ;;  %v4782_v5 = vsel %vm4716_vm15, %v4684_v18, %v4750_v6  ;;  %v4617_v8 = vadd.f32 %v13705_v60, %v4195_v45  ;;  %v5348_v17 = vshrl.u32 %v5002_v62, 16  ;;  %v14083_v35 = vpop.f32.mrf.mxu1  ;;  %v5351_v10 = vshll.u32 %v5002_v62, 16  ;;  %9182 = vmatmul.msk.bf16.gmra.mxu0 %vm5089_vm9, %v6178_v40 }
 0x38c   : > { %v4853_v43 = vpack.c.bf16 %v4782_v5, %v4782_v5  ;;  %v3942_v6 = vadd.f32 %v13790_v57, %v3500_v22  ;;  %v9268_v57 = vld [vmem:[%s15508_s2 + $0x14] sm:$0xf] }
 0x38d   : > { %v4651_v13 = vmul.f32 %v13750_v15, %v4617_v8  ;;  %v10357_v58 = vld [vmem:[#allocation3 + $0x70] sm:$0xff]   ;;  %v5350_v62 = vrot.slane %v5348_v17, 3  ;;  %v5353_v44 = vrot.slane %v5351_v10, 4  ;;  %v16226_v8 = vld [vmem:[#allocation98_spill] sm:$0xff] }
 0x38e   : > { %v5458_v27 = vpop.f32.mrf.mxu2  ;;  %4885 = vst.msk [vmem:[#allocation3 + $0x78] sm:$0xf] %vm4787_vm7, %v4853_v43  ;;  %v14092_v18 = vunpack.c.l.bf16 %v10357_v58  ;;  %v14094_v60 = vunpack.c.h.bf16 %v10357_v58  ;;  %v5607_v43 = vmul.f32 %v13762_v2, %v16226_v8  ;;  %v9285_v17 = vld [vmem:[%s15508_s2 + $0x18] sm:$0xf]  ;;  %v16228_v2 = vld [vmem:[#allocation40_spill] sm:$0xff]  ;;  %v6940_v8 = vsel %vm5138_vm8, %v9268_v57, 0 }
 0x38f   : > { %v14090_v41 = vadd.f32 %v5458_v27, %v13917_v23  ;;  %v4685_v45 = vadd.f32 %v13767_v56, %v4651_v13  ;;  %6949 = vmatpush.bf16.msra.mxu2 %v6940_v8  ;;  %v5711_v57 = vor.u32 %v5709_v1, %v14056_v53  ;;  %v16230_v8 = vld [vmem:[#allocation45_spill] sm:$0xff]  ;;  %v9302_v53 = vld [vmem:[%s15508_s2 + $0x1c] sm:$0xf] }
 0x390   : > { %v4159_v40 = vpop.f32.mrf.mxu3  ;;  %v6037_v5 = vmul.f32 %v14092_v18, %v16219_v34  ;;  %v6038_v23 = vmul.f32 %v14094_v60, %v16220_v51  ;;  %v14114_v22 = vpop.f32.mrf.mxu0  ;;  %v14116_v27 = vpack.c.bf16 %v5608_v4, %v5607_v43  ;;  %v4984_v58 = vmul.f32 %v14092_v18, %v16228_v2  ;;  %v16229_v51 = vld [vmem:[#allocation39_spill] sm:$0xff] }
 0x391   : > { %vm4717_vm0 = vcmp.gt.f32.partialorder %v4685_v45, 0.0  ;;  %v4751_v39 = vmul.f32 %v13734_v48, %v4685_v45  ;;  %v4196_v10 = vadd.f32 %v4159_v40, %v3942_v6  ;;  %16227 = vst [vmem:[#allocation80_spill] sm:$0xff] %v14114_v22  ;;  %v4985_v34 = vmul.f32 %v14094_v60, %v16229_v51 }
 0x392   : > { %v6057_v13 = vpack.c.bf16 %v6038_v23, %v6037_v5  ;;  %v7382_v6 = vsel %vm5138_vm8, %v9285_v17, 0  ;;  %v5713_v4 = vshll.u32 %v14116_v27, 16 }
 0x393   : > { %v4783_v36 = vsel %vm4717_vm0, %v4685_v45, %v4751_v39  ;;  %v4618_v21 = vadd.f32 %v13757_v24, %v4196_v10  ;;  %v14125_v30 = vpop.f32.mrf.mxu1  ;;  %7391 = vmatpush.bf16.msra.mxu3 %v7382_v6  ;;  %v14130_v24 = vor.u32 %v5353_v44, %v5350_v62  ;;  %v16231_v62 = vld [vmem:[#allocation107_spill] sm:$0xff]  ;;  %v16232_v6 = vld [vmem:[#allocation106_spill] sm:$0xff] }
 0x394   : > { %v4854_v40 = vpack.c.bf16 %v4783_v36, %v4783_v36  ;;  %v6180_v22 = vshrl.u32 %v6057_v13, 16  ;;  %v6183_v5 = vshll.u32 %v6057_v13, 16  ;;  %v5715_v10 = vrot.slane %v5713_v4, 1  ;;  %v16234_v4 = vld [vmem:[#allocation103_spill] sm:$0xff] }
 0x395   : > { %v4652_v23 = vmul.f32 %v13750_v15, %v4618_v21  ;;  %9161 = vmatmul.msk.bf16.gmra.mxu3 %vm5089_vm9, %v5708_v16  ;;  %v9470_v43 = vld [vmem:[#allocation3 + $0x74] sm:$0xff]  ;;  %v3943_v13 = vadd.f32 %v13826_v0, %v16230_v8  ;;  %v5003_v16 = vpack.c.bf16 %v4985_v34, %v4984_v58  ;;  %v5610_v44 = vmul.f32 %v13895_v54, %v16231_v62 }
 0x396   : > { %v5460_v45 = vpop.f32.mrf.mxu2  ;;  %4886 = vst.msk [vmem:[#allocation3 + $0x7c] sm:$0xf] %vm4787_vm7, %v4854_v40  ;;  %v6182_v17 = vrot.slane %v6180_v22, 3  ;;  %v6185_v39 = vrot.slane %v6183_v5, 4  ;;  %9135 = vmatmul.msk.bf16.gmra.mxu1 %vm5089_vm9, %v9470_v43  ;;  %v5716_v22 = vsel %vm2080_vm6, %v5711_v57, %v5715_v10  ;;  %v5609_v0 = vmul.f32 %v13832_v28, %v16232_v6  ;;  %v16233_v5 = vld [vmem:[#allocation35_spill] sm:$0xff] }
 0x397   : > { %v14135_v36 = vadd.f32 %v5460_v45, %v13951_v47  ;;  %v4686_v21 = vadd.f32 %v13767_v56, %v4652_v23  ;;  %v7636_v40 = vsel %vm5138_vm8, %v9302_v53, 0  ;;  %v5355_v54 = vsel %vm1220_vm4, %v14044_v32, %v14130_v24  ;;  %v9383_v43 = vld [vmem:[%s15508_s2 + $0x20] sm:$0xf] }
 0x398   : > { %v4162_v47 = vpop.f32.mrf.mxu3  ;;  %v14146_v1 = vor.u32 %v6185_v39, %v6182_v17  ;;  %7645 = vmatpush.bf16.msra.mxu0 %v7636_v40  ;;  %v3080_v23 = vadd.f32 %v16234_v4, %v16233_v5  ;;  %v14162_v45 = vpack.c.bf16 %v5610_v44, %v5609_v0  ;;  %v14168_v32 = vpop.f32.mrf.mxu0  ;;  %v5717_v39 = vshrl.u32 %v14116_v27, 16 }
 0x399   : > { %vm4718_vm1 = vcmp.gt.f32.partialorder %v4686_v21, 0.0  ;;  %v4752_v34 = vmul.f32 %v13734_v48, %v4686_v21  ;;  %v4197_v58 = vadd.f32 %v4162_v47, %v3943_v13  ;;  %16235 = vst [vmem:[#allocation85_spill] sm:$0xff] %v14168_v32  ;;  %v8058_v8 = vsel %vm5138_vm8, %v9383_v43, 0 }
 0x39a   : > { %v6187_v28 = vsel %vm1220_vm4, %v14069_v49, %v14146_v1  ;;  %v5357_v47 = vshrl.u32 %v5003_v16, 16  ;;  %v5721_v49 = vshll.u32 %v14162_v45, 16  ;;  %8067 = vmatpush.bf16.msra.mxu1 %v8058_v8  ;;  %v3502_v44 = vadd.f32 %v13666_v50, %v3080_v23 }
 0x39b   : > { %9149 = vmatmul.msk.bf16.gmra.mxu2 %vm5089_vm9, %v5355_v54  ;;  %v4784_v57 = vsel %vm4718_vm1, %v4686_v21, %v4752_v34  ;;  %v4619_v17 = vadd.f32 %v13804_v25, %v4197_v58  ;;  %v14172_v53 = vpop.f32.mrf.mxu1  ;;  %9183 = vmatmul.msk.bf16.gmra.mxu0 %vm5089_vm9, %v6187_v28  ;;  %v5360_v21 = vshll.u32 %v5003_v16, 16  ;;  %v5719_v34 = vor.u32 %v5717_v39, %v5715_v10 }
 0x39c   : > { %v4855_v13 = vpack.c.bf16 %v4784_v57, %v4784_v57  ;;  %v5723_v5 = vrot.slane %v5721_v49, 1  ;;  %v3944_v50 = vadd.f32 %v13857_v11, %v3502_v44  ;;  %v5359_v28 = vrot.slane %v5357_v47, 3  ;;  %v16237_v49 = vld [vmem:[#allocation54_spill] sm:$0xff] }
 0x39d   : > { %v4653_v0 = vmul.f32 %v13750_v15, %v4619_v17  ;;  %v10358_v40 = vld [vmem:[#allocation3 + $0x78] sm:$0xff]   ;;  %v5362_v17 = vrot.slane %v5360_v21, 4 }
 0x39e   : > { %v5463_v25 = vpop.f32.mrf.mxu2  ;;  %4887 = vst.msk [vmem:[#allocation3 + $0x80] sm:$0xf] %vm4787_vm7, %v4855_v13  ;;  %v14182_v58 = vunpack.c.l.bf16 %v10358_v40  ;;  %v14184_v54 = vunpack.c.h.bf16 %v10358_v40  ;;  %v16236_v13 = vld [vmem:[#allocation50_spill] sm:$0xff] }
 0x39f   : > { %v14180_v27 = vadd.f32 %v5463_v25, %v13982_v61  ;;  %v4687_v4 = vadd.f32 %v13767_v56, %v4653_v0  ;;  %v14193_v61 = vsel %vm2080_vm6, %v5719_v34, %v5723_v5 }
 0x3a0   : > { %v4164_v23 = vpop.f32.mrf.mxu3  ;;  %v6039_v16 = vmul.f32 %v14182_v58, %v16228_v2  ;;  %v6040_v10 = vmul.f32 %v14184_v54, %v16229_v51  ;;  %v4986_v47 = vmul.f32 %v14182_v58, %v16236_v13  ;;  %v4987_v44 = vmul.f32 %v14184_v54, %v16237_v49  ;;  %v14204_v2 = vpop.f32.mrf.mxu0 }
 0x3a1   : > { %vm4719_vm8 = vcmp.gt.f32.partialorder %v4687_v4, 0.0  ;;  %v4753_v43 = vmul.f32 %v13734_v48, %v4687_v4  ;;  %v4198_v57 = vadd.f32 %v4164_v23, %v3944_v50  ;;  %16238 = vst [vmem:[#allocation36_spill] sm:$0xff] %v14204_v2 }
 0x3a2   : > { %v6058_v39 = vpack.c.bf16 %v6040_v10, %v6039_v16  ;;  %v16240_v16 = vld [vmem:[#allocation113_spill] sm:$0xff] }
 0x3a3   : > { %v4785_v11 = vsel %vm4719_vm8, %v4687_v4, %v4753_v43  ;;  %v4620_v8 = vadd.f32 %v13844_v29, %v4198_v57  ;;  %v14201_v25 = vpop.f32.mrf.mxu1  ;;  %v14207_v29 = vor.u32 %v5362_v17, %v5359_v28  ;;  %v16239_v4 = vld [vmem:[#allocation112_spill] sm:$0xff]  ;;  %v5612_v10 = vmul.f32 %v13960_v42, %v16240_v16 }
 0x3a4   : > { %v4856_v0 = vpack.c.bf16 %v4785_v11, %v4785_v11  ;;  %v6189_v40 = vshrl.u32 %v6058_v39, 16  ;;  %v6192_v34 = vshll.u32 %v6058_v39, 16  ;;  %v5611_v23 = vmul.f32 %v13897_v31, %v16239_v4 }
 0x3a5   : > { %v4654_v51 = vmul.f32 %v13750_v15, %v4620_v8  ;;  %9162 = vmatmul.msk.bf16.gmra.mxu3 %vm5089_vm9, %v5716_v22  ;;  %v9471_v50 = vld [vmem:[#allocation3 + $0x7c] sm:$0xff]  ;;  %v5004_v22 = vpack.c.bf16 %v4987_v44, %v4986_v47 }
 0x3a6   : > { %v5465_v21 = vpop.f32.mrf.mxu2  ;;  %4888 = vst.msk [vmem:[#allocation3 + $0x84] sm:$0xf] %vm4787_vm7, %v4856_v0  ;;  %v6191_v15 = vrot.slane %v6189_v40, 3  ;;  %v6194_v57 = vrot.slane %v6192_v34, 4  ;;  %9136 = vmatmul.msk.bf16.gmra.mxu1 %vm5089_vm9, %v9471_v50  ;;  %v14219_v28 = vpack.c.bf16 %v5612_v10, %v5611_v23  ;;  %v4922_v10 = vld [vmem:[#allocation3 + $0x80] sm:$0xf] }
 0x3a7   : > { %v14215_v43 = vadd.f32 %v5465_v21, %v14016_v33  ;;  %v4688_v39 = vadd.f32 %v13767_v56, %v4654_v51  ;;  %v5364_v33 = vsel %vm1220_vm4, %v14130_v24, %v14207_v29  ;;  %v5725_v51 = vshrl.u32 %v14162_v45, 16 }
 0x3a8   : > { %v5833_v17 = vpop.f32.mrf.mxu3  ;;  %v6195_v11 = vor.u32 %v6194_v57, %v6191_v15  ;;  %v5729_v8 = vshll.u32 %v14219_v28, 16  ;;  %v5366_v44 = vshrl.u32 %v5004_v22, 16  ;;  %v14243_v15 = vpop.f32.mrf.mxu0 }
 0x3a9   : > { %vm4720_vm3 = vcmp.gt.f32.partialorder %v4688_v39, 0.0  ;;  %v4754_v31 = vmul.f32 %v13734_v48, %v4688_v39  ;;  %v14223_v42 = vadd.f32 %v5833_v17, %v13893_v38  ;;  %v5369_v38 = vshll.u32 %v5004_v22, 16  ;;  %16241 = vst [vmem:[#allocation42_spill] sm:$0xff] %v14243_v15 }
 0x3aa   : > { %v6196_v56 = vsel %vm1220_vm4, %v14146_v1, %v6195_v11  ;;  %v5727_v40 = vor.u32 %v5725_v51, %v5723_v5  ;;  %v5731_v34 = vrot.slane %v5729_v8, 1  ;;  %v5368_v5 = vrot.slane %v5366_v44, 3 }
 0x3ab   : > { %9150 = vmatmul.msk.bf16.gmra.mxu2 %vm5089_vm9, %v5364_v33  ;;  %v4786_v47 = vsel %vm4720_vm3, %v4688_v39, %v4754_v31  ;;  %v14233_v48 = vpop.f32.mrf.mxu1  ;;  %9184 = vmatmul.msk.bf16.gmra.mxu0 %vm5089_vm9, %v6196_v56  ;;  %v5371_v39 = vrot.slane %v5369_v38, 4  ;;  %v9472_v38 = vld [vmem:[#allocation3 + $0xc] sm:$0xff] }
 0x3ac   : > { %v4857_v0 = vpack.c.bf16 %v4786_v47, %v4786_v47  ;;  %v14241_v23 = vsel %vm2080_vm6, %v5727_v40, %v5731_v34 }
 0x3ad   : > { %v10359_v21 = vld [vmem:[#allocation3 + $0x80] sm:$0xff]   ;;  %v14252_v51 = vor.u32 %v5371_v39, %v5368_v5 }
 0x3ae   : > { %v5468_v24 = vpop.f32.mrf.mxu2  ;;  %4889 = vst.msk [vmem:[#allocation3 + $0x88] sm:$0xf] %vm4787_vm7, %v4857_v0  ;;  %v10043_v45 = vunpack.c.l.bf16 %v10359_v21  ;;  %v10044_v50 = vunpack.c.h.bf16 %v10359_v21  ;;  %v16242_v0 = vld [vmem:[#allocation118_spill] sm:$0xff] }
 0x3af   : > { %v14238_v1 = vadd.f32 %v5468_v24, %v14047_v52  ;;  %v4955_v52 = vunpack.c.l.bf16 %v4922_v10  ;;  %v5614_v40 = vmul.f32 %v14025_v26, %v16242_v0  ;;  %v16243_v24 = vld [vmem:[#allocation49_spill] sm:$0xff] }
 0x3b0   : > { %v5835_v57 = vpop.f32.mrf.mxu3  ;;  %v6041_v22 = vmul.f32 %v10043_v45, %v16236_v13  ;;  %v6042_v17 = vmul.f32 %v10044_v50, %v16237_v49  ;;  %v16244_v45 = vld [vmem:[#allocation29_spill] sm:$0xff] }
 0x3b1   : > { %v14248_v31 = vadd.f32 %v5835_v57, %v13924_v20  ;;  %v4988_v21 = vmul.f32 %v4955_v52, %v16243_v24  ;;  %v5613_v50 = vmul.f32 %v13962_v12, %v16244_v45 }
 0x3b2   : > { %v6059_v33 = vpack.c.bf16 %v6042_v17, %v6041_v22 }
 0x3b3   : > { %v14250_v56 = vpop.f32.mrf.mxu1  ;;  %v5634_v26 = vpack.c.bf16 %v5614_v40, %v5613_v50 }
 0x3b4   : > { %v6198_v8 = vshrl.u32 %v6059_v33, 16  ;;  %v6201_v47 = vshll.u32 %v6059_v33, 16  ;;  %v14269_v33 = vpop.f32.mrf.mxu0 }
 0x3b5   : > { %9163 = vmatmul.msk.bf16.gmra.mxu3 %vm5089_vm9, %v14193_v61  ;;  %v5977_v20 = vld [vmem:[#allocation3 + $0x88] sm:$0xf]  ;;  %v5373_v61 = vsel %vm1220_vm4, %v14207_v29, %v14252_v51  ;;  %16245 = vst [vmem:[#allocation46_spill] sm:$0xff] %v14269_v33 }
 0x3b6   : > { %v5470_v44 = vpop.f32.mrf.mxu2  ;;  %v6200_v57 = vrot.slane %v6198_v8, 3  ;;  %v6203_v5 = vrot.slane %v6201_v47, 4  ;;  %v6010_v39 = vunpack.c.l.bf16 %v5977_v20  ;;  %9252 = vmatmul.msk.bf16.vlgmr.msrb.gmra.mxu1 %vm5089_vm9, %v9472_v38  ;;  %v5733_v8 = vshrl.u32 %v14219_v28, 16 }
 0x3b7   : > { %v14262_v10 = vadd.f32 %v5470_v44, %v14083_v35  ;;  %v5005_v35 = vpack.c.bf16 %v4988_v21, %v4988_v21  ;;  %v5737_v47 = vshll.u32 %v5634_v26, 16 }
 0x3b8   : > { %v5838_v22 = vpop.f32.mrf.mxu3  ;;  %v6204_v17 = vor.u32 %v6203_v5, %v6200_v57  ;;  %v6043_v52 = vmul.f32 %v6010_v39, %v16243_v24  ;;  %v5735_v44 = vor.u32 %v5733_v8, %v5731_v34 }
 0x3b9   : > { %v14272_v12 = vadd.f32 %v5838_v22, %v13958_v55  ;;  %v5739_v38 = vrot.slane %v5737_v47, 1  ;;  %v5375_v57 = vshrl.u32 %v5005_v35, 16  ;;  %v5378_v5 = vshll.u32 %v5005_v35, 16  ;;  %v14287_v47 = vld [vmem:[#allocation3 + $0x18] sm:$0xff]  }
 0x3ba   : > { %v6205_v40 = vsel %vm1220_vm4, %v6195_v11, %v6204_v17  ;;  %v6060_v29 = vpack.c.bf16 %v6043_v52, %v6043_v52  ;;  %v6641_v52 = vld [vmem:[#allocation3 + $0xc] sm:$0xf] }
 0x3bb   : > { %9151 = vmatmul.msk.bf16.gmra.mxu2 %vm5089_vm9, %v5373_v61  ;;  %v14277_v20 = vpop.f32.mrf.mxu1  ;;  %9185 = vmatmul.msk.bf16.gmra.mxu0 %vm5089_vm9, %v6205_v40  ;;  %v5740_v55 = vsel %vm2080_vm6, %v5735_v44, %v5739_v38  ;;  %v10360_v61 = vld [vmem:[#allocation3 + $0x10] sm:$0xff]   ;;  %v5377_v34 = vrot.slane %v5375_v57, 3  ;;  %v5380_v8 = vrot.slane %v5378_v5, 4 }
 0x3bc   : > { %v6207_v39 = vshrl.u32 %v6060_v29, 16  ;;  %v6210_v22 = vshll.u32 %v6060_v29, 16  ;;  %v14289_v40 = vpop.f32.mrf.mxu0  ;;  %v10047_v35 = vunpack.c.l.bf16 %v10360_v61  ;;  %v16248_v29 = vld [vmem:[#allocation122_spill] sm:$0xff]  ;;  %v9473_v57 = vld [vmem:[#allocation3 + $0x14] sm:$0xff] }
 0x3bd   : > { %16246 = vst [vmem:[#allocation93_spill] sm:$0xff] %v14289_v40  ;;  %v5616_v13 = vmul.f32 %v14092_v18, %v16248_v29  ;;  %v5381_v5 = vor.u32 %v5380_v8, %v5377_v34  ;;  %v6674_v40 = vunpack.c.l.bf16 %v6641_v52  ;;  %v5741_v29 = vshrl.u32 %v5634_v26, 16  ;;  %v16250_v8 = vld [vmem:[#allocation21_spill] sm:$0xff] }
 0x3be   : > { %v5473_v50 = vpop.f32.mrf.mxu2  ;;  %v6209_v44 = vrot.slane %v6207_v39, 3 }
 0x3bf   : > { %v14282_v21 = vadd.f32 %v5473_v50, %v14125_v30  ;;  %v6212_v30 = vrot.slane %v6210_v22, 4  ;;  %v16247_v50 = vld [vmem:[#allocation41_spill] sm:$0xff]  ;;  %v10048_v22 = vunpack.c.h.bf16 %v10360_v61  ;;  %v5382_v34 = vsel %vm1220_vm4, %v14252_v51, %v5381_v5  ;;  %v16252_v61 = vld [vmem:[#allocation31_spill] sm:$0xff] }
 0x3c0   : > { %v5840_v28 = vpop.f32.mrf.mxu3  ;;  %v5615_v49 = vmul.f32 %v14027_v19, %v16247_v50  ;;  %v16249_v19 = vld [vmem:[#allocation26_spill] sm:$0xff]  ;;  %v6707_v52 = vmul.f32 %v6674_v40, %v16250_v8 }
 0x3c1   : > { %v14285_v11 = vadd.f32 %v5840_v28, %v13989_v7  ;;  %v10051_v28 = vunpack.c.l.bf16 %v14287_v47  ;;  %v6708_v50 = vmul.f32 %v10047_v35, %v16249_v19  ;;  %v6213_v18 = vor.u32 %v6212_v30, %v6209_v44 }
 0x3c2   : > { %v5635_v39 = vpack.c.bf16 %v5616_v13, %v5615_v49  ;;  %v5743_v13 = vor.u32 %v5741_v29, %v5739_v38  ;;  %v6709_v35 = vmul.f32 %v10048_v22, %v16252_v61  ;;  %v14330_v29 = vld [vmem:[#allocation3 + $0x20] sm:$0xff]  }
 0x3c3   : > { %v14291_v24 = vpop.f32.mrf.mxu1  ;;  %v6214_v26 = vsel %vm1220_vm4, %v6204_v17, %v6213_v18  ;;  %v10055_v18 = vunpack.c.l.bf16 %v14330_v29 }
 0x3c4   : > { %v5745_v2 = vshll.u32 %v5635_v39, 16 }
 0x3c5   : > { %9164 = vmatmul.msk.bf16.gmra.mxu3 %vm5089_vm9, %v14241_v23 }
 0x3c6   : > { %v5475_v7 = vpop.f32.mrf.mxu2  ;;  %9253 = vmatmul.msk.bf16.gmra.mxu1 %vm5089_vm9, %v9473_v57  ;;  %v5747_v49 = vrot.slane %v5745_v2, 1  ;;  %v6740_v57 = vpack.c.bf16 %v6708_v50, %v6707_v52 }
 0x3c7   : > { %v14301_v33 = vadd.f32 %v5475_v7, %v14172_v53  ;;  %v16251_v53 = vld [vmem:[#allocation32_spill] sm:$0xff] }
 0x3c8   : > { %v5843_v15 = vpop.f32.mrf.mxu3  ;;  %v6710_v7 = vmul.f32 %v10051_v28, %v16251_v53  ;;  %v6762_v2 = vshll.u32 %v6740_v57, 16 }
 0x3c9   : > { %v14306_v23 = vadd.f32 %v5843_v15, %v14023_v14  ;;  %v5748_v14 = vsel %vm2080_vm6, %v5743_v13, %v5747_v49  ;;  %v14318_v15 = vpop.f32.mrf.mxu0 }
 0x3ca   : > { %16253 = vst [vmem:[#allocation96_spill] sm:$0xff] %v14318_v15  ;;  %v14321_v40 = vpack.c.bf16 %v6710_v7, %v6709_v35  ;;  %v6764_v5 = vrot.slane %v6762_v2, 1  ;;  %v16255_v7 = vld [vmem:[#allocation126_spill] sm:$0xff]  ;;  %v6760_v35 = vshrl.u32 %v6740_v57, 16  ;;  %v10052_v2 = vunpack.c.h.bf16 %v14287_v47  ;;  %v16258_v47 = vld [vmem:[#allocation37_spill] sm:$0xff] }
 0x3cb   : > { %9152 = vmatmul.msk.bf16.gmra.mxu2 %vm5089_vm9, %v5382_v34  ;;  %v14315_v44 = vpop.f32.mrf.mxu1  ;;  %9186 = vmatmul.msk.bf16.gmra.mxu0 %vm5089_vm9, %v6214_v26  ;;  %v16254_v34 = vld [vmem:[#allocation51_spill] sm:$0xff] }
 0x3cc   : > { %v6767_v17 = vshll.u32 %v14321_v40, 16  ;;  %v5617_v52 = vmul.f32 %v14094_v60, %v16254_v34  ;;  %v6765_v60 = vor.u32 %v6764_v5, %v6760_v35  ;;  %v16259_v5 = vld [vmem:[#allocation27_spill] sm:$0xff]  ;;  %v16260_v35 = vld [vmem:[#allocation28_spill] sm:$0xff] }
 0x3ce   : > { %v5478_v51 = vpop.f32.mrf.mxu2  ;;  %v6769_v26 = vrot.slane %v6767_v17, 1  ;;  %v6711_v17 = vmul.f32 %v10052_v2, %v16258_v47  ;;  %v9475_v47 = vld [vmem:[#allocation3 + $0x24] sm:$0xff] }
 0x3cf   : > { %v14324_v30 = vadd.f32 %v5478_v51, %v14201_v25  ;;  %v5618_v25 = vmul.f32 %v14182_v58, %v16255_v7  ;;  %v16257_v58 = vld [vmem:[#allocation38_spill] sm:$0xff] }
 0x3d0   : > { %v5845_v38 = vpop.f32.mrf.mxu3  ;;  %v6712_v8 = vmul.f32 %v10055_v18, %v16257_v58  ;;  %v7132_v58 = vmul.f32 %v10052_v2, %v16260_v35  ;;  %v16263_v35 = vld [vmem:[#allocation34_spill] sm:$0xff] }
 0x3d1   : > { %v14327_v50 = vadd.f32 %v5845_v38, %v14054_v59  ;;  %v9474_v59 = vld [vmem:[#allocation3 + $0x1c] sm:$0xff]  ;;  %v14344_v38 = vpack.c.bf16 %v5618_v25, %v5617_v52  ;;  %v14346_v61 = vpop.f32.mrf.mxu0 }
 0x3d2   : > { %16256 = vst [vmem:[#allocation97_spill] sm:$0xff] %v14346_v61  ;;  %v14363_v61 = vpack.c.bf16 %v6712_v8, %v6711_v17 }
 0x3d3   : > { %v14332_v22 = vpop.f32.mrf.mxu1  ;;  %v5753_v19 = vshll.u32 %v14344_v38, 16 }
 0x3d5   : > { %9165 = vmatmul.msk.bf16.gmra.mxu3 %vm5089_vm9, %v5740_v55  ;;  %v5749_v55 = vshrl.u32 %v5635_v39, 16  ;;  %v14357_v25 = vrot.slane %v5753_v19, 1  ;;  %v10056_v19 = vunpack.c.h.bf16 %v14330_v29  ;;  %v6771_v29 = vshrl.u32 %v14321_v40, 16 }
 0x3d6   : > { %v5480_v13 = vpop.f32.mrf.mxu2  ;;  %9254 = vmatmul.msk.bf16.gmra.mxu1 %vm5089_vm9, %v9474_v59  ;;  %v7131_v59 = vmul.f32 %v10051_v28, %v16259_v5  ;;  %v6775_v28 = vshll.u32 %v14363_v61, 16 }
 0x3d7   : > { %v14341_v51 = vadd.f32 %v5480_v13, %v14233_v48  ;;  %v6770_v48 = vsel %vm2080_vm6, %v6765_v60, %v6769_v26  ;;  %v5751_v52 = vor.u32 %v5749_v55, %v5747_v49  ;;  %v9488_v13 = vld [vmem:[#allocation3 + $0x14] sm:$0xff] }
 0x3d8   : > { %v5848_v53 = vpop.f32.mrf.mxu3  ;;  %v7163_v49 = vpack.c.bf16 %v7132_v58, %v7131_v59  ;;  %v6777_v58 = vrot.slane %v6775_v28, 1  ;;  %v16264_v28 = vld [vmem:[#allocation48_spill] sm:$0xff] }
 0x3d9   : > { %v14352_v57 = vadd.f32 %v5848_v53, %v14090_v41  ;;  %v5756_v41 = vsel %vm2080_vm6, %v5751_v52, %v14357_v25  ;;  %v14373_v2 = vpop.f32.mrf.mxu0 }
 0x3da   : > { %16261 = vst [vmem:[#allocation120_spill] sm:$0xff] %v14373_v2  ;;  %v7190_v17 = vshrl.u32 %v7163_v49, 16  ;;  %v7193_v52 = vshll.u32 %v7163_v49, 16  ;;  %v6773_v49 = vor.u32 %v6771_v29, %v6769_v26  ;;  %v9489_v26 = vld [vmem:[#allocation3 + $0x1c] sm:$0xff] }
 0x3db   : > { %9269 = vmatmul.msk.bf16.vlgmr.msra.gmra.mxu2 %vm5089_vm9, %v6770_v48  ;;  %v14361_v39 = vpop.f32.mrf.mxu1  ;;  %9367 = vmatmul.msk.bf16.vlgmr.msra.gmra.mxu0 %vm5089_vm9, %v9488_v13  ;;  %v14378_v48 = vld [vmem:[#allocation3 + $0x28] sm:$0xff]   ;;  %v16262_v13 = vld [vmem:[#allocation33_spill] sm:$0xff] }
 0x3dc   : > { %v7133_v5 = vmul.f32 %v10055_v18, %v16262_v13  ;;  %v7192_v18 = vrot.slane %v7190_v17, 3  ;;  %v7195_v13 = vrot.slane %v7193_v52, 4  ;;  %v6778_v40 = vsel %vm2080_vm6, %v6773_v49, %v6777_v58 }
 0x3de   : > { %v5483_v53 = vpop.f32.mrf.mxu2  ;;  %v14400_v52 = vor.u32 %v7195_v13, %v7192_v18 }
 0x3df   : > { %v14369_v60 = vadd.f32 %v5483_v53, %v14250_v56  ;;  %v7134_v56 = vmul.f32 %v10056_v19, %v16263_v35 }
 0x3e0   : > { %v5850_v55 = vpop.f32.mrf.mxu3 }
 0x3e1   : > { %v14376_v8 = vadd.f32 %v5850_v55, %v14135_v36  ;;  %v10059_v36 = vunpack.c.l.bf16 %v14378_v48  ;;  %v7164_v55 = vpack.c.bf16 %v7134_v56, %v7133_v5 }
 0x3e3   : > { %v14382_v53 = vpop.f32.mrf.mxu1  ;;  %v7199_v35 = vshrl.u32 %v7164_v55, 16  ;;  %v7202_v15 = vshll.u32 %v7164_v55, 16  ;;  %v6714_v7 = vmul.f32 %v10059_v36, %v16264_v28 }
 0x3e5   : > { %9166 = vmatmul.msk.bf16.gmra.mxu3 %vm5089_vm9, %v5748_v14  ;;  %v7201_v45 = vrot.slane %v7199_v35, 3  ;;  %v7204_v5 = vrot.slane %v7202_v15, 4  ;;  %v14419_v35 = vld [vmem:[#allocation3 + $0x30] sm:$0xff]  }
 0x3e6   : > { %v5485_v59 = vpop.f32.mrf.mxu2  ;;  %9255 = vmatmul.msk.bf16.gmra.mxu1 %vm5089_vm9, %v9475_v47  ;;  %v16266_v47 = vld [vmem:[#allocation47_spill] sm:$0xff] }
 0x3e7   : > { %v14388_v2 = vadd.f32 %v5485_v59, %v14277_v20  ;;  %v14397_v20 = vpop.f32.mrf.mxu0  ;;  %v6713_v17 = vmul.f32 %v10056_v19, %v16266_v47  ;;  %v7205_v56 = vor.u32 %v7204_v5, %v7201_v45  ;;  %v5554_v59 = vld [vmem:[#allocation3 + $0x80] sm:$0xf]  ;;  %v10060_v19 = vunpack.c.h.bf16 %v14378_v48  ;;  %v16269_v5 = vld [vmem:[#allocation44_spill] sm:$0xff] }
 0x3e8   : > { %v5853_v34 = vpop.f32.mrf.mxu3  ;;  %16265 = vst [vmem:[#allocation109_spill] sm:$0xff] %v14397_v20  ;;  %v5587_v18 = vunpack.c.l.bf16 %v5554_v59  ;;  %v16270_v47 = vld [vmem:[#allocation60_spill] sm:$0xff] }
 0x3e9   : > { %v14393_v14 = vadd.f32 %v5853_v34, %v14180_v27  ;;  %v14405_v34 = vpack.c.bf16 %v6714_v7, %v6713_v17  ;;  %v14409_v15 = vsel %vm1220_vm4, %v14400_v52, %v7205_v56  ;;  %v16268_v7 = vld [vmem:[#allocation43_spill] sm:$0xff] }
 0x3ea   : > { %v9476_v59 = vld [vmem:[#allocation3 + $0x2c] sm:$0xff] }
 0x3eb   : > { %9270 = vmatmul.msk.bf16.gmra.mxu2 %vm5089_vm9, %v6778_v40  ;;  %v14402_v29 = vpop.f32.mrf.mxu1  ;;  %9368 = vmatmul.msk.bf16.gmra.mxu0 %vm5089_vm9, %v9489_v26  ;;  %v6783_v13 = vshll.u32 %v14405_v34, 16  ;;  %v7135_v40 = vmul.f32 %v10059_v36, %v16268_v7  ;;  %v7136_v26 = vmul.f32 %v10060_v19, %v16269_v5  ;;  %v16272_v7 = vld [vmem:[#allocation131_spill] sm:$0xff] }
 0x3ec   : > { %v5619_v5 = vmul.f32 %v14184_v54, %v16272_v7  ;;  %v16274_v54 = vld [vmem:[#allocation59_spill] sm:$0xff] }
 0x3ed   : > { %v6785_v28 = vrot.slane %v6783_v13, 1  ;;  %v7165_v20 = vpack.c.bf16 %v7136_v26, %v7135_v40  ;;  %v6715_v26 = vmul.f32 %v10060_v19, %v16274_v54  ;;  %v10064_v19 = vunpack.c.h.bf16 %v14419_v35 }
 0x3ee   : > { %v5488_v27 = vpop.f32.mrf.mxu2 }
 0x3ef   : > { %v14412_v55 = vadd.f32 %v5488_v27, %v14291_v24  ;;  %v5620_v24 = vmul.f32 %v5587_v18, %v16270_v47  ;;  %v10063_v27 = vunpack.c.l.bf16 %v14419_v35  ;;  %v14427_v48 = vpop.f32.mrf.mxu0  ;;  %v7208_v47 = vshrl.u32 %v7165_v20, 16 }
 0x3f0   : > { %v5855_v49 = vpop.f32.mrf.mxu3  ;;  %16271 = vst [vmem:[#allocation102_spill] sm:$0xff] %v14427_v48 }
 0x3f1   : > { %v14416_v45 = vadd.f32 %v5855_v49, %v14215_v43  ;;  %v6779_v49 = vshrl.u32 %v14363_v61, 16  ;;  %v14437_v0 = vpack.c.bf16 %v5620_v24, %v5619_v5 }
 0x3f3   : > { %16267 = vst [vmem:[#allocation111_spill] sm:$0xff] %v14416_v45  ;;  %v14423_v17 = vpop.f32.mrf.mxu1  ;;  %v6781_v18 = vor.u32 %v6779_v49, %v6777_v58  ;;  %v7211_v45 = vshll.u32 %v7165_v20, 16  ;;  %v5761_v20 = vshll.u32 %v14437_v0, 16 }
 0x3f5   : > { %9167 = vmatmul.msk.bf16.gmra.mxu3 %vm5089_vm9, %v5756_v41  ;;  %v16273_v41 = vld [vmem:[#allocation58_spill] sm:$0xff]  ;;  %v6786_v13 = vsel %vm2080_vm6, %v6781_v18, %v6785_v28  ;;  %v7213_v40 = vrot.slane %v7211_v45, 4  ;;  %v5757_v18 = vshrl.u32 %v14344_v38, 16  ;;  %v6787_v38 = vshrl.u32 %v14405_v34, 16 }
 0x3f6   : > { %v5490_v43 = vpop.f32.mrf.mxu2  ;;  %9256 = vmatmul.msk.bf16.gmra.mxu1 %vm5089_vm9, %v9476_v59  ;;  %v6716_v32 = vmul.f32 %v10063_v27, %v16273_v41 }
 0x3f7   : > { %v14432_v36 = vadd.f32 %v5490_v43, %v14315_v44  ;;  %v7210_v44 = vrot.slane %v7208_v47, 3  ;;  %v9490_v43 = vld [vmem:[#allocation3 + $0x24] sm:$0xff]  ;;  %v14458_v45 = vpop.f32.mrf.mxu0 }
 0x3f8   : > { %v5858_v48 = vpop.f32.mrf.mxu3  ;;  %v14449_v24 = vpack.c.bf16 %v6716_v32, %v6715_v26  ;;  %16275 = vst [vmem:[#allocation124_spill] sm:$0xff] %v14458_v45  ;;  %v14467_v26 = vld [vmem:[#allocation3 + $0x38] sm:$0xff]  }
 0x3f9   : > { %v14441_v61 = vadd.f32 %v5858_v48, %v14238_v1  ;;  %v7214_v58 = vor.u32 %v7213_v40, %v7210_v44  ;;  %v5555_v48 = vld [vmem:[#allocation3 + $0x84] sm:$0x1]  ;;  %v16279_v45 = vld [vmem:[#allocation129_spill] sm:$0xff] }
 0x3fa   : > { %v6791_v32 = vshll.u32 %v14449_v24, 16  ;;  %v5588_v44 = vunpack.c.l.bf16 %v5555_v48 }
 0x3fb   : > { %9271 = vmatmul.msk.bf16.gmra.mxu2 %vm5089_vm9, %v6786_v13  ;;  %v14446_v59 = vpop.f32.mrf.mxu1  ;;  %9369 = vmatmul.msk.bf16.gmra.mxu0 %vm5089_vm9, %v9490_v43  ;;  %v14453_v49 = vsel %vm1220_vm4, %v7205_v56, %v7214_v58  ;;  %v5763_v13 = vrot.slane %v5761_v20, 1  ;;  %v5759_v56 = vor.u32 %v5757_v18, %v14357_v25  ;;  %v10067_v25 = vunpack.c.l.bf16 %v14467_v26 }
 0x3fc   : > { %v6793_v20 = vrot.slane %v6791_v32, 1  ;;  %v5621_v48 = vmul.f32 %v5588_v44, %v16279_v45 }
 0x3fd   : > { %v5764_v35 = vsel %vm2080_vm6, %v5759_v56, %v5763_v13  ;;  %v6718_v45 = vmul.f32 %v10067_v25, %v16185_v46 }
 0x3fe   : > { %v5493_v1 = vpop.f32.mrf.mxu2  ;;  %v5638_v32 = vpack.c.bf16 %v5621_v48, %v5621_v48 }
 0x3ff   : > { %v14456_v47 = vadd.f32 %v5493_v1, %v14332_v22  ;;  %v16277_v22 = vld [vmem:[#allocation52_spill] sm:$0xff]  ;;  %v16278_v1 = vld [vmem:[#allocation53_spill] sm:$0xff]  ;;  %v14483_v44 = vpop.f32.mrf.mxu0 }
 0x400   : > { %v5860_v5 = vpop.f32.mrf.mxu3  ;;  %v7137_v43 = vmul.f32 %v10063_v27, %v16277_v22  ;;  %v7138_v54 = vmul.f32 %v10064_v19, %v16278_v1  ;;  %v6789_v22 = vor.u32 %v6787_v38, %v6785_v28  ;;  %16280 = vst [vmem:[#allocation55_spill] sm:$0xff] %v14483_v44  ;;  %v16282_v28 = vld [vmem:[#allocation66_spill] sm:$0xff] }
 0x401   : > { %v14464_v40 = vadd.f32 %v5860_v5, %v14262_v10  ;;  %v9477_v5 = vld [vmem:[#allocation3 + $0x34] sm:$0xff]  ;;  %v6717_v38 = vmul.f32 %v10064_v19, %v16282_v28  ;;  %v10068_v19 = vunpack.c.h.bf16 %v14467_v26  ;;  %v16287_v26 = vld [vmem:[#allocation62_spill] sm:$0xff] }
 0x402   : > { %v7166_v18 = vpack.c.bf16 %v7138_v54, %v7137_v43  ;;  %v6794_v34 = vsel %vm2080_vm6, %v6789_v22, %v6793_v20  ;;  %v5769_v22 = vshll.u32 %v5638_v32, 16  ;;  %v16284_v28 = vld [vmem:[#allocation24_spill] sm:$0xff] }
 0x403   : > { %16276 = vst [vmem:[#allocation63_spill] sm:$0xff] %v14464_v40  ;;  %v14471_v41 = vpop.f32.mrf.mxu1  ;;  %v14494_v44 = vpack.c.bf16 %v6718_v45, %v6717_v38  ;;  %v14508_v38 = vld [vmem:[#allocation3 + $0x40] sm:$0xff]  }
 0x404   : > { %v7217_v1 = vshrl.u32 %v7166_v18, 16  ;;  %v7220_v56 = vshll.u32 %v7166_v18, 16 }
 0x405   : > { %9168 = vmatmul.msk.bf16.gmra.mxu3 %vm5089_vm9, %v5764_v35  ;;  %v6799_v45 = vshll.u32 %v14494_v44, 16 }
 0x406   : > { %v5495_v10 = vpop.f32.mrf.mxu2  ;;  %9257 = vmatmul.msk.bf16.gmra.mxu1 %vm5089_vm9, %v9477_v5  ;;  %v7219_v54 = vrot.slane %v7217_v1, 3  ;;  %v7222_v43 = vrot.slane %v7220_v56, 4 }
 0x407   : > { %v14479_v27 = vadd.f32 %v5495_v10, %v14361_v39  ;;  %v9491_v39 = vld [vmem:[#allocation3 + $0x2c] sm:$0xff]  ;;  %v7064_v10 = vld [vmem:[#allocation3 + $0x14] sm:$0xf] }
 0x408   : > { %v5863_v7 = vpop.f32.mrf.mxu3  ;;  %v7223_v5 = vor.u32 %v7222_v43, %v7219_v54  ;;  %v7097_v56 = vunpack.c.l.bf16 %v7064_v10  ;;  %v5765_v54 = vshrl.u32 %v14437_v0, 16  ;;  %v5771_v43 = vrot.slane %v5769_v22, 1  ;;  %v16286_v10 = vld [vmem:[#allocation61_spill] sm:$0xff]  ;;  %v16288_v22 = vld [vmem:[#allocation22_spill] sm:$0xff] }
 0x409   : > { %v14486_v35 = vadd.f32 %v5863_v7, %v14282_v21  ;;  %v7063_v21 = vld [vmem:[#allocation3 + $0x10] sm:$0x8] }
 0x40a   : > { %v14497_v7 = vsel %vm1220_vm4, %v7214_v58, %v7223_v5  ;;  %v7096_v32 = vunpack.c.l.bf16 %v7063_v21  ;;  %v5767_v58 = vor.u32 %v5765_v54, %v5763_v13  ;;  %v7130_v46 = vmul.f32 %v7097_v56, %v16284_v28  ;;  %v9478_v13 = vld [vmem:[#allocation3 + $0x3c] sm:$0xff] }
 0x40b   : > { %16281 = vst [vmem:[#allocation128_spill] sm:$0xff] %v14486_v35  ;;  %9272 = vmatmul.msk.bf16.gmra.mxu2 %vm5089_vm9, %v6794_v34  ;;  %v14491_v18 = vpop.f32.mrf.mxu1  ;;  %9370 = vmatmul.msk.bf16.gmra.mxu0 %vm5089_vm9, %v9491_v39  ;;  %v7140_v35 = vmul.f32 %v10068_v19, %v16287_v26  ;;  %v10071_v21 = vunpack.c.l.bf16 %v14508_v38  ;;  %v6795_v28 = vshrl.u32 %v14449_v24, 16  ;;  %v6801_v56 = vrot.slane %v6799_v45, 1 }
 0x40c   : > { %v5772_v0 = vsel %vm2080_vm6, %v5767_v58, %v5771_v43 }
 0x40d   : > { %v6797_v26 = vor.u32 %v6795_v28, %v6793_v20 }
 0x40e   : > { %v5498_v48 = vpop.f32.mrf.mxu2 }
 0x40f   : > { %v14500_v1 = vadd.f32 %v5498_v48, %v14382_v53  ;;  %v14511_v53 = vpop.f32.mrf.mxu0  ;;  %v7139_v48 = vmul.f32 %v10067_v25, %v16286_v10 }
 0x410   : > { %v5865_v34 = vpop.f32.mrf.mxu3  ;;  %16285 = vst [vmem:[#allocation132_spill] sm:$0xff] %v14511_v53 }
 0x411   : > { %v14505_v39 = vadd.f32 %v5865_v34, %v14301_v33  ;;  %v7129_v33 = vmul.f32 %v7096_v32, %v16288_v22  ;;  %v7167_v54 = vpack.c.bf16 %v7140_v35, %v7139_v48  ;;  %v16289_v22 = vld [vmem:[#allocation75_spill] sm:$0xff] }
 0x412   : > { %v6720_v53 = vmul.f32 %v10071_v21, %v16289_v22 }
 0x413   : > { %16283 = vst [vmem:[#allocation100_spill] sm:$0xff] %v14505_v39  ;;  %v14515_v40 = vpop.f32.mrf.mxu1  ;;  %v7162_v10 = vpack.c.bf16 %v7130_v46, %v7129_v33  ;;  %v7226_v43 = vshrl.u32 %v7167_v54, 16  ;;  %v7229_v58 = vshll.u32 %v7167_v54, 16  ;;  %v6802_v39 = vsel %vm2080_vm6, %v6797_v26, %v6801_v56  ;;  %v16290_v46 = vld [vmem:[#allocation74_spill] sm:$0xff]  ;;  %v9492_v33 = vld [vmem:[#allocation3 + $0x34] sm:$0xff] }
 0x414   : > { %v6719_v48 = vmul.f32 %v10068_v19, %v16290_v46  ;;  %v10072_v19 = vunpack.c.h.bf16 %v14508_v38  ;;  %v6803_v38 = vshrl.u32 %v14494_v44, 16 }
 0x415   : > { %9169 = vmatmul.msk.bf16.gmra.mxu3 %vm5089_vm9, %v5772_v0  ;;  %v7228_v24 = vrot.slane %v7226_v43, 3  ;;  %v7231_v45 = vrot.slane %v7229_v58, 4  ;;  %v7185_v35 = vshll.u32 %v7162_v10, 16 }
 0x416   : > { %v5500_v34 = vpop.f32.mrf.mxu2  ;;  %9258 = vmatmul.msk.bf16.gmra.mxu1 %vm5089_vm9, %v9478_v13  ;;  %v14535_v13 = vpack.c.bf16 %v6720_v53, %v6719_v48 }
 0x417   : > { %v14523_v25 = vadd.f32 %v5500_v34, %v14402_v29  ;;  %v7182_v29 = vshrl.u32 %v7162_v10, 16  ;;  %v7232_v20 = vor.u32 %v7231_v45, %v7228_v24  ;;  %v14537_v28 = vpop.f32.mrf.mxu0  ;;  %v7187_v26 = vrot.slane %v7185_v35, 4  ;;  %v14551_v24 = vld [vmem:[#allocation3 + $0x48] sm:$0xff]  }
 0x418   : > { %v5868_v32 = vpop.f32.mrf.mxu3  ;;  %v6807_v58 = vshll.u32 %v14535_v13, 16  ;;  %v16291_v45 = vld [vmem:[#allocation71_spill] sm:$0xff] }
 0x419   : > { %v14528_v0 = vadd.f32 %v5868_v32, %v14324_v30  ;;  %v14541_v54 = vsel %vm1220_vm4, %v7223_v5, %v7232_v20  ;;  %v7184_v10 = vrot.slane %v7182_v29, 3  ;;  %v7141_v48 = vmul.f32 %v10071_v21, %v16291_v45  ;;  %v16292_v5 = vld [vmem:[#allocation69_spill] sm:$0xff] }
 0x41a   : > { %v6809_v29 = vrot.slane %v6807_v58, 1  ;;  %v6805_v21 = vor.u32 %v6803_v38, %v6801_v56  ;;  %v16294_v56 = vld [vmem:[#allocation82_spill] sm:$0xff] }
 0x41b   : > { %9273 = vmatmul.msk.bf16.gmra.mxu2 %vm5089_vm9, %v6802_v39  ;;  %v14533_v34 = vpop.f32.mrf.mxu1  ;;  %9371 = vmatmul.msk.bf16.gmra.mxu0 %vm5089_vm9, %v9492_v33  ;;  %v7188_v32 = vor.u32 %v7187_v26, %v7184_v10  ;;  %v7142_v33 = vmul.f32 %v10072_v19, %v16292_v5 }
 0x41c   : > { %v6810_v44 = vsel %vm2080_vm6, %v6805_v21, %v6809_v29 }
 0x41d   : > { %v7168_v10 = vpack.c.bf16 %v7142_v33, %v7141_v48  ;;  %v6721_v33 = vmul.f32 %v10072_v19, %v16294_v56 }
 0x41e   : > { %v5503_v30 = vpop.f32.mrf.mxu2 }
 0x41f   : > { %v14544_v39 = vadd.f32 %v5503_v30, %v14423_v17  ;;  %v7197_v17 = vsel %vm1220_vm4, %v7188_v32, %v14400_v52  ;;  %v10075_v30 = vunpack.c.l.bf16 %v14551_v24  ;;  %v7235_v45 = vshrl.u32 %v7168_v10, 16 }
 0x420   : > { %v5870_v43 = vpop.f32.mrf.mxu3  ;;  %v7238_v52 = vshll.u32 %v7168_v10, 16 }
 0x421   : > { %v14549_v53 = vadd.f32 %v5870_v43, %v14341_v51  ;;  %v9479_v51 = vld [vmem:[#allocation3 + $0x44] sm:$0xff]  ;;  %v14565_v43 = vpop.f32.mrf.mxu0  ;;  %v6722_v5 = vmul.f32 %v10075_v30, %v16205_v63  ;;  %v6811_v63 = vshrl.u32 %v14535_v13, 16 }
 0x422   : > { %16293 = vst [vmem:[#allocation108_spill] sm:$0xff] %v14565_v43  ;;  %v7240_v48 = vrot.slane %v7238_v52, 4 }
 0x423   : > { %v14555_v46 = vpop.f32.mrf.mxu1  ;;  %v14578_v10 = vpack.c.bf16 %v6722_v5, %v6721_v33  ;;  %v16296_v5 = vld [vmem:[#allocation64_spill] sm:$0xff]  ;;  %v16298_v33 = vld [vmem:[#allocation78_spill] sm:$0xff] }
 0x425   : > { %9286 = vmatmul.msk.bf16.vlgmr.msra.gmra.mxu3 %vm5089_vm9, %v7197_v17  ;;  %v7237_v17 = vrot.slane %v7235_v45, 3  ;;  %v10076_v45 = vunpack.c.h.bf16 %v14551_v24 }
 0x426   : > { %v5505_v35 = vpop.f32.mrf.mxu2  ;;  %9259 = vmatmul.msk.bf16.gmra.mxu1 %vm5089_vm9, %v9479_v51 }
 0x427   : > { %v14563_v26 = vadd.f32 %v5505_v35, %v14446_v59  ;;  %v9493_v59 = vld [vmem:[#allocation3 + $0x3c] sm:$0xff]  ;;  %v7241_v38 = vor.u32 %v7240_v48, %v7237_v17  ;;  %v14593_v17 = vld [vmem:[#allocation3 + $0x50] sm:$0xff]   ;;  %v6355_v48 = vadd.f32 %v16296_v5, %v14223_v42 }
 0x428   : > { %v5873_v32 = vpop.f32.mrf.mxu3  ;;  %v10079_v24 = vunpack.c.l.bf16 %v14593_v17 }
 0x429   : > { %v14570_v58 = vadd.f32 %v5873_v32, %v14369_v60  ;;  %v14581_v60 = vsel %vm1220_vm4, %v7232_v20, %v7241_v38  ;;  %v14587_v32 = vpop.f32.mrf.mxu0  ;;  %v16297_v20 = vld [vmem:[#allocation77_spill] sm:$0xff] }
 0x42a   : > { %16295 = vst [vmem:[#allocation115_spill] sm:$0xff] %v14587_v32 }
 0x42b   : > { %9274 = vmatmul.msk.bf16.gmra.mxu2 %vm5089_vm9, %v6810_v44  ;;  %v14575_v35 = vpop.f32.mrf.mxu1  ;;  %9372 = vmatmul.msk.bf16.gmra.mxu0 %vm5089_vm9, %v9493_v59  ;;  %v6815_v44 = vshll.u32 %v14578_v10, 16  ;;  %v7143_v59 = vmul.f32 %v10075_v30, %v16297_v20  ;;  %v6813_v30 = vor.u32 %v6811_v63, %v6809_v29  ;;  %v16299_v63 = vld [vmem:[#allocation105_spill] sm:$0xff] }
 0x42c   : > { %v6356_v29 = vadd.f32 %v16299_v63, %v14248_v31 }
 0x42d   : > { %v6817_v22 = vrot.slane %v6815_v44, 1 }
 0x42e   : > { %v5508_v51 = vpop.f32.mrf.mxu2 }
 0x42f   : > { %v14584_v21 = vadd.f32 %v5508_v51, %v14471_v41  ;;  %v7144_v41 = vmul.f32 %v10076_v45, %v16298_v33 }
 0x430   : > { %v5875_v52 = vpop.f32.mrf.mxu3 }
 0x431   : > { %v14590_v19 = vadd.f32 %v5875_v52, %v14388_v2  ;;  %v9480_v52 = vld [vmem:[#allocation3 + $0x4c] sm:$0xff]  ;;  %v7169_v32 = vpack.c.bf16 %v7144_v41, %v7143_v59  ;;  %v14616_v44 = vpop.f32.mrf.mxu0  ;;  %v9494_v59 = vld [vmem:[#allocation3 + $0x44] sm:$0xff] }
 0x433   : > { %v6529_v51 = vpop.f32.mrf.mxu1  ;;  %v7244_v5 = vshrl.u32 %v7169_v32, 16  ;;  %v7247_v20 = vshll.u32 %v7169_v32, 16 }
 0x434   : > { %v14600_v56 = vadd.f32 %v6529_v51, %v6355_v48  ;;  %v6724_v48 = vmul.f32 %v10079_v24, %v16215_v3  ;;  %v16355_v3 = vld [vmem:[#allocation26_spill] sm:$0xff] }
 0x435   : > { %9287 = vmatmul.msk.bf16.gmra.mxu3 %vm5089_vm9, %v14409_v15  ;;  %v6818_v15 = vsel %vm2080_vm6, %v6813_v30, %v6817_v22  ;;  %v7246_v43 = vrot.slane %v7244_v5, 3  ;;  %v7249_v13 = vrot.slane %v7247_v20, 4  ;;  %v10080_v5 = vunpack.c.h.bf16 %v14593_v17 }
 0x436   : > { %v5510_v2 = vpop.f32.mrf.mxu2  ;;  %9260 = vmatmul.msk.bf16.gmra.mxu1 %vm5089_vm9, %v9480_v52 }
 0x437   : > { %v14606_v42 = vadd.f32 %v5510_v2, %v14491_v18  ;;  %v6723_v18 = vmul.f32 %v10076_v45, %v16216_v37  ;;  %v7250_v32 = vor.u32 %v7249_v13, %v7246_v43  ;;  %v16301_v13 = vld [vmem:[#allocation13_spill] sm:$0xff] }
 0x438   : > { %v5878_v33 = vpop.f32.mrf.mxu3 }
 0x439   : > { %v14611_v51 = vadd.f32 %v5878_v33, %v14412_v55  ;;  %v14620_v2 = vpack.c.bf16 %v6724_v48, %v6723_v18  ;;  %v14626_v30 = vsel %vm1220_vm4, %v7241_v38, %v7250_v32  ;;  %v14636_v33 = vld [vmem:[#allocation3 + $0x58] sm:$0xff]   ;;  %v16300_v48 = vld [vmem:[#allocation56_spill] sm:$0xff]  ;;  %v7145_v18 = vmul.f32 %v10079_v24, %v16301_v13  ;;  %v16302_v38 = vld [vmem:[#allocation14_spill] sm:$0xff]  ;;  %v14643_v17 = vpop.f32.mrf.mxu0 }
 0x43b   : > { %9275 = vmatmul.msk.bf16.gmra.mxu2 %vm5089_vm9, %v6818_v15  ;;  %v6531_v41 = vpop.f32.mrf.mxu1  ;;  %9373 = vmatmul.msk.bf16.gmra.mxu0 %vm5089_vm9, %v9494_v59  ;;  %v6823_v31 = vshll.u32 %v14620_v2, 16  ;;  %v6357_v15 = vadd.f32 %v16300_v48, %v14272_v12  ;;  %v7146_v59 = vmul.f32 %v10080_v5, %v16302_v38 }
 0x43c   : > { %v14623_v55 = vadd.f32 %v6531_v41, %v6356_v29 }
 0x43d   : > { %v6825_v29 = vrot.slane %v6823_v31, 1  ;;  %v7170_v12 = vpack.c.bf16 %v7146_v59, %v7145_v18  ;;  %v9495_v18 = vld [vmem:[#allocation3 + $0x4c] sm:$0xff]  ;;  %v16304_v59 = vld [vmem:[#allocation98_spill] sm:$0xff] }
 0x43e   : > { %v5513_v52 = vpop.f32.mrf.mxu2 }
 0x43f   : > { %v14629_v45 = vadd.f32 %v5513_v52, %v14515_v40  ;;  %v6819_v40 = vshrl.u32 %v14578_v10, 16  ;;  %v9481_v52 = vld [vmem:[#allocation3 + $0x54] sm:$0xff]  ;;  %v7253_v10 = vshrl.u32 %v7170_v12, 16  ;;  %v7256_v31 = vshll.u32 %v7170_v12, 16 }
 0x440   : > { %v5880_v20 = vpop.f32.mrf.mxu3 }
 0x441   : > { %v14634_v43 = vadd.f32 %v5880_v20, %v14432_v36  ;;  %v10083_v20 = vunpack.c.l.bf16 %v14636_v33  ;;  %v6821_v48 = vor.u32 %v6819_v40, %v6817_v22  ;;  %v7258_v37 = vrot.slane %v7256_v31, 4 }
 0x442   : > { %v6725_v40 = vmul.f32 %v10080_v5, %v16304_v59 }
 0x443   : > { %v6534_v63 = vpop.f32.mrf.mxu1 }
 0x444   : > { %v14645_v41 = vadd.f32 %v6534_v63, %v6357_v15  ;;  %v6826_v15 = vsel %vm2080_vm6, %v6821_v48, %v6825_v29  ;;  %v7255_v63 = vrot.slane %v7253_v10, 3 }
 0x445   : > { %9288 = vmatmul.msk.bf16.gmra.mxu3 %vm5089_vm9, %v14453_v49  ;;  %v6726_v49 = vmul.f32 %v10083_v20, %v16225_v9 }
 0x446   : > { %v5515_v36 = vpop.f32.mrf.mxu2  ;;  %9261 = vmatmul.msk.bf16.gmra.mxu1 %vm5089_vm9, %v9481_v52 }
 0x447   : > { %v14651_v24 = vadd.f32 %v5515_v36, %v14533_v34  ;;  %v16303_v34 = vld [vmem:[#allocation72_spill] sm:$0xff]  ;;  %v7259_v36 = vor.u32 %v7258_v37, %v7255_v63  ;;  %v14666_v48 = vpack.c.bf16 %v6726_v49, %v6725_v40  ;;  %v14681_v63 = vld [vmem:[#allocation3 + $0x60] sm:$0xff]  }
 0x448   : > { %v5883_v13 = vpop.f32.mrf.mxu3  ;;  %v6358_v22 = vadd.f32 %v16303_v34, %v14285_v11  ;;  %v10084_v11 = vunpack.c.h.bf16 %v14636_v33  ;;  %v16305_v49 = vld [vmem:[#allocation30_spill] sm:$0xff] }
 0x449   : > { %v14656_v38 = vadd.f32 %v5883_v13, %v14456_v47  ;;  %v14669_v10 = vsel %vm1220_vm4, %v7250_v32, %v7259_v36  ;;  %v14674_v13 = vpop.f32.mrf.mxu0  ;;  %v16306_v32 = vld [vmem:[#allocation11_spill] sm:$0xff]  ;;  %v9482_v33 = vld [vmem:[#allocation3 + $0x5c] sm:$0xff] }
 0x44a   : > { %v7147_v34 = vmul.f32 %v10083_v20, %v16306_v32 }
 0x44b   : > { %9276 = vmatmul.msk.bf16.gmra.mxu2 %vm5089_vm9, %v6826_v15  ;;  %v6536_v52 = vpop.f32.mrf.mxu1  ;;  %9374 = vmatmul.msk.bf16.gmra.mxu0 %vm5089_vm9, %v9495_v18  ;;  %v6831_v15 = vshll.u32 %v14666_v48, 16  ;;  %v6359_v18 = vadd.f32 %v16305_v49, %v14306_v23 }
 0x44c   : > { %v14664_v12 = vadd.f32 %v6536_v52, %v6358_v22  ;;  %v16307_v22 = vld [vmem:[#allocation12_spill] sm:$0xff]  ;;  %v10087_v52 = vunpack.c.l.bf16 %v14681_v63 }
 0x44d   : > { %v6833_v59 = vrot.slane %v6831_v15, 1 }
 0x44e   : > { %v5518_v47 = vpop.f32.mrf.mxu2 }
 0x44f   : > { %v14672_v31 = vadd.f32 %v5518_v47, %v14555_v46  ;;  %v7148_v46 = vmul.f32 %v10084_v11, %v16307_v22 }
 0x450   : > { %v5885_v5 = vpop.f32.mrf.mxu3 }
 0x451   : > { %v14678_v37 = vadd.f32 %v5885_v5, %v14479_v27  ;;  %v6827_v5 = vshrl.u32 %v14620_v2, 16  ;;  %v7171_v9 = vpack.c.bf16 %v7148_v46, %v7147_v34  ;;  %v9496_v46 = vld [vmem:[#allocation3 + $0x54] sm:$0xff] }
 0x453   : > { %v6539_v40 = vpop.f32.mrf.mxu1  ;;  %v6829_v20 = vor.u32 %v6827_v5, %v6825_v29  ;;  %v7262_v49 = vshrl.u32 %v7171_v9, 16  ;;  %v7265_v32 = vshll.u32 %v7171_v9, 16  ;;  %v16308_v29 = vld [vmem:[#allocation94_spill] sm:$0xff] }
 0x454   : > { %v14688_v47 = vadd.f32 %v6539_v40, %v6359_v18  ;;  %v6728_v18 = vmul.f32 %v10087_v52, %v16231_v62  ;;  %v14698_v40 = vpop.f32.mrf.mxu0  ;;  %v6360_v9 = vadd.f32 %v16308_v29, %v14327_v50  ;;  %v16312_v29 = vld [vmem:[#allocation16_spill] sm:$0xff] }
 0x455   : > { %9289 = vmatmul.msk.bf16.gmra.mxu3 %vm5089_vm9, %v14497_v7  ;;  %v6834_v2 = vsel %vm2080_vm6, %v6829_v20, %v6833_v59  ;;  %v7264_v15 = vrot.slane %v7262_v49, 3  ;;  %v7267_v34 = vrot.slane %v7265_v32, 4 }
 0x456   : > { %v5520_v27 = vpop.f32.mrf.mxu2  ;;  %9262 = vmatmul.msk.bf16.gmra.mxu1 %vm5089_vm9, %v9482_v33 }
 0x457   : > { %v14694_v23 = vadd.f32 %v5520_v27, %v14575_v35  ;;  %v6727_v35 = vmul.f32 %v10084_v11, %v16232_v6  ;;  %v7268_v27 = vor.u32 %v7267_v34, %v7264_v15  ;;  %v10088_v11 = vunpack.c.h.bf16 %v14681_v63  ;;  %v16310_v34 = vld [vmem:[#allocation76_spill] sm:$0xff] }
 0x458   : > { %v5888_v22 = vpop.f32.mrf.mxu3  ;;  %v6835_v63 = vshrl.u32 %v14666_v48, 16 }
 0x459   : > { %v14701_v7 = vadd.f32 %v5888_v22, %v14500_v1  ;;  %v14708_v5 = vpack.c.bf16 %v6728_v18, %v6727_v35  ;;  %v14714_v20 = vsel %vm1220_vm4, %v7259_v36, %v7268_v27  ;;  %v14724_v18 = vld [vmem:[#allocation3 + $0x68] sm:$0xff]   ;;  %v6361_v35 = vadd.f32 %v16310_v34, %v14352_v57 }
 0x45a   : > { %v16311_v36 = vld [vmem:[#allocation15_spill] sm:$0xff]  ;;  %v10091_v6 = vunpack.c.l.bf16 %v14724_v18 }
 0x45b   : > { %9277 = vmatmul.msk.bf16.gmra.mxu2 %vm5089_vm9, %v6834_v2  ;;  %v6541_v33 = vpop.f32.mrf.mxu1  ;;  %9375 = vmatmul.msk.bf16.gmra.mxu0 %vm5089_vm9, %v9496_v46  ;;  %v6839_v50 = vshll.u32 %v14708_v5, 16  ;;  %v7149_v46 = vmul.f32 %v10087_v52, %v16311_v36  ;;  %v6837_v52 = vor.u32 %v6835_v63, %v6833_v59 }
 0x45c   : > { %v14711_v1 = vadd.f32 %v6541_v33, %v6360_v9  ;;  %v14726_v15 = vpop.f32.mrf.mxu0 }
 0x45d   : > { %16309 = vst [vmem:[#allocation68_spill] sm:$0xff] %v14726_v15  ;;  %v6841_v33 = vrot.slane %v6839_v50, 1  ;;  %v7790_v15 = vld [vmem:[#allocation3 + $0x90] sm:$0xf] }
 0x45e   : > { %v6951_v22 = vpop.f32.mrf.mxu2 }
 0x45f   : > { %v14717_v49 = vadd.f32 %v6951_v22, %v14600_v56  ;;  %v7150_v56 = vmul.f32 %v10088_v11, %v16312_v29  ;;  %v6842_v50 = vsel %vm2080_vm6, %v6837_v52, %v6841_v33 }
 0x460   : > { %v5890_v32 = vpop.f32.mrf.mxu3 }
 0x461   : > { %v14722_v2 = vadd.f32 %v5890_v32, %v14523_v25  ;;  %v9483_v32 = vld [vmem:[#allocation3 + $0x64] sm:$0xff]  ;;  %v7172_v62 = vpack.c.bf16 %v7150_v56, %v7149_v46  ;;  %v9497_v46 = vld [vmem:[#allocation3 + $0x5c] sm:$0xff]  ;;  %v6729_v56 = vmul.f32 %v10088_v11, %v16239_v4 }
 0x463   : > { %v6544_v9 = vpop.f32.mrf.mxu1  ;;  %v7271_v34 = vshrl.u32 %v7172_v62, 16  ;;  %v7274_v36 = vshll.u32 %v7172_v62, 16 }
 0x464   : > { %v14733_v22 = vadd.f32 %v6544_v9, %v6361_v35 }
 0x465   : > { %9290 = vmatmul.msk.bf16.gmra.mxu3 %vm5089_vm9, %v14541_v54  ;;  %v6730_v54 = vmul.f32 %v10091_v6, %v16240_v16  ;;  %v7273_v29 = vrot.slane %v7271_v34, 3  ;;  %v7276_v9 = vrot.slane %v7274_v36, 4  ;;  %v16322_v16 = vld [vmem:[#allocation111_spill] sm:$0xff] }
 0x466   : > { %v6953_v25 = vpop.f32.mrf.mxu2  ;;  %9263 = vmatmul.msk.bf16.gmra.mxu1 %vm5089_vm9, %v9483_v32 }
 0x467   : > { %v14739_v57 = vadd.f32 %v6953_v25, %v14623_v55  ;;  %v16313_v55 = vld [vmem:[#allocation80_spill] sm:$0xff]  ;;  %v7277_v63 = vor.u32 %v7276_v9, %v7273_v29  ;;  %v14751_v25 = vpop.f32.mrf.mxu0  ;;  %v14756_v52 = vpack.c.bf16 %v6730_v54, %v6729_v56  ;;  %v16315_v9 = vld [vmem:[#allocation85_spill] sm:$0xff] }
 0x468   : > { %v5893_v48 = vpop.f32.mrf.mxu3  ;;  %v6362_v59 = vadd.f32 %v16313_v55, %v14376_v8  ;;  %16314 = vst [vmem:[#allocation110_spill] sm:$0xff] %v14751_v25  ;;  %v10092_v8 = vunpack.c.h.bf16 %v14724_v18  ;;  %v14769_v29 = vld [vmem:[#allocation3 + $0x70] sm:$0xff]   ;;  %v6363_v54 = vadd.f32 %v16315_v9, %v14393_v14 }
 0x469   : > { %v14744_v35 = vadd.f32 %v5893_v48, %v14544_v39  ;;  %v14759_v34 = vsel %vm1220_vm4, %v7268_v27, %v7277_v63  ;;  %v16317_v27 = vld [vmem:[#allocation17_spill] sm:$0xff]  ;;  %v9484_v18 = vld [vmem:[#allocation3 + $0x6c] sm:$0xff] }
 0x46b   : > { %9278 = vmatmul.msk.bf16.gmra.mxu2 %vm5089_vm9, %v6842_v50  ;;  %v6546_v62 = vpop.f32.mrf.mxu1  ;;  %9376 = vmatmul.msk.bf16.gmra.mxu0 %vm5089_vm9, %v9497_v46  ;;  %v6847_v50 = vshll.u32 %v14756_v52, 16  ;;  %v16316_v46 = vld [vmem:[#allocation18_spill] sm:$0xff] }
 0x46c   : > { %v14754_v39 = vadd.f32 %v6546_v62, %v6362_v59  ;;  %v7151_v55 = vmul.f32 %v10091_v6, %v16316_v46  ;;  %v7152_v59 = vmul.f32 %v10092_v8, %v16317_v27 }
 0x46e   : > { %v6956_v32 = vpop.f32.mrf.mxu2  ;;  %v7173_v4 = vpack.c.bf16 %v7152_v59, %v7151_v55 }
 0x46f   : > { %v14762_v36 = vadd.f32 %v6956_v32, %v14645_v41  ;;  %v10095_v41 = vunpack.c.l.bf16 %v14769_v29  ;;  %v6843_v32 = vshrl.u32 %v14708_v5, 16  ;;  %v14784_v6 = vpop.f32.mrf.mxu0 }
 0x470   : > { %v5895_v11 = vpop.f32.mrf.mxu3  ;;  %16319 = vst [vmem:[#allocation92_spill] sm:$0xff] %v14784_v6  ;;  %v7280_v46 = vshrl.u32 %v7173_v4, 16 }
 0x471   : > { %v14766_v48 = vadd.f32 %v5895_v11, %v14563_v26  ;;  %v6849_v11 = vrot.slane %v6847_v50, 1  ;;  %v6845_v9 = vor.u32 %v6843_v32, %v6841_v33 }
 0x472   : > { %v7282_v50 = vrot.slane %v7280_v46, 3 }
 0x473   : > { %v6549_v56 = vpop.f32.mrf.mxu1  ;;  %v6850_v5 = vsel %vm2080_vm6, %v6845_v9, %v6849_v11 }
 0x474   : > { %v14776_v62 = vadd.f32 %v6549_v56, %v6363_v54  ;;  %v7283_v54 = vshll.u32 %v7173_v4, 16  ;;  %v16320_v56 = vld [vmem:[#allocation118_spill] sm:$0xff] }
 0x475   : > { %9291 = vmatmul.msk.bf16.gmra.mxu3 %vm5089_vm9, %v14581_v60 }
 0x476   : > { %16318 = vst [vmem:[#allocation65_spill] sm:$0xff] %v14776_v62  ;;  %v6958_v26 = vpop.f32.mrf.mxu2  ;;  %9264 = vmatmul.msk.bf16.gmra.mxu1 %vm5089_vm9, %v9484_v18  ;;  %v6732_v62 = vmul.f32 %v10095_v41, %v16320_v56  ;;  %v7285_v55 = vrot.slane %v7283_v54, 4  ;;  %v16323_v18 = vld [vmem:[#allocation36_spill] sm:$0xff] }
 0x477   : > { %v14782_v14 = vadd.f32 %v6958_v26, %v14664_v12  ;;  %v16321_v12 = vld [vmem:[#allocation29_spill] sm:$0xff]  ;;  %v9498_v26 = vld [vmem:[#allocation3 + $0x64] sm:$0xff]  ;;  %v6364_v33 = vadd.f32 %v16323_v18, %v16322_v16  ;;  %v16328_v18 = vld [vmem:[#allocation20_spill] sm:$0xff] }
 0x478   : > { %v5898_v27 = vpop.f32.mrf.mxu3  ;;  %v6731_v59 = vmul.f32 %v10092_v8, %v16321_v12  ;;  %v7286_v32 = vor.u32 %v7285_v55, %v7282_v50  ;;  %v10096_v8 = vunpack.c.h.bf16 %v14769_v29  ;;  %v14814_v50 = vld [vmem:[#allocation3 + $0x78] sm:$0xff]   ;;  %v16326_v55 = vld [vmem:[#allocation42_spill] sm:$0xff]  ;;  %v6851_v29 = vshrl.u32 %v14756_v52, 16 }
 0x479   : > { %v14789_v60 = vadd.f32 %v5898_v27, %v14584_v21 }
 0x47a   : > { %v14796_v6 = vpack.c.bf16 %v6732_v62, %v6731_v59  ;;  %v14802_v9 = vsel %vm1220_vm4, %v7277_v63, %v7286_v32  ;;  %v6365_v59 = vadd.f32 %v16326_v55, %v14441_v61  ;;  %v16327_v63 = vld [vmem:[#allocation19_spill] sm:$0xff] }
 0x47b   : > { %9279 = vmatmul.msk.bf16.gmra.mxu2 %vm5089_vm9, %v6850_v5  ;;  %v6551_v4 = vpop.f32.mrf.mxu1  ;;  %9377 = vmatmul.msk.bf16.gmra.mxu0 %vm5089_vm9, %v9498_v26  ;;  %v14809_v5 = vpop.f32.mrf.mxu0  ;;  %v7153_v26 = vmul.f32 %v10095_v41, %v16327_v63  ;;  %v6853_v41 = vor.u32 %v6851_v29, %v6849_v11  ;;  %v16333_v11 = vld [vmem:[#allocation63_spill] sm:$0xff] }
 0x47c   : > { %v14799_v21 = vadd.f32 %v6551_v4, %v6364_v33  ;;  %v6855_v16 = vshll.u32 %v14796_v6, 16  ;;  %16325 = vst [vmem:[#allocation121_spill] sm:$0xff] %v14809_v5  ;;  %v16354_v5 = vld [vmem:[#allocation39_spill] sm:$0xff] }
 0x47e   : > { %16324 = vst [vmem:[#allocation73_spill] sm:$0xff] %v14799_v21  ;;  %v6961_v27 = vpop.f32.mrf.mxu2  ;;  %v6857_v4 = vrot.slane %v6855_v16, 1  ;;  %v10099_v21 = vunpack.c.l.bf16 %v14814_v50 }
 0x47f   : > { %v14805_v46 = vadd.f32 %v6961_v27, %v14688_v47  ;;  %v7154_v47 = vmul.f32 %v10096_v8, %v16328_v18 }
 0x480   : > { %v5900_v54 = vpop.f32.mrf.mxu3  ;;  %v6858_v16 = vsel %vm2080_vm6, %v6853_v41, %v6857_v4 }
 0x481   : > { %v14812_v62 = vadd.f32 %v5900_v54, %v14606_v42  ;;  %v9485_v54 = vld [vmem:[#allocation3 + $0x74] sm:$0xff]  ;;  %v7174_v12 = vpack.c.bf16 %v7154_v47, %v7153_v26  ;;  %v16334_v47 = vld [vmem:[#allocation46_spill] sm:$0xff] }
 0x482   : > { %v6366_v29 = vadd.f32 %v16334_v47, %v16333_v11  ;;  %v16340_v47 = vld [vmem:[#allocation23_spill] sm:$0xff] }
 0x483   : > { %v6554_v33 = vpop.f32.mrf.mxu1  ;;  %v7289_v55 = vshrl.u32 %v7174_v12, 16  ;;  %v7292_v63 = vshll.u32 %v7174_v12, 16  ;;  %v14836_v26 = vpop.f32.mrf.mxu0 }
 0x484   : > { %v14821_v27 = vadd.f32 %v6554_v33, %v6365_v59  ;;  %16332 = vst [vmem:[#allocation79_spill] sm:$0xff] %v14836_v26 }
 0x485   : > { %9292 = vmatmul.msk.bf16.gmra.mxu3 %vm5089_vm9, %v14626_v30  ;;  %v16331_v30 = vld [vmem:[#allocation122_spill] sm:$0xff]  ;;  %v7291_v33 = vrot.slane %v7289_v55, 3 }
 0x486   : > { %16329 = vst [vmem:[#allocation117_spill] sm:$0xff] %v14821_v27  ;;  %v6963_v42 = vpop.f32.mrf.mxu2  ;;  %9265 = vmatmul.msk.bf16.gmra.mxu1 %vm5089_vm9, %v9485_v54  ;;  %v6734_v18 = vmul.f32 %v10099_v21, %v16331_v30  ;;  %v7294_v27 = vrot.slane %v7292_v63, 4 }
 0x487   : > { %v14827_v61 = vadd.f32 %v6963_v42, %v14711_v1  ;;  %v9499_v1 = vld [vmem:[#allocation3 + $0x6c] sm:$0xff]  ;;  %v16335_v42 = vld [vmem:[#allocation41_spill] sm:$0xff] }
 0x488   : > { %v5903_v52 = vpop.f32.mrf.mxu3  ;;  %v6733_v12 = vmul.f32 %v10096_v8, %v16335_v42  ;;  %v7295_v54 = vor.u32 %v7294_v27, %v7291_v33  ;;  %v14857_v33 = vld [vmem:[#allocation3 + $0x80] sm:$0xff]   ;;  %v6859_v42 = vshrl.u32 %v14796_v6, 16 }
 0x489   : > { %v14832_v59 = vadd.f32 %v5903_v52, %v14629_v45 }
 0x48a   : > { %v14844_v52 = vpack.c.bf16 %v6734_v18, %v6733_v12  ;;  %v14847_v55 = vsel %vm1220_vm4, %v7286_v32, %v7295_v54  ;;  %v16341_v32 = vld [vmem:[#allocation25_spill] sm:$0xff] }
 0x48b   : > { %16330 = vst [vmem:[#allocation88_spill] sm:$0xff] %v14832_v59  ;;  %9280 = vmatmul.msk.bf16.gmra.mxu2 %vm5089_vm9, %v6858_v16  ;;  %v6556_v56 = vpop.f32.mrf.mxu1  ;;  %9378 = vmatmul.msk.bf16.gmra.mxu0 %vm5089_vm9, %v9499_v1  ;;  %v10100_v16 = vunpack.c.h.bf16 %v14814_v50  ;;  %v16339_v1 = vld [vmem:[#allocation93_spill] sm:$0xff] }
 0x48c   : > { %v14842_v45 = vadd.f32 %v6556_v56, %v6366_v29  ;;  %v6863_v27 = vshll.u32 %v14844_v52, 16  ;;  %v16338_v56 = vld [vmem:[#allocation128_spill] sm:$0xff]  ;;  %v7155_v29 = vmul.f32 %v10099_v21, %v16340_v47  ;;  %v6867_v25 = vshrl.u32 %v14844_v52, 16 }
 0x48d   : > { %v6367_v18 = vadd.f32 %v16339_v1, %v16338_v56  ;;  %v7156_v12 = vmul.f32 %v10100_v16, %v16341_v32  ;;  %v6861_v1 = vor.u32 %v6859_v42, %v6857_v4 }
 0x48e   : > { %16336 = vst [vmem:[#allocation70_spill] sm:$0xff] %v14842_v45  ;;  %v6966_v41 = vpop.f32.mrf.mxu2  ;;  %v6865_v30 = vrot.slane %v6863_v27, 1  ;;  %v16346_v27 = vld [vmem:[#allocation51_spill] sm:$0xff] }
 0x48f   : > { %v14850_v63 = vadd.f32 %v6966_v41, %v14733_v22  ;;  %v10103_v22 = vunpack.c.l.bf16 %v14857_v33  ;;  %v14864_v41 = vpop.f32.mrf.mxu0  ;;  %v7175_v56 = vpack.c.bf16 %v7156_v12, %v7155_v29  ;;  %v9500_v29 = vld [vmem:[#allocation3 + $0x74] sm:$0xff] }
 0x490   : > { %v5905_v11 = vpop.f32.mrf.mxu3  ;;  %16342 = vst [vmem:[#allocation81_spill] sm:$0xff] %v14864_v41  ;;  %v16347_v12 = vld [vmem:[#allocation100_spill] sm:$0xff] }
 0x491   : > { %v14854_v8 = vadd.f32 %v5905_v11, %v14651_v24  ;;  %v9486_v11 = vld [vmem:[#allocation3 + $0x7c] sm:$0xff]  ;;  %v7298_v47 = vshrl.u32 %v7175_v56, 16  ;;  %v7301_v32 = vshll.u32 %v7175_v56, 16 }
 0x493   : > { %16337 = vst [vmem:[#allocation84_spill] sm:$0xff] %v14854_v8  ;;  %v6559_v45 = vpop.f32.mrf.mxu1  ;;  %v7300_v26 = vrot.slane %v7298_v47, 3  ;;  %v7303_v6 = vrot.slane %v7301_v32, 4  ;;  %v14897_v32 = vld [vmem:[#allocation3 + $0x20] sm:$0xff]  }
 0x494   : > { %v14866_v50 = vadd.f32 %v6559_v45, %v6367_v18  ;;  %v16344_v45 = vld [vmem:[#allocation126_spill] sm:$0xff] }
 0x495   : > { %9293 = vmatmul.msk.bf16.gmra.mxu3 %vm5089_vm9, %v14669_v10  ;;  %v6736_v18 = vmul.f32 %v10103_v22, %v16344_v45  ;;  %v6866_v10 = vsel %vm2080_vm6, %v6861_v1, %v6865_v30  ;;  %v14884_v42 = vor.u32 %v7303_v6, %v7300_v26  ;;  %v10104_v26 = vunpack.c.h.bf16 %v14857_v33 }
 0x496   : > { %16343 = vst [vmem:[#allocation101_spill] sm:$0xff] %v14866_v50  ;;  %v6968_v24 = vpop.f32.mrf.mxu2  ;;  %9266 = vmatmul.msk.bf16.gmra.mxu1 %vm5089_vm9, %v9486_v11 }
 0x497   : > { %v14872_v21 = vadd.f32 %v6968_v24, %v14754_v39  ;;  %v6735_v39 = vmul.f32 %v10100_v16, %v16346_v27  ;;  %v16348_v24 = vld [vmem:[#allocation96_spill] sm:$0xff]  ;;  %v14893_v1 = vsel %vm1220_vm4, %v7295_v54, %v14884_v42  ;;  %v14895_v47 = vpop.f32.mrf.mxu0  ;;  %v16352_v54 = vld [vmem:[#allocation97_spill] sm:$0xff] }
 0x498   : > { %v5908_v41 = vpop.f32.mrf.mxu3  ;;  %v6368_v4 = vadd.f32 %v16348_v24, %v16347_v12  ;;  %16350 = vst [vmem:[#allocation87_spill] sm:$0xff] %v14895_v47  ;;  %v7759_v16 = vld [vmem:[#allocation3 + $0x14] sm:$0xf]  ;;  %v10171_v12 = vunpack.c.l.bf16 %v14897_v32 }
 0x499   : > { %v14877_v50 = vadd.f32 %v5908_v41, %v14672_v31  ;;  %v14886_v56 = vpack.c.bf16 %v6736_v18, %v6735_v39  ;;  %v10390_v41 = vld [vmem:[#allocation3 + $0x18] sm:$0xff]   ;;  %v7792_v24 = vunpack.c.l.bf16 %v7759_v16 }
 0x49a   : > { %v10167_v6 = vunpack.c.l.bf16 %v10390_v41 }
 0x49b   : > { %16345 = vst [vmem:[#allocation125_spill] sm:$0xff] %v14877_v50  ;;  %9281 = vmatmul.msk.bf16.gmra.mxu2 %vm5089_vm9, %v6866_v10  ;;  %v6561_v11 = vpop.f32.mrf.mxu1  ;;  %9379 = vmatmul.msk.bf16.gmra.mxu0 %vm5089_vm9, %v9500_v29  ;;  %v6871_v18 = vshll.u32 %v14886_v56, 16  ;;  %v6672_v29 = vld [vmem:[#allocation3 + $0x88] sm:$0xf]  ;;  %v7158_v50 = vmul.f32 %v10104_v26, %v16354_v5  ;;  %v16357_v5 = vld [vmem:[#allocation21_spill] sm:$0xff] }
 0x49c   : > { %v14889_v31 = vadd.f32 %v6561_v11, %v6368_v4  ;;  %v6369_v4 = vadd.f32 %v16352_v54, %v14528_v0  ;;  %v10168_v11 = vunpack.c.h.bf16 %v10390_v41  ;;  %v9487_v0 = vld [vmem:[#allocation3 + $0x84] sm:$0xff]  ;;  %v7825_v41 = vmul.f32 %v7792_v24, %v16357_v5  ;;  %v16358_v54 = vld [vmem:[#allocation32_spill] sm:$0xff] }
 0x49d   : > { %v14910_v8 = vrot.slane %v6871_v18, 1  ;;  %v7828_v52 = vmul.f32 %v10171_v12, %v16358_v54  ;;  %v16362_v5 = vld [vmem:[#allocation120_spill] sm:$0xff] }
 0x49e   : > { %16349 = vst [vmem:[#allocation114_spill] sm:$0xff] %v14889_v31  ;;  %v16353_v31 = vld [vmem:[#allocation40_spill] sm:$0xff] }
 0x49f   : > { %v7157_v47 = vmul.f32 %v10103_v22, %v16353_v31  ;;  %v6869_v31 = vor.u32 %v6867_v25, %v6865_v30  ;;  %v14927_v30 = vld [vmem:[#allocation3 + $0x88] sm:$0xff]  }
 0x4a0   : > { %v5910_v10 = vpop.f32.mrf.mxu3 }
 0x4a1   : > { %v14902_v39 = vadd.f32 %v5910_v10, %v14694_v23  ;;  %v7826_v23 = vmul.f32 %v10167_v6, %v16355_v3  ;;  %v6705_v10 = vunpack.c.l.bf16 %v6672_v29  ;;  %v7176_v22 = vpack.c.bf16 %v7158_v50, %v7157_v47  ;;  %v16360_v50 = vld [vmem:[#allocation60_spill] sm:$0xff]  ;;  %v14929_v47 = vpop.f32.mrf.mxu0 }
 0x4a2   : > { %v7823_v29 = vunpack.c.l.bf16 %v7790_v15  ;;  %v10163_v15 = vunpack.c.l.bf16 %v14927_v30 }
 0x4a3   : > { %16351 = vst [vmem:[#allocation127_spill] sm:$0xff] %v14902_v39  ;;  %v6564_v33 = vpop.f32.mrf.mxu1  ;;  %v14913_v39 = vld [vmem:[#allocation3 + $0x80] sm:$0xff]   ;;  %v7307_v18 = vshrl.u32 %v7176_v22, 16  ;;  %v7310_v3 = vshll.u32 %v7176_v22, 16  ;;  %v6738_v25 = vmul.f32 %v6705_v10, %v16360_v50 }
 0x4a4   : > { %v14915_v16 = vadd.f32 %v6564_v33, %v6369_v4  ;;  %v10220_v6 = vunpack.c.h.bf16 %v14913_v39  ;;  %v6874_v4 = vsel %vm2080_vm6, %v6869_v31, %v14910_v8  ;;  %v16359_v33 = vld [vmem:[#allocation31_spill] sm:$0xff]  ;;  %v9501_v10 = vld [vmem:[#allocation3 + $0x7c] sm:$0xff] }
 0x4a5   : > { %9294 = vmatmul.msk.bf16.gmra.mxu3 %vm5089_vm9, %v14714_v20  ;;  %v7827_v20 = vmul.f32 %v10168_v11, %v16359_v33  ;;  %v7309_v24 = vrot.slane %v7307_v18, 3  ;;  %v16361_v31 = vld [vmem:[#allocation131_spill] sm:$0xff] }
 0x4a6   : > { %16356 = vst [vmem:[#allocation86_spill] sm:$0xff] %v14915_v16  ;;  %9267 = vmatmul.msk.bf16.gmra.mxu1 %vm5089_vm9, %v9487_v0  ;;  %v7858_v16 = vpack.c.bf16 %v7826_v23, %v7825_v41  ;;  %v7312_v0 = vrot.slane %v7310_v3, 4  ;;  %v6737_v11 = vmul.f32 %v10104_v26, %v16361_v31  ;;  %v15738_v23 = vunpack.c.h.bf16 %v14927_v30  ;;  %v14963_v33 = vld [vmem:[#allocation3 + $0x28] sm:$0xff]  }
 0x4a7   : > { %v14936_v22 = vpack.c.bf16 %v7828_v52, %v7827_v20  ;;  %v6370_v41 = vadd.f32 %v16362_v5, %v14549_v53  ;;  %v7856_v26 = vmul.f32 %v7823_v29, %v16360_v50 }
 0x4a8   : > { %v7393_v59 = vpop.f32.mrf.mxu3  ;;  %v14942_v54 = vor.u32 %v7312_v0, %v7309_v24  ;;  %v7880_v3 = vshll.u32 %v7858_v16, 16  ;;  %v14948_v52 = vpack.c.bf16 %v6738_v25, %v6737_v11 }
 0x4a9   : > { %v14932_v12 = vadd.f32 %v7393_v59, %v14717_v49  ;;  %v7853_v49 = vmul.f32 %v10220_v6, %v16346_v27  ;;  %v7854_v59 = vmul.f32 %v10163_v15, %v16344_v45  ;;  %v7855_v45 = vmul.f32 %v15738_v23, %v16361_v31 }
 0x4aa   : > { %v14957_v53 = vsel %vm1220_vm4, %v14884_v42, %v14942_v54  ;;  %v7885_v6 = vshll.u32 %v14936_v22, 16  ;;  %v7882_v25 = vrot.slane %v7880_v3, 1  ;;  %v6879_v24 = vshll.u32 %v14948_v52, 16 }
 0x4ab   : > { %9282 = vmatmul.msk.bf16.gmra.mxu2 %vm5089_vm9, %v6874_v4  ;;  %v6566_v18 = vpop.f32.mrf.mxu1  ;;  %9380 = vmatmul.msk.bf16.gmra.mxu0 %vm5089_vm9, %v9501_v10  ;;  %v7872_v27 = vpack.c.bf16 %v7854_v59, %v7853_v49  ;;  %v14965_v29 = vpack.c.bf16 %v7856_v26, %v7855_v45  ;;  %v7878_v31 = vshrl.u32 %v7858_v16, 16  ;;  %v14975_v49 = vpop.f32.mrf.mxu0  ;;  %v16363_v59 = vld [vmem:[#allocation109_spill] sm:$0xff]  ;;  %v6875_v16 = vshrl.u32 %v14886_v56, 16 }
 0x4ac   : > { %v14952_v4 = vadd.f32 %v6566_v18, %v6370_v41  ;;  %v7887_v5 = vrot.slane %v7885_v6, 1  ;;  %v10175_v41 = vunpack.c.l.bf16 %v14963_v33  ;;  %v6371_v18 = vadd.f32 %v16363_v59, %v14570_v58 }
 0x4ad   : > { %v7989_v20 = vshll.u32 %v7872_v27, 16  ;;  %v7993_v11 = vshrl.u32 %v7872_v27, 16  ;;  %v7997_v10 = vshll.u32 %v14965_v29, 16  ;;  %v7883_v45 = vor.u32 %v7882_v25, %v7878_v31  ;;  %v6673_v27 = vld [vmem:[#allocation3 + $0x8c] sm:$0x1] }
 0x4ae   : > { %v6881_v6 = vrot.slane %v6879_v24, 1  ;;  %v6706_v25 = vunpack.c.l.bf16 %v6673_v27 }
 0x4af   : > { %v14971_v42 = vrot.slane %v7989_v20, 1  ;;  %v14980_v26 = vrot.slane %v7997_v10, 1  ;;  %v10172_v20 = vunpack.c.h.bf16 %v14897_v32  ;;  %v16364_v10 = vld [vmem:[#allocation38_spill] sm:$0xff]  ;;  %v6877_v32 = vor.u32 %v6875_v16, %v14910_v8  ;;  %v10393_v16 = vld [vmem:[#allocation3 + $0x30] sm:$0xff]  }
 0x4b0   : > { %v7395_v50 = vpop.f32.mrf.mxu3  ;;  %v7830_v59 = vmul.f32 %v10175_v41, %v16364_v10  ;;  %v16367_v10 = vld [vmem:[#allocation129_spill] sm:$0xff] }
 0x4b1   : > { %v14969_v0 = vadd.f32 %v7395_v50, %v14739_v57  ;;  %v7995_v3 = vor.u32 %v7993_v11, %v14971_v42  ;;  %v7888_v11 = vsel %vm2080_vm6, %v7883_v45, %v7887_v5  ;;  %v6882_v56 = vsel %vm2080_vm6, %v6877_v32, %v6881_v6  ;;  %v16366_v45 = vld [vmem:[#allocation102_spill] sm:$0xff] }
 0x4b2   : > { %v6372_v41 = vadd.f32 %v16366_v45, %v14590_v19  ;;  %v10179_v19 = vunpack.c.l.bf16 %v10393_v16 }
 0x4b3   : > { %v6569_v57 = vpop.f32.mrf.mxu1  ;;  %v14990_v58 = vsel %vm2080_vm6, %v7995_v3, %v14980_v26  ;;  %v9502_v3 = vld [vmem:[#allocation3 + $0x84] sm:$0xff]  ;;  %v15005_v8 = vpop.f32.mrf.mxu0 }
 0x4b4   : > { %v14983_v50 = vadd.f32 %v6569_v57, %v6371_v18  ;;  %v16365_v18 = vld [vmem:[#allocation37_spill] sm:$0xff] }
 0x4b5   : > { %9295 = vmatmul.msk.bf16.gmra.mxu3 %vm5089_vm9, %v14759_v34  ;;  %v7829_v57 = vmul.f32 %v10172_v20, %v16365_v18 }
 0x4b6   : > { %9384 = vmatmul.msk.bf16.vlgmr.msra.gmra.mxu1 %vm5089_vm9, %v7888_v11  ;;  %v6739_v11 = vmul.f32 %v6706_v25, %v16367_v10  ;;  %v16368_v25 = vld [vmem:[#allocation124_spill] sm:$0xff] }
 0x4b7   : > { %v7860_v24 = vpack.c.bf16 %v7830_v59, %v7829_v57  ;;  %v7889_v59 = vshrl.u32 %v14936_v22, 16  ;;  %v6373_v57 = vadd.f32 %v16368_v25, %v14611_v51 }
 0x4b8   : > { %v7398_v31 = vpop.f32.mrf.mxu3  ;;  %v6756_v27 = vpack.c.bf16 %v6739_v11, %v6739_v11 }
 0x4b9   : > { %v14998_v34 = vadd.f32 %v7398_v31, %v14762_v36  ;;  %v7893_v36 = vshll.u32 %v7860_v24, 16 }
 0x4ba   : > { %v6887_v45 = vshll.u32 %v6756_v27, 16 }
 0x4bb   : > { %9283 = vmatmul.msk.bf16.gmra.mxu2 %vm5089_vm9, %v6882_v56  ;;  %v6571_v23 = vpop.f32.mrf.mxu1  ;;  %9381 = vmatmul.msk.bf16.gmra.mxu0 %vm5089_vm9, %v9502_v3  ;;  %v7895_v18 = vrot.slane %v7893_v36, 1  ;;  %v6883_v56 = vshrl.u32 %v14948_v52, 16  ;;  %v16369_v36 = vld [vmem:[#allocation48_spill] sm:$0xff]  ;;  %v16370_v52 = vld [vmem:[#allocation47_spill] sm:$0xff] }
 0x4bc   : > { %v15008_v20 = vadd.f32 %v6571_v23, %v6372_v41  ;;  %v7891_v23 = vor.u32 %v7889_v59, %v7887_v5  ;;  %v10176_v41 = vunpack.c.h.bf16 %v14963_v33  ;;  %v6889_v51 = vrot.slane %v6887_v45, 1 }
 0x4be   : > { %v7896_v22 = vsel %vm2080_vm6, %v7891_v23, %v7895_v18  ;;  %v7831_v27 = vmul.f32 %v10176_v41, %v16370_v52  ;;  %v7897_v41 = vshrl.u32 %v7860_v24, 16  ;;  %v16374_v24 = vld [vmem:[#allocation59_spill] sm:$0xff] }
 0x4c0   : > { %v7400_v32 = vpop.f32.mrf.mxu3 }
 0x4c1   : > { %v15011_v31 = vadd.f32 %v7400_v32, %v14782_v14  ;;  %v6885_v14 = vor.u32 %v6883_v56, %v6881_v6  ;;  %v7832_v32 = vmul.f32 %v10179_v19, %v16369_v36 }
 0x4c3   : > { %v6574_v3 = vpop.f32.mrf.mxu1  ;;  %v6890_v33 = vsel %vm2080_vm6, %v6885_v14, %v6889_v51  ;;  %v7861_v59 = vpack.c.bf16 %v7832_v32, %v7831_v27  ;;  %v16372_v14 = vld [vmem:[#allocation132_spill] sm:$0xff]  ;;  %v7899_v32 = vor.u32 %v7897_v41, %v7895_v18  ;;  %v16373_v27 = vld [vmem:[#allocation58_spill] sm:$0xff] }
 0x4c4   : > { %v15018_v11 = vadd.f32 %v6574_v3, %v6373_v57  ;;  %v10394_v3 = vld [vmem:[#allocation3 + $0x38] sm:$0xff]   ;;  %v6375_v36 = vadd.f32 %v16372_v14, %v14656_v38 }
 0x4c5   : > { %9296 = vmatmul.msk.bf16.gmra.mxu3 %vm5089_vm9, %v14802_v9  ;;  %v16371_v9 = vld [vmem:[#allocation55_spill] sm:$0xff]  ;;  %v7901_v19 = vshll.u32 %v7861_v59, 16 }
 0x4c6   : > { %9385 = vmatmul.msk.bf16.gmra.mxu1 %vm5089_vm9, %v7896_v22  ;;  %v6374_v6 = vadd.f32 %v16371_v9, %v14634_v43  ;;  %v10183_v22 = vunpack.c.l.bf16 %v10394_v3 }
 0x4c8   : > { %v7403_v25 = vpop.f32.mrf.mxu3 }
 0x4c9   : > { %v15027_v5 = vadd.f32 %v7403_v25, %v14805_v46  ;;  %v7903_v46 = vrot.slane %v7901_v19, 1  ;;  %v10180_v25 = vunpack.c.h.bf16 %v10393_v16  ;;  %v6376_v16 = vadd.f32 %v14537_v28, %v14678_v37  ;;  %v10395_v19 = vld [vmem:[#allocation3 + $0x40] sm:$0xff]   ;;  %v16376_v37 = vld [vmem:[#allocation67_spill] sm:$0xff] }
 0x4cb   : > { %9284 = vmatmul.msk.bf16.gmra.mxu2 %vm5089_vm9, %v6890_v33  ;;  %v6576_v57 = vpop.f32.mrf.mxu1  ;;  %v7904_v43 = vsel %vm2080_vm6, %v7899_v32, %v7903_v46  ;;  %v7834_v33 = vmul.f32 %v10183_v22, %v16373_v27  ;;  %v7833_v9 = vmul.f32 %v10180_v25, %v16374_v24  ;;  %v7905_v22 = vshrl.u32 %v7861_v59, 16  ;;  %v16378_v24 = vld [vmem:[#allocation115_spill] sm:$0xff] }
 0x4cc   : > { %v15033_v56 = vadd.f32 %v6576_v57, %v6374_v6 }
 0x4cd   : > { %v7862_v38 = vpack.c.bf16 %v7834_v33, %v7833_v9  ;;  %v7907_v25 = vor.u32 %v7905_v22, %v7903_v46 }
 0x4d0   : > { %v7405_v45 = vpop.f32.mrf.mxu3 }
 0x4d1   : > { %v15036_v23 = vadd.f32 %v7405_v45, %v14827_v61 }
 0x4d3   : > { %v6579_v51 = vpop.f32.mrf.mxu1 }
 0x4d4   : > { %v15040_v52 = vadd.f32 %v6579_v51, %v6375_v36  ;;  %v10187_v36 = vunpack.c.l.bf16 %v10395_v19  ;;  %v16375_v51 = vld [vmem:[#allocation108_spill] sm:$0xff] }
 0x4d5   : > { %9297 = vmatmul.msk.bf16.gmra.mxu3 %vm5089_vm9, %v14847_v55  ;;  %v7909_v55 = vshll.u32 %v7862_v38, 16 }
 0x4d6   : > { %9386 = vmatmul.msk.bf16.gmra.mxu1 %vm5089_vm9, %v7904_v43  ;;  %v10184_v43 = vunpack.c.h.bf16 %v10394_v3  ;;  %v7836_v33 = vmul.f32 %v10187_v36, %v16376_v37  ;;  %v7913_v36 = vshrl.u32 %v7862_v38, 16  ;;  %v15080_v37 = vpop.f32.mrf.mxu0 }
 0x4d7   : > { %v7911_v14 = vrot.slane %v7909_v55, 1  ;;  %v16380_v55 = vld [vmem:[#allocation54_spill] sm:$0xff] }
 0x4d8   : > { %v7408_v61 = vpop.f32.mrf.mxu3 }
 0x4d9   : > { %v15049_v6 = vadd.f32 %v7408_v61, %v14850_v63  ;;  %v6377_v63 = vadd.f32 %v16375_v51, %v14701_v7  ;;  %v7912_v28 = vsel %vm2080_vm6, %v7907_v25, %v7911_v14  ;;  %v6378_v7 = vadd.f32 %v16378_v24, %v14722_v2  ;;  %v7095_v24 = vld [vmem:[#allocation3 + $0x90] sm:$0xf] }
 0x4da   : > { %v7915_v25 = vor.u32 %v7913_v36, %v7911_v14 }
 0x4db   : > { %v6581_v18 = vpop.f32.mrf.mxu1 }
 0x4dc   : > { %v15053_v57 = vadd.f32 %v6581_v18, %v6376_v16  ;;  %v10396_v16 = vld [vmem:[#allocation3 + $0x48] sm:$0xff]   ;;  %v16379_v18 = vld [vmem:[#allocation50_spill] sm:$0xff] }
 0x4e0   : > { %v7410_v45 = vpop.f32.mrf.mxu3 }
 0x4e1   : > { %v15056_v41 = vadd.f32 %v7410_v45, %v14872_v21  ;;  %v16377_v21 = vld [vmem:[#allocation66_spill] sm:$0xff]  ;;  %v16381_v45 = vunpack.c.h.bf16 %v14927_v30 }
 0x4e2   : > { %v7835_v59 = vmul.f32 %v10184_v43, %v16377_v21 }
 0x4e3   : > { %v6584_v32 = vpop.f32.mrf.mxu1  ;;  %v7160_v22 = vmul.f32 %v16381_v45, %v16380_v55  ;;  %v7128_v55 = vunpack.c.l.bf16 %v7095_v24  ;;  %v15094_v45 = vpop.f32.mrf.mxu0 }
 0x4e4   : > { %v15060_v27 = vadd.f32 %v6584_v32, %v6377_v63  ;;  %v7863_v61 = vpack.c.bf16 %v7836_v33, %v7835_v59  ;;  %v10191_v63 = vunpack.c.l.bf16 %v10396_v16  ;;  %v6379_v32 = vadd.f32 %v14616_v44, %v14744_v35  ;;  %v16383_v44 = vld [vmem:[#allocation74_spill] sm:$0xff] }
 0x4e5   : > { %9298 = vmatmul.msk.bf16.gmra.mxu3 %vm5089_vm9, %v14893_v1  ;;  %v7159_v1 = vmul.f32 %v10163_v15, %v16379_v18  ;;  %v16382_v15 = vld [vmem:[#allocation75_spill] sm:$0xff] }
 0x4e6   : > { %9387 = vmatmul.msk.bf16.gmra.mxu1 %vm5089_vm9, %v7912_v28  ;;  %v7917_v3 = vshll.u32 %v7863_v61, 16  ;;  %v10188_v28 = vunpack.c.h.bf16 %v10395_v19  ;;  %v7838_v38 = vmul.f32 %v10191_v63, %v16382_v15  ;;  %v6380_v19 = vadd.f32 %v14643_v17, %v14766_v48 }
 0x4e7   : > { %v7177_v43 = vpack.c.bf16 %v7160_v22, %v7159_v1  ;;  %v10397_v22 = vld [vmem:[#allocation3 + $0x50] sm:$0xff]   ;;  %v7921_v63 = vshrl.u32 %v7863_v61, 16  ;;  %v6381_v48 = vadd.f32 %v14674_v13, %v14789_v60  ;;  %v10192_v15 = vunpack.c.h.bf16 %v10396_v16 }
 0x4e8   : > { %v7919_v51 = vrot.slane %v7917_v3, 1  ;;  %v7837_v35 = vmul.f32 %v10188_v28, %v16383_v44  ;;  %v10195_v17 = vunpack.c.l.bf16 %v10397_v22 }
 0x4e9   : > { %v7316_v21 = vshrl.u32 %v7177_v43, 16  ;;  %v7319_v59 = vshll.u32 %v7177_v43, 16 }
 0x4ea   : > { %v7920_v30 = vsel %vm2080_vm6, %v7915_v25, %v7919_v51  ;;  %v7864_v14 = vpack.c.bf16 %v7838_v38, %v7837_v35  ;;  %v16386_v35 = vld [vmem:[#allocation82_spill] sm:$0xff] }
 0x4eb   : > { %v6586_v9 = vpop.f32.mrf.mxu1  ;;  %v7321_v3 = vrot.slane %v7319_v59, 4  ;;  %v16385_v59 = vld [vmem:[#allocation83_spill] sm:$0xff] }
 0x4ec   : > { %v15070_v46 = vadd.f32 %v6586_v9, %v6378_v7  ;;  %v7318_v9 = vrot.slane %v7316_v21, 3  ;;  %v7925_v1 = vshll.u32 %v7864_v14, 16  ;;  %v7840_v44 = vmul.f32 %v10195_v17, %v16385_v59  ;;  %v16388_v17 = vld [vmem:[#allocation68_spill] sm:$0xff] }
 0x4ee   : > { %v7322_v36 = vor.u32 %v7321_v3, %v7318_v9 }
 0x4f0   : > { %v7323_v28 = vsel %vm1220_vm4, %v14942_v54, %v7322_v36  ;;  %v6382_v54 = vadd.f32 %v14698_v40, %v14812_v62 }
 0x4f3   : > { %v6589_v2 = vpop.f32.mrf.mxu1 }
 0x4f4   : > { %v15082_v33 = vadd.f32 %v6589_v2, %v6379_v32  ;;  %v7927_v32 = vrot.slane %v7925_v1, 1  ;;  %v16384_v2 = vld [vmem:[#allocation49_spill] sm:$0xff] }
 0x4f5   : > { %9299 = vmatmul.msk.bf16.gmra.mxu3 %vm5089_vm9, %v14957_v53  ;;  %v9503_v53 = vld [vmem:[#allocation3 + $0x8c] sm:$0xff]  ;;  %v7161_v25 = vmul.f32 %v7128_v55, %v16384_v2  ;;  %v7929_v55 = vshrl.u32 %v7864_v14, 16  ;;  %v16390_v14 = vld [vmem:[#allocation90_spill] sm:$0xff] }
 0x4f6   : > { %9388 = vmatmul.msk.bf16.gmra.mxu1 %vm5089_vm9, %v7920_v30  ;;  %9382 = vmatmul.msk.bf16.gmra.mxu0 %vm5089_vm9, %v9503_v53  ;;  %v7923_v30 = vor.u32 %v7921_v63, %v7919_v51  ;;  %v10398_v53 = vld [vmem:[#allocation3 + $0x58] sm:$0xff]  }
 0x4f7   : > { %v7178_v61 = vpack.c.bf16 %v7161_v25, %v7161_v25  ;;  %v10199_v2 = vunpack.c.l.bf16 %v10398_v53  ;;  %v16387_v25 = vld [vmem:[#allocation88_spill] sm:$0xff] }
 0x4f8   : > { %v7928_v21 = vsel %vm2080_vm6, %v7923_v30, %v7927_v32  ;;  %v7931_v30 = vor.u32 %v7929_v55, %v7927_v32  ;;  %v10399_v32 = vld [vmem:[#allocation3 + $0x60] sm:$0xff]  }
 0x4f9   : > { %v7325_v13 = vshrl.u32 %v7178_v61, 16  ;;  %v7328_v60 = vshll.u32 %v7178_v61, 16 }
 0x4fb   : > { %v6591_v7 = vpop.f32.mrf.mxu1  ;;  %v7330_v9 = vrot.slane %v7328_v60, 4 }
 0x4fc   : > { %v15092_v18 = vadd.f32 %v6591_v7, %v6380_v19  ;;  %v7839_v19 = vmul.f32 %v10192_v15, %v16386_v35  ;;  %v7327_v7 = vrot.slane %v7325_v13, 3  ;;  %v10196_v15 = vunpack.c.h.bf16 %v10397_v22  ;;  %v16391_v35 = vld [vmem:[#allocation84_spill] sm:$0xff] }
 0x4fe   : > { %v7865_v24 = vpack.c.bf16 %v7840_v44, %v7839_v19  ;;  %v7331_v1 = vor.u32 %v7330_v9, %v7327_v7  ;;  %v7841_v59 = vmul.f32 %v10196_v15, %v16390_v14  ;;  %v16392_v19 = vld [vmem:[#allocation110_spill] sm:$0xff]  ;;  %v10203_v7 = vunpack.c.l.bf16 %v10399_v32  ;;  %v16393_v9 = vld [vmem:[#allocation125_spill] sm:$0xff] }
 0x4ff   : > { %v6384_v13 = vadd.f32 %v16392_v19, %v16391_v35 }
 0x500   : > { %v7933_v3 = vshll.u32 %v7865_v24, 16 }
 0x502   : > { %v7935_v63 = vrot.slane %v7933_v3, 1  ;;  %v16394_v3 = vld [vmem:[#allocation92_spill] sm:$0xff] }
 0x503   : > { %v6594_v43 = vpop.f32.mrf.mxu1 }
 0x504   : > { %v15102_v38 = vadd.f32 %v6594_v43, %v6381_v48  ;;  %v6383_v48 = vadd.f32 %v16388_v17, %v16387_v25  ;;  %v7936_v62 = vsel %vm2080_vm6, %v7931_v30, %v7935_v63  ;;  %v10200_v25 = vunpack.c.h.bf16 %v10398_v53  ;;  %v16397_v30 = vld [vmem:[#allocation98_spill] sm:$0xff] }
 0x505   : > { %9300 = vmatmul.msk.bf16.gmra.mxu3 %vm5089_vm9, %v7323_v28  ;;  %v7332_v28 = vsel %vm1220_vm4, %v7322_v36, %v7331_v1  ;;  %v6385_v1 = vadd.f32 %v16394_v3, %v16393_v9  ;;  %v10204_v3 = vunpack.c.h.bf16 %v10399_v32  ;;  %v16403_v32 = vld [vmem:[#allocation106_spill] sm:$0xff] }
 0x506   : > { %9389 = vmatmul.msk.bf16.gmra.mxu1 %vm5089_vm9, %v7928_v21  ;;  %v16389_v21 = vld [vmem:[#allocation91_spill] sm:$0xff]  ;;  %v7843_v15 = vmul.f32 %v10200_v25, %v16397_v30  ;;  %v16404_v30 = vld [vmem:[#allocation81_spill] sm:$0xff] }
 0x507   : > { %v7842_v61 = vmul.f32 %v10199_v2, %v16389_v21  ;;  %v16399_v21 = vld [vmem:[#allocation121_spill] sm:$0xff] }
 0x509   : > { %v7866_v44 = vpack.c.bf16 %v7842_v61, %v7841_v59 }
 0x50b   : > { %v6596_v16 = vpop.f32.mrf.mxu1  ;;  %v7941_v22 = vshll.u32 %v7866_v44, 16  ;;  %v7945_v53 = vshrl.u32 %v7866_v44, 16 }
 0x50c   : > { %v15111_v51 = vadd.f32 %v6596_v16, %v6382_v54  ;;  %v7937_v54 = vshrl.u32 %v7865_v24, 16  ;;  %v16398_v24 = vld [vmem:[#allocation127_spill] sm:$0xff] }
 0x50d   : > { %v7943_v16 = vrot.slane %v7941_v22, 1  ;;  %v6386_v61 = vadd.f32 %v16399_v21, %v16398_v24  ;;  %v15165_v21 = vpop.f32.mrf.mxu2 }
 0x50e   : > { %v7939_v2 = vor.u32 %v7937_v54, %v7935_v63  ;;  %v10400_v63 = vld [vmem:[#allocation3 + $0x68] sm:$0xff]  }
 0x50f   : > { %v15144_v54 = vld [vmem:[%s15510_s4 + $0x3] ss:$0 sm:$0xff]  ;;  %v7947_v9 = vor.u32 %v7945_v53, %v7943_v16  ;;  %v15167_v53 = vpop.f32.mrf.mxu3 }
 0x513   : > { %v6599_v43 = vpop.f32.mrf.mxu1 }
 0x514   : > { %v15116_v40 = vadd.f32 %v6599_v43, %v6383_v48  ;;  %v7944_v48 = vsel %vm2080_vm6, %v7939_v2, %v7943_v16  ;;  %v16396_v43 = vld [vmem:[#allocation99_spill] sm:$0xff]  ;;  %v7845_v16 = vmul.f32 %v10204_v3, %v16403_v32 }
 0x515   : > { %9301 = vmatmul.msk.bf16.gmra.mxu3 %vm5089_vm9, %v7332_v28  ;;  %v7844_v28 = vmul.f32 %v10203_v7, %v16396_v43  ;;  %v16402_v2 = vld [vmem:[#allocation107_spill] sm:$0xff] }
 0x516   : > { %9390 = vmatmul.msk.bf16.gmra.mxu1 %vm5089_vm9, %v7936_v62 }
 0x517   : > { %v7867_v62 = vpack.c.bf16 %v7844_v28, %v7843_v15  ;;  %v7728_v15 = vadd.f32 %v16404_v30, %v14969_v0 }
 0x519   : > { %v7949_v35 = vshll.u32 %v7867_v62, 16 }
 0x51b   : > { %v6601_v60 = vpop.f32.mrf.mxu1  ;;  %v7951_v19 = vrot.slane %v7949_v35, 1 }
 0x51c   : > { %v15125_v36 = vadd.f32 %v6601_v60, %v6384_v13  ;;  %v10207_v13 = vunpack.c.l.bf16 %v10400_v63  ;;  %v16401_v60 = vld [vmem:[#allocation79_spill] sm:$0xff] }
 0x51d   : > { %v7727_v22 = vadd.f32 %v16401_v60, %v14932_v12  ;;  %v7952_v44 = vsel %vm2080_vm6, %v7947_v9, %v7951_v19  ;;  %v7953_v9 = vshrl.u32 %v7867_v62, 16 }
 0x51e   : > { %v7846_v25 = vmul.f32 %v10207_v13, %v16402_v2 }
 0x51f   : > { %v7955_v32 = vor.u32 %v7953_v9, %v7951_v19 }
 0x520   : > { %v7868_v28 = vpack.c.bf16 %v7846_v25, %v7845_v16  ;;  %v15174_v25 = vpop.f32.mrf.mxu0  ;;  %v10208_v16 = vunpack.c.h.bf16 %v10400_v63 }
 0x522   : > { %v7957_v13 = vshll.u32 %v7868_v28, 16 }
 0x523   : > { %v6604_v55 = vpop.f32.mrf.mxu1 }
 0x524   : > { %v15129_v17 = vadd.f32 %v6604_v55, %v6385_v1  ;;  %v15149_v55 = vld [vmem:[%s15510_s4 + $0x4] ss:$0 sm:$0xff]  ;;  %v7959_v3 = vrot.slane %v7957_v13, 1  ;;  %v16407_v13 = vld [vmem:[#allocation112_spill] sm:$0xff] }
 0x526   : > { %16395 = vst [vmem:[#allocation89_spill] sm:$0xff] %v15129_v17  ;;  %9391 = vmatmul.msk.bf16.gmra.mxu1 %vm5089_vm9, %v7944_v48  ;;  %v15158_v48 = vld [vmem:[%s15510_s4 + $0x5] ss:$0 sm:$0xff]  ;;  %v7960_v62 = vsel %vm2080_vm6, %v7955_v32, %v7959_v3 }
 0x52b   : > { %v6606_v14 = vpop.f32.mrf.mxu1 }
 0x52c   : > { %v15137_v59 = vadd.f32 %v6606_v14, %v6386_v61 }
 0x52e   : > { %16400 = vst [vmem:[#allocation116_spill] sm:$0xff] %v15137_v59  ;;  %v16411_v59 = vld [vmem:[#allocation41_spill] sm:$0xff] }
 0x533   : > { %v8069_v7 = vpop.f32.mrf.mxu1 }
 0x534   : > { %v8149_v1 = vadd.f32 %v8069_v7, %v7727_v22  ;;  %v10401_v22 = vld [vmem:[#allocation3 + $0x70] sm:$0xff]  }
 0x535   : > { %v10211_v0 = vunpack.c.l.bf16 %v10401_v22 }
 0x536   : > { %v8183_v12 = vmul.f32 %v15144_v54, %v8149_v1  ;;  %9392 = vmatmul.msk.bf16.gmra.mxu1 %vm5089_vm9, %v7952_v44  ;;  %v16405_v1 = vld [vmem:[#allocation87_spill] sm:$0xff] }
 0x537   : > { %v7729_v44 = vadd.f32 %v16405_v1, %v14998_v34  ;;  %v15182_v34 = vpop.f32.mrf.mxu3 }
 0x538   : > { %v8217_v43 = vadd.f32 %v15149_v55, %v8183_v12 }
 0x53a   : > { %vm8249_vm4 = vcmp.gt.f32.partialorder %v8217_v43, 0.0  ;;  %v8283_v24 = vmul.f32 %v15158_v48, %v8217_v43 }
 0x53b   : > { %v8071_v61 = vpop.f32.mrf.mxu1 }
 0x53c   : > { %v8150_v14 = vadd.f32 %v8071_v61, %v7728_v15  ;;  %v8315_v35 = vsel %vm8249_vm4, %v8217_v43, %v8283_v24  ;;  %v15176_v15 = vpop.f32.mrf.mxu2  ;;  %v16406_v24 = vld [vmem:[#allocation113_spill] sm:$0xff] }
 0x53d   : > { %8347 = vxpose.xlu1.b32.start [1/16] (narrow) %v8315_v35, 8  ;;  %v7848_v61 = vmul.f32 %v10211_v0, %v16406_v24  ;;  %v7961_v24 = vshrl.u32 %v7868_v28, 16 }
 0x53e   : > { %v8184_v60 = vmul.f32 %v15144_v54, %v8150_v14 }
 0x540   : > { %v8218_v7 = vadd.f32 %v15149_v55, %v8184_v60  ;;  %v7847_v60 = vmul.f32 %v10208_v16, %v16407_v13 }
 0x542   : > { %vm8250_vm7 = vcmp.gt.f32.partialorder %v8218_v7, 0.0  ;;  %v8284_v2 = vmul.f32 %v15158_v48, %v8218_v7  ;;  %v15186_v63 = vpack.c.bf16 %v7848_v61, %v7847_v60 }
 0x543   : > { %v8074_v12 = vpop.f32.mrf.mxu1 }
 0x544   : > { %v8151_v43 = vadd.f32 %v8074_v12, %v7729_v44  ;;  %v8316_v30 = vsel %vm8250_vm7, %v8218_v7, %v8284_v2  ;;  %v7730_v7 = vadd.f32 %v14929_v47, %v15011_v31  ;;  %v15191_v2 = vpop.f32.mrf.mxu0  ;;  %v7965_v32 = vshll.u32 %v15186_v63, 16  ;;  %v15201_v31 = vpop.f32.mrf.mxu3 }
 0x545   : > { %8348 = vxpose.xlu1.b32.cont [2/16] (narrow) %v8316_v30, 8 }
 0x546   : > { %v8185_v14 = vmul.f32 %v15144_v54, %v8151_v43  ;;  %9393 = vmatmul.msk.bf16.gmra.mxu1 %vm5089_vm9, %v7960_v62  ;;  %v15195_v43 = vld [vmem:[#allocation3 + $0x78] sm:$0xff]   ;;  %v15197_v62 = vpop.f32.mrf.mxu2  ;;  %v7967_v61 = vrot.slane %v7965_v32, 1 }
 0x548   : > { %v8219_v19 = vadd.f32 %v15149_v55, %v8185_v14  ;;  %v10215_v14 = vunpack.c.l.bf16 %v15195_v43 }
 0x54a   : > { %vm8251_vm5 = vcmp.gt.f32.partialorder %v8219_v19, 0.0  ;;  %v8285_v9 = vmul.f32 %v15158_v48, %v8219_v19 }
 0x54b   : > { %v8076_v1 = vpop.f32.mrf.mxu1 }
 0x54c   : > { %v8152_v0 = vadd.f32 %v8076_v1, %v7730_v7  ;;  %v8317_v44 = vsel %vm8251_vm5, %v8219_v19, %v8285_v9  ;;  %v7963_v19 = vor.u32 %v7961_v24, %v7959_v3  ;;  %v10212_v7 = vunpack.c.h.bf16 %v10401_v22 }
 0x54d   : > { %8349 = vxpose.xlu1.b32.cont [3/16] (narrow) %v8317_v44, 8  ;;  %v8413_v12 = vmax.f32 %v8315_v35, %v8317_v44  ;;  %v7731_v35 = vadd.f32 %v14975_v49, %v15027_v5  ;;  %v16409_v49 = vld [vmem:[#allocation29_spill] sm:$0xff] }
 0x54e   : > { %v8186_v16 = vmul.f32 %v15144_v54, %v8152_v0  ;;  %v7968_v44 = vsel %vm2080_vm6, %v7963_v19, %v7967_v61  ;;  %v7849_v5 = vmul.f32 %v10212_v7, %v16409_v49  ;;  %v15216_v3 = vpop.f32.mrf.mxu2  ;;  %v15228_v19 = vld [vmem:[%s15510_s4 + $0x6] ss:$0 sm:$0xff]  ;;  %v10219_v49 = vunpack.c.l.bf16 %v14913_v39 }
 0x54f   : > { %8429 = vst.msk [vmem:[#allocation4] sm:$0xff] %vm5089_vm9, %v8413_v12  ;;  %v16408_v12 = vld [vmem:[#allocation118_spill] sm:$0xff] }
 0x550   : > { %v8220_v47 = vadd.f32 %v15149_v55, %v8186_v16  ;;  %v7850_v28 = vmul.f32 %v10215_v14, %v16408_v12  ;;  %v15211_v16 = vpop.f32.mrf.mxu0  ;;  %v15223_v14 = vpop.f32.mrf.mxu3 }
 0x552   : > { %vm8252_vm10 = vcmp.gt.f32.partialorder %v8220_v47, 0.0  ;;  %v8286_v13 = vmul.f32 %v15158_v48, %v8220_v47 }
 0x553   : > { %v8079_v60 = vpop.f32.mrf.mxu1 }
 0x554   : > { %v8153_v9 = vadd.f32 %v8079_v60, %v7731_v35  ;;  %v8318_v1 = vsel %vm8252_vm10, %v8220_v47, %v8286_v13  ;;  %v7732_v47 = vadd.f32 %v15005_v8, %v15036_v23 }
 0x555   : > { %v8414_v0 = vmax.f32 %v8316_v30, %v8318_v1  ;;  %8350 = vxpose.xlu1.b32.cont [4/16] (narrow) %v8318_v1, 8  ;;  %v15218_v30 = vpack.c.bf16 %v7850_v28, %v7849_v5  ;;  %v7733_v5 = vadd.f32 %v15080_v37, %v15049_v6 }
 0x556   : > { %v8187_v32 = vmul.f32 %v15144_v54, %v8153_v9  ;;  %9394 = vmatmul.msk.bf16.gmra.mxu1 %vm5089_vm9, %v7968_v44  ;;  %v7969_v44 = vshrl.u32 %v15186_v63, 16  ;;  %v10216_v63 = vunpack.c.h.bf16 %v15195_v43  ;;  %v7734_v43 = vadd.f32 %v15094_v45, %v15056_v41 }
 0x557   : > { %8430 = vst.msk [vmem:[#allocation4 + $0x8] sm:$0xff] %vm5089_vm9, %v8414_v0  ;;  %v7973_v7 = vshll.u32 %v15218_v30, 16 }
 0x558   : > { %v8221_v22 = vadd.f32 %v15149_v55, %v8187_v32  ;;  %v15234_v12 = vpop.f32.mrf.mxu0  ;;  %v7851_v17 = vmul.f32 %v10216_v63, %v16411_v59 }
 0x559   : > { %v7975_v32 = vrot.slane %v7973_v7, 1  ;;  %v16410_v7 = vld [vmem:[#allocation122_spill] sm:$0xff] }
 0x55a   : > { %vm8253_vm11 = vcmp.gt.f32.partialorder %v8221_v22, 0.0  ;;  %v8287_v24 = vmul.f32 %v15158_v48, %v8221_v22  ;;  %v7852_v6 = vmul.f32 %v10219_v49, %v16410_v7  ;;  %v16412_v49 = vld [vmem:[#allocation65_spill] sm:$0xff] }
 0x55b   : > { %v8081_v35 = vpop.f32.mrf.mxu1 }
 0x55c   : > { %v8154_v13 = vadd.f32 %v8081_v35, %v7732_v47  ;;  %v8319_v60 = vsel %vm8253_vm11, %v8221_v22, %v8287_v24  ;;  %v15241_v47 = vpop.f32.mrf.mxu2 }
 0x55d   : > { %8351 = vxpose.xlu1.b32.cont [5/16] (narrow) %v8319_v60, 8 }
 0x55e   : > { %v8188_v9 = vmul.f32 %v15144_v54, %v8154_v13  ;;  %v8445_v1 = vld [vmem:[#allocation4] ss:$2 sm:$0xff]  ;;  %v8461_v8 = vld [vmem:[#allocation4 + $0x1] ss:$2 sm:$0xff]  ;;  %v7971_v13 = vor.u32 %v7969_v44, %v7967_v61 }
 0x55f   : > { %v8476_v23 = vmax.f32 %v8445_v1, %v8461_v8  ;;  %v15244_v8 = vpop.f32.mrf.mxu3 }
 0x560   : > { %v8222_v0 = vadd.f32 %v15149_v55, %v8188_v9  ;;  %v7976_v39 = vsel %vm2080_vm6, %v7971_v13, %v7975_v32  ;;  %v15257_v44 = vpop.f32.mrf.mxu0 }
 0x561   : > { %vm8484_vm12 = vcmp.gt.f32.partialorder %v8476_v23, 0.0  ;;  %v8494_v28 = vmul.f32 %v15228_v19, %v8476_v23 }
 0x562   : > { %vm8254_vm2 = vcmp.gt.f32.partialorder %v8222_v0, 0.0  ;;  %v8288_v22 = vmul.f32 %v15158_v48, %v8222_v0 }
 0x563   : > { %v8084_v24 = vpop.f32.mrf.mxu1  ;;  %v8502_v35 = vsel %vm8484_vm12, %v8476_v23, %v8494_v28  ;;  %v15252_v23 = vpack.c.bf16 %v7852_v6, %v7851_v17 }
 0x564   : > { %v8155_v9 = vadd.f32 %v8084_v24, %v7733_v5  ;;  %8510 = vxpose.xlu0.b32.start [1/8] (short) (narrow) %v8502_v35, 8  ;;  %v8320_v1 = vsel %vm8254_vm2, %v8222_v0, %v8288_v22  ;;  %v7039_v5 = vadd.f32 %v15165_v21, %v16412_v49  ;;  %v15261_v35 = vpop.f32.mrf.mxu2  ;;  %v7977_v21 = vshrl.u32 %v15218_v30, 16 }
 0x565   : > { %8352 = vxpose.xlu1.b32.cont [6/16] (narrow) %v8320_v1, 8  ;;  %v7981_v17 = vshll.u32 %v15252_v23, 16 }
 0x566   : > { %v8189_v37 = vmul.f32 %v15144_v54, %v8155_v9  ;;  %9395 = vmatmul.msk.bf16.gmra.mxu1 %vm5089_vm9, %v7976_v39  ;;  %v7481_v13 = vadd.f32 %v15167_v53, %v7039_v5  ;;  %v7979_v6 = vor.u32 %v7977_v21, %v7975_v32 }
 0x567   : > { %v15266_v45 = vpop.f32.mrf.mxu3  ;;  %v7983_v9 = vrot.slane %v7981_v17, 1 }
 0x568   : > { %v8223_v61 = vadd.f32 %v15149_v55, %v8189_v37  ;;  %v7735_v39 = vadd.f32 %v15174_v25, %v7481_v13  ;;  %v16413_v37 = vld [vmem:[#allocation73_spill] sm:$0xff] }
 0x569   : > { %v7040_v53 = vadd.f32 %v15176_v15, %v16413_v37  ;;  %v7984_v49 = vsel %vm2080_vm6, %v7979_v6, %v7983_v9 }
 0x56a   : > { %vm8255_vm13 = vcmp.gt.f32.partialorder %v8223_v61, 0.0  ;;  %v8289_v0 = vmul.f32 %v15158_v48, %v8223_v61 }
 0x56b   : > { %v8086_v28 = vpop.f32.mrf.mxu1  ;;  %v7482_v30 = vadd.f32 %v15182_v34, %v7040_v53 }
 0x56c   : > { %v8156_v22 = vadd.f32 %v8086_v28, %v7734_v43  ;;  %v8321_v24 = vsel %vm8255_vm13, %v8223_v61, %v8289_v0  ;;  %v15275_v0 = vpop.f32.mrf.mxu0  ;;  %v15281_v5 = vpop.f32.mrf.mxu2 }
 0x56d   : > { %v8415_v59 = vmax.f32 %v8319_v60, %v8321_v24  ;;  %8353 = vxpose.xlu1.b32.cont [7/16] (narrow) %v8321_v24, 8 }
 0x56e   : > { %v8190_v41 = vmul.f32 %v15144_v54, %v8156_v22  ;;  %v7736_v22 = vadd.f32 %v15191_v2, %v7482_v30  ;;  %v16415_v30 = vld [vmem:[#allocation70_spill] sm:$0xff] }
 0x56f   : > { %8431 = vst.msk [vmem:[#allocation4 + $0x10] sm:$0xff] %vm5089_vm9, %v8415_v59  ;;  %v15285_v32 = vpop.f32.mrf.mxu3  ;;  %v16414_v59 = vld [vmem:[#allocation117_spill] sm:$0xff] }
 0x570   : > { %v8224_v63 = vadd.f32 %v15149_v55, %v8190_v41  ;;  %v7041_v34 = vadd.f32 %v15197_v62, %v16414_v59  ;;  %v7985_v62 = vshrl.u32 %v15252_v23, 16 }
 0x572   : > { %vm8256_vm14 = vcmp.gt.f32.partialorder %v8224_v63, 0.0  ;;  %v8290_v60 = vmul.f32 %v15158_v48, %v8224_v63  ;;  %v7483_v41 = vadd.f32 %v15201_v31, %v7041_v34 }
 0x573   : > { %v8089_v7 = vpop.f32.mrf.mxu1 }
 0x574   : > { %v8157_v61 = vadd.f32 %v8089_v7, %v7735_v39  ;;  %v8322_v43 = vsel %vm8256_vm14, %v8224_v63, %v8290_v60  ;;  %v15293_v60 = vpop.f32.mrf.mxu0  ;;  %v15296_v6 = vpop.f32.mrf.mxu2  ;;  %v7737_v53 = vadd.f32 %v15211_v16, %v7483_v41  ;;  %v16416_v41 = vld [vmem:[#allocation101_spill] sm:$0xff] }
 0x575   : > { %v8416_v28 = vmax.f32 %v8320_v1, %v8322_v43  ;;  %8354 = vxpose.xlu1.b32.cont [8/16] (narrow) %v8322_v43, 8 }
 0x576   : > { %v8191_v25 = vmul.f32 %v15144_v54, %v8157_v61  ;;  %9396 = vmatmul.msk.bf16.gmra.mxu1 %vm5089_vm9, %v7984_v49  ;;  %v7987_v49 = vor.u32 %v7985_v62, %v7983_v9 }
 0x577   : > { %8432 = vst.msk [vmem:[#allocation4 + $0x18] sm:$0xff] %vm5089_vm9, %v8416_v28  ;;  %v15302_v61 = vpop.f32.mrf.mxu3 }
 0x578   : > { %v8225_v15 = vadd.f32 %v15149_v55, %v8191_v25  ;;  %v7042_v25 = vadd.f32 %v15216_v3, %v16415_v30  ;;  %v7992_v23 = vsel %vm2080_vm6, %v7987_v49, %v14971_v42  ;;  %v7043_v42 = vadd.f32 %v15241_v47, %v16416_v41 }
 0x57a   : > { %vm8257_vm15 = vcmp.gt.f32.partialorder %v8225_v15, 0.0  ;;  %v8291_v1 = vmul.f32 %v15158_v48, %v8225_v15  ;;  %v7484_v16 = vadd.f32 %v15223_v14, %v7042_v25 }
 0x57b   : > { %v8091_v24 = vpop.f32.mrf.mxu1 }
 0x57c   : > { %v8158_v17 = vadd.f32 %v8091_v24, %v7736_v22  ;;  %v8323_v13 = vsel %vm8257_vm15, %v8225_v15, %v8291_v1  ;;  %v15312_v59 = vpop.f32.mrf.mxu0  ;;  %v7738_v9 = vadd.f32 %v15234_v12, %v7484_v16  ;;  %v15316_v34 = vpop.f32.mrf.mxu2 }
 0x57d   : > { %8355 = vxpose.xlu1.b32.cont [9/16] (narrow) %v8323_v13, 8 }
 0x57e   : > { %v8192_v63 = vmul.f32 %v15144_v54, %v8158_v17  ;;  %v8447_v21 = vld [vmem:[#allocation4 + $0x10] ss:$2 sm:$0xff]  ;;  %v8463_v39 = vld [vmem:[#allocation4 + $0x11] ss:$2 sm:$0xff] }
 0x57f   : > { %v8477_v7 = vmax.f32 %v8447_v21, %v8463_v39  ;;  %v15320_v21 = vpop.f32.mrf.mxu3 }
 0x580   : > { %v8226_v2 = vadd.f32 %v15149_v55, %v8192_v63 }
 0x581   : > { %vm8485_vm0 = vcmp.gt.f32.partialorder %v8477_v7, 0.0  ;;  %v8495_v37 = vmul.f32 %v15228_v19, %v8477_v7 }
 0x582   : > { %vm8258_vm1 = vcmp.gt.f32.partialorder %v8226_v2, 0.0  ;;  %v8292_v31 = vmul.f32 %v15158_v48, %v8226_v2 }
 0x583   : > { %v8094_v43 = vpop.f32.mrf.mxu1  ;;  %v8503_v28 = vsel %vm8485_vm0, %v8477_v7, %v8495_v37  ;;  %v7485_v7 = vadd.f32 %v15244_v8, %v7043_v42  ;;  %v7791_v37 = vld [vmem:[#allocation3 + $0x94] sm:$0x1] }
 0x584   : > { %v8159_v15 = vadd.f32 %v8094_v43, %v7737_v53  ;;  %8511 = vxpose.xlu0.b32.cont [2/8] (short) (narrow) %v8503_v28, 8  ;;  %v8324_v22 = vsel %vm8258_vm1, %v8226_v2, %v8292_v31  ;;  %v15328_v53 = vpop.f32.mrf.mxu0  ;;  %v7824_v43 = vunpack.c.l.bf16 %v7791_v37  ;;  %v15332_v30 = vpop.f32.mrf.mxu2 }
 0x585   : > { %8356 = vxpose.xlu1.b32.cont [10/16] (narrow) %v8324_v22, 8  ;;  %v7739_v62 = vadd.f32 %v15257_v44, %v7485_v7  ;;  %v8001_v7 = vshrl.u32 %v14965_v29, 16  ;;  %v7046_v29 = vadd.f32 %v15296_v6, %v14952_v4 }
 0x586   : > { %v8193_v1 = vmul.f32 %v15144_v54, %v8159_v15  ;;  %9397 = vmatmul.msk.bf16.gmra.mxu1 %vm5089_vm9, %v7992_v23  ;;  %v7857_v16 = vmul.f32 %v7824_v43, %v16367_v10 }
 0x587   : > { %v15338_v23 = vpop.f32.mrf.mxu3 }
 0x588   : > { %v8227_v24 = vadd.f32 %v15149_v55, %v8193_v1 }
 0x58a   : > { %vm8259_vm8 = vcmp.gt.f32.partialorder %v8227_v24, 0.0  ;;  %v8293_v3 = vmul.f32 %v15158_v48, %v8227_v24 }
 0x58b   : > { %v8096_v17 = vpop.f32.mrf.mxu1 }
 0x58c   : > { %v8160_v14 = vadd.f32 %v8096_v17, %v7738_v9  ;;  %v8325_v63 = vsel %vm8259_vm8, %v8227_v24, %v8293_v3  ;;  %v16418_v9 = vld [vmem:[#allocation86_spill] sm:$0xff]  ;;  %v15347_v41 = vpop.f32.mrf.mxu0 }
 0x58d   : > { %v8417_v39 = vmax.f32 %v8323_v13, %v8325_v63  ;;  %8357 = vxpose.xlu1.b32.cont [11/16] (narrow) %v8325_v63, 8  ;;  %v16417_v13 = vld [vmem:[#allocation114_spill] sm:$0xff]  ;;  %v7045_v3 = vadd.f32 %v15281_v5, %v16418_v9 }
 0x58e   : > { %v8194_v2 = vmul.f32 %v15144_v54, %v8160_v14  ;;  %v7044_v28 = vadd.f32 %v15261_v35, %v16417_v13 }
 0x58f   : > { %8433 = vst.msk [vmem:[#allocation4 + $0x20] sm:$0xff] %vm5089_vm9, %v8417_v39  ;;  %v7487_v42 = vadd.f32 %v15285_v32, %v7045_v3  ;;  %v7438_v37 = vpop.f32.mrf.mxu3 }
 0x590   : > { %v8228_v12 = vadd.f32 %v15149_v55, %v8194_v2  ;;  %v7486_v15 = vadd.f32 %v15266_v45, %v7044_v28  ;;  %v7874_v45 = vpack.c.bf16 %v7857_v16, %v7857_v16 }
 0x592   : > { %vm8260_vm3 = vcmp.gt.f32.partialorder %v8228_v12, 0.0  ;;  %v8294_v47 = vmul.f32 %v15158_v48, %v8228_v12  ;;  %v7740_v1 = vadd.f32 %v15275_v0, %v7486_v15  ;;  %v6996_v0 = vpop.f32.mrf.mxu2  ;;  %v8005_v2 = vshll.u32 %v7874_v45, 16 }
 0x593   : > { %v8099_v31 = vpop.f32.mrf.mxu1 }
 0x594   : > { %v8161_v8 = vadd.f32 %v8099_v31, %v7739_v62  ;;  %v8326_v49 = vsel %vm8260_vm3, %v8228_v12, %v8294_v47  ;;  %v8003_v62 = vor.u32 %v8001_v7, %v14980_v26  ;;  %v7741_v47 = vadd.f32 %v15293_v60, %v7487_v42  ;;  %v7692_v60 = vpop.f32.mrf.mxu0 }
 0x595   : > { %v8418_v25 = vmax.f32 %v8324_v22, %v8326_v49  ;;  %8358 = vxpose.xlu1.b32.cont [12/16] (narrow) %v8326_v49, 8  ;;  %v8007_v13 = vrot.slane %v8005_v2, 1 }
 0x596   : > { %v8195_v44 = vmul.f32 %v15144_v54, %v8161_v8  ;;  %9398 = vmatmul.msk.bf16.gmra.mxu1 %vm5089_vm9, %v14990_v58 }
 0x597   : > { %8434 = vst.msk [vmem:[#allocation4 + $0x28] sm:$0xff] %vm5089_vm9, %v8418_v25  ;;  %v8008_v49 = vsel %vm2080_vm6, %v8003_v62, %v8007_v13  ;;  %v7488_v25 = vadd.f32 %v15302_v61, %v7046_v29  ;;  %v7440_v6 = vpop.f32.mrf.mxu3 }
 0x598   : > { %v8229_v35 = vadd.f32 %v15149_v55, %v8195_v44 }
 0x599   : > { %v7742_v16 = vadd.f32 %v15312_v59, %v7488_v25 }
 0x59a   : > { %vm8261_vm4 = vcmp.gt.f32.partialorder %v8229_v35, 0.0  ;;  %v8295_v22 = vmul.f32 %v15158_v48, %v8229_v35  ;;  %v6998_v44 = vpop.f32.mrf.mxu2 }
 0x59b   : > { %v8101_v24 = vpop.f32.mrf.mxu1 }
 0x59c   : > { %v8162_v17 = vadd.f32 %v8101_v24, %v7740_v1  ;;  %v8327_v58 = vsel %vm8261_vm4, %v8229_v35, %v8295_v22  ;;  %v7047_v1 = vadd.f32 %v15316_v34, %v14983_v50  ;;  %v7694_v3 = vpop.f32.mrf.mxu0  ;;  %v7048_v34 = vadd.f32 %v15332_v30, %v15008_v20 }
 0x59d   : > { %8359 = vxpose.xlu1.b32.cont [13/16] (narrow) %v8327_v58, 8  ;;  %v7049_v30 = vadd.f32 %v6996_v0, %v15018_v11 }
 0x59e   : > { %v8196_v10 = vmul.f32 %v15144_v54, %v8162_v17  ;;  %v8449_v14 = vld [vmem:[#allocation4 + $0x20] ss:$2 sm:$0xff]  ;;  %v8465_v63 = vld [vmem:[#allocation4 + $0x21] ss:$2 sm:$0xff]  ;;  %v7489_v45 = vadd.f32 %v15320_v21, %v7047_v1 }
 0x59f   : > { %v8478_v39 = vmax.f32 %v8449_v14, %v8465_v63  ;;  %v7443_v21 = vpop.f32.mrf.mxu3 }
 0x5a0   : > { %v8230_v12 = vadd.f32 %v15149_v55, %v8196_v10  ;;  %v7743_v17 = vadd.f32 %v15328_v53, %v7489_v45 }
 0x5a1   : > { %vm8486_vm7 = vcmp.gt.f32.partialorder %v8478_v39, 0.0  ;;  %v8496_v5 = vmul.f32 %v15228_v19, %v8478_v39 }
 0x5a2   : > { %vm8262_vm5 = vcmp.gt.f32.partialorder %v8230_v12, 0.0  ;;  %v8296_v32 = vmul.f32 %v15158_v48, %v8230_v12  ;;  %v7001_v10 = vpop.f32.mrf.mxu2 }
 0x5a3   : > { %v8104_v31 = vpop.f32.mrf.mxu1  ;;  %v8504_v43 = vsel %vm8486_vm7, %v8478_v39, %v8496_v5  ;;  %v7490_v39 = vadd.f32 %v15338_v23, %v7048_v34  ;;  %v7491_v23 = vadd.f32 %v7438_v37, %v7049_v30 }
 0x5a4   : > { %v8163_v28 = vadd.f32 %v8104_v31, %v7741_v47  ;;  %8512 = vxpose.xlu0.b32.cont [3/8] (short) (narrow) %v8504_v43, 8  ;;  %v8328_v8 = vsel %vm8262_vm5, %v8230_v12, %v8296_v32  ;;  %v7697_v5 = vpop.f32.mrf.mxu0 }
 0x5a5   : > { %8360 = vxpose.xlu1.b32.cont [14/16] (narrow) %v8328_v8, 8  ;;  %v7744_v2 = vadd.f32 %v15347_v41, %v7490_v39 }
 0x5a6   : > { %v8197_v26 = vmul.f32 %v15144_v54, %v8163_v28  ;;  %9399 = vmatmul.msk.bf16.gmra.mxu1 %vm5089_vm9, %v8008_v49  ;;  %v7745_v49 = vadd.f32 %v7692_v60, %v7491_v23 }
 0x5a7   : > { %v7445_v29 = vpop.f32.mrf.mxu3 }
 0x5a8   : > { %v8231_v15 = vadd.f32 %v15149_v55, %v8197_v26  ;;  %v7050_v26 = vadd.f32 %v6998_v44, %v15033_v56 }
 0x5aa   : > { %vm8263_vm10 = vcmp.gt.f32.partialorder %v8231_v15, 0.0  ;;  %v8297_v4 = vmul.f32 %v15158_v48, %v8231_v15  ;;  %v7003_v32 = vpop.f32.mrf.mxu2 }
 0x5ab   : > { %v8106_v35 = vpop.f32.mrf.mxu1 }
 0x5ac   : > { %v8164_v22 = vadd.f32 %v8106_v35, %v7742_v16  ;;  %v8329_v61 = vsel %vm8263_vm10, %v8231_v15, %v8297_v4  ;;  %v7699_v16 = vpop.f32.mrf.mxu0  ;;  %v7492_v4 = vadd.f32 %v7440_v6, %v7050_v26 }
 0x5ad   : > { %v8419_v24 = vmax.f32 %v8327_v58, %v8329_v61  ;;  %8361 = vxpose.xlu1.b32.cont [15/16] (narrow) %v8329_v61, 8 }
 0x5ae   : > { %v8198_v9 = vmul.f32 %v15144_v54, %v8164_v22  ;;  %v7746_v60 = vadd.f32 %v7694_v3, %v7492_v4 }
 0x5af   : > { %8435 = vst.msk [vmem:[#allocation4 + $0x30] sm:$0xff] %vm5089_vm9, %v8419_v24  ;;  %v7448_v61 = vpop.f32.mrf.mxu3 }
 0x5b0   : > { %v8232_v59 = vadd.f32 %v15149_v55, %v8198_v9  ;;  %v7051_v9 = vadd.f32 %v7001_v10, %v15040_v52  ;;  %v7052_v52 = vadd.f32 %v7003_v32, %v15053_v57 }
 0x5b2   : > { %vm8264_vm6 = vcmp.gt.f32.partialorder %v8232_v59, 0.0  ;;  %v8298_v42 = vmul.f32 %v15158_v48, %v8232_v59  ;;  %v7006_v1 = vpop.f32.mrf.mxu2 }
 0x5b3   : > { %v8109_v50 = vpop.f32.mrf.mxu1  ;;  %v7053_v57 = vadd.f32 %v7006_v1, %v15060_v27 }
 0x5b4   : > { %v8165_v58 = vadd.f32 %v8109_v50, %v7743_v17  ;;  %v8330_v14 = vsel %vm8264_vm6, %v8232_v59, %v8298_v42  ;;  %v7493_v17 = vadd.f32 %v7443_v21, %v7051_v9  ;;  %v7702_v42 = vpop.f32.mrf.mxu0  ;;  %v7494_v21 = vadd.f32 %v7445_v29, %v7052_v52 }
 0x5b5   : > { %v8420_v63 = vmax.f32 %v8328_v8, %v8330_v14  ;;  %8362 = vxpose.xlu1.b32.end [16/16] (narrow) %v8330_v14, 8 }
 0x5b6   : > { %v8199_v7 = vmul.f32 %v15144_v54, %v8165_v58  ;;  %v7747_v3 = vadd.f32 %v7697_v5, %v7493_v17  ;;  %v7748_v5 = vadd.f32 %v7699_v16, %v7494_v21 }
 0x5b7   : > { %8436 = vst.msk [vmem:[#allocation4 + $0x38] sm:$0xff] %vm5089_vm9, %v8420_v63  ;;  %v7450_v14 = vpop.f32.mrf.mxu3 }
 0x5b8   : > { %v8233_v53 = vadd.f32 %v15149_v55, %v8199_v7 }
 0x5ba   : > { %vm8265_vm11 = vcmp.gt.f32.partialorder %v8233_v53, 0.0  ;;  %v8299_v12 = vmul.f32 %v15158_v48, %v8233_v53  ;;  %v7008_v34 = vpop.f32.mrf.mxu2 }
 0x5bb   : > { %v8111_v20 = vpop.f32.mrf.mxu1  ;;  %v7054_v26 = vadd.f32 %v7008_v34, %v15070_v46 }
 0x5bc   : > { %v8166_v62 = vadd.f32 %v8111_v20, %v7744_v2  ;;  %v8331_v47 = vsel %vm8265_vm11, %v8233_v53, %v8299_v12  ;;  %v7704_v12 = vpop.f32.mrf.mxu0 }
 0x5bd   : > { %8379 = vxpose.xlu2.b32.start [1/16] (narrow) %v8331_v47, 8  ;;  %v7496_v4 = vadd.f32 %v7450_v14, %v7054_v26 }
 0x5be   : > { %v8200_v31 = vmul.f32 %v15144_v54, %v8166_v62  ;;  %v8451_v43 = vld [vmem:[#allocation4 + $0x30] ss:$2 sm:$0xff]  ;;  %v8467_v13 = vld [vmem:[#allocation4 + $0x31] ss:$2 sm:$0xff] }
 0x5bf   : > { %v8479_v28 = vmax.f32 %v8451_v43, %v8467_v13  ;;  %v7453_v23 = vpop.f32.mrf.mxu3 }
 0x5c0   : > { %v8234_v41 = vadd.f32 %v15149_v55, %v8200_v31  ;;  %v7495_v31 = vadd.f32 %v7448_v61, %v7053_v57  ;;  %v7750_v61 = vadd.f32 %v7704_v12, %v7496_v4 }
 0x5c1   : > { %vm8487_vm12 = vcmp.gt.f32.partialorder %v8479_v28, 0.0  ;;  %v8497_v8 = vmul.f32 %v15228_v19, %v8479_v28 }
 0x5c2   : > { %vm8266_vm2 = vcmp.gt.f32.partialorder %v8234_v41, 0.0  ;;  %v8300_v11 = vmul.f32 %v15158_v48, %v8234_v41  ;;  %v7011_v30 = vpop.f32.mrf.mxu2 }
 0x5c3   : > { %v8114_v0 = vpop.f32.mrf.mxu1  ;;  %v8505_v25 = vsel %vm8487_vm12, %v8479_v28, %v8497_v8 }
 0x5c4   : > { %v8167_v37 = vadd.f32 %v8114_v0, %v7745_v49  ;;  %8513 = vxpose.xlu0.b32.cont [4/8] (short) (narrow) %v8505_v25, 8  ;;  %v8332_v15 = vsel %vm8266_vm2, %v8234_v41, %v8300_v11  ;;  %v7749_v49 = vadd.f32 %v7702_v42, %v7495_v31  ;;  %v7707_v27 = vpop.f32.mrf.mxu0 }
 0x5c5   : > { %8380 = vxpose.xlu2.b32.cont [2/16] (narrow) %v8332_v15, 8 }
 0x5c6   : > { %v8201_v35 = vmul.f32 %v15144_v54, %v8167_v37 }
 0x5c7   : > { %v7455_v1 = vpop.f32.mrf.mxu3 }
 0x5c8   : > { %v8235_v22 = vadd.f32 %v15149_v55, %v8201_v35 }
 0x5ca   : > { %vm8267_vm13 = vcmp.gt.f32.partialorder %v8235_v22, 0.0  ;;  %v8301_v24 = vmul.f32 %v15158_v48, %v8235_v22  ;;  %v7013_v16 = vpop.f32.mrf.mxu2 }
 0x5cb   : > { %v8116_v45 = vpop.f32.mrf.mxu1 }
 0x5cc   : > { %v8168_v56 = vadd.f32 %v8116_v45, %v7746_v60  ;;  %v8333_v44 = vsel %vm8267_vm13, %v8235_v22, %v8301_v24  ;;  %v7055_v45 = vadd.f32 %v7011_v30, %v15082_v33  ;;  %v7056_v33 = vadd.f32 %v7013_v16, %v15092_v18 }
 0x5cd   : > { %8381 = vxpose.xlu2.b32.cont [3/16] (narrow) %v8333_v44, 8  ;;  %v8421_v59 = vmax.f32 %v8331_v47, %v8333_v44 }
 0x5ce   : > { %v8202_v6 = vmul.f32 %v15144_v54, %v8168_v56  ;;  %v7709_v56 = vpop.f32.mrf.mxu0 }
 0x5cf   : > { %8437 = vst.msk [vmem:[#allocation4 + $0x40] sm:$0xff] %vm5089_vm9, %v8421_v59  ;;  %v7497_v59 = vadd.f32 %v7453_v23, %v7055_v45 }
 0x5d0   : > { %v8236_v50 = vadd.f32 %v15149_v55, %v8202_v6 }
 0x5d1   : > { %v7751_v34 = vadd.f32 %v7707_v27, %v7497_v59 }
 0x5d2   : > { %vm8268_vm14 = vcmp.gt.f32.partialorder %v8236_v50, 0.0  ;;  %v8302_v58 = vmul.f32 %v15158_v48, %v8236_v50  ;;  %v7016_v6 = vpop.f32.mrf.mxu2 }
 0x5d3   : > { %v8119_v63 = vpop.f32.mrf.mxu1  ;;  %v7057_v18 = vadd.f32 %v7016_v6, %v15102_v38 }
 0x5d4   : > { %v8169_v10 = vadd.f32 %v8119_v63, %v7747_v3  ;;  %v8334_v39 = vsel %vm8268_vm14, %v8236_v50, %v8302_v58  ;;  %v7458_v50 = vpop.f32.mrf.mxu3 }
 0x5d5   : > { %v8422_v7 = vmax.f32 %v8332_v15, %v8334_v39  ;;  %8382 = vxpose.xlu2.b32.cont [4/16] (narrow) %v8334_v39, 8  ;;  %v7499_v57 = vadd.f32 %v7458_v50, %v7057_v18 }
 0x5d6   : > { %v8203_v53 = vmul.f32 %v15144_v54, %v8169_v10  ;;  %v7498_v10 = vadd.f32 %v7455_v1, %v7056_v33 }
 0x5d7   : > { %8438 = vst.msk [vmem:[#allocation4 + $0x48] sm:$0xff] %vm5089_vm9, %v8422_v7  ;;  %v7712_v7 = vpop.f32.mrf.mxu0 }
 0x5d8   : > { %v8237_v2 = vadd.f32 %v15149_v55, %v8203_v53 }
 0x5da   : > { %vm8269_vm15 = vcmp.gt.f32.partialorder %v8237_v2, 0.0  ;;  %v8303_v20 = vmul.f32 %v15158_v48, %v8237_v2  ;;  %v7018_v53 = vpop.f32.mrf.mxu2 }
 0x5db   : > { %v8121_v62 = vpop.f32.mrf.mxu1 }
 0x5dc   : > { %v8170_v47 = vadd.f32 %v8121_v62, %v7748_v5  ;;  %v8335_v32 = vsel %vm8269_vm15, %v8237_v2, %v8303_v20  ;;  %v7752_v2 = vadd.f32 %v7709_v56, %v7498_v10  ;;  %v7460_v5 = vpop.f32.mrf.mxu3 }
 0x5dd   : > { %8383 = vxpose.xlu2.b32.cont [5/16] (narrow) %v8335_v32, 8 }
 0x5de   : > { %v8204_v43 = vmul.f32 %v15144_v54, %v8170_v47  ;;  %v8453_v13 = vld [vmem:[#allocation4 + $0x40] ss:$2 sm:$0xff]  ;;  %v8469_v29 = vld [vmem:[#allocation4 + $0x41] ss:$2 sm:$0xff] }
 0x5df   : > { %v8480_v28 = vmax.f32 %v8453_v13, %v8469_v29  ;;  %v7714_v13 = vpop.f32.mrf.mxu0 }
 0x5e0   : > { %v8238_v41 = vadd.f32 %v15149_v55, %v8204_v43 }
 0x5e1   : > { %vm8488_vm0 = vcmp.gt.f32.partialorder %v8480_v28, 0.0  ;;  %v8498_v8 = vmul.f32 %v15228_v19, %v8480_v28 }
 0x5e2   : > { %vm8270_vm1 = vcmp.gt.f32.partialorder %v8238_v41, 0.0  ;;  %v8304_v11 = vmul.f32 %v15158_v48, %v8238_v41  ;;  %v7021_v38 = vpop.f32.mrf.mxu2 }
 0x5e3   : > { %v8124_v0 = vpop.f32.mrf.mxu1  ;;  %v8506_v25 = vsel %vm8488_vm0, %v8480_v28, %v8498_v8  ;;  %v7753_v28 = vadd.f32 %v7712_v7, %v7499_v57 }
 0x5e4   : > { %v8171_v37 = vadd.f32 %v8124_v0, %v7749_v49  ;;  %8514 = vxpose.xlu0.b32.cont [5/8] (short) (narrow) %v8506_v25, 8  ;;  %v8336_v15 = vsel %vm8270_vm1, %v8238_v41, %v8304_v11  ;;  %v7058_v11 = vadd.f32 %v7018_v53, %v15111_v51  ;;  %v7463_v25 = vpop.f32.mrf.mxu3 }
 0x5e5   : > { %8384 = vxpose.xlu2.b32.cont [6/16] (narrow) %v8336_v15, 8 }
 0x5e6   : > { %v8205_v35 = vmul.f32 %v15144_v54, %v8171_v37  ;;  %v7500_v26 = vadd.f32 %v7460_v5, %v7058_v11 }
 0x5e8   : > { %v8239_v22 = vadd.f32 %v15149_v55, %v8205_v35  ;;  %v7754_v16 = vadd.f32 %v7714_v13, %v7500_v26  ;;  %v7717_v35 = vpop.f32.mrf.mxu0 }
 0x5ea   : > { %vm8271_vm8 = vcmp.gt.f32.partialorder %v8239_v22, 0.0  ;;  %v8305_v60 = vmul.f32 %v15158_v48, %v8239_v22 }
 0x5eb   : > { %v8126_v24 = vpop.f32.mrf.mxu1 }
 0x5ec   : > { %v8172_v9 = vadd.f32 %v8126_v24, %v7750_v61  ;;  %v8337_v46 = vsel %vm8271_vm8, %v8239_v22, %v8305_v60  ;;  %v7059_v22 = vadd.f32 %v7021_v38, %v15116_v40  ;;  %v7023_v60 = vpop.f32.mrf.mxu2 }
 0x5ed   : > { %v8423_v44 = vmax.f32 %v8335_v32, %v8337_v46  ;;  %8385 = vxpose.xlu2.b32.cont [7/16] (narrow) %v8337_v46, 8  ;;  %v7465_v46 = vpop.f32.mrf.mxu3  ;;  %v7060_v40 = vadd.f32 %v7023_v60, %v15125_v36  ;;  %v16419_v36 = vld [vmem:[#allocation89_spill] sm:$0xff] }
 0x5ee   : > { %v8206_v17 = vmul.f32 %v15144_v54, %v8172_v9  ;;  %v7501_v45 = vadd.f32 %v7463_v25, %v7059_v22 }
 0x5ef   : > { %8439 = vst.msk [vmem:[#allocation4 + $0x50] sm:$0xff] %vm5089_vm9, %v8423_v44 }
 0x5f0   : > { %v8240_v42 = vadd.f32 %v15149_v55, %v8206_v17  ;;  %v7755_v44 = vadd.f32 %v7717_v35, %v7501_v45  ;;  %v7719_v50 = vpop.f32.mrf.mxu0 }
 0x5f2   : > { %vm8272_vm3 = vcmp.gt.f32.partialorder %v8240_v42, 0.0  ;;  %v8306_v3 = vmul.f32 %v15158_v48, %v8240_v42 }
 0x5f3   : > { %v8129_v58 = vpop.f32.mrf.mxu1 }
 0x5f4   : > { %v8173_v14 = vadd.f32 %v8129_v58, %v7751_v34  ;;  %v8338_v63 = vsel %vm8272_vm3, %v8240_v42, %v8306_v3  ;;  %v7502_v3 = vadd.f32 %v7465_v46, %v7060_v40  ;;  %v7026_v33 = vpop.f32.mrf.mxu2 }
 0x5f5   : > { %v8424_v52 = vmax.f32 %v8336_v15, %v8338_v63  ;;  %8386 = vxpose.xlu2.b32.cont [8/16] (narrow) %v8338_v63, 8  ;;  %v7468_v63 = vpop.f32.mrf.mxu3  ;;  %v7061_v7 = vadd.f32 %v7026_v33, %v16419_v36 }
 0x5f6   : > { %v8207_v39 = vmul.f32 %v15144_v54, %v8173_v14 }
 0x5f7   : > { %8440 = vst.msk [vmem:[#allocation4 + $0x58] sm:$0xff] %vm5089_vm9, %v8424_v52  ;;  %v7756_v52 = vadd.f32 %v7719_v50, %v7502_v3 }
 0x5f8   : > { %v8241_v21 = vadd.f32 %v15149_v55, %v8207_v39 }
 0x5fa   : > { %vm8273_vm4 = vcmp.gt.f32.partialorder %v8241_v21, 0.0  ;;  %v8307_v12 = vmul.f32 %v15158_v48, %v8241_v21 }
 0x5fb   : > { %v8131_v20 = vpop.f32.mrf.mxu1 }
 0x5fc   : > { %v8174_v30 = vadd.f32 %v8131_v20, %v7752_v2  ;;  %v8339_v62 = vsel %vm8273_vm4, %v8241_v21, %v8307_v12  ;;  %v7722_v2 = vpop.f32.mrf.mxu0  ;;  %v7503_v12 = vadd.f32 %v7468_v63, %v7061_v7 }
 0x5fd   : > { %8387 = vxpose.xlu2.b32.cont [9/16] (narrow) %v8339_v62, 8 }
 0x5fe   : > { %v8208_v47 = vmul.f32 %v15144_v54, %v8174_v30  ;;  %v8455_v32 = vld [vmem:[#allocation4 + $0x50] ss:$2 sm:$0xff]  ;;  %v8471_v23 = vld [vmem:[#allocation4 + $0x51] ss:$2 sm:$0xff] }
 0x5ff   : > { %v8481_v31 = vmax.f32 %v8455_v32, %v8471_v23  ;;  %v10470_v32 = vld [vmem:[%s15510_s4 + $0x5] ss:$0 sm:$0xff] }
 0x600   : > { %v8242_v43 = vadd.f32 %v15149_v55, %v8208_v47  ;;  %v7757_v47 = vadd.f32 %v7722_v2, %v7503_v12 }
 0x601   : > { %vm8489_vm7 = vcmp.gt.f32.partialorder %v8481_v31, 0.0  ;;  %v8499_v29 = vmul.f32 %v15228_v19, %v8481_v31 }
 0x602   : > { %vm8274_vm5 = vcmp.gt.f32.partialorder %v8242_v43, 0.0  ;;  %v8308_v41 = vmul.f32 %v15158_v48, %v8242_v43 }
 0x603   : > { %v8134_v8 = vpop.f32.mrf.mxu1  ;;  %v8507_v49 = vsel %vm8489_vm7, %v8481_v31, %v8499_v29  ;;  %v7470_v31 = vpop.f32.mrf.mxu3  ;;  %v16420_v29 = vld [vmem:[#allocation116_spill] sm:$0xff] }
 0x604   : > { %v8175_v27 = vadd.f32 %v8134_v8, %v7753_v28  ;;  %8515 = vxpose.xlu0.b32.cont [6/8] (short) (narrow) %v8507_v49, 8  ;;  %v8340_v0 = vsel %vm8274_vm5, %v8242_v43, %v8308_v41  ;;  %v7724_v11 = vpop.f32.mrf.mxu0 }
 0x605   : > { %8388 = vxpose.xlu2.b32.cont [10/16] (narrow) %v8340_v0, 8 }
 0x606   : > { %v8209_v37 = vmul.f32 %v15144_v54, %v8175_v27 }
 0x608   : > { %v8243_v15 = vadd.f32 %v15149_v55, %v8209_v37 }
 0x60a   : > { %vm8275_vm10 = vcmp.gt.f32.partialorder %v8243_v15, 0.0  ;;  %v8309_v4 = vmul.f32 %v15158_v48, %v8243_v15 }
 0x60b   : > { %v8136_v1 = vpop.f32.mrf.mxu1 }
 0x60c   : > { %v8176_v61 = vadd.f32 %v8136_v1, %v7754_v16  ;;  %v8341_v51 = vsel %vm8275_vm10, %v8243_v15, %v8309_v4 }
 0x60d   : > { %v8425_v24 = vmax.f32 %v8339_v62, %v8341_v51  ;;  %8389 = vxpose.xlu2.b32.cont [11/16] (narrow) %v8341_v51, 8  ;;  %v7028_v62 = vpop.f32.mrf.mxu2  ;;  %v8363_v51 = vpop.trf.xlu1 }
 0x60e   : > { %v8210_v9 = vmul.f32 %v15144_v54, %v8176_v61  ;;  %v7062_v28 = vadd.f32 %v7028_v62, %v16420_v29  ;;  %8411 = vst [vmem:[%s255_s18] sm:$0xff] %v8363_v51 }
 0x60f   : > { %8441 = vst.msk [vmem:[#allocation4 + $0x60] sm:$0xff] %vm5089_vm9, %v8425_v24 }
 0x610   : > { %v8244_v56 = vadd.f32 %v15149_v55, %v8210_v9  ;;  %v7504_v8 = vadd.f32 %v7470_v31, %v7062_v28 }
 0x612   : > { %vm8276_vm6 = vcmp.gt.f32.partialorder %v8244_v56, 0.0  ;;  %v8310_v59 = vmul.f32 %v15158_v48, %v8244_v56 }
 0x613   : > { %v8139_v17 = vpop.f32.mrf.mxu1 }
 0x614   : > { %v8177_v6 = vadd.f32 %v8139_v17, %v7755_v44  ;;  %v8342_v42 = vsel %vm8276_vm6, %v8244_v56, %v8310_v59 }
 0x615   : > { %v8426_v34 = vmax.f32 %v8340_v0, %v8342_v42  ;;  %8390 = vxpose.xlu2.b32.cont [12/16] (narrow) %v8342_v42, 8  ;;  %v7758_v0 = vadd.f32 %v7724_v11, %v7504_v8 }
 0x616   : > { %v8211_v58 = vmul.f32 %v15144_v54, %v8177_v6  ;;  %v10468_v54 = vld [vmem:[%s15510_s4 + $0x3] ss:$0 sm:$0xff] }
 0x617   : > { %8442 = vst.msk [vmem:[#allocation4 + $0x68] sm:$0xff] %vm5089_vm9, %v8426_v34 }
 0x618   : > { %v8245_v14 = vadd.f32 %v15149_v55, %v8211_v58 }
 0x61a   : > { %vm8277_vm11 = vcmp.gt.f32.partialorder %v8245_v14, 0.0  ;;  %v8311_v10 = vmul.f32 %v15158_v48, %v8245_v14  ;;  %v10469_v48 = vld [vmem:[%s15510_s4 + $0x4] ss:$0 sm:$0xff] }
 0x61b   : > { %v8141_v39 = vpop.f32.mrf.mxu1 }
 0x61c   : > { %v8178_v21 = vadd.f32 %v8141_v39, %v7756_v52  ;;  %v8343_v53 = vsel %vm8277_vm11, %v8245_v14, %v8311_v10 }
 0x61d   : > { %8391 = vxpose.xlu2.b32.cont [13/16] (narrow) %v8343_v53, 8 }
 0x61e   : > { %v8212_v5 = vmul.f32 %v10468_v54, %v8178_v21  ;;  %v8457_v20 = vld [vmem:[#allocation4 + $0x60] ss:$2 sm:$0xff]  ;;  %v8473_v55 = vld [vmem:[#allocation4 + $0x61] ss:$2 sm:$0xff] }
 0x61f   : > { %v8482_v18 = vmax.f32 %v8457_v20, %v8473_v55 }
 0x620   : > { %v8246_v30 = vadd.f32 %v10469_v48, %v8212_v5 }
 0x621   : > { %vm8490_vm12 = vcmp.gt.f32.partialorder %v8482_v18, 0.0  ;;  %v8500_v57 = vmul.f32 %v15228_v19, %v8482_v18 }
 0x622   : > { %vm8278_vm2 = vcmp.gt.f32.partialorder %v8246_v30, 0.0  ;;  %v8312_v23 = vmul.f32 %v10470_v32, %v8246_v30 }
 0x623   : > { %v8144_v43 = vpop.f32.mrf.mxu1  ;;  %v8508_v13 = vsel %vm8490_vm12, %v8482_v18, %v8500_v57 }
 0x624   : > { %v8179_v41 = vadd.f32 %v8144_v43, %v7757_v47  ;;  %8516 = vxpose.xlu0.b32.cont [7/8] (short) (narrow) %v8508_v13, 8  ;;  %v8344_v38 = vsel %vm8278_vm2, %v8246_v30, %v8312_v23 }
 0x625   : > { %8392 = vxpose.xlu2.b32.cont [14/16] (narrow) %v8344_v38, 8 }
 0x626   : > { %v8213_v49 = vmul.f32 %v10468_v54, %v8179_v41 }
 0x628   : > { %v8247_v27 = vadd.f32 %v10469_v48, %v8213_v49 }
 0x62a   : > { %vm8279_vm13 = vcmp.gt.f32.partialorder %v8247_v27, 0.0  ;;  %v8313_v25 = vmul.f32 %v10470_v32, %v8247_v27 }
 0x62b   : > { %v8146_v26 = vpop.f32.mrf.mxu1 }
 0x62c   : > { %v8180_v37 = vadd.f32 %v8146_v26, %v7758_v0  ;;  %v8345_v15 = vsel %vm8279_vm13, %v8247_v27, %v8313_v25 }
 0x62d   : > { %v8427_v16 = vmax.f32 %v8343_v53, %v8345_v15  ;;  %8393 = vxpose.xlu2.b32.cont [15/16] (narrow) %v8345_v15, 8 }
 0x62e   : > { %v8214_v4 = vmul.f32 %v10468_v54, %v8180_v37 }
 0x62f   : > { %8443 = vst.msk [vmem:[#allocation4 + $0x70] sm:$0xff] %vm5089_vm9, %v8427_v16 }
 0x630   : > { %v8248_v35 = vadd.f32 %v10469_v48, %v8214_v4 }
 0x632   : > { %vm8280_vm14 = vcmp.gt.f32.partialorder %v8248_v35, 0.0  ;;  %v8314_v1 = vmul.f32 %v10470_v32, %v8248_v35 }
 0x634   : > { %v8346_v22 = vsel %vm8280_vm14, %v8248_v35, %v8314_v1 }
 0x635   : > { %v8428_v61 = vmax.f32 %v8344_v38, %v8346_v22  ;;  %8394 = vxpose.xlu2.b32.end [16/16] (narrow) %v8346_v22, 8 }
 0x637   : > { %8444 = vst.msk [vmem:[#allocation4 + $0x78] sm:$0xff] %vm5089_vm9, %v8428_v61 }
 0x63e   : > { %v8459_v60 = vld [vmem:[#allocation4 + $0x70] ss:$2 sm:$0xff]  ;;  %v8475_v24 = vld [vmem:[#allocation4 + $0x71] ss:$2 sm:$0xff] }
 0x63f   : > { %v8483_v45 = vmax.f32 %v8459_v60, %v8475_v24 }
 0x641   : > { %vm8491_vm15 = vcmp.gt.f32.partialorder %v8483_v45, 0.0  ;;  %v8501_v9 = vmul.f32 %v15228_v19, %v8483_v45 }
 0x643   : > { %v8509_v46 = vsel %vm8491_vm15, %v8483_v45, %v8501_v9 }
 0x644   : > { %8517 = vxpose.xlu0.b32.end [8/8] (short) (narrow) %v8509_v46, 8 }
 0x656   : > { %v8395_v56 = vpop.trf.xlu2 }
 0x657   : > { %8412 = vst [vmem:[%s255_s18 + $0x8] sm:$0xff] %v8395_v56 }
 0x658   : > { %10498 = shalt.err (!%p10495_p3)
}
 0x659   : > { %10408 = dma.vmem_to_hbm [thread:$0]  (%p10642_p5), %s8578_s29, 256, %s8580_s15, %s8550_s9   ;;  %vm8542_vm9 = vcmask 523264  }
 0x65a   : > { %s8676_s18 = sshll.u32 %s15453_s16, 3  ;;  %s9402_s20 = sshll.u32 %s10625_s25, 3 }
 0x65b   : > { %s8560_s12 = scalar_lea.hbm %s15511_s5, %s9402_s20  ;;  %s248_s13 = scalar_lea.vmem [#allocation5], %s8676_s18 }
 0x65c   : > { %s8562_s17 = sshll.u32 %s248_s13, 4  ;;  %s8564_s10 = sshll.u32 %s8560_s12, 4  ;;  %s8563_s17 = int_to_ptr.vmem [resolvable:$true] %s8562_s17  ;;  %s8565_s10 = int_to_ptr.hbm [resolvable:$true] %s8564_s10 }
 0x65d   : > { %s8545_s11 = scalar_lea.sflag [#allocation6], %s15453_s16  ;;  %s10513_s14 = sshra.s32 %s8565_s10, 4  ;;  %s10514_s14 = int_to_ptr.hbm [resolvable:$true] %s10513_s14 }
 0x65e   : > { %s10515_s19 = scalar_lea.hbm %s10514_s14, 8  ;;  %s10519_s15 = scalar_lea.hbm %s15511_s5, 16 }
 0x65f   : > { %p10516_p4 = scmp.ne.s32.totalorder %s10514_s14, %s10515_s19  ;;  %p10520_p9 = scmp.lt.s32.totalorder %s10514_s14, %s15511_s5 }
 0x660   : > { %p10521_p10 = scmp.lt.s32.totalorder %s10519_s15, %s10515_s19 }
 0x661   : > { %p10517_p7 = pnand %p10516_p4, %p10642_p5 }
 0x662   : > { %p10522_p11 = por %p10521_p10, %p10520_p9 }
 0x663   : > { %p10518_p8 = pneg %p10517_p7 }
 0x665   : > { %p10523_p12 = pnand %p10522_p11, %p10518_p8 }
 0x6b0   : > { %v8526_v19 = vpop.trf.xlu0 }
 0x6b1   : > { %8543 = vst.msk [vmem:[%s248_s13] sm:$0xff] %vm8542_vm9, %v8526_v19 }
 0x6b2   : > { %10526 = shalt.err (!%p10523_p12)
}
 0x6b3   : > { %10407 = dma.vmem_to_hbm [thread:$0]  (%p10642_p5), %s8563_s17, 128, %s8565_s10, %s8545_s11  }
 0x6b4 PF: > { %p10418_p13 = scmp.ge.s32.totalorder %s10565_s24, 2  ;;  %s8591_s16 = sand.u32 1, %s10553_s21  }
 0x6b5   : > { %s8592_s20 = scalar_lea.sflag [#allocation6], %s8591_s16 }
 0x6b6   : > { %p10412_p0 = pnand %p10418_p13, %p10646_p6 }
 0x6b8   : > { %p10413_p1 = pneg %p10412_p0 }
 0x6ba   : > { %10544 = dma.done.wait (%p10413_p1), %s8592_s20, 128  }
 0x6bb   : > { %10546 = vsyncadd (%p10413_p1), %s8592_s20, 4294967168  ;;  %s8602_s26 = scalar_lea.sflag [#allocation8], %s8591_s16 }
 0x6bc   : > { %10548 = dma.done.wait (%p10413_p1), %s8602_s26, 256  }
 0x6bd   : > { %10550 = vsyncadd (%p10413_p1), %s8602_s26, 4294967040  ;;  %p20_p5 = scmp.ge.s32.totalorder %s10629_s27, 4   ;;  %s16421_s21 = smov %s10557_s22 }
 0x6be   : > { %s16422_s22 = smov %s10561_s23  ;;  %s16423_s23 = smov %s10640_s30 }
 0x6bf   : > { %s16424_s24 = smov %s10629_s27  ;;  %22 = sbr.rel (!%p20_p5) target bundleno = 5 (0x5), region = 124 }
 0x6c4   :  { %8608 = vsyncpa [#allocation6], 1 }
 0x6c5   :  { %8610 = vsyncpa [#allocation6 + $0x1], 1 }
 0x6c6   :  { %8611 = vsyncpa [#allocation8], 1 }
 0x6c7   :  { %8613 = vsyncpa [#allocation8 + $0x1], 1 }

</bundles_post_ra>
